<compile_context>
chip_gen: v7x
topology: tpu7x:2x2x1
jax: 0.10.0
libtpu: 0.0.40
codegen_flags: <defaults>
</compile_context>

<pallas_src>
import functools

import jax
import jax.numpy as jnp
from jax.experimental import pallas as pl
from jax.experimental.pallas import tpu as pltpu

BN_EPS = 1e-5                 # PyTorch BatchNorm2d default eps
MM_BLOCK_M_CAP = 512          # max rows per M tile for the conv matmul kernel
MM_BLOCK_K = 1024             # K tile size (used only when K is a larger multiple)


def _default_vmem_limit():
    # Generation-gated VMEM budget: ~75% of physical (96 MiB on v5e/v6e's 128 MiB,
    # 48 MiB on v7x's 64 MiB).  Safe 48 MiB fallback if the query is unavailable.
    try:
        cap = pltpu.get_tpu_info().vmem_capacity_bytes
        return int(min(cap * 3 // 4, 96 << 20))
    except Exception:  # pragma: no cover - conservative fallback
        return 48 << 20


VMEM_LIMIT = _default_vmem_limit()


def _round_up(x, m):
    return ((x + m - 1) // m) * m


def _pick_block_m(m, cap=MM_BLOCK_M_CAP):
    """Adaptive M tile: <= cap, multiple of 8, minimal padding."""
    tiles = max(1, -(-m // cap))
    bm = _round_up(-(-m // tiles), 8)
    return bm, bm * tiles


def _pick_block_k(k):
    """Tile K only when it is a larger multiple of MM_BLOCK_K (deep layers)."""
    if k > MM_BLOCK_K and k % MM_BLOCK_K == 0:
        return MM_BLOCK_K
    return k


# --------------------------------------------------------------------------
# Fused conv matmul kernel:
#   A(bf16 patches) -> [*scale + shift] -> [lrelu|relu] -> bf16 @ B(bf16) -> f32 acc
#   -> (+bias) -> [tanh] -> bf16/f32 store   (+ optional masked BN stats epilogue)
# --------------------------------------------------------------------------
def _mm_kernel(a_ref, w_ref, bias_ref, sc_ref, sh_ref, *rest,
               act_in, act_out, compute_stats, m_real, bm, out_dtype):
    if compute_stats:
        o_ref, s_ref, ss_ref, acc_ref = rest
    else:
        o_ref, acc_ref = rest

    i = pl.program_id(0)
    k = pl.program_id(1)
    nk = pl.num_programs(1)

    # Prologue: deferred BatchNorm (per-K-column scale/shift) + activation.
    a = a_ref[...].astype(jnp.float32)
    a = a * sc_ref[...] + sh_ref[...]
    if act_in == "lrelu":
        a = jnp.where(a > 0, a, 0.2 * a)
    elif act_in == "relu":
        a = jnp.maximum(a, 0.0)
    contrib = jnp.dot(a.astype(jnp.bfloat16), w_ref[...],
                      preferred_element_type=jnp.float32)

    @pl.when(k == 0)
    def _():
        acc_ref[...] = contrib

    @pl.when(k != 0)
    def _():
        acc_ref[...] = acc_ref[...] + contrib

    @pl.when(k == nk - 1)
    def _():
        acc = acc_ref[...] + bias_ref[...]
        if act_out == "tanh":
            acc = jnp.tanh(acc)
        o_ref[...] = acc.astype(out_dtype)

        if compute_stats:
            # Fused BatchNorm statistics on the (pre-norm) conv output; padded rows
            # are masked out so padding never pollutes the batch statistics.
            row = i * bm + jax.lax.broadcasted_iota(jnp.int32, (bm, 1), 0)
            accm = jnp.where(row < m_real, acc, 0.0)
            s = jnp.sum(accm, axis=0, keepdims=True)
            ss = jnp.sum(accm * accm, axis=0, keepdims=True)

            @pl.when(i == 0)
            def _():
                s_ref[...] = s
                ss_ref[...] = ss

            @pl.when(i != 0)
            def _():
                s_ref[...] = s_ref[...] + s
                ss_ref[...] = ss_ref[...] + ss


def matmul_fused(a_bf16, w_bf16, bias_f32, scale_f32, shift_f32, *,
                 act_in="none", act_out="none", out_dtype=jnp.bfloat16,
                 compute_stats=False):
    m, k = a_bf16.shape
    k2, n = w_bf16.shape
    assert k == k2, (k, k2)
    assert not (compute_stats and act_out != "none")

    bm, mp = _pick_block_m(m)
    bk = _pick_block_k(k)
    if mp != m:
        a_bf16 = jnp.pad(a_bf16, ((0, mp - m), (0, 0)))
    mt, kt = mp // bm, k // bk

    kernel = functools.partial(_mm_kernel, act_in=act_in, act_out=act_out,
                               compute_stats=compute_stats, m_real=m, bm=bm,
                               out_dtype=out_dtype)

    out_shape = [jax.ShapeDtypeStruct((mp, n), out_dtype)]
    out_specs = [pl.BlockSpec((bm, n), lambda i, kk: (i, 0))]
    if compute_stats:
        out_shape += [jax.ShapeDtypeStruct((1, n), jnp.float32)] * 2
        out_specs += [pl.BlockSpec((1, n), lambda i, kk: (0, 0)),
                      pl.BlockSpec((1, n), lambda i, kk: (0, 0))]

    res = pl.pallas_call(
        kernel,
        out_shape=tuple(out_shape) if compute_stats else out_shape[0],
        grid=(mt, kt),
        in_specs=[
            pl.BlockSpec((bm, bk), lambda i, kk: (i, kk)),
            pl.BlockSpec((bk, n), lambda i, kk: (kk, 0)),
            pl.BlockSpec((1, n), lambda i, kk: (0, 0)),
            pl.BlockSpec((1, bk), lambda i, kk: (0, kk)),
            pl.BlockSpec((1, bk), lambda i, kk: (0, kk)),
        ],
        out_specs=tuple(out_specs) if compute_stats else out_specs[0],
        scratch_shapes=[pltpu.VMEM((bm, n), jnp.float32)],
        compiler_params=pltpu.CompilerParams(
            dimension_semantics=("arbitrary" if compute_stats else "parallel",
                                 "arbitrary"),
            vmem_limit_bytes=VMEM_LIMIT,
        ),
    )(a_bf16,
      w_bf16,
      bias_f32.reshape(1, n).astype(jnp.float32),
      scale_f32.reshape(1, k).astype(jnp.float32),
      shift_f32.reshape(1, k).astype(jnp.float32))

    if compute_stats:
        out, s, ss = res
        out = out[:m] if mp != m else out
        return out, s[0], ss[0]
    out = res
    return out[:m] if mp != m else out


# --------------------------------------------------------------------------
# Per-channel batch statistics (for the up-path BatchNorm): row-tiled Pallas pass
# over the bf16 activation, lane-packed so the lane width is >= 128 where possible.
# --------------------------------------------------------------------------
def _stats_kernel(x_ref, s_ref, ss_ref):
    x = x_ref[...].astype(jnp.float32)
    s = jnp.sum(x, axis=0, keepdims=True)
    ss = jnp.sum(x * x, axis=0, keepdims=True)

    @pl.when(pl.program_id(0) == 0)
    def _():
        s_ref[...] = s
        ss_ref[...] = ss

    @pl.when(pl.program_id(0) != 0)
    def _():
        s_ref[...] = s_ref[...] + s
        ss_ref[...] = ss_ref[...] + ss


def channel_stats(x):
    """Per-channel mean and biased variance over N,H,W of an NHWC tensor."""
    n, h, w, c = x.shape
    r = n * h * w
    g = 1
    while g * 2 * c <= 256 and r % (g * 2) == 0:   # pack rows to keep lanes dense
        g *= 2
    rows = r // g
    xr = x.reshape(rows, g * c)
    rt = min(1024, _round_up(rows, 8))
    rp = _round_up(rows, rt)
    if rp != rows:
        xr = jnp.pad(xr, ((0, rp - rows), (0, 0)))     # zero rows -> zero sums
    s, ss = pl.pallas_call(
        _stats_kernel,
        out_shape=(jax.ShapeDtypeStruct((1, g * c), jnp.float32),
                   jax.ShapeDtypeStruct((1, g * c), jnp.float32)),
        grid=(rp // rt,),
        in_specs=[pl.BlockSpec((rt, g * c), lambda i: (i, 0))],
        out_specs=(pl.BlockSpec((1, g * c), lambda i: (0, 0)),
                   pl.BlockSpec((1, g * c), lambda i: (0, 0))),
        compiler_params=pltpu.CompilerParams(
            dimension_semantics=("arbitrary",),
            vmem_limit_bytes=VMEM_LIMIT,
        ),
    )(xr)
    s = s.reshape(g, c).sum(axis=0)
    ss = ss.reshape(g, c).sum(axis=0)
    mean = s / r
    var = jnp.maximum(ss / r - mean * mean, 0.0)   # clamp against f32 cancellation
    return mean, var


def _bn_scale_shift(mean, var, gamma, beta):
    scale = gamma * jax.lax.rsqrt(var + BN_EPS)
    shift = beta - mean * scale
    return scale, shift


# --------------------------------------------------------------------------
# Conv glue: patch extraction directly from the (never-concatenated) skip parts.
# --------------------------------------------------------------------------
def conv_down(parts, scales, shifts, w_mat, *, act_in, bn=None,
              out_dtype=jnp.bfloat16):
    """[scale/shift] -> [LeakyReLU] -> Conv2d(4,2,1) [-> fused BN stats]."""
    n, h, w, _ = parts[0].shape
    ho, wo = h // 2, w // 2
    padded = [jnp.pad(p, ((0, 0), (1, 1), (1, 1), (0, 0))) for p in parts]
    cols = []
    for kh in range(4):
        for kw in range(4):
            for xp in padded:
                cols.append(xp[:, kh:kh + 2 * ho - 1:2, kw:kw + 2 * wo - 1:2, :])
    patches = jnp.concatenate(cols, axis=-1).reshape(n * ho * wo, -1)
    sc = jnp.tile(jnp.concatenate(scales), 16)
    sh = jnp.tile(jnp.concatenate(shifts), 16)
    nout = w_mat.shape[1]
    bias = jnp.zeros((nout,), jnp.float32)           # BN'd convs have no bias
    if bn is None:
        y = matmul_fused(patches, w_mat, bias, sc, sh,
                         act_in=act_in, out_dtype=out_dtype)
        return y.reshape(n, ho, wo, nout), None, None
    y, s, ss = matmul_fused(patches, w_mat, bias, sc, sh,
                            act_in=act_in, out_dtype=out_dtype,
                            compute_stats=True)
    cnt = n * ho * wo
    mean = s / cnt
    var = jnp.maximum(ss / cnt - mean * mean, 0.0)
    y_scale, y_shift = _bn_scale_shift(mean, var, bn["g"], bn["b"])
    return y.reshape(n, ho, wo, nout), y_scale, y_shift


def conv_transpose(parts, scales, shifts, w_mat, bias4, cout, *, act_in,
                   act_out="none", out_dtype=jnp.bfloat16):
    """[scale/shift] -> ReLU -> ConvTranspose2d(4,2,1) (+bias, +tanh).

    Sub-pixel decomposition: one matmul on 2x2 patches of the zero-padded input with
    a (4*Cin, 4*Cout) phase-stacked weight, then interleave the 4 output phases.
    """
    n, h, w, _ = parts[0].shape
    padded = [jnp.pad(p, ((0, 0), (1, 1), (1, 1), (0, 0))) for p in parts]
    cols = []
    for d in range(2):
        for e in range(2):
            for xp in padded:
                cols.append(xp[:, d:d + h + 1, e:e + w + 1, :])
    patches = jnp.concatenate(cols, axis=-1).reshape(n * (h + 1) * (w + 1), -1)
    sc = jnp.tile(jnp.concatenate(scales), 4)
    sh = jnp.tile(jnp.concatenate(shifts), 4)
    q = matmul_fused(patches, w_mat, bias4, sc, sh,
                     act_in=act_in, act_out=act_out, out_dtype=out_dtype)
    q = q.reshape(n, h + 1, w + 1, 4 * cout)
    phases = []
    for a in range(2):
        for b in range(2):
            ph = 2 * a + b
            phases.append(q[:, a:a + h, b:b + w, ph * cout:(ph + 1) * cout])
    t = jnp.stack(phases, axis=3).reshape(n, h, w, 2, 2, cout)
    return jnp.transpose(t, (0, 1, 3, 2, 4, 5)).reshape(n, 2 * h, 2 * w, cout)


# --------------------------------------------------------------------------
# Parameters (PyTorch layouts -> matmul matrices, deterministic pix2pix-style init)
# --------------------------------------------------------------------------
def _conv_weight_mat(key, cout, cin):
    w = 0.02 * jax.random.normal(key, (cout, cin, 4, 4), jnp.float32)   # OIHW
    # (kh, kw, cin, cout) matches im2col patch ordering (kh, kw, ci)
    return jnp.transpose(w, (2, 3, 1, 0)).reshape(16 * cin, cout).astype(jnp.bfloat16)


def _convT_weight_mat(key, cin, cout):
    w = 0.02 * jax.random.normal(key, (cin, cout, 4, 4), jnp.float32)   # (Cin,Cout,kH,kW)
    phase_blocks = []
    for a in range(2):
        for b in range(2):
            # output phase (a,b): window row d / col e uses tap kh=3-a-2d, kw=3-b-2e
            taps = [w[:, :, 3 - a - 2 * d, 3 - b - 2 * e]
                    for d in range(2) for e in range(2)]
            phase_blocks.append(jnp.concatenate(taps, axis=0))          # (4*Cin, Cout)
    return jnp.concatenate(phase_blocks, axis=1).astype(jnp.bfloat16)   # (4*Cin, 4*Cout)


def _bn_params(c):
    return {"g": jnp.ones((c,), jnp.float32), "b": jnp.zeros((c,), jnp.float32)}


def _unet_block_params(key, outer_nc, inner_nc, input_nc=None, submodule=None,
                       outermost=False, innermost=False):
    if input_nc is None:
        input_nc = outer_nc
    kd, ku = jax.random.split(key, 2)
    p = {"outermost": outermost, "innermost": innermost,
         "outer_nc": outer_nc, "inner_nc": inner_nc, "sub": submodule}
    # downconv: Conv2d(input_nc, inner_nc, 4, 2, 1, bias=False)   (BatchNorm -> no bias)
    p["down_w"] = _conv_weight_mat(kd, inner_nc, input_nc)
    # upconv: ConvTranspose2d(up_in, outer_nc, 4, 2, 1); bias only for outermost,
    # initialized to zero (pix2pix init_weights convention).
    up_in = inner_nc if innermost else inner_nc * 2
    p["up_w"] = _convT_weight_mat(ku, up_in, outer_nc)
    p["up_b"] = jnp.zeros((4 * outer_nc,), jnp.float32)
    if not (outermost or innermost):
        p["bn_down"] = _bn_params(inner_nc)
    if not outermost:
        p["bn_up"] = _bn_params(outer_nc)
    return p


def init_unet_params(key, input_nc=3, output_nc=3, num_downs=5, ngf=64):
    keys = iter(jax.random.split(key, num_downs))
    blk = _unet_block_params(next(keys), ngf * 8, ngf * 8, innermost=True)
    for _ in range(num_downs - 5):
        blk = _unet_block_params(next(keys), ngf * 8, ngf * 8, submodule=blk)
    blk = _unet_block_params(next(keys), ngf * 4, ngf * 8, submodule=blk)
    blk = _unet_block_params(next(keys), ngf * 2, ngf * 4, submodule=blk)
    blk = _unet_block_params(next(keys), ngf, ngf * 2, submodule=blk)
    blk = _unet_block_params(next(keys), output_nc, ngf, input_nc=input_nc,
                             submodule=blk, outermost=True)
    return blk


# --------------------------------------------------------------------------
# Forward pass (mirrors UnetSkipConnectionBlock.forward recursion).
# Activations travel as (list of raw bf16 NHWC parts, per-part BN scale, shift);
# the concat of torch.cat([x, model(x)], 1) is virtual (list append).
# --------------------------------------------------------------------------
def _block_forward(p, xs, xsc, xsh):
    outermost, innermost = p["outermost"], p["innermost"]
    inner_nc, cout = p["inner_nc"], p["outer_nc"]

    # down: [LeakyReLU(0.2)] -> Conv(4,2,1) -> [BN (stats fused, apply deferred)]
    d, d_sc, d_sh = conv_down(
        xs, xsc, xsh, p["down_w"],
        act_in="none" if outermost else "lrelu",
        bn=p.get("bn_down"))
    if d_sc is None:
        d_sc = jnp.ones((inner_nc,), jnp.float32)
        d_sh = jnp.zeros((inner_nc,), jnp.float32)

    # submodule
    if innermost:
        mid, mid_sc, mid_sh = [d], [d_sc], [d_sh]
    else:
        mid, mid_sc, mid_sh = _block_forward(p["sub"], [d], [d_sc], [d_sh])

    # up: ReLU -> ConvT(4,2,1) (+bias,+tanh if outermost) -> [BN (apply deferred)]
    u = conv_transpose(mid, mid_sc, mid_sh, p["up_w"], p["up_b"], cout,
                       act_in="relu",
                       act_out="tanh" if outermost else "none",
                       out_dtype=jnp.float32 if outermost else jnp.bfloat16)
    if outermost:
        return u

    mean, var = channel_stats(u)
    u_sc, u_sh = _bn_scale_shift(mean, var, p["bn_up"]["g"], p["bn_up"]["b"])
    # torch.cat([x, model(x)], 1): virtual concat of parts + their BN scale/shift.
    return xs + [u], xsc + [u_sc], xsh + [u_sh]


def unet_forward(params, x_nchw):
    x = jnp.transpose(x_nchw, (0, 2, 3, 1)).astype(jnp.bfloat16)   # NCHW -> NHWC bf16
    c = x.shape[-1]
    y = _block_forward(params, [x],
                       [jnp.ones((c,), jnp.float32)],
                       [jnp.zeros((c,), jnp.float32)])
    return jnp.transpose(y.astype(jnp.float32), (0, 3, 1, 2))      # back to NCHW


# --------------------------------------------------------------------------
if __name__ == "__main__":
    root_key = jax.random.PRNGKey(0)
    pkey, xkey = jax.random.split(root_key)
    # Small deterministic config: num_downs=5 needs spatial >= 32; ngf kept small.
    # (ngf=16 still exercises the K-tiled accumulation path: innermost K = 2048.)
    params = init_unet_params(pkey, input_nc=3, output_nc=3, num_downs=5, ngf=16)
    x = jax.random.normal(xkey, (2, 3, 32, 32), jnp.float32)        # NCHW like PyTorch

    fwd = jax.jit(lambda inp: unet_forward(params, inp))
    y = fwd(x)
    jax.block_until_ready(y)

    assert y.shape == (2, 3, 32, 32), y.shape
    assert bool(jnp.all(jnp.isfinite(y)))
    assert bool(jnp.max(jnp.abs(y)) <= 1.0 + 1e-3)                  # tanh-bounded output
    print("KERNEL_OK")
</pallas_src>

<mosaic_0001>
module attributes {stable_mosaic.version = 11 : i64} {
  func.func @_mm_kernel(%arg0: i32, %arg1: i32, %arg2: memref<512x48xbf16, #tpu.memory_space<vmem>>, %arg3: memref<48x16xbf16, #tpu.memory_space<vmem>>, %arg4: memref<1x16xf32, #tpu.memory_space<vmem>>, %arg5: memref<1x48xf32, #tpu.memory_space<vmem>>, %arg6: memref<1x48xf32, #tpu.memory_space<vmem>>, %arg7: memref<512x16xbf16, #tpu.memory_space<vmem>>, %arg8: memref<512x16xf32, #tpu.memory_space<vmem>>) attributes {dimension_semantics = [#tpu.dimension_semantics<parallel>, #tpu.dimension_semantics<arbitrary>], iteration_bounds = array<i64: 1, 1>, scalar_prefetch = 0 : i64, scratch_operands = 1 : i64, tpu.core_type = #tpu.core_type<tc>, window_params = [{transform_indices = @transform_0, window_bounds = array<i64: 512, 48>}, {transform_indices = @transform_1, window_bounds = array<i64: 48, 16>}, {pipeline_mode = #tpu.pipeline_mode<synchronous>, transform_indices = @transform_2, window_bounds = array<i64: 1, 16>}, {transform_indices = @transform_3, window_bounds = array<i64: 1, 48>}, {transform_indices = @transform_4, window_bounds = array<i64: 1, 48>}, {transform_indices = @transform_5, window_bounds = array<i64: 512, 16>}]} {
    %c0 = arith.constant 0 : index
    %c0_0 = arith.constant 0 : index
    %0 = vector.load %arg2[%c0, %c0_0] : memref<512x48xbf16, #tpu.memory_space<vmem>>, vector<512x48xbf16>
    %1 = arith.extf %0 : vector<512x48xbf16> to vector<512x48xf32>
    %c0_1 = arith.constant 0 : index
    %c0_2 = arith.constant 0 : index
    %2 = vector.load %arg5[%c0_1, %c0_2] : memref<1x48xf32, #tpu.memory_space<vmem>>, vector<1x48xf32>
    %3 = vector.broadcast %2 : vector<1x48xf32> to vector<512x48xf32>
    %4 = arith.mulf %1, %3 : vector<512x48xf32>
    %c0_3 = arith.constant 0 : index
    %c0_4 = arith.constant 0 : index
    %5 = vector.load %arg6[%c0_3, %c0_4] : memref<1x48xf32, #tpu.memory_space<vmem>>, vector<1x48xf32>
    %6 = vector.broadcast %5 : vector<1x48xf32> to vector<512x48xf32>
    %7 = arith.addf %4, %6 : vector<512x48xf32>
    %8 = arith.truncf %7 : vector<512x48xf32> to vector<512x48xbf16>
    %c0_5 = arith.constant 0 : index
    %c0_6 = arith.constant 0 : index
    %9 = vector.load %arg3[%c0_5, %c0_6] : memref<48x16xbf16, #tpu.memory_space<vmem>>, vector<48x16xbf16>
    %cst = arith.constant dense<0.000000e+00> : vector<512x16xf32>
    %10 = tpu.matmul %8, %9, %cst {dimension_numbers = #tpu.dot_dimension_numbers<[1], [0], [0], [1], [0, 0, 1, 1], [], []>} : vector<512x48xbf16>, vector<48x16xbf16>, vector<512x16xf32> -> vector<512x16xf32>
    %c0_i32 = arith.constant 0 : i32
    %11 = arith.cmpi eq, %arg1, %c0_i32 : i32
    %12 = arith.extui %11 : i1 to i32
    %c0_i32_7 = arith.constant 0 : i32
    %13 = arith.cmpi ne, %12, %c0_i32_7 : i32
    scf.if %13 {
      %c0_12 = arith.constant 0 : index
      %c0_13 = arith.constant 0 : index
      %20 = vector.load %arg8[%c0_12, %c0_13] : memref<512x16xf32, #tpu.memory_space<vmem>>, vector<512x16xf32>
      tpu.vector_store %arg8[%c0_12, %c0_13], %10 {strides = array<i32>} : memref<512x16xf32, #tpu.memory_space<vmem>>, vector<512x16xf32>,
    } else {
    }
    %c0_i32_8 = arith.constant 0 : i32
    %14 = arith.cmpi ne, %arg1, %c0_i32_8 : i32
    %15 = arith.extui %14 : i1 to i32
    %c0_i32_9 = arith.constant 0 : i32
    %16 = arith.cmpi ne, %15, %c0_i32_9 : i32
    scf.if %16 {
      %c0_12 = arith.constant 0 : index
      %c0_13 = arith.constant 0 : index
      %20 = vector.load %arg8[%c0_12, %c0_13] : memref<512x16xf32, #tpu.memory_space<vmem>>, vector<512x16xf32>
      %21 = arith.addf %20, %10 : vector<512x16xf32>
      %c0_14 = arith.constant 0 : index
      %c0_15 = arith.constant 0 : index
      %22 = vector.load %arg8[%c0_14, %c0_15] : memref<512x16xf32, #tpu.memory_space<vmem>>, vector<512x16xf32>
      tpu.vector_store %arg8[%c0_14, %c0_15], %21 {strides = array<i32>} : memref<512x16xf32, #tpu.memory_space<vmem>>, vector<512x16xf32>,
    } else {
    }
    %c0_i32_10 = arith.constant 0 : i32
    %17 = arith.cmpi eq, %arg1, %c0_i32_10 : i32
    %18 = arith.extui %17 : i1 to i32
    %c0_i32_11 = arith.constant 0 : i32
    %19 = arith.cmpi ne, %18, %c0_i32_11 : i32
    scf.if %19 {
      %c0_12 = arith.constant 0 : index
      %c0_13 = arith.constant 0 : index
      %20 = vector.load %arg8[%c0_12, %c0_13] : memref<512x16xf32, #tpu.memory_space<vmem>>, vector<512x16xf32>
      %c0_14 = arith.constant 0 : index
      %c0_15 = arith.constant 0 : index
      %21 = vector.load %arg4[%c0_14, %c0_15] : memref<1x16xf32, #tpu.memory_space<vmem>>, vector<1x16xf32>
      %22 = vector.broadcast %21 : vector<1x16xf32> to vector<512x16xf32>
      %23 = arith.addf %20, %22 : vector<512x16xf32>
      %24 = arith.truncf %23 : vector<512x16xf32> to vector<512x16xbf16>
      %c0_16 = arith.constant 0 : index
      %c0_17 = arith.constant 0 : index
      %25 = vector.load %arg7[%c0_16, %c0_17] : memref<512x16xbf16, #tpu.memory_space<vmem>>, vector<512x16xbf16>
      tpu.vector_store %arg7[%c0_16, %c0_17], %24 {strides = array<i32>} : memref<512x16xbf16, #tpu.memory_space<vmem>>, vector<512x16xbf16>,
    } else {
    }
    return
  }
  func.func @transform_0(%arg0: i32, %arg1: i32) -> (i32, i32) {
    %c0_i32 = arith.constant 0 : i32
    return %arg0, %arg1 : i32, i32
  }
  func.func @transform_1(%arg0: i32, %arg1: i32) -> (i32, i32) {
    %c0_i32 = arith.constant 0 : i32
    %c0_i32_0 = arith.constant 0 : i32
    return %arg1, %c0_i32 : i32, i32
  }
  func.func @transform_2(%arg0: i32, %arg1: i32) -> (i32, i32) {
    %c0_i32 = arith.constant 0 : i32
    %c0_i32_0 = arith.constant 0 : i32
    %c0_i32_1 = arith.constant 0 : i32
    return %c0_i32, %c0_i32_0 : i32, i32
  }
  func.func @transform_3(%arg0: i32, %arg1: i32) -> (i32, i32) {
    %c0_i32 = arith.constant 0 : i32
    %c0_i32_0 = arith.constant 0 : i32
    return %c0_i32, %arg1 : i32, i32
  }
  func.func @transform_4(%arg0: i32, %arg1: i32) -> (i32, i32) {
    %c0_i32 = arith.constant 0 : i32
    %c0_i32_0 = arith.constant 0 : i32
    return %c0_i32, %arg1 : i32, i32
  }
  func.func @transform_5(%arg0: i32, %arg1: i32) -> (i32, i32) {
    %c0_i32 = arith.constant 0 : i32
    %c0_i32_0 = arith.constant 0 : i32
    return %arg0, %c0_i32 : i32, i32
  }
}

module attributes {stable_mosaic.version = 11 : i64} {
  func.func @_mm_kernel(%arg0: i32, %arg1: i32, %arg2: memref<128x256xbf16, #tpu.memory_space<vmem>>, %arg3: memref<256x32xbf16, #tpu.memory_space<vmem>>, %arg4: memref<1x32xf32, #tpu.memory_space<vmem>>, %arg5: memref<1x256xf32, #tpu.memory_space<vmem>>, %arg6: memref<1x256xf32, #tpu.memory_space<vmem>>, %arg7: memref<128x32xbf16, #tpu.memory_space<vmem>>, %arg8: memref<1x32xf32, #tpu.memory_space<vmem>>, %arg9: memref<1x32xf32, #tpu.memory_space<vmem>>, %arg10: memref<128x32xf32, #tpu.memory_space<vmem>>) attributes {dimension_semantics = [#tpu.dimension_semantics<arbitrary>, #tpu.dimension_semantics<arbitrary>], iteration_bounds = array<i64: 1, 1>, scalar_prefetch = 0 : i64, scratch_operands = 1 : i64, tpu.core_type = #tpu.core_type<tc>, window_params = [{transform_indices = @transform_0, window_bounds = array<i64: 128, 256>}, {transform_indices = @transform_1, window_bounds = array<i64: 256, 32>}, {pipeline_mode = #tpu.pipeline_mode<synchronous>, transform_indices = @transform_2, window_bounds = array<i64: 1, 32>}, {transform_indices = @transform_3, window_bounds = array<i64: 1, 256>}, {transform_indices = @transform_4, window_bounds = array<i64: 1, 256>}, {transform_indices = @transform_5, window_bounds = array<i64: 128, 32>}, {pipeline_mode = #tpu.pipeline_mode<synchronous>, transform_indices = @transform_6, window_bounds = array<i64: 1, 32>}, {pipeline_mode = #tpu.pipeline_mode<synchronous>, transform_indices = @transform_7, window_bounds = array<i64: 1, 32>}]} {
    %c0 = arith.constant 0 : index
    %c0_0 = arith.constant 0 : index
    %0 = vector.load %arg2[%c0, %c0_0] : memref<128x256xbf16, #tpu.memory_space<vmem>>, vector<128x256xbf16>
    %1 = arith.extf %0 : vector<128x256xbf16> to vector<128x256xf32>
    %c0_1 = arith.constant 0 : index
    %c0_2 = arith.constant 0 : index
    %2 = vector.load %arg5[%c0_1, %c0_2] : memref<1x256xf32, #tpu.memory_space<vmem>>, vector<1x256xf32>
    %3 = vector.broadcast %2 : vector<1x256xf32> to vector<128x256xf32>
    %4 = arith.mulf %1, %3 : vector<128x256xf32>
    %c0_3 = arith.constant 0 : index
    %c0_4 = arith.constant 0 : index
    %5 = vector.load %arg6[%c0_3, %c0_4] : memref<1x256xf32, #tpu.memory_space<vmem>>, vector<1x256xf32>
    %6 = vector.broadcast %5 : vector<1x256xf32> to vector<128x256xf32>
    %7 = arith.addf %4, %6 : vector<128x256xf32>
    %cst = arith.constant 0.000000e+00 : f32
    %8 = vector.broadcast %cst : f32 to vector<128x256xf32>
    %9 = arith.cmpf ogt, %7, %8 : vector<128x256xf32>
    %cst_5 = arith.constant 2.000000e-01 : f32
    %10 = vector.broadcast %cst_5 : f32 to vector<128x256xf32>
    %11 = arith.mulf %10, %7 : vector<128x256xf32>
    %12 = arith.select %9, %7, %11 : vector<128x256xi1>, vector<128x256xf32>
    %13 = arith.truncf %12 : vector<128x256xf32> to vector<128x256xbf16>
    %c0_6 = arith.constant 0 : index
    %c0_7 = arith.constant 0 : index
    %14 = vector.load %arg3[%c0_6, %c0_7] : memref<256x32xbf16, #tpu.memory_space<vmem>>, vector<256x32xbf16>
    %cst_8 = arith.constant dense<0.000000e+00> : vector<128x32xf32>
    %15 = tpu.matmul %13, %14, %cst_8 {dimension_numbers = #tpu.dot_dimension_numbers<[1], [0], [0], [1], [0, 0, 1, 1], [], []>} : vector<128x256xbf16>, vector<256x32xbf16>, vector<128x32xf32> -> vector<128x32xf32>
    %c0_i32 = arith.constant 0 : i32
    %16 = arith.cmpi eq, %arg1, %c0_i32 : i32
    %17 = arith.extui %16 : i1 to i32
    %c0_i32_9 = arith.constant 0 : i32
    %18 = arith.cmpi ne, %17, %c0_i32_9 : i32
    scf.if %18 {
      %c0_14 = arith.constant 0 : index
      %c0_15 = arith.constant 0 : index
      %25 = vector.load %arg10[%c0_14, %c0_15] : memref<128x32xf32, #tpu.memory_space<vmem>>, vector<128x32xf32>
      tpu.vector_store %arg10[%c0_14, %c0_15], %15 {strides = array<i32>} : memref<128x32xf32, #tpu.memory_space<vmem>>, vector<128x32xf32>,
    } else {
    }
    %c0_i32_10 = arith.constant 0 : i32
    %19 = arith.cmpi ne, %arg1, %c0_i32_10 : i32
    %20 = arith.extui %19 : i1 to i32
    %c0_i32_11 = arith.constant 0 : i32
    %21 = arith.cmpi ne, %20, %c0_i32_11 : i32
    scf.if %21 {
      %c0_14 = arith.constant 0 : index
      %c0_15 = arith.constant 0 : index
      %25 = vector.load %arg10[%c0_14, %c0_15] : memref<128x32xf32, #tpu.memory_space<vmem>>, vector<128x32xf32>
      %26 = arith.addf %25, %15 : vector<128x32xf32>
      %c0_16 = arith.constant 0 : index
      %c0_17 = arith.constant 0 : index
      %27 = vector.load %arg10[%c0_16, %c0_17] : memref<128x32xf32, #tpu.memory_space<vmem>>, vector<128x32xf32>
      tpu.vector_store %arg10[%c0_16, %c0_17], %26 {strides = array<i32>} : memref<128x32xf32, #tpu.memory_space<vmem>>, vector<128x32xf32>,
    } else {
    }
    %c0_i32_12 = arith.constant 0 : i32
    %22 = arith.cmpi eq, %arg1, %c0_i32_12 : i32
    %23 = arith.extui %22 : i1 to i32
    %c0_i32_13 = arith.constant 0 : i32
    %24 = arith.cmpi ne, %23, %c0_i32_13 : i32
    scf.if %24 {
      %c0_14 = arith.constant 0 : index
      %c0_15 = arith.constant 0 : index
      %25 = vector.load %arg10[%c0_14, %c0_15] : memref<128x32xf32, #tpu.memory_space<vmem>>, vector<128x32xf32>
      %c0_16 = arith.constant 0 : index
      %c0_17 = arith.constant 0 : index
      %26 = vector.load %arg4[%c0_16, %c0_17] : memref<1x32xf32, #tpu.memory_space<vmem>>, vector<1x32xf32>
      %27 = vector.broadcast %26 : vector<1x32xf32> to vector<128x32xf32>
      %28 = arith.addf %25, %27 : vector<128x32xf32>
      %29 = arith.truncf %28 : vector<128x32xf32> to vector<128x32xbf16>
      %c0_18 = arith.constant 0 : index
      %c0_19 = arith.constant 0 : index
      %30 = vector.load %arg7[%c0_18, %c0_19] : memref<128x32xbf16, #tpu.memory_space<vmem>>, vector<128x32xbf16>
      tpu.vector_store %arg7[%c0_18, %c0_19], %29 {strides = array<i32>} : memref<128x32xbf16, #tpu.memory_space<vmem>>, vector<128x32xbf16>,
      %c128_i32 = arith.constant 128 : i32
      %31 = arith.muli %arg0, %c128_i32 : i32
      %32 = tpu.iota {dimensions = array<i32: 0>} : vector<128x1xi32>
      %33 = vector.broadcast %31 : i32 to vector<128x1xi32>
      %34 = arith.addi %33, %32 : vector<128x1xi32>
      %c128_i32_20 = arith.constant 128 : i32
      %35 = vector.broadcast %c128_i32_20 : i32 to vector<128x1xi32>
      %36 = arith.cmpi slt, %34, %35 : vector<128x1xi32>
      %cst_21 = arith.constant 0.000000e+00 : f32
      %37 = vector.shape_cast %36 : vector<128x1xi1> to vector<128x1xi1>
      %38 = vector.broadcast %37 : vector<128x1xi1> to vector<128x32xi1>
      %39 = vector.broadcast %cst_21 : f32 to vector<128x32xf32>
      %40 = arith.select %38, %28, %39 : vector<128x32xi1>, vector<128x32xf32>
      %cst_22 = arith.constant dense<0.000000e+00> : vector<32xf32>
      %41 = vector.multi_reduction <add>, %40, %cst_22 [0] : vector<128x32xf32> to vector<32xf32>
      %42 = vector.shape_cast %41 : vector<32xf32> to vector<1x32xf32>
      %43 = arith.mulf %40, %40 : vector<128x32xf32>
      %cst_23 = arith.constant dense<0.000000e+00> : vector<32xf32>
      %44 = vector.multi_reduction <add>, %43, %cst_23 [0] : vector<128x32xf32> to vector<32xf32>
      %45 = vector.shape_cast %44 : vector<32xf32> to vector<1x32xf32>
      %c0_i32_24 = arith.constant 0 : i32
      %46 = arith.cmpi eq, %arg0, %c0_i32_24 : i32
      %47 = arith.extui %46 : i1 to i32
      %c0_i32_25 = arith.constant 0 : i32
      %48 = arith.cmpi ne, %47, %c0_i32_25 : i32
      scf.if %48 {
        %c0_28 = arith.constant 0 : index
        %c0_29 = arith.constant 0 : index
        %52 = vector.load %arg8[%c0_28, %c0_29] : memref<1x32xf32, #tpu.memory_space<vmem>>, vector<1x32xf32>
        tpu.vector_store %arg8[%c0_28, %c0_29], %42 {strides = array<i32>} : memref<1x32xf32, #tpu.memory_space<vmem>>, vector<1x32xf32>,
        %c0_30 = arith.constant 0 : index
        %c0_31 = arith.constant 0 : index
        %53 = vector.load %arg9[%c0_30, %c0_31] : memref<1x32xf32, #tpu.memory_space<vmem>>, vector<1x32xf32>
        tpu.vector_store %arg9[%c0_30, %c0_31], %45 {strides = array<i32>} : memref<1x32xf32, #tpu.memory_space<vmem>>, vector<1x32xf32>,
      } else {
      }
      %c0_i32_26 = arith.constant 0 : i32
      %49 = arith.cmpi ne, %arg0, %c0_i32_26 : i32
      %50 = arith.extui %49 : i1 to i32
      %c0_i32_27 = arith.constant 0 : i32
      %51 = arith.cmpi ne, %50, %c0_i32_27 : i32
      scf.if %51 {
        %c0_28 = arith.constant 0 : index
        %c0_29 = arith.constant 0 : index
        %52 = vector.load %arg8[%c0_28, %c0_29] : memref<1x32xf32, #tpu.memory_space<vmem>>, vector<1x32xf32>
        %53 = arith.addf %52, %42 : vector<1x32xf32>
        %c0_30 = arith.constant 0 : index
        %c0_31 = arith.constant 0 : index
        %54 = vector.load %arg8[%c0_30, %c0_31] : memref<1x32xf32, #tpu.memory_space<vmem>>, vector<1x32xf32>
        tpu.vector_store %arg8[%c0_30, %c0_31], %53 {strides = array<i32>} : memref<1x32xf32, #tpu.memory_space<vmem>>, vector<1x32xf32>,
        %c0_32 = arith.constant 0 : index
        %c0_33 = arith.constant 0 : index
        %55 = vector.load %arg9[%c0_32, %c0_33] : memref<1x32xf32, #tpu.memory_space<vmem>>, vector<1x32xf32>
        %56 = arith.addf %55, %45 : vector<1x32xf32>
        %c0_34 = arith.constant 0 : index
        %c0_35 = arith.constant 0 : index
        %57 = vector.load %arg9[%c0_34, %c0_35] : memref<1x32xf32, #tpu.memory_space<vmem>>, vector<1x32xf32>
        tpu.vector_store %arg9[%c0_34, %c0_35], %56 {strides = array<i32>} : memref<1x32xf32, #tpu.memory_space<vmem>>, vector<1x32xf32>,
      } else {
      }
    } else {
    }
    return
  }
  func.func @transform_0(%arg0: i32, %arg1: i32) -> (i32, i32) {
    %c0_i32 = arith.constant 0 : i32
    return %arg0, %arg1 : i32, i32
  }
  func.func @transform_1(%arg0: i32, %arg1: i32) -> (i32, i32) {
    %c0_i32 = arith.constant 0 : i32
    %c0_i32_0 = arith.constant 0 : i32
    return %arg1, %c0_i32 : i32, i32
  }
  func.func @transform_2(%arg0: i32, %arg1: i32) -> (i32, i32) {
    %c0_i32 = arith.constant 0 : i32
    %c0_i32_0 = arith.constant 0 : i32
    %c0_i32_1 = arith.constant 0 : i32
    return %c0_i32, %c0_i32_0 : i32, i32
  }
  func.func @transform_3(%arg0: i32, %arg1: i32) -> (i32, i32) {
    %c0_i32 = arith.constant 0 : i32
    %c0_i32_0 = arith.constant 0 : i32
    return %c0_i32, %arg1 : i32, i32
  }
  func.func @transform_4(%arg0: i32, %arg1: i32) -> (i32, i32) {
    %c0_i32 = arith.constant 0 : i32
    %c0_i32_0 = arith.constant 0 : i32
    return %c0_i32, %arg1 : i32, i32
  }
  func.func @transform_5(%arg0: i32, %arg1: i32) -> (i32, i32) {
    %c0_i32 = arith.constant 0 : i32
    %c0_i32_0 = arith.constant 0 : i32
    return %arg0, %c0_i32 : i32, i32
  }
  func.func @transform_6(%arg0: i32, %arg1: i32) -> (i32, i32) {
    %c0_i32 = arith.constant 0 : i32
    %c0_i32_0 = arith.constant 0 : i32
    %c0_i32_1 = arith.constant 0 : i32
    return %c0_i32, %c0_i32_0 : i32, i32
  }
  func.func @transform_7(%arg0: i32, %arg1: i32) -> (i32, i32) {
    %c0_i32 = arith.constant 0 : i32
    %c0_i32_0 = arith.constant 0 : i32
    %c0_i32_1 = arith.constant 0 : i32
    return %c0_i32, %c0_i32_0 : i32, i32
  }
}

module attributes {stable_mosaic.version = 11 : i64} {
  func.func @_mm_kernel(%arg0: i32, %arg1: i32, %arg2: memref<32x512xbf16, #tpu.memory_space<vmem>>, %arg3: memref<512x64xbf16, #tpu.memory_space<vmem>>, %arg4: memref<1x64xf32, #tpu.memory_space<vmem>>, %arg5: memref<1x512xf32, #tpu.memory_space<vmem>>, %arg6: memref<1x512xf32, #tpu.memory_space<vmem>>, %arg7: memref<32x64xbf16, #tpu.memory_space<vmem>>, %arg8: memref<1x64xf32, #tpu.memory_space<vmem>>, %arg9: memref<1x64xf32, #tpu.memory_space<vmem>>, %arg10: memref<32x64xf32, #tpu.memory_space<vmem>>) attributes {dimension_semantics = [#tpu.dimension_semantics<arbitrary>, #tpu.dimension_semantics<arbitrary>], iteration_bounds = array<i64: 1, 1>, scalar_prefetch = 0 : i64, scratch_operands = 1 : i64, tpu.core_type = #tpu.core_type<tc>, window_params = [{transform_indices = @transform_0, window_bounds = array<i64: 32, 512>}, {transform_indices = @transform_1, window_bounds = array<i64: 512, 64>}, {pipeline_mode = #tpu.pipeline_mode<synchronous>, transform_indices = @transform_2, window_bounds = array<i64: 1, 64>}, {transform_indices = @transform_3, window_bounds = array<i64: 1, 512>}, {transform_indices = @transform_4, window_bounds = array<i64: 1, 512>}, {transform_indices = @transform_5, window_bounds = array<i64: 32, 64>}, {pipeline_mode = #tpu.pipeline_mode<synchronous>, transform_indices = @transform_6, window_bounds = array<i64: 1, 64>}, {pipeline_mode = #tpu.pipeline_mode<synchronous>, transform_indices = @transform_7, window_bounds = array<i64: 1, 64>}]} {
    %c0 = arith.constant 0 : index
    %c0_0 = arith.constant 0 : index
    %0 = vector.load %arg2[%c0, %c0_0] : memref<32x512xbf16, #tpu.memory_space<vmem>>, vector<32x512xbf16>
    %1 = arith.extf %0 : vector<32x512xbf16> to vector<32x512xf32>
    %c0_1 = arith.constant 0 : index
    %c0_2 = arith.constant 0 : index
    %2 = vector.load %arg5[%c0_1, %c0_2] : memref<1x512xf32, #tpu.memory_space<vmem>>, vector<1x512xf32>
    %3 = vector.broadcast %2 : vector<1x512xf32> to vector<32x512xf32>
    %4 = arith.mulf %1, %3 : vector<32x512xf32>
    %c0_3 = arith.constant 0 : index
    %c0_4 = arith.constant 0 : index
    %5 = vector.load %arg6[%c0_3, %c0_4] : memref<1x512xf32, #tpu.memory_space<vmem>>, vector<1x512xf32>
    %6 = vector.broadcast %5 : vector<1x512xf32> to vector<32x512xf32>
    %7 = arith.addf %4, %6 : vector<32x512xf32>
    %cst = arith.constant 0.000000e+00 : f32
    %8 = vector.broadcast %cst : f32 to vector<32x512xf32>
    %9 = arith.cmpf ogt, %7, %8 : vector<32x512xf32>
    %cst_5 = arith.constant 2.000000e-01 : f32
    %10 = vector.broadcast %cst_5 : f32 to vector<32x512xf32>
    %11 = arith.mulf %10, %7 : vector<32x512xf32>
    %12 = arith.select %9, %7, %11 : vector<32x512xi1>, vector<32x512xf32>
    %13 = arith.truncf %12 : vector<32x512xf32> to vector<32x512xbf16>
    %c0_6 = arith.constant 0 : index
    %c0_7 = arith.constant 0 : index
    %14 = vector.load %arg3[%c0_6, %c0_7] : memref<512x64xbf16, #tpu.memory_space<vmem>>, vector<512x64xbf16>
    %cst_8 = arith.constant dense<0.000000e+00> : vector<32x64xf32>
    %15 = tpu.matmul %13, %14, %cst_8 {dimension_numbers = #tpu.dot_dimension_numbers<[1], [0], [0], [1], [0, 0, 1, 1], [], []>} : vector<32x512xbf16>, vector<512x64xbf16>, vector<32x64xf32> -> vector<32x64xf32>
    %c0_i32 = arith.constant 0 : i32
    %16 = arith.cmpi eq, %arg1, %c0_i32 : i32
    %17 = arith.extui %16 : i1 to i32
    %c0_i32_9 = arith.constant 0 : i32
    %18 = arith.cmpi ne, %17, %c0_i32_9 : i32
    scf.if %18 {
      %c0_14 = arith.constant 0 : index
      %c0_15 = arith.constant 0 : index
      %25 = vector.load %arg10[%c0_14, %c0_15] : memref<32x64xf32, #tpu.memory_space<vmem>>, vector<32x64xf32>
      tpu.vector_store %arg10[%c0_14, %c0_15], %15 {strides = array<i32>} : memref<32x64xf32, #tpu.memory_space<vmem>>, vector<32x64xf32>,
    } else {
    }
    %c0_i32_10 = arith.constant 0 : i32
    %19 = arith.cmpi ne, %arg1, %c0_i32_10 : i32
    %20 = arith.extui %19 : i1 to i32
    %c0_i32_11 = arith.constant 0 : i32
    %21 = arith.cmpi ne, %20, %c0_i32_11 : i32
    scf.if %21 {
      %c0_14 = arith.constant 0 : index
      %c0_15 = arith.constant 0 : index
      %25 = vector.load %arg10[%c0_14, %c0_15] : memref<32x64xf32, #tpu.memory_space<vmem>>, vector<32x64xf32>
      %26 = arith.addf %25, %15 : vector<32x64xf32>
      %c0_16 = arith.constant 0 : index
      %c0_17 = arith.constant 0 : index
      %27 = vector.load %arg10[%c0_16, %c0_17] : memref<32x64xf32, #tpu.memory_space<vmem>>, vector<32x64xf32>
      tpu.vector_store %arg10[%c0_16, %c0_17], %26 {strides = array<i32>} : memref<32x64xf32, #tpu.memory_space<vmem>>, vector<32x64xf32>,
    } else {
    }
    %c0_i32_12 = arith.constant 0 : i32
    %22 = arith.cmpi eq, %arg1, %c0_i32_12 : i32
    %23 = arith.extui %22 : i1 to i32
    %c0_i32_13 = arith.constant 0 : i32
    %24 = arith.cmpi ne, %23, %c0_i32_13 : i32
    scf.if %24 {
      %c0_14 = arith.constant 0 : index
      %c0_15 = arith.constant 0 : index
      %25 = vector.load %arg10[%c0_14, %c0_15] : memref<32x64xf32, #tpu.memory_space<vmem>>, vector<32x64xf32>
      %c0_16 = arith.constant 0 : index
      %c0_17 = arith.constant 0 : index
      %26 = vector.load %arg4[%c0_16, %c0_17] : memref<1x64xf32, #tpu.memory_space<vmem>>, vector<1x64xf32>
      %27 = vector.broadcast %26 : vector<1x64xf32> to vector<32x64xf32>
      %28 = arith.addf %25, %27 : vector<32x64xf32>
      %29 = arith.truncf %28 : vector<32x64xf32> to vector<32x64xbf16>
      %c0_18 = arith.constant 0 : index
      %c0_19 = arith.constant 0 : index
      %30 = vector.load %arg7[%c0_18, %c0_19] : memref<32x64xbf16, #tpu.memory_space<vmem>>, vector<32x64xbf16>
      tpu.vector_store %arg7[%c0_18, %c0_19], %29 {strides = array<i32>} : memref<32x64xbf16, #tpu.memory_space<vmem>>, vector<32x64xbf16>,
      %c32_i32 = arith.constant 32 : i32
      %31 = arith.muli %arg0, %c32_i32 : i32
      %32 = tpu.iota {dimensions = array<i32: 0>} : vector<32x1xi32>
      %33 = vector.broadcast %31 : i32 to vector<32x1xi32>
      %34 = arith.addi %33, %32 : vector<32x1xi32>
      %c32_i32_20 = arith.constant 32 : i32
      %35 = vector.broadcast %c32_i32_20 : i32 to vector<32x1xi32>
      %36 = arith.cmpi slt, %34, %35 : vector<32x1xi32>
      %cst_21 = arith.constant 0.000000e+00 : f32
      %37 = vector.shape_cast %36 : vector<32x1xi1> to vector<32x1xi1>
      %38 = vector.broadcast %37 : vector<32x1xi1> to vector<32x64xi1>
      %39 = vector.broadcast %cst_21 : f32 to vector<32x64xf32>
      %40 = arith.select %38, %28, %39 : vector<32x64xi1>, vector<32x64xf32>
      %cst_22 = arith.constant dense<0.000000e+00> : vector<64xf32>
      %41 = vector.multi_reduction <add>, %40, %cst_22 [0] : vector<32x64xf32> to vector<64xf32>
      %42 = vector.shape_cast %41 : vector<64xf32> to vector<1x64xf32>
      %43 = arith.mulf %40, %40 : vector<32x64xf32>
      %cst_23 = arith.constant dense<0.000000e+00> : vector<64xf32>
      %44 = vector.multi_reduction <add>, %43, %cst_23 [0] : vector<32x64xf32> to vector<64xf32>
      %45 = vector.shape_cast %44 : vector<64xf32> to vector<1x64xf32>
      %c0_i32_24 = arith.constant 0 : i32
      %46 = arith.cmpi eq, %arg0, %c0_i32_24 : i32
      %47 = arith.extui %46 : i1 to i32
      %c0_i32_25 = arith.constant 0 : i32
      %48 = arith.cmpi ne, %47, %c0_i32_25 : i32
      scf.if %48 {
        %c0_28 = arith.constant 0 : index
        %c0_29 = arith.constant 0 : index
        %52 = vector.load %arg8[%c0_28, %c0_29] : memref<1x64xf32, #tpu.memory_space<vmem>>, vector<1x64xf32>
        tpu.vector_store %arg8[%c0_28, %c0_29], %42 {strides = array<i32>} : memref<1x64xf32, #tpu.memory_space<vmem>>, vector<1x64xf32>,
        %c0_30 = arith.constant 0 : index
        %c0_31 = arith.constant 0 : index
        %53 = vector.load %arg9[%c0_30, %c0_31] : memref<1x64xf32, #tpu.memory_space<vmem>>, vector<1x64xf32>
        tpu.vector_store %arg9[%c0_30, %c0_31], %45 {strides = array<i32>} : memref<1x64xf32, #tpu.memory_space<vmem>>, vector<1x64xf32>,
      } else {
      }
      %c0_i32_26 = arith.constant 0 : i32
      %49 = arith.cmpi ne, %arg0, %c0_i32_26 : i32
      %50 = arith.extui %49 : i1 to i32
      %c0_i32_27 = arith.constant 0 : i32
      %51 = arith.cmpi ne, %50, %c0_i32_27 : i32
      scf.if %51 {
        %c0_28 = arith.constant 0 : index
        %c0_29 = arith.constant 0 : index
        %52 = vector.load %arg8[%c0_28, %c0_29] : memref<1x64xf32, #tpu.memory_space<vmem>>, vector<1x64xf32>
        %53 = arith.addf %52, %42 : vector<1x64xf32>
        %c0_30 = arith.constant 0 : index
        %c0_31 = arith.constant 0 : index
        %54 = vector.load %arg8[%c0_30, %c0_31] : memref<1x64xf32, #tpu.memory_space<vmem>>, vector<1x64xf32>
        tpu.vector_store %arg8[%c0_30, %c0_31], %53 {strides = array<i32>} : memref<1x64xf32, #tpu.memory_space<vmem>>, vector<1x64xf32>,
        %c0_32 = arith.constant 0 : index
        %c0_33 = arith.constant 0 : index
        %55 = vector.load %arg9[%c0_32, %c0_33] : memref<1x64xf32, #tpu.memory_space<vmem>>, vector<1x64xf32>
        %56 = arith.addf %55, %45 : vector<1x64xf32>
        %c0_34 = arith.constant 0 : index
        %c0_35 = arith.constant 0 : index
        %57 = vector.load %arg9[%c0_34, %c0_35] : memref<1x64xf32, #tpu.memory_space<vmem>>, vector<1x64xf32>
        tpu.vector_store %arg9[%c0_34, %c0_35], %56 {strides = array<i32>} : memref<1x64xf32, #tpu.memory_space<vmem>>, vector<1x64xf32>,
      } else {
      }
    } else {
    }
    return
  }
  func.func @transform_0(%arg0: i32, %arg1: i32) -> (i32, i32) {
    %c0_i32 = arith.constant 0 : i32
    return %arg0, %arg1 : i32, i32
  }
  func.func @transform_1(%arg0: i32, %arg1: i32) -> (i32, i32) {
    %c0_i32 = arith.constant 0 : i32
    %c0_i32_0 = arith.constant 0 : i32
    return %arg1, %c0_i32 : i32, i32
  }
  func.func @transform_2(%arg0: i32, %arg1: i32) -> (i32, i32) {
    %c0_i32 = arith.constant 0 : i32
    %c0_i32_0 = arith.constant 0 : i32
    %c0_i32_1 = arith.constant 0 : i32
    return %c0_i32, %c0_i32_0 : i32, i32
  }
  func.func @transform_3(%arg0: i32, %arg1: i32) -> (i32, i32) {
    %c0_i32 = arith.constant 0 : i32
    %c0_i32_0 = arith.constant 0 : i32
    return %c0_i32, %arg1 : i32, i32
  }
  func.func @transform_4(%arg0: i32, %arg1: i32) -> (i32, i32) {
    %c0_i32 = arith.constant 0 : i32
    %c0_i32_0 = arith.constant 0 : i32
    return %c0_i32, %arg1 : i32, i32
  }
  func.func @transform_5(%arg0: i32, %arg1: i32) -> (i32, i32) {
    %c0_i32 = arith.constant 0 : i32
    %c0_i32_0 = arith.constant 0 : i32
    return %arg0, %c0_i32 : i32, i32
  }
  func.func @transform_6(%arg0: i32, %arg1: i32) -> (i32, i32) {
    %c0_i32 = arith.constant 0 : i32
    %c0_i32_0 = arith.constant 0 : i32
    %c0_i32_1 = arith.constant 0 : i32
    return %c0_i32, %c0_i32_0 : i32, i32
  }
  func.func @transform_7(%arg0: i32, %arg1: i32) -> (i32, i32) {
    %c0_i32 = arith.constant 0 : i32
    %c0_i32_0 = arith.constant 0 : i32
    %c0_i32_1 = arith.constant 0 : i32
    return %c0_i32, %c0_i32_0 : i32, i32
  }
}

module attributes {stable_mosaic.version = 11 : i64} {
  func.func @_mm_kernel(%arg0: i32, %arg1: i32, %arg2: memref<8x1024xbf16, #tpu.memory_space<vmem>>, %arg3: memref<1024x128xbf16, #tpu.memory_space<vmem>>, %arg4: memref<1x128xf32, #tpu.memory_space<vmem>>, %arg5: memref<1x1024xf32, #tpu.memory_space<vmem>>, %arg6: memref<1x1024xf32, #tpu.memory_space<vmem>>, %arg7: memref<8x128xbf16, #tpu.memory_space<vmem>>, %arg8: memref<1x128xf32, #tpu.memory_space<vmem>>, %arg9: memref<1x128xf32, #tpu.memory_space<vmem>>, %arg10: memref<8x128xf32, #tpu.memory_space<vmem>>) attributes {dimension_semantics = [#tpu.dimension_semantics<arbitrary>, #tpu.dimension_semantics<arbitrary>], iteration_bounds = array<i64: 1, 1>, scalar_prefetch = 0 : i64, scratch_operands = 1 : i64, tpu.core_type = #tpu.core_type<tc>, window_params = [{transform_indices = @transform_0, window_bounds = array<i64: 8, 1024>}, {transform_indices = @transform_1, window_bounds = array<i64: 1024, 128>}, {pipeline_mode = #tpu.pipeline_mode<synchronous>, transform_indices = @transform_2, window_bounds = array<i64: 1, 128>}, {transform_indices = @transform_3, window_bounds = array<i64: 1, 1024>}, {transform_indices = @transform_4, window_bounds = array<i64: 1, 1024>}, {transform_indices = @transform_5, window_bounds = array<i64: 8, 128>}, {pipeline_mode = #tpu.pipeline_mode<synchronous>, transform_indices = @transform_6, window_bounds = array<i64: 1, 128>}, {pipeline_mode = #tpu.pipeline_mode<synchronous>, transform_indices = @transform_7, window_bounds = array<i64: 1, 128>}]} {
    %c0 = arith.constant 0 : index
    %c0_0 = arith.constant 0 : index
    %0 = vector.load %arg2[%c0, %c0_0] : memref<8x1024xbf16, #tpu.memory_space<vmem>>, vector<8x1024xbf16>
    %1 = arith.extf %0 : vector<8x1024xbf16> to vector<8x1024xf32>
    %c0_1 = arith.constant 0 : index
    %c0_2 = arith.constant 0 : index
    %2 = vector.load %arg5[%c0_1, %c0_2] : memref<1x1024xf32, #tpu.memory_space<vmem>>, vector<1x1024xf32>
    %3 = vector.broadcast %2 : vector<1x1024xf32> to vector<8x1024xf32>
    %4 = arith.mulf %1, %3 : vector<8x1024xf32>
    %c0_3 = arith.constant 0 : index
    %c0_4 = arith.constant 0 : index
    %5 = vector.load %arg6[%c0_3, %c0_4] : memref<1x1024xf32, #tpu.memory_space<vmem>>, vector<1x1024xf32>
    %6 = vector.broadcast %5 : vector<1x1024xf32> to vector<8x1024xf32>
    %7 = arith.addf %4, %6 : vector<8x1024xf32>
    %cst = arith.constant 0.000000e+00 : f32
    %8 = vector.broadcast %cst : f32 to vector<8x1024xf32>
    %9 = arith.cmpf ogt, %7, %8 : vector<8x1024xf32>
    %cst_5 = arith.constant 2.000000e-01 : f32
    %10 = vector.broadcast %cst_5 : f32 to vector<8x1024xf32>
    %11 = arith.mulf %10, %7 : vector<8x1024xf32>
    %12 = arith.select %9, %7, %11 : vector<8x1024xi1>, vector<8x1024xf32>
    %13 = arith.truncf %12 : vector<8x1024xf32> to vector<8x1024xbf16>
    %c0_6 = arith.constant 0 : index
    %c0_7 = arith.constant 0 : index
    %14 = vector.load %arg3[%c0_6, %c0_7] : memref<1024x128xbf16, #tpu.memory_space<vmem>>, vector<1024x128xbf16>
    %cst_8 = arith.constant dense<0.000000e+00> : vector<8x128xf32>
    %15 = tpu.matmul %13, %14, %cst_8 {dimension_numbers = #tpu.dot_dimension_numbers<[1], [0], [0], [1], [0, 0, 1, 1], [], []>} : vector<8x1024xbf16>, vector<1024x128xbf16>, vector<8x128xf32> -> vector<8x128xf32>
    %c0_i32 = arith.constant 0 : i32
    %16 = arith.cmpi eq, %arg1, %c0_i32 : i32
    %17 = arith.extui %16 : i1 to i32
    %c0_i32_9 = arith.constant 0 : i32
    %18 = arith.cmpi ne, %17, %c0_i32_9 : i32
    scf.if %18 {
      %c0_14 = arith.constant 0 : index
      %c0_15 = arith.constant 0 : index
      %25 = vector.load %arg10[%c0_14, %c0_15] : memref<8x128xf32, #tpu.memory_space<vmem>>, vector<8x128xf32>
      tpu.vector_store %arg10[%c0_14, %c0_15], %15 {strides = array<i32>} : memref<8x128xf32, #tpu.memory_space<vmem>>, vector<8x128xf32>,
    } else {
    }
    %c0_i32_10 = arith.constant 0 : i32
    %19 = arith.cmpi ne, %arg1, %c0_i32_10 : i32
    %20 = arith.extui %19 : i1 to i32
    %c0_i32_11 = arith.constant 0 : i32
    %21 = arith.cmpi ne, %20, %c0_i32_11 : i32
    scf.if %21 {
      %c0_14 = arith.constant 0 : index
      %c0_15 = arith.constant 0 : index
      %25 = vector.load %arg10[%c0_14, %c0_15] : memref<8x128xf32, #tpu.memory_space<vmem>>, vector<8x128xf32>
      %26 = arith.addf %25, %15 : vector<8x128xf32>
      %c0_16 = arith.constant 0 : index
      %c0_17 = arith.constant 0 : index
      %27 = vector.load %arg10[%c0_16, %c0_17] : memref<8x128xf32, #tpu.memory_space<vmem>>, vector<8x128xf32>
      tpu.vector_store %arg10[%c0_16, %c0_17], %26 {strides = array<i32>} : memref<8x128xf32, #tpu.memory_space<vmem>>, vector<8x128xf32>,
    } else {
    }
    %c0_i32_12 = arith.constant 0 : i32
    %22 = arith.cmpi eq, %arg1, %c0_i32_12 : i32
    %23 = arith.extui %22 : i1 to i32
    %c0_i32_13 = arith.constant 0 : i32
    %24 = arith.cmpi ne, %23, %c0_i32_13 : i32
    scf.if %24 {
      %c0_14 = arith.constant 0 : index
      %c0_15 = arith.constant 0 : index
      %25 = vector.load %arg10[%c0_14, %c0_15] : memref<8x128xf32, #tpu.memory_space<vmem>>, vector<8x128xf32>
      %c0_16 = arith.constant 0 : index
      %c0_17 = arith.constant 0 : index
      %26 = vector.load %arg4[%c0_16, %c0_17] : memref<1x128xf32, #tpu.memory_space<vmem>>, vector<1x128xf32>
      %27 = vector.broadcast %26 : vector<1x128xf32> to vector<8x128xf32>
      %28 = arith.addf %25, %27 : vector<8x128xf32>
      %29 = arith.truncf %28 : vector<8x128xf32> to vector<8x128xbf16>
      %c0_18 = arith.constant 0 : index
      %c0_19 = arith.constant 0 : index
      %30 = vector.load %arg7[%c0_18, %c0_19] : memref<8x128xbf16, #tpu.memory_space<vmem>>, vector<8x128xbf16>
      tpu.vector_store %arg7[%c0_18, %c0_19], %29 {strides = array<i32>} : memref<8x128xbf16, #tpu.memory_space<vmem>>, vector<8x128xbf16>,
      %c8_i32 = arith.constant 8 : i32
      %31 = arith.muli %arg0, %c8_i32 : i32
      %32 = tpu.iota {dimensions = array<i32: 0>} : vector<8x1xi32>
      %33 = vector.broadcast %31 : i32 to vector<8x1xi32>
      %34 = arith.addi %33, %32 : vector<8x1xi32>
      %c8_i32_20 = arith.constant 8 : i32
      %35 = vector.broadcast %c8_i32_20 : i32 to vector<8x1xi32>
      %36 = arith.cmpi slt, %34, %35 : vector<8x1xi32>
      %cst_21 = arith.constant 0.000000e+00 : f32
      %37 = vector.shape_cast %36 : vector<8x1xi1> to vector<8x1xi1>
      %38 = vector.broadcast %37 : vector<8x1xi1> to vector<8x128xi1>
      %39 = vector.broadcast %cst_21 : f32 to vector<8x128xf32>
      %40 = arith.select %38, %28, %39 : vector<8x128xi1>, vector<8x128xf32>
      %cst_22 = arith.constant dense<0.000000e+00> : vector<128xf32>
      %41 = vector.multi_reduction <add>, %40, %cst_22 [0] : vector<8x128xf32> to vector<128xf32>
      %42 = vector.shape_cast %41 : vector<128xf32> to vector<1x128xf32>
      %43 = arith.mulf %40, %40 : vector<8x128xf32>
      %cst_23 = arith.constant dense<0.000000e+00> : vector<128xf32>
      %44 = vector.multi_reduction <add>, %43, %cst_23 [0] : vector<8x128xf32> to vector<128xf32>
      %45 = vector.shape_cast %44 : vector<128xf32> to vector<1x128xf32>
      %c0_i32_24 = arith.constant 0 : i32
      %46 = arith.cmpi eq, %arg0, %c0_i32_24 : i32
      %47 = arith.extui %46 : i1 to i32
      %c0_i32_25 = arith.constant 0 : i32
      %48 = arith.cmpi ne, %47, %c0_i32_25 : i32
      scf.if %48 {
        %c0_28 = arith.constant 0 : index
        %c0_29 = arith.constant 0 : index
        %52 = vector.load %arg8[%c0_28, %c0_29] : memref<1x128xf32, #tpu.memory_space<vmem>>, vector<1x128xf32>
        tpu.vector_store %arg8[%c0_28, %c0_29], %42 {strides = array<i32>} : memref<1x128xf32, #tpu.memory_space<vmem>>, vector<1x128xf32>,
        %c0_30 = arith.constant 0 : index
        %c0_31 = arith.constant 0 : index
        %53 = vector.load %arg9[%c0_30, %c0_31] : memref<1x128xf32, #tpu.memory_space<vmem>>, vector<1x128xf32>
        tpu.vector_store %arg9[%c0_30, %c0_31], %45 {strides = array<i32>} : memref<1x128xf32, #tpu.memory_space<vmem>>, vector<1x128xf32>,
      } else {
      }
      %c0_i32_26 = arith.constant 0 : i32
      %49 = arith.cmpi ne, %arg0, %c0_i32_26 : i32
      %50 = arith.extui %49 : i1 to i32
      %c0_i32_27 = arith.constant 0 : i32
      %51 = arith.cmpi ne, %50, %c0_i32_27 : i32
      scf.if %51 {
        %c0_28 = arith.constant 0 : index
        %c0_29 = arith.constant 0 : index
        %52 = vector.load %arg8[%c0_28, %c0_29] : memref<1x128xf32, #tpu.memory_space<vmem>>, vector<1x128xf32>
        %53 = arith.addf %52, %42 : vector<1x128xf32>
        %c0_30 = arith.constant 0 : index
        %c0_31 = arith.constant 0 : index
        %54 = vector.load %arg8[%c0_30, %c0_31] : memref<1x128xf32, #tpu.memory_space<vmem>>, vector<1x128xf32>
        tpu.vector_store %arg8[%c0_30, %c0_31], %53 {strides = array<i32>} : memref<1x128xf32, #tpu.memory_space<vmem>>, vector<1x128xf32>,
        %c0_32 = arith.constant 0 : index
        %c0_33 = arith.constant 0 : index
        %55 = vector.load %arg9[%c0_32, %c0_33] : memref<1x128xf32, #tpu.memory_space<vmem>>, vector<1x128xf32>
        %56 = arith.addf %55, %45 : vector<1x128xf32>
        %c0_34 = arith.constant 0 : index
        %c0_35 = arith.constant 0 : index
        %57 = vector.load %arg9[%c0_34, %c0_35] : memref<1x128xf32, #tpu.memory_space<vmem>>, vector<1x128xf32>
        tpu.vector_store %arg9[%c0_34, %c0_35], %56 {strides = array<i32>} : memref<1x128xf32, #tpu.memory_space<vmem>>, vector<1x128xf32>,
      } else {
      }
    } else {
    }
    return
  }
  func.func @transform_0(%arg0: i32, %arg1: i32) -> (i32, i32) {
    %c0_i32 = arith.constant 0 : i32
    return %arg0, %arg1 : i32, i32
  }
  func.func @transform_1(%arg0: i32, %arg1: i32) -> (i32, i32) {
    %c0_i32 = arith.constant 0 : i32
    %c0_i32_0 = arith.constant 0 : i32
    return %arg1, %c0_i32 : i32, i32
  }
  func.func @transform_2(%arg0: i32, %arg1: i32) -> (i32, i32) {
    %c0_i32 = arith.constant 0 : i32
    %c0_i32_0 = arith.constant 0 : i32
    %c0_i32_1 = arith.constant 0 : i32
    return %c0_i32, %c0_i32_0 : i32, i32
  }
  func.func @transform_3(%arg0: i32, %arg1: i32) -> (i32, i32) {
    %c0_i32 = arith.constant 0 : i32
    %c0_i32_0 = arith.constant 0 : i32
    return %c0_i32, %arg1 : i32, i32
  }
  func.func @transform_4(%arg0: i32, %arg1: i32) -> (i32, i32) {
    %c0_i32 = arith.constant 0 : i32
    %c0_i32_0 = arith.constant 0 : i32
    return %c0_i32, %arg1 : i32, i32
  }
  func.func @transform_5(%arg0: i32, %arg1: i32) -> (i32, i32) {
    %c0_i32 = arith.constant 0 : i32
    %c0_i32_0 = arith.constant 0 : i32
    return %arg0, %c0_i32 : i32, i32
  }
  func.func @transform_6(%arg0: i32, %arg1: i32) -> (i32, i32) {
    %c0_i32 = arith.constant 0 : i32
    %c0_i32_0 = arith.constant 0 : i32
    %c0_i32_1 = arith.constant 0 : i32
    return %c0_i32, %c0_i32_0 : i32, i32
  }
  func.func @transform_7(%arg0: i32, %arg1: i32) -> (i32, i32) {
    %c0_i32 = arith.constant 0 : i32
    %c0_i32_0 = arith.constant 0 : i32
    %c0_i32_1 = arith.constant 0 : i32
    return %c0_i32, %c0_i32_0 : i32, i32
  }
}

module attributes {stable_mosaic.version = 11 : i64} {
  func.func @_mm_kernel(%arg0: i32, %arg1: i32, %arg2: memref<8x1024xbf16, #tpu.memory_space<vmem>>, %arg3: memref<1024x128xbf16, #tpu.memory_space<vmem>>, %arg4: memref<1x128xf32, #tpu.memory_space<vmem>>, %arg5: memref<1x1024xf32, #tpu.memory_space<vmem>>, %arg6: memref<1x1024xf32, #tpu.memory_space<vmem>>, %arg7: memref<8x128xbf16, #tpu.memory_space<vmem>>, %arg8: memref<8x128xf32, #tpu.memory_space<vmem>>) attributes {dimension_semantics = [#tpu.dimension_semantics<parallel>, #tpu.dimension_semantics<arbitrary>], iteration_bounds = array<i64: 1, 2>, scalar_prefetch = 0 : i64, scratch_operands = 1 : i64, tpu.core_type = #tpu.core_type<tc>, window_params = [{transform_indices = @transform_0, window_bounds = array<i64: 8, 1024>}, {transform_indices = @transform_1, window_bounds = array<i64: 1024, 128>}, {pipeline_mode = #tpu.pipeline_mode<synchronous>, transform_indices = @transform_2, window_bounds = array<i64: 1, 128>}, {transform_indices = @transform_3, window_bounds = array<i64: 1, 1024>}, {transform_indices = @transform_4, window_bounds = array<i64: 1, 1024>}, {transform_indices = @transform_5, window_bounds = array<i64: 8, 128>}]} {
    %c0 = arith.constant 0 : index
    %c0_0 = arith.constant 0 : index
    %0 = vector.load %arg2[%c0, %c0_0] : memref<8x1024xbf16, #tpu.memory_space<vmem>>, vector<8x1024xbf16>
    %1 = arith.extf %0 : vector<8x1024xbf16> to vector<8x1024xf32>
    %c0_1 = arith.constant 0 : index
    %c0_2 = arith.constant 0 : index
    %2 = vector.load %arg5[%c0_1, %c0_2] : memref<1x1024xf32, #tpu.memory_space<vmem>>, vector<1x1024xf32>
    %3 = vector.broadcast %2 : vector<1x1024xf32> to vector<8x1024xf32>
    %4 = arith.mulf %1, %3 : vector<8x1024xf32>
    %c0_3 = arith.constant 0 : index
    %c0_4 = arith.constant 0 : index
    %5 = vector.load %arg6[%c0_3, %c0_4] : memref<1x1024xf32, #tpu.memory_space<vmem>>, vector<1x1024xf32>
    %6 = vector.broadcast %5 : vector<1x1024xf32> to vector<8x1024xf32>
    %7 = arith.addf %4, %6 : vector<8x1024xf32>
    %cst = arith.constant 0.000000e+00 : f32
    %8 = vector.broadcast %cst : f32 to vector<8x1024xf32>
    %9 = arith.cmpf ogt, %7, %8 : vector<8x1024xf32>
    %cst_5 = arith.constant 2.000000e-01 : f32
    %10 = vector.broadcast %cst_5 : f32 to vector<8x1024xf32>
    %11 = arith.mulf %10, %7 : vector<8x1024xf32>
    %12 = arith.select %9, %7, %11 : vector<8x1024xi1>, vector<8x1024xf32>
    %13 = arith.truncf %12 : vector<8x1024xf32> to vector<8x1024xbf16>
    %c0_6 = arith.constant 0 : index
    %c0_7 = arith.constant 0 : index
    %14 = vector.load %arg3[%c0_6, %c0_7] : memref<1024x128xbf16, #tpu.memory_space<vmem>>, vector<1024x128xbf16>
    %cst_8 = arith.constant dense<0.000000e+00> : vector<8x128xf32>
    %15 = tpu.matmul %13, %14, %cst_8 {dimension_numbers = #tpu.dot_dimension_numbers<[1], [0], [0], [1], [0, 0, 1, 1], [], []>} : vector<8x1024xbf16>, vector<1024x128xbf16>, vector<8x128xf32> -> vector<8x128xf32>
    %c0_i32 = arith.constant 0 : i32
    %16 = arith.cmpi eq, %arg1, %c0_i32 : i32
    %17 = arith.extui %16 : i1 to i32
    %c0_i32_9 = arith.constant 0 : i32
    %18 = arith.cmpi ne, %17, %c0_i32_9 : i32
    scf.if %18 {
      %c0_13 = arith.constant 0 : index
      %c0_14 = arith.constant 0 : index
      %25 = vector.load %arg8[%c0_13, %c0_14] : memref<8x128xf32, #tpu.memory_space<vmem>>, vector<8x128xf32>
      tpu.vector_store %arg8[%c0_13, %c0_14], %15 {strides = array<i32>} : memref<8x128xf32, #tpu.memory_space<vmem>>, vector<8x128xf32>,
    } else {
    }
    %c0_i32_10 = arith.constant 0 : i32
    %19 = arith.cmpi ne, %arg1, %c0_i32_10 : i32
    %20 = arith.extui %19 : i1 to i32
    %c0_i32_11 = arith.constant 0 : i32
    %21 = arith.cmpi ne, %20, %c0_i32_11 : i32
    scf.if %21 {
      %c0_13 = arith.constant 0 : index
      %c0_14 = arith.constant 0 : index
      %25 = vector.load %arg8[%c0_13, %c0_14] : memref<8x128xf32, #tpu.memory_space<vmem>>, vector<8x128xf32>
      %26 = arith.addf %25, %15 : vector<8x128xf32>
      %c0_15 = arith.constant 0 : index
      %c0_16 = arith.constant 0 : index
      %27 = vector.load %arg8[%c0_15, %c0_16] : memref<8x128xf32, #tpu.memory_space<vmem>>, vector<8x128xf32>
      tpu.vector_store %arg8[%c0_15, %c0_16], %26 {strides = array<i32>} : memref<8x128xf32, #tpu.memory_space<vmem>>, vector<8x128xf32>,
    } else {
    }
    %c1_i32 = arith.constant 1 : i32
    %22 = arith.cmpi eq, %arg1, %c1_i32 : i32
    %23 = arith.extui %22 : i1 to i32
    %c0_i32_12 = arith.constant 0 : i32
    %24 = arith.cmpi ne, %23, %c0_i32_12 : i32
    scf.if %24 {
      %c0_13 = arith.constant 0 : index
      %c0_14 = arith.constant 0 : index
      %25 = vector.load %arg8[%c0_13, %c0_14] : memref<8x128xf32, #tpu.memory_space<vmem>>, vector<8x128xf32>
      %c0_15 = arith.constant 0 : index
      %c0_16 = arith.constant 0 : index
      %26 = vector.load %arg4[%c0_15, %c0_16] : memref<1x128xf32, #tpu.memory_space<vmem>>, vector<1x128xf32>
      %27 = vector.broadcast %26 : vector<1x128xf32> to vector<8x128xf32>
      %28 = arith.addf %25, %27 : vector<8x128xf32>
      %29 = arith.truncf %28 : vector<8x128xf32> to vector<8x128xbf16>
      %c0_17 = arith.constant 0 : index
      %c0_18 = arith.constant 0 : index
      %30 = vector.load %arg7[%c0_17, %c0_18] : memref<8x128xbf16, #tpu.memory_space<vmem>>, vector<8x128xbf16>
      tpu.vector_store %arg7[%c0_17, %c0_18], %29 {strides = array<i32>} : memref<8x128xbf16, #tpu.memory_space<vmem>>, vector<8x128xbf16>,
    } else {
    }
    return
  }
  func.func @transform_0(%arg0: i32, %arg1: i32) -> (i32, i32) {
    %c0_i32 = arith.constant 0 : i32
    return %arg0, %arg1 : i32, i32
  }
  func.func @transform_1(%arg0: i32, %arg1: i32) -> (i32, i32) {
    %c0_i32 = arith.constant 0 : i32
    %c0_i32_0 = arith.constant 0 : i32
    return %arg1, %c0_i32 : i32, i32
  }
  func.func @transform_2(%arg0: i32, %arg1: i32) -> (i32, i32) {
    %c0_i32 = arith.constant 0 : i32
    %c0_i32_0 = arith.constant 0 : i32
    %c0_i32_1 = arith.constant 0 : i32
    return %c0_i32, %c0_i32_0 : i32, i32
  }
  func.func @transform_3(%arg0: i32, %arg1: i32) -> (i32, i32) {
    %c0_i32 = arith.constant 0 : i32
    %c0_i32_0 = arith.constant 0 : i32
    return %c0_i32, %arg1 : i32, i32
  }
  func.func @transform_4(%arg0: i32, %arg1: i32) -> (i32, i32) {
    %c0_i32 = arith.constant 0 : i32
    %c0_i32_0 = arith.constant 0 : i32
    return %c0_i32, %arg1 : i32, i32
  }
  func.func @transform_5(%arg0: i32, %arg1: i32) -> (i32, i32) {
    %c0_i32 = arith.constant 0 : i32
    %c0_i32_0 = arith.constant 0 : i32
    return %arg0, %c0_i32 : i32, i32
  }
}

module attributes {stable_mosaic.version = 11 : i64} {
  func.func @_mm_kernel(%arg0: i32, %arg1: i32, %arg2: memref<8x512xbf16, #tpu.memory_space<vmem>>, %arg3: memref<512x512xbf16, #tpu.memory_space<vmem>>, %arg4: memref<1x512xf32, #tpu.memory_space<vmem>>, %arg5: memref<1x512xf32, #tpu.memory_space<vmem>>, %arg6: memref<1x512xf32, #tpu.memory_space<vmem>>, %arg7: memref<8x512xbf16, #tpu.memory_space<vmem>>, %arg8: memref<8x512xf32, #tpu.memory_space<vmem>>) attributes {dimension_semantics = [#tpu.dimension_semantics<parallel>, #tpu.dimension_semantics<arbitrary>], iteration_bounds = array<i64: 1, 1>, scalar_prefetch = 0 : i64, scratch_operands = 1 : i64, tpu.core_type = #tpu.core_type<tc>, window_params = [{transform_indices = @transform_0, window_bounds = array<i64: 8, 512>}, {transform_indices = @transform_1, window_bounds = array<i64: 512, 512>}, {pipeline_mode = #tpu.pipeline_mode<synchronous>, transform_indices = @transform_2, window_bounds = array<i64: 1, 512>}, {transform_indices = @transform_3, window_bounds = array<i64: 1, 512>}, {transform_indices = @transform_4, window_bounds = array<i64: 1, 512>}, {transform_indices = @transform_5, window_bounds = array<i64: 8, 512>}]} {
    %c0 = arith.constant 0 : index
    %c0_0 = arith.constant 0 : index
    %0 = vector.load %arg2[%c0, %c0_0] : memref<8x512xbf16, #tpu.memory_space<vmem>>, vector<8x512xbf16>
    %1 = arith.extf %0 : vector<8x512xbf16> to vector<8x512xf32>
    %c0_1 = arith.constant 0 : index
    %c0_2 = arith.constant 0 : index
    %2 = vector.load %arg5[%c0_1, %c0_2] : memref<1x512xf32, #tpu.memory_space<vmem>>, vector<1x512xf32>
    %3 = vector.broadcast %2 : vector<1x512xf32> to vector<8x512xf32>
    %4 = arith.mulf %1, %3 : vector<8x512xf32>
    %c0_3 = arith.constant 0 : index
    %c0_4 = arith.constant 0 : index
    %5 = vector.load %arg6[%c0_3, %c0_4] : memref<1x512xf32, #tpu.memory_space<vmem>>, vector<1x512xf32>
    %6 = vector.broadcast %5 : vector<1x512xf32> to vector<8x512xf32>
    %7 = arith.addf %4, %6 : vector<8x512xf32>
    %cst = arith.constant 0.000000e+00 : f32
    %8 = vector.broadcast %cst : f32 to vector<8x512xf32>
    %9 = arith.maximumf %7, %8 : vector<8x512xf32>
    %10 = arith.truncf %9 : vector<8x512xf32> to vector<8x512xbf16>
    %c0_5 = arith.constant 0 : index
    %c0_6 = arith.constant 0 : index
    %11 = vector.load %arg3[%c0_5, %c0_6] : memref<512x512xbf16, #tpu.memory_space<vmem>>, vector<512x512xbf16>
    %cst_7 = arith.constant dense<0.000000e+00> : vector<8x512xf32>
    %12 = tpu.matmul %10, %11, %cst_7 {dimension_numbers = #tpu.dot_dimension_numbers<[1], [0], [0], [1], [0, 0, 1, 1], [], []>} : vector<8x512xbf16>, vector<512x512xbf16>, vector<8x512xf32> -> vector<8x512xf32>
    %c0_i32 = arith.constant 0 : i32
    %13 = arith.cmpi eq, %arg1, %c0_i32 : i32
    %14 = arith.extui %13 : i1 to i32
    %c0_i32_8 = arith.constant 0 : i32
    %15 = arith.cmpi ne, %14, %c0_i32_8 : i32
    scf.if %15 {
      %c0_13 = arith.constant 0 : index
      %c0_14 = arith.constant 0 : index
      %22 = vector.load %arg8[%c0_13, %c0_14] : memref<8x512xf32, #tpu.memory_space<vmem>>, vector<8x512xf32>
      tpu.vector_store %arg8[%c0_13, %c0_14], %12 {strides = array<i32>} : memref<8x512xf32, #tpu.memory_space<vmem>>, vector<8x512xf32>,
    } else {
    }
    %c0_i32_9 = arith.constant 0 : i32
    %16 = arith.cmpi ne, %arg1, %c0_i32_9 : i32
    %17 = arith.extui %16 : i1 to i32
    %c0_i32_10 = arith.constant 0 : i32
    %18 = arith.cmpi ne, %17, %c0_i32_10 : i32
    scf.if %18 {
      %c0_13 = arith.constant 0 : index
      %c0_14 = arith.constant 0 : index
      %22 = vector.load %arg8[%c0_13, %c0_14] : memref<8x512xf32, #tpu.memory_space<vmem>>, vector<8x512xf32>
      %23 = arith.addf %22, %12 : vector<8x512xf32>
      %c0_15 = arith.constant 0 : index
      %c0_16 = arith.constant 0 : index
      %24 = vector.load %arg8[%c0_15, %c0_16] : memref<8x512xf32, #tpu.memory_space<vmem>>, vector<8x512xf32>
      tpu.vector_store %arg8[%c0_15, %c0_16], %23 {strides = array<i32>} : memref<8x512xf32, #tpu.memory_space<vmem>>, vector<8x512xf32>,
    } else {
    }
    %c0_i32_11 = arith.constant 0 : i32
    %19 = arith.cmpi eq, %arg1, %c0_i32_11 : i32
    %20 = arith.extui %19 : i1 to i32
    %c0_i32_12 = arith.constant 0 : i32
    %21 = arith.cmpi ne, %20, %c0_i32_12 : i32
    scf.if %21 {
      %c0_13 = arith.constant 0 : index
      %c0_14 = arith.constant 0 : index
      %22 = vector.load %arg8[%c0_13, %c0_14] : memref<8x512xf32, #tpu.memory_space<vmem>>, vector<8x512xf32>
      %c0_15 = arith.constant 0 : index
      %c0_16 = arith.constant 0 : index
      %23 = vector.load %arg4[%c0_15, %c0_16] : memref<1x512xf32, #tpu.memory_space<vmem>>, vector<1x512xf32>
      %24 = vector.broadcast %23 : vector<1x512xf32> to vector<8x512xf32>
      %25 = arith.addf %22, %24 : vector<8x512xf32>
      %26 = arith.truncf %25 : vector<8x512xf32> to vector<8x512xbf16>
      %c0_17 = arith.constant 0 : index
      %c0_18 = arith.constant 0 : index
      %27 = vector.load %arg7[%c0_17, %c0_18] : memref<8x512xbf16, #tpu.memory_space<vmem>>, vector<8x512xbf16>
      tpu.vector_store %arg7[%c0_17, %c0_18], %26 {strides = array<i32>} : memref<8x512xbf16, #tpu.memory_space<vmem>>, vector<8x512xbf16>,
    } else {
    }
    return
  }
  func.func @transform_0(%arg0: i32, %arg1: i32) -> (i32, i32) {
    %c0_i32 = arith.constant 0 : i32
    return %arg0, %arg1 : i32, i32
  }
  func.func @transform_1(%arg0: i32, %arg1: i32) -> (i32, i32) {
    %c0_i32 = arith.constant 0 : i32
    %c0_i32_0 = arith.constant 0 : i32
    return %arg1, %c0_i32 : i32, i32
  }
  func.func @transform_2(%arg0: i32, %arg1: i32) -> (i32, i32) {
    %c0_i32 = arith.constant 0 : i32
    %c0_i32_0 = arith.constant 0 : i32
    %c0_i32_1 = arith.constant 0 : i32
    return %c0_i32, %c0_i32_0 : i32, i32
  }
  func.func @transform_3(%arg0: i32, %arg1: i32) -> (i32, i32) {
    %c0_i32 = arith.constant 0 : i32
    %c0_i32_0 = arith.constant 0 : i32
    return %c0_i32, %arg1 : i32, i32
  }
  func.func @transform_4(%arg0: i32, %arg1: i32) -> (i32, i32) {
    %c0_i32 = arith.constant 0 : i32
    %c0_i32_0 = arith.constant 0 : i32
    return %c0_i32, %arg1 : i32, i32
  }
  func.func @transform_5(%arg0: i32, %arg1: i32) -> (i32, i32) {
    %c0_i32 = arith.constant 0 : i32
    %c0_i32_0 = arith.constant 0 : i32
    return %arg0, %c0_i32 : i32, i32
  }
}

module attributes {stable_mosaic.version = 11 : i64} {
  func.func @_stats_kernel(%arg0: i32, %arg1: memref<8x256xbf16, #tpu.memory_space<vmem>>, %arg2: memref<1x256xf32, #tpu.memory_space<vmem>>, %arg3: memref<1x256xf32, #tpu.memory_space<vmem>>) attributes {dimension_semantics = [#tpu.dimension_semantics<arbitrary>], iteration_bounds = array<i64: 1>, scalar_prefetch = 0 : i64, scratch_operands = 0 : i64, tpu.core_type = #tpu.core_type<tc>, window_params = [{transform_indices = @transform_0, window_bounds = array<i64: 8, 256>}, {pipeline_mode = #tpu.pipeline_mode<synchronous>, transform_indices = @transform_1, window_bounds = array<i64: 1, 256>}, {pipeline_mode = #tpu.pipeline_mode<synchronous>, transform_indices = @transform_2, window_bounds = array<i64: 1, 256>}]} {
    %c0 = arith.constant 0 : index
    %c0_0 = arith.constant 0 : index
    %0 = vector.load %arg1[%c0, %c0_0] : memref<8x256xbf16, #tpu.memory_space<vmem>>, vector<8x256xbf16>
    %1 = arith.extf %0 : vector<8x256xbf16> to vector<8x256xf32>
    %cst = arith.constant dense<0.000000e+00> : vector<256xf32>
    %2 = vector.multi_reduction <add>, %1, %cst [0] : vector<8x256xf32> to vector<256xf32>
    %3 = vector.shape_cast %2 : vector<256xf32> to vector<1x256xf32>
    %4 = arith.mulf %1, %1 : vector<8x256xf32>
    %cst_1 = arith.constant dense<0.000000e+00> : vector<256xf32>
    %5 = vector.multi_reduction <add>, %4, %cst_1 [0] : vector<8x256xf32> to vector<256xf32>
    %6 = vector.shape_cast %5 : vector<256xf32> to vector<1x256xf32>
    %c0_i32 = arith.constant 0 : i32
    %7 = arith.cmpi eq, %arg0, %c0_i32 : i32
    %8 = arith.extui %7 : i1 to i32
    %c0_i32_2 = arith.constant 0 : i32
    %9 = arith.cmpi ne, %8, %c0_i32_2 : i32
    scf.if %9 {
      %c0_5 = arith.constant 0 : index
      %c0_6 = arith.constant 0 : index
      %13 = vector.load %arg2[%c0_5, %c0_6] : memref<1x256xf32, #tpu.memory_space<vmem>>, vector<1x256xf32>
      tpu.vector_store %arg2[%c0_5, %c0_6], %3 {strides = array<i32>} : memref<1x256xf32, #tpu.memory_space<vmem>>, vector<1x256xf32>,
      %c0_7 = arith.constant 0 : index
      %c0_8 = arith.constant 0 : index
      %14 = vector.load %arg3[%c0_7, %c0_8] : memref<1x256xf32, #tpu.memory_space<vmem>>, vector<1x256xf32>
      tpu.vector_store %arg3[%c0_7, %c0_8], %6 {strides = array<i32>} : memref<1x256xf32, #tpu.memory_space<vmem>>, vector<1x256xf32>,
    } else {
    }
    %c0_i32_3 = arith.constant 0 : i32
    %10 = arith.cmpi ne, %arg0, %c0_i32_3 : i32
    %11 = arith.extui %10 : i1 to i32
    %c0_i32_4 = arith.constant 0 : i32
    %12 = arith.cmpi ne, %11, %c0_i32_4 : i32
    scf.if %12 {
      %c0_5 = arith.constant 0 : index
      %c0_6 = arith.constant 0 : index
      %13 = vector.load %arg2[%c0_5, %c0_6] : memref<1x256xf32, #tpu.memory_space<vmem>>, vector<1x256xf32>
      %14 = arith.addf %13, %3 : vector<1x256xf32>
      %c0_7 = arith.constant 0 : index
      %c0_8 = arith.constant 0 : index
      %15 = vector.load %arg2[%c0_7, %c0_8] : memref<1x256xf32, #tpu.memory_space<vmem>>, vector<1x256xf32>
      tpu.vector_store %arg2[%c0_7, %c0_8], %14 {strides = array<i32>} : memref<1x256xf32, #tpu.memory_space<vmem>>, vector<1x256xf32>,
      %c0_9 = arith.constant 0 : index
      %c0_10 = arith.constant 0 : index
      %16 = vector.load %arg3[%c0_9, %c0_10] : memref<1x256xf32, #tpu.memory_space<vmem>>, vector<1x256xf32>
      %17 = arith.addf %16, %6 : vector<1x256xf32>
      %c0_11 = arith.constant 0 : index
      %c0_12 = arith.constant 0 : index
      %18 = vector.load %arg3[%c0_11, %c0_12] : memref<1x256xf32, #tpu.memory_space<vmem>>, vector<1x256xf32>
      tpu.vector_store %arg3[%c0_11, %c0_12], %17 {strides = array<i32>} : memref<1x256xf32, #tpu.memory_space<vmem>>, vector<1x256xf32>,
    } else {
    }
    return
  }
  func.func @transform_0(%arg0: i32) -> (i32, i32) {
    %c0_i32 = arith.constant 0 : i32
    %c0_i32_0 = arith.constant 0 : i32
    return %arg0, %c0_i32 : i32, i32
  }
  func.func @transform_1(%arg0: i32) -> (i32, i32) {
    %c0_i32 = arith.constant 0 : i32
    %c0_i32_0 = arith.constant 0 : i32
    %c0_i32_1 = arith.constant 0 : i32
    return %c0_i32, %c0_i32_0 : i32, i32
  }
  func.func @transform_2(%arg0: i32) -> (i32, i32) {
    %c0_i32 = arith.constant 0 : i32
    %c0_i32_0 = arith.constant 0 : i32
    %c0_i32_1 = arith.constant 0 : i32
    return %c0_i32, %c0_i32_0 : i32, i32
  }
}

module attributes {stable_mosaic.version = 11 : i64} {
  func.func @_mm_kernel(%arg0: i32, %arg1: i32, %arg2: memref<24x1024xbf16, #tpu.memory_space<vmem>>, %arg3: memref<1024x256xbf16, #tpu.memory_space<vmem>>, %arg4: memref<1x256xf32, #tpu.memory_space<vmem>>, %arg5: memref<1x1024xf32, #tpu.memory_space<vmem>>, %arg6: memref<1x1024xf32, #tpu.memory_space<vmem>>, %arg7: memref<24x256xbf16, #tpu.memory_space<vmem>>, %arg8: memref<24x256xf32, #tpu.memory_space<vmem>>) attributes {dimension_semantics = [#tpu.dimension_semantics<parallel>, #tpu.dimension_semantics<arbitrary>], iteration_bounds = array<i64: 1, 1>, scalar_prefetch = 0 : i64, scratch_operands = 1 : i64, tpu.core_type = #tpu.core_type<tc>, window_params = [{transform_indices = @transform_0, window_bounds = array<i64: 24, 1024>}, {transform_indices = @transform_1, window_bounds = array<i64: 1024, 256>}, {pipeline_mode = #tpu.pipeline_mode<synchronous>, transform_indices = @transform_2, window_bounds = array<i64: 1, 256>}, {transform_indices = @transform_3, window_bounds = array<i64: 1, 1024>}, {transform_indices = @transform_4, window_bounds = array<i64: 1, 1024>}, {transform_indices = @transform_5, window_bounds = array<i64: 24, 256>}]} {
    %c0 = arith.constant 0 : index
    %c0_0 = arith.constant 0 : index
    %0 = vector.load %arg2[%c0, %c0_0] : memref<24x1024xbf16, #tpu.memory_space<vmem>>, vector<24x1024xbf16>
    %1 = arith.extf %0 : vector<24x1024xbf16> to vector<24x1024xf32>
    %c0_1 = arith.constant 0 : index
    %c0_2 = arith.constant 0 : index
    %2 = vector.load %arg5[%c0_1, %c0_2] : memref<1x1024xf32, #tpu.memory_space<vmem>>, vector<1x1024xf32>
    %3 = vector.broadcast %2 : vector<1x1024xf32> to vector<24x1024xf32>
    %4 = arith.mulf %1, %3 : vector<24x1024xf32>
    %c0_3 = arith.constant 0 : index
    %c0_4 = arith.constant 0 : index
    %5 = vector.load %arg6[%c0_3, %c0_4] : memref<1x1024xf32, #tpu.memory_space<vmem>>, vector<1x1024xf32>
    %6 = vector.broadcast %5 : vector<1x1024xf32> to vector<24x1024xf32>
    %7 = arith.addf %4, %6 : vector<24x1024xf32>
    %cst = arith.constant 0.000000e+00 : f32
    %8 = vector.broadcast %cst : f32 to vector<24x1024xf32>
    %9 = arith.maximumf %7, %8 : vector<24x1024xf32>
    %10 = arith.truncf %9 : vector<24x1024xf32> to vector<24x1024xbf16>
    %c0_5 = arith.constant 0 : index
    %c0_6 = arith.constant 0 : index
    %11 = vector.load %arg3[%c0_5, %c0_6] : memref<1024x256xbf16, #tpu.memory_space<vmem>>, vector<1024x256xbf16>
    %cst_7 = arith.constant dense<0.000000e+00> : vector<24x256xf32>
    %12 = tpu.matmul %10, %11, %cst_7 {dimension_numbers = #tpu.dot_dimension_numbers<[1], [0], [0], [1], [0, 0, 1, 1], [], []>} : vector<24x1024xbf16>, vector<1024x256xbf16>, vector<24x256xf32> -> vector<24x256xf32>
    %c0_i32 = arith.constant 0 : i32
    %13 = arith.cmpi eq, %arg1, %c0_i32 : i32
    %14 = arith.extui %13 : i1 to i32
    %c0_i32_8 = arith.constant 0 : i32
    %15 = arith.cmpi ne, %14, %c0_i32_8 : i32
    scf.if %15 {
      %c0_13 = arith.constant 0 : index
      %c0_14 = arith.constant 0 : index
      %22 = vector.load %arg8[%c0_13, %c0_14] : memref<24x256xf32, #tpu.memory_space<vmem>>, vector<24x256xf32>
      tpu.vector_store %arg8[%c0_13, %c0_14], %12 {strides = array<i32>} : memref<24x256xf32, #tpu.memory_space<vmem>>, vector<24x256xf32>,
    } else {
    }
    %c0_i32_9 = arith.constant 0 : i32
    %16 = arith.cmpi ne, %arg1, %c0_i32_9 : i32
    %17 = arith.extui %16 : i1 to i32
    %c0_i32_10 = arith.constant 0 : i32
    %18 = arith.cmpi ne, %17, %c0_i32_10 : i32
    scf.if %18 {
      %c0_13 = arith.constant 0 : index
      %c0_14 = arith.constant 0 : index
      %22 = vector.load %arg8[%c0_13, %c0_14] : memref<24x256xf32, #tpu.memory_space<vmem>>, vector<24x256xf32>
      %23 = arith.addf %22, %12 : vector<24x256xf32>
      %c0_15 = arith.constant 0 : index
      %c0_16 = arith.constant 0 : index
      %24 = vector.load %arg8[%c0_15, %c0_16] : memref<24x256xf32, #tpu.memory_space<vmem>>, vector<24x256xf32>
      tpu.vector_store %arg8[%c0_15, %c0_16], %23 {strides = array<i32>} : memref<24x256xf32, #tpu.memory_space<vmem>>, vector<24x256xf32>,
    } else {
    }
    %c0_i32_11 = arith.constant 0 : i32
    %19 = arith.cmpi eq, %arg1, %c0_i32_11 : i32
    %20 = arith.extui %19 : i1 to i32
    %c0_i32_12 = arith.constant 0 : i32
    %21 = arith.cmpi ne, %20, %c0_i32_12 : i32
    scf.if %21 {
      %c0_13 = arith.constant 0 : index
      %c0_14 = arith.constant 0 : index
      %22 = vector.load %arg8[%c0_13, %c0_14] : memref<24x256xf32, #tpu.memory_space<vmem>>, vector<24x256xf32>
      %c0_15 = arith.constant 0 : index
      %c0_16 = arith.constant 0 : index
      %23 = vector.load %arg4[%c0_15, %c0_16] : memref<1x256xf32, #tpu.memory_space<vmem>>, vector<1x256xf32>
      %24 = vector.broadcast %23 : vector<1x256xf32> to vector<24x256xf32>
      %25 = arith.addf %22, %24 : vector<24x256xf32>
      %26 = arith.truncf %25 : vector<24x256xf32> to vector<24x256xbf16>
      %c0_17 = arith.constant 0 : index
      %c0_18 = arith.constant 0 : index
      %27 = vector.load %arg7[%c0_17, %c0_18] : memref<24x256xbf16, #tpu.memory_space<vmem>>, vector<24x256xbf16>
      tpu.vector_store %arg7[%c0_17, %c0_18], %26 {strides = array<i32>} : memref<24x256xbf16, #tpu.memory_space<vmem>>, vector<24x256xbf16>,
    } else {
    }
    return
  }
  func.func @transform_0(%arg0: i32, %arg1: i32) -> (i32, i32) {
    %c0_i32 = arith.constant 0 : i32
    return %arg0, %arg1 : i32, i32
  }
  func.func @transform_1(%arg0: i32, %arg1: i32) -> (i32, i32) {
    %c0_i32 = arith.constant 0 : i32
    %c0_i32_0 = arith.constant 0 : i32
    return %arg1, %c0_i32 : i32, i32
  }
  func.func @transform_2(%arg0: i32, %arg1: i32) -> (i32, i32) {
    %c0_i32 = arith.constant 0 : i32
    %c0_i32_0 = arith.constant 0 : i32
    %c0_i32_1 = arith.constant 0 : i32
    return %c0_i32, %c0_i32_0 : i32, i32
  }
  func.func @transform_3(%arg0: i32, %arg1: i32) -> (i32, i32) {
    %c0_i32 = arith.constant 0 : i32
    %c0_i32_0 = arith.constant 0 : i32
    return %c0_i32, %arg1 : i32, i32
  }
  func.func @transform_4(%arg0: i32, %arg1: i32) -> (i32, i32) {
    %c0_i32 = arith.constant 0 : i32
    %c0_i32_0 = arith.constant 0 : i32
    return %c0_i32, %arg1 : i32, i32
  }
  func.func @transform_5(%arg0: i32, %arg1: i32) -> (i32, i32) {
    %c0_i32 = arith.constant 0 : i32
    %c0_i32_0 = arith.constant 0 : i32
    return %arg0, %c0_i32 : i32, i32
  }
}

module attributes {stable_mosaic.version = 11 : i64} {
  func.func @_mm_kernel(%arg0: i32, %arg1: i32, %arg2: memref<56x512xbf16, #tpu.memory_space<vmem>>, %arg3: memref<512x128xbf16, #tpu.memory_space<vmem>>, %arg4: memref<1x128xf32, #tpu.memory_space<vmem>>, %arg5: memref<1x512xf32, #tpu.memory_space<vmem>>, %arg6: memref<1x512xf32, #tpu.memory_space<vmem>>, %arg7: memref<56x128xbf16, #tpu.memory_space<vmem>>, %arg8: memref<56x128xf32, #tpu.memory_space<vmem>>) attributes {dimension_semantics = [#tpu.dimension_semantics<parallel>, #tpu.dimension_semantics<arbitrary>], iteration_bounds = array<i64: 1, 1>, scalar_prefetch = 0 : i64, scratch_operands = 1 : i64, tpu.core_type = #tpu.core_type<tc>, window_params = [{transform_indices = @transform_0, window_bounds = array<i64: 56, 512>}, {transform_indices = @transform_1, window_bounds = array<i64: 512, 128>}, {pipeline_mode = #tpu.pipeline_mode<synchronous>, transform_indices = @transform_2, window_bounds = array<i64: 1, 128>}, {transform_indices = @transform_3, window_bounds = array<i64: 1, 512>}, {transform_indices = @transform_4, window_bounds = array<i64: 1, 512>}, {transform_indices = @transform_5, window_bounds = array<i64: 56, 128>}]} {
    %c0 = arith.constant 0 : index
    %c0_0 = arith.constant 0 : index
    %0 = vector.load %arg2[%c0, %c0_0] : memref<56x512xbf16, #tpu.memory_space<vmem>>, vector<56x512xbf16>
    %1 = arith.extf %0 : vector<56x512xbf16> to vector<56x512xf32>
    %c0_1 = arith.constant 0 : index
    %c0_2 = arith.constant 0 : index
    %2 = vector.load %arg5[%c0_1, %c0_2] : memref<1x512xf32, #tpu.memory_space<vmem>>, vector<1x512xf32>
    %3 = vector.broadcast %2 : vector<1x512xf32> to vector<56x512xf32>
    %4 = arith.mulf %1, %3 : vector<56x512xf32>
    %c0_3 = arith.constant 0 : index
    %c0_4 = arith.constant 0 : index
    %5 = vector.load %arg6[%c0_3, %c0_4] : memref<1x512xf32, #tpu.memory_space<vmem>>, vector<1x512xf32>
    %6 = vector.broadcast %5 : vector<1x512xf32> to vector<56x512xf32>
    %7 = arith.addf %4, %6 : vector<56x512xf32>
    %cst = arith.constant 0.000000e+00 : f32
    %8 = vector.broadcast %cst : f32 to vector<56x512xf32>
    %9 = arith.maximumf %7, %8 : vector<56x512xf32>
    %10 = arith.truncf %9 : vector<56x512xf32> to vector<56x512xbf16>
    %c0_5 = arith.constant 0 : index
    %c0_6 = arith.constant 0 : index
    %11 = vector.load %arg3[%c0_5, %c0_6] : memref<512x128xbf16, #tpu.memory_space<vmem>>, vector<512x128xbf16>
    %cst_7 = arith.constant dense<0.000000e+00> : vector<56x128xf32>
    %12 = tpu.matmul %10, %11, %cst_7 {dimension_numbers = #tpu.dot_dimension_numbers<[1], [0], [0], [1], [0, 0, 1, 1], [], []>} : vector<56x512xbf16>, vector<512x128xbf16>, vector<56x128xf32> -> vector<56x128xf32>
    %c0_i32 = arith.constant 0 : i32
    %13 = arith.cmpi eq, %arg1, %c0_i32 : i32
    %14 = arith.extui %13 : i1 to i32
    %c0_i32_8 = arith.constant 0 : i32
    %15 = arith.cmpi ne, %14, %c0_i32_8 : i32
    scf.if %15 {
      %c0_13 = arith.constant 0 : index
      %c0_14 = arith.constant 0 : index
      %22 = vector.load %arg8[%c0_13, %c0_14] : memref<56x128xf32, #tpu.memory_space<vmem>>, vector<56x128xf32>
      tpu.vector_store %arg8[%c0_13, %c0_14], %12 {strides = array<i32>} : memref<56x128xf32, #tpu.memory_space<vmem>>, vector<56x128xf32>,
    } else {
    }
    %c0_i32_9 = arith.constant 0 : i32
    %16 = arith.cmpi ne, %arg1, %c0_i32_9 : i32
    %17 = arith.extui %16 : i1 to i32
    %c0_i32_10 = arith.constant 0 : i32
    %18 = arith.cmpi ne, %17, %c0_i32_10 : i32
    scf.if %18 {
      %c0_13 = arith.constant 0 : index
      %c0_14 = arith.constant 0 : index
      %22 = vector.load %arg8[%c0_13, %c0_14] : memref<56x128xf32, #tpu.memory_space<vmem>>, vector<56x128xf32>
      %23 = arith.addf %22, %12 : vector<56x128xf32>
      %c0_15 = arith.constant 0 : index
      %c0_16 = arith.constant 0 : index
      %24 = vector.load %arg8[%c0_15, %c0_16] : memref<56x128xf32, #tpu.memory_space<vmem>>, vector<56x128xf32>
      tpu.vector_store %arg8[%c0_15, %c0_16], %23 {strides = array<i32>} : memref<56x128xf32, #tpu.memory_space<vmem>>, vector<56x128xf32>,
    } else {
    }
    %c0_i32_11 = arith.constant 0 : i32
    %19 = arith.cmpi eq, %arg1, %c0_i32_11 : i32
    %20 = arith.extui %19 : i1 to i32
    %c0_i32_12 = arith.constant 0 : i32
    %21 = arith.cmpi ne, %20, %c0_i32_12 : i32
    scf.if %21 {
      %c0_13 = arith.constant 0 : index
      %c0_14 = arith.constant 0 : index
      %22 = vector.load %arg8[%c0_13, %c0_14] : memref<56x128xf32, #tpu.memory_space<vmem>>, vector<56x128xf32>
      %c0_15 = arith.constant 0 : index
      %c0_16 = arith.constant 0 : index
      %23 = vector.load %arg4[%c0_15, %c0_16] : memref<1x128xf32, #tpu.memory_space<vmem>>, vector<1x128xf32>
      %24 = vector.broadcast %23 : vector<1x128xf32> to vector<56x128xf32>
      %25 = arith.addf %22, %24 : vector<56x128xf32>
      %26 = arith.truncf %25 : vector<56x128xf32> to vector<56x128xbf16>
      %c0_17 = arith.constant 0 : index
      %c0_18 = arith.constant 0 : index
      %27 = vector.load %arg7[%c0_17, %c0_18] : memref<56x128xbf16, #tpu.memory_space<vmem>>, vector<56x128xbf16>
      tpu.vector_store %arg7[%c0_17, %c0_18], %26 {strides = array<i32>} : memref<56x128xbf16, #tpu.memory_space<vmem>>, vector<56x128xbf16>,
    } else {
    }
    return
  }
  func.func @transform_0(%arg0: i32, %arg1: i32) -> (i32, i32) {
    %c0_i32 = arith.constant 0 : i32
    return %arg0, %arg1 : i32, i32
  }
  func.func @transform_1(%arg0: i32, %arg1: i32) -> (i32, i32) {
    %c0_i32 = arith.constant 0 : i32
    %c0_i32_0 = arith.constant 0 : i32
    return %arg1, %c0_i32 : i32, i32
  }
  func.func @transform_2(%arg0: i32, %arg1: i32) -> (i32, i32) {
    %c0_i32 = arith.constant 0 : i32
    %c0_i32_0 = arith.constant 0 : i32
    %c0_i32_1 = arith.constant 0 : i32
    return %c0_i32, %c0_i32_0 : i32, i32
  }
  func.func @transform_3(%arg0: i32, %arg1: i32) -> (i32, i32) {
    %c0_i32 = arith.constant 0 : i32
    %c0_i32_0 = arith.constant 0 : i32
    return %c0_i32, %arg1 : i32, i32
  }
  func.func @transform_4(%arg0: i32, %arg1: i32) -> (i32, i32) {
    %c0_i32 = arith.constant 0 : i32
    %c0_i32_0 = arith.constant 0 : i32
    return %c0_i32, %arg1 : i32, i32
  }
  func.func @transform_5(%arg0: i32, %arg1: i32) -> (i32, i32) {
    %c0_i32 = arith.constant 0 : i32
    %c0_i32_0 = arith.constant 0 : i32
    return %arg0, %c0_i32 : i32, i32
  }
}

module attributes {stable_mosaic.version = 11 : i64} {
  func.func @_stats_kernel(%arg0: i32, %arg1: memref<16x256xbf16, #tpu.memory_space<vmem>>, %arg2: memref<1x256xf32, #tpu.memory_space<vmem>>, %arg3: memref<1x256xf32, #tpu.memory_space<vmem>>) attributes {dimension_semantics = [#tpu.dimension_semantics<arbitrary>], iteration_bounds = array<i64: 1>, scalar_prefetch = 0 : i64, scratch_operands = 0 : i64, tpu.core_type = #tpu.core_type<tc>, window_params = [{transform_indices = @transform_0, window_bounds = array<i64: 16, 256>}, {pipeline_mode = #tpu.pipeline_mode<synchronous>, transform_indices = @transform_1, window_bounds = array<i64: 1, 256>}, {pipeline_mode = #tpu.pipeline_mode<synchronous>, transform_indices = @transform_2, window_bounds = array<i64: 1, 256>}]} {
    %c0 = arith.constant 0 : index
    %c0_0 = arith.constant 0 : index
    %0 = vector.load %arg1[%c0, %c0_0] : memref<16x256xbf16, #tpu.memory_space<vmem>>, vector<16x256xbf16>
    %1 = arith.extf %0 : vector<16x256xbf16> to vector<16x256xf32>
    %cst = arith.constant dense<0.000000e+00> : vector<256xf32>
    %2 = vector.multi_reduction <add>, %1, %cst [0] : vector<16x256xf32> to vector<256xf32>
    %3 = vector.shape_cast %2 : vector<256xf32> to vector<1x256xf32>
    %4 = arith.mulf %1, %1 : vector<16x256xf32>
    %cst_1 = arith.constant dense<0.000000e+00> : vector<256xf32>
    %5 = vector.multi_reduction <add>, %4, %cst_1 [0] : vector<16x256xf32> to vector<256xf32>
    %6 = vector.shape_cast %5 : vector<256xf32> to vector<1x256xf32>
    %c0_i32 = arith.constant 0 : i32
    %7 = arith.cmpi eq, %arg0, %c0_i32 : i32
    %8 = arith.extui %7 : i1 to i32
    %c0_i32_2 = arith.constant 0 : i32
    %9 = arith.cmpi ne, %8, %c0_i32_2 : i32
    scf.if %9 {
      %c0_5 = arith.constant 0 : index
      %c0_6 = arith.constant 0 : index
      %13 = vector.load %arg2[%c0_5, %c0_6] : memref<1x256xf32, #tpu.memory_space<vmem>>, vector<1x256xf32>
      tpu.vector_store %arg2[%c0_5, %c0_6], %3 {strides = array<i32>} : memref<1x256xf32, #tpu.memory_space<vmem>>, vector<1x256xf32>,
      %c0_7 = arith.constant 0 : index
      %c0_8 = arith.constant 0 : index
      %14 = vector.load %arg3[%c0_7, %c0_8] : memref<1x256xf32, #tpu.memory_space<vmem>>, vector<1x256xf32>
      tpu.vector_store %arg3[%c0_7, %c0_8], %6 {strides = array<i32>} : memref<1x256xf32, #tpu.memory_space<vmem>>, vector<1x256xf32>,
    } else {
    }
    %c0_i32_3 = arith.constant 0 : i32
    %10 = arith.cmpi ne, %arg0, %c0_i32_3 : i32
    %11 = arith.extui %10 : i1 to i32
    %c0_i32_4 = arith.constant 0 : i32
    %12 = arith.cmpi ne, %11, %c0_i32_4 : i32
    scf.if %12 {
      %c0_5 = arith.constant 0 : index
      %c0_6 = arith.constant 0 : index
      %13 = vector.load %arg2[%c0_5, %c0_6] : memref<1x256xf32, #tpu.memory_space<vmem>>, vector<1x256xf32>
      %14 = arith.addf %13, %3 : vector<1x256xf32>
      %c0_7 = arith.constant 0 : index
      %c0_8 = arith.constant 0 : index
      %15 = vector.load %arg2[%c0_7, %c0_8] : memref<1x256xf32, #tpu.memory_space<vmem>>, vector<1x256xf32>
      tpu.vector_store %arg2[%c0_7, %c0_8], %14 {strides = array<i32>} : memref<1x256xf32, #tpu.memory_space<vmem>>, vector<1x256xf32>,
      %c0_9 = arith.constant 0 : index
      %c0_10 = arith.constant 0 : index
      %16 = vector.load %arg3[%c0_9, %c0_10] : memref<1x256xf32, #tpu.memory_space<vmem>>, vector<1x256xf32>
      %17 = arith.addf %16, %6 : vector<1x256xf32>
      %c0_11 = arith.constant 0 : index
      %c0_12 = arith.constant 0 : index
      %18 = vector.load %arg3[%c0_11, %c0_12] : memref<1x256xf32, #tpu.memory_space<vmem>>, vector<1x256xf32>
      tpu.vector_store %arg3[%c0_11, %c0_12], %17 {strides = array<i32>} : memref<1x256xf32, #tpu.memory_space<vmem>>, vector<1x256xf32>,
    } else {
    }
    return
  }
  func.func @transform_0(%arg0: i32) -> (i32, i32) {
    %c0_i32 = arith.constant 0 : i32
    %c0_i32_0 = arith.constant 0 : i32
    return %arg0, %c0_i32 : i32, i32
  }
  func.func @transform_1(%arg0: i32) -> (i32, i32) {
    %c0_i32 = arith.constant 0 : i32
    %c0_i32_0 = arith.constant 0 : i32
    %c0_i32_1 = arith.constant 0 : i32
    return %c0_i32, %c0_i32_0 : i32, i32
  }
  func.func @transform_2(%arg0: i32) -> (i32, i32) {
    %c0_i32 = arith.constant 0 : i32
    %c0_i32_0 = arith.constant 0 : i32
    %c0_i32_1 = arith.constant 0 : i32
    return %c0_i32, %c0_i32_0 : i32, i32
  }
}

module attributes {stable_mosaic.version = 11 : i64} {
  func.func @_mm_kernel(%arg0: i32, %arg1: i32, %arg2: memref<168x256xbf16, #tpu.memory_space<vmem>>, %arg3: memref<256x64xbf16, #tpu.memory_space<vmem>>, %arg4: memref<1x64xf32, #tpu.memory_space<vmem>>, %arg5: memref<1x256xf32, #tpu.memory_space<vmem>>, %arg6: memref<1x256xf32, #tpu.memory_space<vmem>>, %arg7: memref<168x64xbf16, #tpu.memory_space<vmem>>, %arg8: memref<168x64xf32, #tpu.memory_space<vmem>>) attributes {dimension_semantics = [#tpu.dimension_semantics<parallel>, #tpu.dimension_semantics<arbitrary>], iteration_bounds = array<i64: 1, 1>, scalar_prefetch = 0 : i64, scratch_operands = 1 : i64, tpu.core_type = #tpu.core_type<tc>, window_params = [{transform_indices = @transform_0, window_bounds = array<i64: 168, 256>}, {transform_indices = @transform_1, window_bounds = array<i64: 256, 64>}, {pipeline_mode = #tpu.pipeline_mode<synchronous>, transform_indices = @transform_2, window_bounds = array<i64: 1, 64>}, {transform_indices = @transform_3, window_bounds = array<i64: 1, 256>}, {transform_indices = @transform_4, window_bounds = array<i64: 1, 256>}, {transform_indices = @transform_5, window_bounds = array<i64: 168, 64>}]} {
    %c0 = arith.constant 0 : index
    %c0_0 = arith.constant 0 : index
    %0 = vector.load %arg2[%c0, %c0_0] : memref<168x256xbf16, #tpu.memory_space<vmem>>, vector<168x256xbf16>
    %1 = arith.extf %0 : vector<168x256xbf16> to vector<168x256xf32>
    %c0_1 = arith.constant 0 : index
    %c0_2 = arith.constant 0 : index
    %2 = vector.load %arg5[%c0_1, %c0_2] : memref<1x256xf32, #tpu.memory_space<vmem>>, vector<1x256xf32>
    %3 = vector.broadcast %2 : vector<1x256xf32> to vector<168x256xf32>
    %4 = arith.mulf %1, %3 : vector<168x256xf32>
    %c0_3 = arith.constant 0 : index
    %c0_4 = arith.constant 0 : index
    %5 = vector.load %arg6[%c0_3, %c0_4] : memref<1x256xf32, #tpu.memory_space<vmem>>, vector<1x256xf32>
    %6 = vector.broadcast %5 : vector<1x256xf32> to vector<168x256xf32>
    %7 = arith.addf %4, %6 : vector<168x256xf32>
    %cst = arith.constant 0.000000e+00 : f32
    %8 = vector.broadcast %cst : f32 to vector<168x256xf32>
    %9 = arith.maximumf %7, %8 : vector<168x256xf32>
    %10 = arith.truncf %9 : vector<168x256xf32> to vector<168x256xbf16>
    %c0_5 = arith.constant 0 : index
    %c0_6 = arith.constant 0 : index
    %11 = vector.load %arg3[%c0_5, %c0_6] : memref<256x64xbf16, #tpu.memory_space<vmem>>, vector<256x64xbf16>
    %cst_7 = arith.constant dense<0.000000e+00> : vector<168x64xf32>
    %12 = tpu.matmul %10, %11, %cst_7 {dimension_numbers = #tpu.dot_dimension_numbers<[1], [0], [0], [1], [0, 0, 1, 1], [], []>} : vector<168x256xbf16>, vector<256x64xbf16>, vector<168x64xf32> -> vector<168x64xf32>
    %c0_i32 = arith.constant 0 : i32
    %13 = arith.cmpi eq, %arg1, %c0_i32 : i32
    %14 = arith.extui %13 : i1 to i32
    %c0_i32_8 = arith.constant 0 : i32
    %15 = arith.cmpi ne, %14, %c0_i32_8 : i32
    scf.if %15 {
      %c0_13 = arith.constant 0 : index
      %c0_14 = arith.constant 0 : index
      %22 = vector.load %arg8[%c0_13, %c0_14] : memref<168x64xf32, #tpu.memory_space<vmem>>, vector<168x64xf32>
      tpu.vector_store %arg8[%c0_13, %c0_14], %12 {strides = array<i32>} : memref<168x64xf32, #tpu.memory_space<vmem>>, vector<168x64xf32>,
    } else {
    }
    %c0_i32_9 = arith.constant 0 : i32
    %16 = arith.cmpi ne, %arg1, %c0_i32_9 : i32
    %17 = arith.extui %16 : i1 to i32
    %c0_i32_10 = arith.constant 0 : i32
    %18 = arith.cmpi ne, %17, %c0_i32_10 : i32
    scf.if %18 {
      %c0_13 = arith.constant 0 : index
      %c0_14 = arith.constant 0 : index
      %22 = vector.load %arg8[%c0_13, %c0_14] : memref<168x64xf32, #tpu.memory_space<vmem>>, vector<168x64xf32>
      %23 = arith.addf %22, %12 : vector<168x64xf32>
      %c0_15 = arith.constant 0 : index
      %c0_16 = arith.constant 0 : index
      %24 = vector.load %arg8[%c0_15, %c0_16] : memref<168x64xf32, #tpu.memory_space<vmem>>, vector<168x64xf32>
      tpu.vector_store %arg8[%c0_15, %c0_16], %23 {strides = array<i32>} : memref<168x64xf32, #tpu.memory_space<vmem>>, vector<168x64xf32>,
    } else {
    }
    %c0_i32_11 = arith.constant 0 : i32
    %19 = arith.cmpi eq, %arg1, %c0_i32_11 : i32
    %20 = arith.extui %19 : i1 to i32
    %c0_i32_12 = arith.constant 0 : i32
    %21 = arith.cmpi ne, %20, %c0_i32_12 : i32
    scf.if %21 {
      %c0_13 = arith.constant 0 : index
      %c0_14 = arith.constant 0 : index
      %22 = vector.load %arg8[%c0_13, %c0_14] : memref<168x64xf32, #tpu.memory_space<vmem>>, vector<168x64xf32>
      %c0_15 = arith.constant 0 : index
      %c0_16 = arith.constant 0 : index
      %23 = vector.load %arg4[%c0_15, %c0_16] : memref<1x64xf32, #tpu.memory_space<vmem>>, vector<1x64xf32>
      %24 = vector.broadcast %23 : vector<1x64xf32> to vector<168x64xf32>
      %25 = arith.addf %22, %24 : vector<168x64xf32>
      %26 = arith.truncf %25 : vector<168x64xf32> to vector<168x64xbf16>
      %c0_17 = arith.constant 0 : index
      %c0_18 = arith.constant 0 : index
      %27 = vector.load %arg7[%c0_17, %c0_18] : memref<168x64xbf16, #tpu.memory_space<vmem>>, vector<168x64xbf16>
      tpu.vector_store %arg7[%c0_17, %c0_18], %26 {strides = array<i32>} : memref<168x64xbf16, #tpu.memory_space<vmem>>, vector<168x64xbf16>,
    } else {
    }
    return
  }
  func.func @transform_0(%arg0: i32, %arg1: i32) -> (i32, i32) {
    %c0_i32 = arith.constant 0 : i32
    return %arg0, %arg1 : i32, i32
  }
  func.func @transform_1(%arg0: i32, %arg1: i32) -> (i32, i32) {
    %c0_i32 = arith.constant 0 : i32
    %c0_i32_0 = arith.constant 0 : i32
    return %arg1, %c0_i32 : i32, i32
  }
  func.func @transform_2(%arg0: i32, %arg1: i32) -> (i32, i32) {
    %c0_i32 = arith.constant 0 : i32
    %c0_i32_0 = arith.constant 0 : i32
    %c0_i32_1 = arith.constant 0 : i32
    return %c0_i32, %c0_i32_0 : i32, i32
  }
  func.func @transform_3(%arg0: i32, %arg1: i32) -> (i32, i32) {
    %c0_i32 = arith.constant 0 : i32
    %c0_i32_0 = arith.constant 0 : i32
    return %c0_i32, %arg1 : i32, i32
  }
  func.func @transform_4(%arg0: i32, %arg1: i32) -> (i32, i32) {
    %c0_i32 = arith.constant 0 : i32
    %c0_i32_0 = arith.constant 0 : i32
    return %c0_i32, %arg1 : i32, i32
  }
  func.func @transform_5(%arg0: i32, %arg1: i32) -> (i32, i32) {
    %c0_i32 = arith.constant 0 : i32
    %c0_i32_0 = arith.constant 0 : i32
    return %arg0, %c0_i32 : i32, i32
  }
}

module attributes {stable_mosaic.version = 11 : i64} {
  func.func @_stats_kernel(%arg0: i32, %arg1: memref<32x256xbf16, #tpu.memory_space<vmem>>, %arg2: memref<1x256xf32, #tpu.memory_space<vmem>>, %arg3: memref<1x256xf32, #tpu.memory_space<vmem>>) attributes {dimension_semantics = [#tpu.dimension_semantics<arbitrary>], iteration_bounds = array<i64: 1>, scalar_prefetch = 0 : i64, scratch_operands = 0 : i64, tpu.core_type = #tpu.core_type<tc>, window_params = [{transform_indices = @transform_0, window_bounds = array<i64: 32, 256>}, {pipeline_mode = #tpu.pipeline_mode<synchronous>, transform_indices = @transform_1, window_bounds = array<i64: 1, 256>}, {pipeline_mode = #tpu.pipeline_mode<synchronous>, transform_indices = @transform_2, window_bounds = array<i64: 1, 256>}]} {
    %c0 = arith.constant 0 : index
    %c0_0 = arith.constant 0 : index
    %0 = vector.load %arg1[%c0, %c0_0] : memref<32x256xbf16, #tpu.memory_space<vmem>>, vector<32x256xbf16>
    %1 = arith.extf %0 : vector<32x256xbf16> to vector<32x256xf32>
    %cst = arith.constant dense<0.000000e+00> : vector<256xf32>
    %2 = vector.multi_reduction <add>, %1, %cst [0] : vector<32x256xf32> to vector<256xf32>
    %3 = vector.shape_cast %2 : vector<256xf32> to vector<1x256xf32>
    %4 = arith.mulf %1, %1 : vector<32x256xf32>
    %cst_1 = arith.constant dense<0.000000e+00> : vector<256xf32>
    %5 = vector.multi_reduction <add>, %4, %cst_1 [0] : vector<32x256xf32> to vector<256xf32>
    %6 = vector.shape_cast %5 : vector<256xf32> to vector<1x256xf32>
    %c0_i32 = arith.constant 0 : i32
    %7 = arith.cmpi eq, %arg0, %c0_i32 : i32
    %8 = arith.extui %7 : i1 to i32
    %c0_i32_2 = arith.constant 0 : i32
    %9 = arith.cmpi ne, %8, %c0_i32_2 : i32
    scf.if %9 {
      %c0_5 = arith.constant 0 : index
      %c0_6 = arith.constant 0 : index
      %13 = vector.load %arg2[%c0_5, %c0_6] : memref<1x256xf32, #tpu.memory_space<vmem>>, vector<1x256xf32>
      tpu.vector_store %arg2[%c0_5, %c0_6], %3 {strides = array<i32>} : memref<1x256xf32, #tpu.memory_space<vmem>>, vector<1x256xf32>,
      %c0_7 = arith.constant 0 : index
      %c0_8 = arith.constant 0 : index
      %14 = vector.load %arg3[%c0_7, %c0_8] : memref<1x256xf32, #tpu.memory_space<vmem>>, vector<1x256xf32>
      tpu.vector_store %arg3[%c0_7, %c0_8], %6 {strides = array<i32>} : memref<1x256xf32, #tpu.memory_space<vmem>>, vector<1x256xf32>,
    } else {
    }
    %c0_i32_3 = arith.constant 0 : i32
    %10 = arith.cmpi ne, %arg0, %c0_i32_3 : i32
    %11 = arith.extui %10 : i1 to i32
    %c0_i32_4 = arith.constant 0 : i32
    %12 = arith.cmpi ne, %11, %c0_i32_4 : i32
    scf.if %12 {
      %c0_5 = arith.constant 0 : index
      %c0_6 = arith.constant 0 : index
      %13 = vector.load %arg2[%c0_5, %c0_6] : memref<1x256xf32, #tpu.memory_space<vmem>>, vector<1x256xf32>
      %14 = arith.addf %13, %3 : vector<1x256xf32>
      %c0_7 = arith.constant 0 : index
      %c0_8 = arith.constant 0 : index
      %15 = vector.load %arg2[%c0_7, %c0_8] : memref<1x256xf32, #tpu.memory_space<vmem>>, vector<1x256xf32>
      tpu.vector_store %arg2[%c0_7, %c0_8], %14 {strides = array<i32>} : memref<1x256xf32, #tpu.memory_space<vmem>>, vector<1x256xf32>,
      %c0_9 = arith.constant 0 : index
      %c0_10 = arith.constant 0 : index
      %16 = vector.load %arg3[%c0_9, %c0_10] : memref<1x256xf32, #tpu.memory_space<vmem>>, vector<1x256xf32>
      %17 = arith.addf %16, %6 : vector<1x256xf32>
      %c0_11 = arith.constant 0 : index
      %c0_12 = arith.constant 0 : index
      %18 = vector.load %arg3[%c0_11, %c0_12] : memref<1x256xf32, #tpu.memory_space<vmem>>, vector<1x256xf32>
      tpu.vector_store %arg3[%c0_11, %c0_12], %17 {strides = array<i32>} : memref<1x256xf32, #tpu.memory_space<vmem>>, vector<1x256xf32>,
    } else {
    }
    return
  }
  func.func @transform_0(%arg0: i32) -> (i32, i32) {
    %c0_i32 = arith.constant 0 : i32
    %c0_i32_0 = arith.constant 0 : i32
    return %arg0, %c0_i32 : i32, i32
  }
  func.func @transform_1(%arg0: i32) -> (i32, i32) {
    %c0_i32 = arith.constant 0 : i32
    %c0_i32_0 = arith.constant 0 : i32
    %c0_i32_1 = arith.constant 0 : i32
    return %c0_i32, %c0_i32_0 : i32, i32
  }
  func.func @transform_2(%arg0: i32) -> (i32, i32) {
    %c0_i32 = arith.constant 0 : i32
    %c0_i32_0 = arith.constant 0 : i32
    %c0_i32_1 = arith.constant 0 : i32
    return %c0_i32, %c0_i32_0 : i32, i32
  }
}

module attributes {stable_mosaic.version = 11 : i64} {
  func.func @_mm_kernel(%arg0: i32, %arg1: i32, %arg2: memref<296x128xbf16, #tpu.memory_space<vmem>>, %arg3: memref<128x12xbf16, #tpu.memory_space<vmem>>, %arg4: memref<1x12xf32, #tpu.memory_space<vmem>>, %arg5: memref<1x128xf32, #tpu.memory_space<vmem>>, %arg6: memref<1x128xf32, #tpu.memory_space<vmem>>, %arg7: memref<296x12xf32, #tpu.memory_space<vmem>>, %arg8: memref<296x12xf32, #tpu.memory_space<vmem>>) attributes {dimension_semantics = [#tpu.dimension_semantics<parallel>, #tpu.dimension_semantics<arbitrary>], iteration_bounds = array<i64: 2, 1>, scalar_prefetch = 0 : i64, scratch_operands = 1 : i64, tpu.core_type = #tpu.core_type<tc>, window_params = [{transform_indices = @transform_0, window_bounds = array<i64: 296, 128>}, {transform_indices = @transform_1, window_bounds = array<i64: 128, 12>}, {pipeline_mode = #tpu.pipeline_mode<synchronous>, transform_indices = @transform_2, window_bounds = array<i64: 1, 12>}, {transform_indices = @transform_3, window_bounds = array<i64: 1, 128>}, {transform_indices = @transform_4, window_bounds = array<i64: 1, 128>}, {transform_indices = @transform_5, window_bounds = array<i64: 296, 12>}]} {
    %c0 = arith.constant 0 : index
    %c0_0 = arith.constant 0 : index
    %0 = vector.load %arg2[%c0, %c0_0] : memref<296x128xbf16, #tpu.memory_space<vmem>>, vector<296x128xbf16>
    %1 = arith.extf %0 : vector<296x128xbf16> to vector<296x128xf32>
    %c0_1 = arith.constant 0 : index
    %c0_2 = arith.constant 0 : index
    %2 = vector.load %arg5[%c0_1, %c0_2] : memref<1x128xf32, #tpu.memory_space<vmem>>, vector<1x128xf32>
    %3 = vector.broadcast %2 : vector<1x128xf32> to vector<296x128xf32>
    %4 = arith.mulf %1, %3 : vector<296x128xf32>
    %c0_3 = arith.constant 0 : index
    %c0_4 = arith.constant 0 : index
    %5 = vector.load %arg6[%c0_3, %c0_4] : memref<1x128xf32, #tpu.memory_space<vmem>>, vector<1x128xf32>
    %6 = vector.broadcast %5 : vector<1x128xf32> to vector<296x128xf32>
    %7 = arith.addf %4, %6 : vector<296x128xf32>
    %cst = arith.constant 0.000000e+00 : f32
    %8 = vector.broadcast %cst : f32 to vector<296x128xf32>
    %9 = arith.maximumf %7, %8 : vector<296x128xf32>
    %10 = arith.truncf %9 : vector<296x128xf32> to vector<296x128xbf16>
    %c0_5 = arith.constant 0 : index
    %c0_6 = arith.constant 0 : index
    %11 = vector.load %arg3[%c0_5, %c0_6] : memref<128x12xbf16, #tpu.memory_space<vmem>>, vector<128x12xbf16>
    %cst_7 = arith.constant dense<0.000000e+00> : vector<296x12xf32>
    %12 = tpu.matmul %10, %11, %cst_7 {dimension_numbers = #tpu.dot_dimension_numbers<[1], [0], [0], [1], [0, 0, 1, 1], [], []>} : vector<296x128xbf16>, vector<128x12xbf16>, vector<296x12xf32> -> vector<296x12xf32>
    %c0_i32 = arith.constant 0 : i32
    %13 = arith.cmpi eq, %arg1, %c0_i32 : i32
    %14 = arith.extui %13 : i1 to i32
    %c0_i32_8 = arith.constant 0 : i32
    %15 = arith.cmpi ne, %14, %c0_i32_8 : i32
    scf.if %15 {
      %c0_13 = arith.constant 0 : index
      %c0_14 = arith.constant 0 : index
      %22 = vector.load %arg8[%c0_13, %c0_14] : memref<296x12xf32, #tpu.memory_space<vmem>>, vector<296x12xf32>
      tpu.vector_store %arg8[%c0_13, %c0_14], %12 {strides = array<i32>} : memref<296x12xf32, #tpu.memory_space<vmem>>, vector<296x12xf32>,
    } else {
    }
    %c0_i32_9 = arith.constant 0 : i32
    %16 = arith.cmpi ne, %arg1, %c0_i32_9 : i32
    %17 = arith.extui %16 : i1 to i32
    %c0_i32_10 = arith.constant 0 : i32
    %18 = arith.cmpi ne, %17, %c0_i32_10 : i32
    scf.if %18 {
      %c0_13 = arith.constant 0 : index
      %c0_14 = arith.constant 0 : index
      %22 = vector.load %arg8[%c0_13, %c0_14] : memref<296x12xf32, #tpu.memory_space<vmem>>, vector<296x12xf32>
      %23 = arith.addf %22, %12 : vector<296x12xf32>
      %c0_15 = arith.constant 0 : index
      %c0_16 = arith.constant 0 : index
      %24 = vector.load %arg8[%c0_15, %c0_16] : memref<296x12xf32, #tpu.memory_space<vmem>>, vector<296x12xf32>
      tpu.vector_store %arg8[%c0_15, %c0_16], %23 {strides = array<i32>} : memref<296x12xf32, #tpu.memory_space<vmem>>, vector<296x12xf32>,
    } else {
    }
    %c0_i32_11 = arith.constant 0 : i32
    %19 = arith.cmpi eq, %arg1, %c0_i32_11 : i32
    %20 = arith.extui %19 : i1 to i32
    %c0_i32_12 = arith.constant 0 : i32
    %21 = arith.cmpi ne, %20, %c0_i32_12 : i32
    scf.if %21 {
      %c0_13 = arith.constant 0 : index
      %c0_14 = arith.constant 0 : index
      %22 = vector.load %arg8[%c0_13, %c0_14] : memref<296x12xf32, #tpu.memory_space<vmem>>, vector<296x12xf32>
      %c0_15 = arith.constant 0 : index
      %c0_16 = arith.constant 0 : index
      %23 = vector.load %arg4[%c0_15, %c0_16] : memref<1x12xf32, #tpu.memory_space<vmem>>, vector<1x12xf32>
      %24 = vector.broadcast %23 : vector<1x12xf32> to vector<296x12xf32>
      %25 = arith.addf %22, %24 : vector<296x12xf32>
      %26 = math.tanh %25 : vector<296x12xf32>
      %c0_17 = arith.constant 0 : index
      %c0_18 = arith.constant 0 : index
      %27 = vector.load %arg7[%c0_17, %c0_18] : memref<296x12xf32, #tpu.memory_space<vmem>>, vector<296x12xf32>
      tpu.vector_store %arg7[%c0_17, %c0_18], %26 {strides = array<i32>} : memref<296x12xf32, #tpu.memory_space<vmem>>, vector<296x12xf32>,
    } else {
    }
    return
  }
  func.func @transform_0(%arg0: i32, %arg1: i32) -> (i32, i32) {
    %c0_i32 = arith.constant 0 : i32
    return %arg0, %arg1 : i32, i32
  }
  func.func @transform_1(%arg0: i32, %arg1: i32) -> (i32, i32) {
    %c0_i32 = arith.constant 0 : i32
    %c0_i32_0 = arith.constant 0 : i32
    return %arg1, %c0_i32 : i32, i32
  }
  func.func @transform_2(%arg0: i32, %arg1: i32) -> (i32, i32) {
    %c0_i32 = arith.constant 0 : i32
    %c0_i32_0 = arith.constant 0 : i32
    %c0_i32_1 = arith.constant 0 : i32
    return %c0_i32, %c0_i32_0 : i32, i32
  }
  func.func @transform_3(%arg0: i32, %arg1: i32) -> (i32, i32) {
    %c0_i32 = arith.constant 0 : i32
    %c0_i32_0 = arith.constant 0 : i32
    return %c0_i32, %arg1 : i32, i32
  }
  func.func @transform_4(%arg0: i32, %arg1: i32) -> (i32, i32) {
    %c0_i32 = arith.constant 0 : i32
    %c0_i32_0 = arith.constant 0 : i32
    return %c0_i32, %arg1 : i32, i32
  }
  func.func @transform_5(%arg0: i32, %arg1: i32) -> (i32, i32) {
    %c0_i32 = arith.constant 0 : i32
    %c0_i32_0 = arith.constant 0 : i32
    return %arg0, %c0_i32 : i32, i32
  }
}

</mosaic_0001>

<bundles_post_ra>
// kernel: tile.76
= control target key start
LH: loop header
LB: loop body
LE: loop exit
PB: predicated region body
PF: predicated region fallthrough
CT: control target
= control target key end

     0   :  { %s20_s0 = inlined_call_operand.<no memory space> [shape: f32[], index: 0, kind: input, shape index: {}]   ;;  %s21_s1 = inlined_call_operand.vmem [shape: f32[1,48], index: 1, kind: output, shape index: {}]  }
   0x1   :  { %v2_v0 = vstv %s20_s0 }
   0x2   :  { %3 = vst [vmem:[%s21_s1] sm:$0x1] %v2_v0 }

// kernel: _lambda_.14
= control target key start
LH: loop header
LB: loop body
LE: loop exit
PB: predicated region body
PF: predicated region fallthrough
CT: control target
= control target key end

     0   :  { %vm347_vm0 = vcmask 392192   ;;  %vm737_vm1 = vcmask 130048   ;;  %vm1393_vm2 = vcmask 125952   ;;  %s2595_s1 = inlined_call_operand.vmem [shape: bf16[48,16], index: 1, kind: input, shape index: {}]   ;;  %s2596_s0 = inlined_call_operand.vmem [shape: bf16[512,48], index: 0, kind: input, shape index: {}]   ;;  %s2597_s3 = inlined_call_operand.vmem [shape: f32[1,48], index: 3, kind: input, shape index: {}]   ;;  %s2598_s4 = inlined_call_operand.vmem [shape: f32[1,48], index: 4, kind: input, shape index: {}]   ;;  %s2599_s2 = inlined_call_operand.vmem [shape: f32[1,16], index: 2, kind: input, shape index: {}]   ;;  %s2600_s5 = inlined_call_operand.vmem [shape: bf16[512,16], index: 5, kind: output, shape index: {}]  }
   0x1   :  { %v1898_v0 = vld [vmem:[%s2595_s1] sm:$0xff]   ;;  %v1899_v1 = vld [vmem:[%s2595_s1 + $0x8] sm:$0xff]   ;;  %v1900_v2 = vld [vmem:[%s2595_s1 + $0x10] sm:$0xff]  }
   0x2   :  { %1822 = vmatprep.subr.bf16.mxu0 %v1898_v0  ;;  %1892 = vmatprep.subr.bf16.mxu1 %v1898_v0  ;;  %v1629_v3 = vld [vmem:[%s2596_s0] sm:$0xff]   ;;  %v1756_v8 = vld [vmem:[%s2596_s0 + $0x8] sm:$0xff]   ;;  %v1757_v15 = vld [vmem:[%s2596_s0 + $0x10] sm:$0xff]  }
   0x3   :  { %1823 = vmatpush3.bf16.msra.mxu0 %v1898_v0  ;;  %1895 = vmatpush3.bf16.msra.mxu1 %v1898_v0  ;;  %v1946_v4 = vld [vmem:[%s2597_s3] ss:$0 sm:$0xff]  ;;  %v1630_v5 = vunpack.c.l.bf16 %v1629_v3  ;;  %v1631_v6 = vunpack.c.h.bf16 %v1629_v3  ;;  %v1772_v9 = vld [vmem:[%s2596_s0 + $0x88] sm:$0xff]   ;;  %v1634_v13 = vunpack.c.l.bf16 %v1756_v8  ;;  %v1635_v14 = vunpack.c.h.bf16 %v1756_v8  ;;  %v1773_v28 = vld [vmem:[%s2596_s0 + $0x90] sm:$0xff]  }
   0x4   :  { %1824 = vmatprep.subr.bf16.mxu0 %v1899_v1  ;;  %1893 = vmatprep.subr.bf16.mxu1 %v1899_v1  ;;  %v1771_v7 = vld [vmem:[%s2596_s0 + $0x80] sm:$0xff]   ;;  %v1698_v18 = vunpack.c.l.bf16 %v1772_v9  ;;  %v1699_v19 = vunpack.c.h.bf16 %v1772_v9  ;;  %v1638_v23 = vunpack.c.l.bf16 %v1757_v15  ;;  %v1639_v27 = vunpack.c.h.bf16 %v1757_v15  ;;  %v1758_v37 = vld [vmem:[%s2596_s0 + $0x18] sm:$0xff]  }
   0x5   :  { %v1960_v10 = vld [vmem:[%s2598_s4] ss:$0 sm:$0xff]  ;;  %v1694_v11 = vunpack.c.l.bf16 %v1771_v7  ;;  %v1695_v12 = vunpack.c.h.bf16 %v1771_v7  ;;  %v156_v16 = vmul.f32 %v1630_v5, %v1946_v4  ;;  %v157_v17 = vmul.f32 %v1631_v6, %v1946_v4  ;;  %v1774_v42 = vld [vmem:[%s2596_s0 + $0x98] sm:$0xff]   ;;  %v1760_v6 = vld [vmem:[%s2596_s0 + $0x28] sm:$0xff]  }
   0x6   :  { %v158_v22 = vmul.f32 %v1634_v13, %v1946_v4  ;;  %v159_v26 = vmul.f32 %v1635_v14, %v1946_v4  ;;  %v190_v32 = vmul.f32 %v1698_v18, %v1946_v4  ;;  %v191_v35 = vmul.f32 %v1699_v19, %v1946_v4  ;;  %v1759_v51 = vld [vmem:[%s2596_s0 + $0x20] sm:$0xff]  }
   0x7   :  { %1825 = vmatpush3.bf16.msra.mxu0 %v1899_v1  ;;  %1896 = vmatpush3.bf16.msra.mxu1 %v1899_v1  ;;  %v188_v20 = vmul.f32 %v1694_v11, %v1946_v4  ;;  %v189_v21 = vmul.f32 %v1695_v12, %v1946_v4  ;;  %v227_v24 = vadd.f32 %v1960_v10, %v156_v16  ;;  %v1702_v41 = vunpack.c.l.bf16 %v1773_v28  ;;  %v1775_v56 = vld [vmem:[%s2596_s0 + $0xa0] sm:$0xff]   ;;  %v1776_v12 = vld [vmem:[%s2596_s0 + $0xa8] sm:$0xff]  }
   0x8   :  { %1826 = vmatprep.subr.bf16.mxu0 %v1900_v2  ;;  %1894 = vmatprep.subr.bf16.mxu1 %v1900_v2  ;;  %v228_v25 = vadd.f32 %v1960_v10, %v157_v17  ;;  %v229_v31 = vadd.f32 %v1960_v10, %v158_v22  ;;  %v230_v34 = vadd.f32 %v1960_v10, %v159_v26  ;;  %v1703_v46 = vunpack.c.h.bf16 %v1773_v28  ;;  %v1761_v17 = vld [vmem:[%s2596_s0 + $0x30] sm:$0xff]  }
   0x9   :  { %v259_v29 = vadd.f32 %v1960_v10, %v188_v20  ;;  %v260_v30 = vadd.f32 %v1960_v10, %v189_v21  ;;  %v160_v36 = vmul.f32 %v1638_v23, %v1946_v4  ;;  %v261_v39 = vadd.f32 %v1960_v10, %v190_v32 }
   0xa   :  { %v291_v33 = vpack.c.bf16 %v228_v25, %v227_v24  ;;  %v161_v40 = vmul.f32 %v1639_v27, %v1946_v4  ;;  %v292_v43 = vpack.c.bf16 %v230_v34, %v229_v31  ;;  %v262_v44 = vadd.f32 %v1960_v10, %v191_v35 }
   0xb   :  { %1827 = vmatpush3.bf16.msra.mxu0 %v1900_v2  ;;  %1897 = vmatpush3.bf16.msra.mxu1 %v1900_v2  ;;  %v307_v38 = vpack.c.bf16 %v260_v30, %v259_v29  ;;  %v231_v45 = vadd.f32 %v1960_v10, %v160_v36  ;;  %v192_v48 = vmul.f32 %v1702_v41, %v1946_v4  ;;  %v1642_v49 = vunpack.c.l.bf16 %v1758_v37  ;;  %v1777_v30 = vld [vmem:[%s2596_s0 + $0xb0] sm:$0xff]  }
   0xc   :  { %1828 = vmatprep.mubr.msk.bf16.mxu0 %vm347_vm0, %v291_v33  ;;  %v232_v47 = vadd.f32 %v1960_v10, %v161_v40  ;;  %v1643_v50 = vunpack.c.h.bf16 %v1758_v37  ;;  %v308_v52 = vpack.c.bf16 %v262_v44, %v261_v39  ;;  %v193_v53 = vmul.f32 %v1703_v46, %v1946_v4  ;;  %v1762_v39 = vld [vmem:[%s2596_s0 + $0x38] sm:$0xff]  }
   0xd   :  { %1860 = vmatprep.mubr.msk.bf16.mxu1 %vm347_vm0, %v307_v38  ;;  %v1706_v54 = vunpack.c.l.bf16 %v1774_v42  ;;  %v1707_v55 = vunpack.c.h.bf16 %v1774_v42  ;;  %v263_v58 = vadd.f32 %v1960_v10, %v192_v48  ;;  %v162_v59 = vmul.f32 %v1642_v49, %v1946_v4  ;;  %v1778_v44 = vld [vmem:[%s2596_s0 + $0xb8] sm:$0xff]  }
   0xe   :  { %1829 = vmatmul.mubr.msk.bf16.vlgmr.msra.gmra.mrb[0].mxu0 %vm347_vm0, %v292_v43  ;;  %v293_v57 = vpack.c.bf16 %v232_v47, %v231_v45  ;;  %v163_v60 = vmul.f32 %v1643_v50, %v1946_v4  ;;  %1861 = vmatmul.mubr.msk.bf16.vlgmr.msra.gmra.mrb[0].mxu1 %vm347_vm0, %v308_v52  ;;  %v264_v61 = vadd.f32 %v1960_v10, %v193_v53  ;;  %v1646_v0 = vunpack.c.l.bf16 %v1759_v51  ;;  %v1763_v53 = vld [vmem:[%s2596_s0 + $0x40] sm:$0xff]  }
   0xf   :  { %v194_v62 = vmul.f32 %v1706_v54, %v1946_v4  ;;  %v195_v63 = vmul.f32 %v1707_v55, %v1946_v4  ;;  %v233_v1 = vadd.f32 %v1960_v10, %v162_v59  ;;  %v1647_v3 = vunpack.c.h.bf16 %v1759_v51 }
  0x10   :  { %1832 = vmatprep.mubr.msk.bf16.mxu0 %vm347_vm0, %v293_v57  ;;  %v234_v2 = vadd.f32 %v1960_v10, %v163_v60  ;;  %v1710_v5 = vunpack.c.l.bf16 %v1775_v56  ;;  %v309_v7 = vpack.c.bf16 %v264_v61, %v263_v58  ;;  %v164_v11 = vmul.f32 %v1646_v0, %v1946_v4  ;;  %v1779_v58 = vld [vmem:[%s2596_s0 + $0xc0] sm:$0xff]  }
  0x11   :  { %v265_v8 = vadd.f32 %v1960_v10, %v194_v62  ;;  %v266_v9 = vadd.f32 %v1960_v10, %v195_v63  ;;  %v165_v14 = vmul.f32 %v1647_v3, %v1946_v4  ;;  %v1711_v15 = vunpack.c.h.bf16 %v1775_v56 }
  0x12   :  { %v294_v13 = vpack.c.bf16 %v234_v2, %v233_v1  ;;  %v196_v16 = vmul.f32 %v1710_v5, %v1946_v4  ;;  %1864 = vmatprep.mubr.msk.bf16.mxu1 %vm347_vm0, %v309_v7  ;;  %v235_v19 = vadd.f32 %v1960_v10, %v164_v11  ;;  %v1650_v20 = vunpack.c.l.bf16 %v1760_v6 }
  0x13   :  { %v310_v18 = vpack.c.bf16 %v266_v9, %v265_v8  ;;  %v1651_v21 = vunpack.c.h.bf16 %v1760_v6  ;;  %v236_v22 = vadd.f32 %v1960_v10, %v165_v14  ;;  %v197_v23 = vmul.f32 %v1711_v15, %v1946_v4  ;;  %v1764_v8 = vld [vmem:[%s2596_s0 + $0x48] sm:$0xff]  }
  0x14   :  { %v267_v24 = vadd.f32 %v1960_v10, %v196_v16  ;;  %v1714_v25 = vunpack.c.l.bf16 %v1776_v12  ;;  %v166_v26 = vmul.f32 %v1650_v20, %v1946_v4  ;;  %v1715_v28 = vunpack.c.h.bf16 %v1776_v12  ;;  %v1780_v14 = vld [vmem:[%s2596_s0 + $0xc8] sm:$0xff]  }
  0x15   :  { %v167_v27 = vmul.f32 %v1651_v21, %v1946_v4  ;;  %v1654_v29 = vunpack.c.l.bf16 %v1761_v17  ;;  %v295_v31 = vpack.c.bf16 %v236_v22, %v235_v19  ;;  %v268_v32 = vadd.f32 %v1960_v10, %v197_v23  ;;  %v1765_v19 = vld [vmem:[%s2596_s0 + $0x50] sm:$0xff]  }
  0x16   :  { %1833 = vmatmul.mubr.msk.bf16.gmra.mrb[4].mxu0 %vm347_vm0, %v294_v13  ;;  %v198_v33 = vmul.f32 %v1714_v25, %v1946_v4  ;;  %v1655_v34 = vunpack.c.h.bf16 %v1761_v17  ;;  %1865 = vmatmul.mubr.msk.bf16.gmra.mrb[4].mxu1 %vm347_vm0, %v310_v18  ;;  %v237_v35 = vadd.f32 %v1960_v10, %v166_v26  ;;  %v199_v37 = vmul.f32 %v1715_v28, %v1946_v4 }
  0x17   :  { %v238_v36 = vadd.f32 %v1960_v10, %v167_v27  ;;  %v168_v38 = vmul.f32 %v1654_v29, %v1946_v4  ;;  %1836 = vmatprep.mubr.msk.bf16.mxu0 %vm347_vm0, %v295_v31  ;;  %v311_v40 = vpack.c.bf16 %v268_v32, %v267_v24  ;;  %v1718_v43 = vunpack.c.l.bf16 %v1777_v30  ;;  %v1781_v32 = vld [vmem:[%s2596_s0 + $0xd0] sm:$0xff]  }
  0x18   :  { %v269_v41 = vadd.f32 %v1960_v10, %v198_v33  ;;  %v169_v42 = vmul.f32 %v1655_v34, %v1946_v4  ;;  %v270_v46 = vadd.f32 %v1960_v10, %v199_v37  ;;  %v1719_v48 = vunpack.c.h.bf16 %v1777_v30 }
  0x19   :  { %v296_v45 = vpack.c.bf16 %v238_v36, %v237_v35  ;;  %v239_v47 = vadd.f32 %v1960_v10, %v168_v38  ;;  %1868 = vmatprep.mubr.msk.bf16.mxu1 %vm347_vm0, %v311_v40  ;;  %v200_v50 = vmul.f32 %v1718_v43, %v1946_v4  ;;  %v1658_v51 = vunpack.c.l.bf16 %v1762_v39 }
  0x1a   :  { %v240_v49 = vadd.f32 %v1960_v10, %v169_v42  ;;  %v1659_v52 = vunpack.c.h.bf16 %v1762_v39  ;;  %v312_v54 = vpack.c.bf16 %v270_v46, %v269_v41  ;;  %v201_v55 = vmul.f32 %v1719_v48, %v1946_v4  ;;  %v1766_v41 = vld [vmem:[%s2596_s0 + $0x58] sm:$0xff]  }
  0x1b   :  { %v1722_v56 = vunpack.c.l.bf16 %v1778_v44  ;;  %v1723_v57 = vunpack.c.h.bf16 %v1778_v44  ;;  %v271_v60 = vadd.f32 %v1960_v10, %v200_v50  ;;  %v170_v61 = vmul.f32 %v1658_v51, %v1946_v4  ;;  %v1782_v46 = vld [vmem:[%s2596_s0 + $0xd8] sm:$0xff]  }
  0x1c   :  { %v297_v59 = vpack.c.bf16 %v240_v49, %v239_v47  ;;  %v171_v62 = vmul.f32 %v1659_v52, %v1946_v4  ;;  %v272_v63 = vadd.f32 %v1960_v10, %v201_v55  ;;  %v1662_v2 = vunpack.c.l.bf16 %v1763_v53  ;;  %v1767_v55 = vld [vmem:[%s2596_s0 + $0x60] sm:$0xff]  }
  0x1d   :  { %v202_v0 = vmul.f32 %v1722_v56, %v1946_v4  ;;  %v203_v1 = vmul.f32 %v1723_v57, %v1946_v4  ;;  %v241_v3 = vadd.f32 %v1960_v10, %v170_v61  ;;  %v1663_v6 = vunpack.c.h.bf16 %v1763_v53 }
  0x1e   :  { %1837 = vmatmul.mubr.msk.bf16.gmra.mrb[8].mxu0 %vm347_vm0, %v296_v45  ;;  %v242_v5 = vadd.f32 %v1960_v10, %v171_v62  ;;  %v1726_v7 = vunpack.c.l.bf16 %v1779_v58  ;;  %1869 = vmatmul.mubr.msk.bf16.gmra.mrb[8].mxu1 %vm347_vm0, %v312_v54  ;;  %v313_v9 = vpack.c.bf16 %v272_v63, %v271_v60  ;;  %v172_v13 = vmul.f32 %v1662_v2, %v1946_v4  ;;  %v1783_v60 = vld [vmem:[%s2596_s0 + $0xe0] sm:$0xff]  }
  0x1f   :  { %1840 = vmatprep.mubr.msk.bf16.mxu0 %vm347_vm0, %v297_v59  ;;  %v273_v11 = vadd.f32 %v1960_v10, %v202_v0  ;;  %v274_v12 = vadd.f32 %v1960_v10, %v203_v1  ;;  %v173_v16 = vmul.f32 %v1663_v6, %v1946_v4  ;;  %v1727_v17 = vunpack.c.h.bf16 %v1779_v58 }
  0x20   :  { %v298_v15 = vpack.c.bf16 %v242_v5, %v241_v3  ;;  %v204_v18 = vmul.f32 %v1726_v7, %v1946_v4  ;;  %1872 = vmatprep.mubr.msk.bf16.mxu1 %vm347_vm0, %v313_v9  ;;  %v243_v21 = vadd.f32 %v1960_v10, %v172_v13  ;;  %v1666_v22 = vunpack.c.l.bf16 %v1764_v8 }
  0x21   :  { %v314_v20 = vpack.c.bf16 %v274_v12, %v273_v11  ;;  %v1667_v23 = vunpack.c.h.bf16 %v1764_v8  ;;  %v244_v24 = vadd.f32 %v1960_v10, %v173_v16  ;;  %v205_v25 = vmul.f32 %v1727_v17, %v1946_v4  ;;  %v1768_v11 = vld [vmem:[%s2596_s0 + $0x68] sm:$0xff]  }
  0x22   :  { %v275_v26 = vadd.f32 %v1960_v10, %v204_v18  ;;  %v1730_v27 = vunpack.c.l.bf16 %v1780_v14  ;;  %v174_v28 = vmul.f32 %v1666_v22, %v1946_v4  ;;  %v1731_v30 = vunpack.c.h.bf16 %v1780_v14 }
  0x23   :  { %v175_v29 = vmul.f32 %v1667_v23, %v1946_v4  ;;  %v1670_v31 = vunpack.c.l.bf16 %v1765_v19  ;;  %v299_v33 = vpack.c.bf16 %v244_v24, %v243_v21  ;;  %v276_v34 = vadd.f32 %v1960_v10, %v205_v25 }
  0x24   :  { %v206_v35 = vmul.f32 %v1730_v27, %v1946_v4  ;;  %v1671_v36 = vunpack.c.h.bf16 %v1765_v19  ;;  %v245_v37 = vadd.f32 %v1960_v10, %v174_v28  ;;  %v207_v39 = vmul.f32 %v1731_v30, %v1946_v4 }
  0x25   :  { %v246_v38 = vadd.f32 %v1960_v10, %v175_v29  ;;  %v176_v40 = vmul.f32 %v1670_v31, %v1946_v4  ;;  %v315_v42 = vpack.c.bf16 %v276_v34, %v275_v26  ;;  %v1734_v45 = vunpack.c.l.bf16 %v1781_v32 }
  0x26   :  { %1841 = vmatmul.mubr.msk.bf16.gmra.mrb[12].mxu0 %vm347_vm0, %v298_v15  ;;  %v277_v43 = vadd.f32 %v1960_v10, %v206_v35  ;;  %v177_v44 = vmul.f32 %v1671_v36, %v1946_v4  ;;  %1873 = vmatmul.mubr.msk.bf16.gmra.mrb[12].mxu1 %vm347_vm0, %v314_v20  ;;  %v278_v48 = vadd.f32 %v1960_v10, %v207_v39  ;;  %v1735_v50 = vunpack.c.h.bf16 %v1781_v32  ;;  %v1784_v15 = vld [vmem:[%s2596_s0 + $0xe8] sm:$0xff]   ;;  %v1769_v20 = vld [vmem:[%s2596_s0 + $0x70] sm:$0xff]  }
  0x27   :  { %1844 = vmatprep.mubr.msk.bf16.mxu0 %vm347_vm0, %v299_v33  ;;  %v300_v47 = vpack.c.bf16 %v246_v38, %v245_v37  ;;  %v247_v49 = vadd.f32 %v1960_v10, %v176_v40  ;;  %1876 = vmatprep.mubr.msk.bf16.mxu1 %vm347_vm0, %v315_v42  ;;  %v208_v52 = vmul.f32 %v1734_v45, %v1946_v4  ;;  %v1674_v53 = vunpack.c.l.bf16 %v1766_v41  ;;  %v1785_v33 = vld [vmem:[%s2596_s0 + $0xf0] sm:$0xff]  }
  0x28   :  { %v248_v51 = vadd.f32 %v1960_v10, %v177_v44  ;;  %v1675_v54 = vunpack.c.h.bf16 %v1766_v41  ;;  %v316_v56 = vpack.c.bf16 %v278_v48, %v277_v43  ;;  %v209_v57 = vmul.f32 %v1735_v50, %v1946_v4  ;;  %v1770_v41 = vld [vmem:[%s2596_s0 + $0x78] sm:$0xff]  }
  0x29   :  { %v1738_v58 = vunpack.c.l.bf16 %v1782_v46  ;;  %v1739_v59 = vunpack.c.h.bf16 %v1782_v46  ;;  %v279_v62 = vadd.f32 %v1960_v10, %v208_v52  ;;  %v178_v63 = vmul.f32 %v1674_v53, %v1946_v4  ;;  %v1786_v46 = vld [vmem:[%s2596_s0 + $0xf8] sm:$0xff]  }
  0x2a   :  { %v301_v61 = vpack.c.bf16 %v248_v51, %v247_v49  ;;  %v179_v0 = vmul.f32 %v1675_v54, %v1946_v4  ;;  %v280_v1 = vadd.f32 %v1960_v10, %v209_v57  ;;  %v1678_v5 = vunpack.c.l.bf16 %v1767_v55 }
  0x2b   :  { %v210_v2 = vmul.f32 %v1738_v58, %v1946_v4  ;;  %v211_v3 = vmul.f32 %v1739_v59, %v1946_v4  ;;  %v249_v6 = vadd.f32 %v1960_v10, %v178_v63  ;;  %v1679_v8 = vunpack.c.h.bf16 %v1767_v55 }
  0x2c   :  { %v250_v7 = vadd.f32 %v1960_v10, %v179_v0  ;;  %v1742_v9 = vunpack.c.l.bf16 %v1783_v60  ;;  %v317_v12 = vpack.c.bf16 %v280_v1, %v279_v62  ;;  %v180_v14 = vmul.f32 %v1678_v5, %v1946_v4 }
  0x2d   :  { %v281_v13 = vadd.f32 %v1960_v10, %v210_v2  ;;  %v282_v16 = vadd.f32 %v1960_v10, %v211_v3  ;;  %v181_v17 = vmul.f32 %v1679_v8, %v1946_v4  ;;  %v1743_v18 = vunpack.c.h.bf16 %v1783_v60 }
  0x2e   :  { %1845 = vmatmul.mubr.msk.bf16.gmra.mrb[16].mxu0 %vm347_vm0, %v300_v47  ;;  %v212_v19 = vmul.f32 %v1742_v9, %v1946_v4  ;;  %1877 = vmatmul.mubr.msk.bf16.gmra.mrb[16].mxu1 %vm347_vm0, %v316_v56  ;;  %v302_v21 = vpack.c.bf16 %v250_v7, %v249_v6  ;;  %v251_v22 = vadd.f32 %v1960_v10, %v180_v14  ;;  %v1682_v23 = vunpack.c.l.bf16 %v1768_v11 }
  0x2f   :  { %1848 = vmatprep.mubr.msk.bf16.mxu0 %vm347_vm0, %v301_v61  ;;  %v1683_v24 = vunpack.c.h.bf16 %v1768_v11  ;;  %1880 = vmatprep.mubr.msk.bf16.mxu1 %vm347_vm0, %v317_v12  ;;  %v252_v25 = vadd.f32 %v1960_v10, %v181_v17  ;;  %v213_v26 = vmul.f32 %v1743_v18, %v1946_v4  ;;  %v1746_v28 = vunpack.c.l.bf16 %v1784_v15 }
  0x30   :  { %v283_v27 = vadd.f32 %v1960_v10, %v212_v19  ;;  %v182_v29 = vmul.f32 %v1682_v23, %v1946_v4  ;;  %v1747_v31 = vunpack.c.h.bf16 %v1784_v15  ;;  %v1686_v32 = vunpack.c.l.bf16 %v1769_v20  ;;  %v2216_v19 = vld [vmem:[%s2599_s2] ss:$0 sm:$0xff] }
  0x31   :  { %v183_v30 = vmul.f32 %v1683_v24, %v1946_v4  ;;  %v303_v34 = vpack.c.bf16 %v252_v25, %v251_v22  ;;  %v284_v35 = vadd.f32 %v1960_v10, %v213_v26  ;;  %v214_v36 = vmul.f32 %v1746_v28, %v1946_v4 }
  0x32   :  { %v1687_v37 = vunpack.c.h.bf16 %v1769_v20  ;;  %v318_v38 = vpack.c.bf16 %v282_v16, %v281_v13  ;;  %v215_v39 = vmul.f32 %v1747_v31, %v1946_v4  ;;  %v184_v40 = vmul.f32 %v1686_v32, %v1946_v4 }
  0x33   :  { %v319_v42 = vpack.c.bf16 %v284_v35, %v283_v27  ;;  %v253_v43 = vadd.f32 %v1960_v10, %v182_v29  ;;  %v1750_v45 = vunpack.c.l.bf16 %v1785_v33  ;;  %v254_v47 = vadd.f32 %v1960_v10, %v183_v30 }
  0x34   :  { %v185_v44 = vmul.f32 %v1687_v37, %v1946_v4  ;;  %v285_v48 = vadd.f32 %v1960_v10, %v214_v36  ;;  %v255_v49 = vadd.f32 %v1960_v10, %v184_v40  ;;  %v1751_v50 = vunpack.c.h.bf16 %v1785_v33 }
  0x35   :  { %v216_v52 = vmul.f32 %v1750_v45, %v1946_v4  ;;  %v1690_v53 = vunpack.c.l.bf16 %v1770_v41  ;;  %v1691_v54 = vunpack.c.h.bf16 %v1770_v41  ;;  %v286_v55 = vadd.f32 %v1960_v10, %v215_v39 }
  0x36   :  { %1849 = vmatmul.mubr.msk.bf16.gmra.mrb[20].mxu0 %vm347_vm0, %v302_v21  ;;  %v256_v51 = vadd.f32 %v1960_v10, %v185_v44  ;;  %1881 = vmatmul.mubr.msk.bf16.gmra.mrb[20].mxu1 %vm347_vm0, %v318_v38  ;;  %v217_v56 = vmul.f32 %v1751_v50, %v1946_v4  ;;  %v1754_v57 = vunpack.c.l.bf16 %v1786_v46  ;;  %v1755_v58 = vunpack.c.h.bf16 %v1786_v46 }
  0x37   :  { %1852 = vmatprep.mubr.msk.bf16.mxu0 %vm347_vm0, %v303_v34  ;;  %1884 = vmatprep.mubr.msk.bf16.mxu1 %vm347_vm0, %v319_v42  ;;  %v287_v59 = vadd.f32 %v1960_v10, %v216_v52  ;;  %v304_v60 = vpack.c.bf16 %v254_v47, %v253_v43  ;;  %v186_v62 = vmul.f32 %v1690_v53, %v1946_v4 }
  0x38   :  { %v288_v61 = vadd.f32 %v1960_v10, %v217_v56  ;;  %v187_v63 = vmul.f32 %v1691_v54, %v1946_v4  ;;  %v305_v0 = vpack.c.bf16 %v256_v51, %v255_v49  ;;  %v320_v1 = vpack.c.bf16 %v286_v55, %v285_v48 }
  0x39   :  { %v218_v2 = vmul.f32 %v1754_v57, %v1946_v4  ;;  %v219_v3 = vmul.f32 %v1755_v58, %v1946_v4  ;;  %v257_v6 = vadd.f32 %v1960_v10, %v186_v62 }
  0x3a   :  { %v321_v5 = vpack.c.bf16 %v288_v61, %v287_v59  ;;  %v258_v7 = vadd.f32 %v1960_v10, %v187_v63 }
  0x3b   :  { %v289_v8 = vadd.f32 %v1960_v10, %v218_v2  ;;  %v290_v9 = vadd.f32 %v1960_v10, %v219_v3 }
  0x3c   :  { %v306_v11 = vpack.c.bf16 %v258_v7, %v257_v6 }
  0x3d   :  { %v322_v12 = vpack.c.bf16 %v290_v9, %v289_v8 }
  0x3e   :  { %1853 = vmatmul.mubr.msk.bf16.gmra.mrb[24].mxu0 %vm347_vm0, %v304_v60  ;;  %1885 = vmatmul.mubr.msk.bf16.gmra.mrb[24].mxu1 %vm347_vm0, %v320_v1 }
  0x3f   :  { %1856 = vmatprep.mubr.msk.bf16.mxu0 %vm347_vm0, %v305_v0  ;;  %1888 = vmatprep.mubr.msk.bf16.mxu1 %vm347_vm0, %v321_v5 }
  0x46   :  { %1857 = vmatmul.mubr.msk.bf16.gmra.mrb[28].mxu0 %vm347_vm0, %v306_v11  ;;  %1889 = vmatmul.mubr.msk.bf16.gmra.mrb[28].mxu1 %vm347_vm0, %v322_v12 }
  0xe1   :  { %v1830_v4 = vpop.f32.mrb[0].mxu0  ;;  %v1862_v14 = vpop.f32.mrb[0].mxu1 }
  0xe2   :  { %740 = vst.msk [vmem:[#allocation2 + $0x10] sm:$0xff] %vm737_vm1, %v1830_v4  ;;  %v478_v13 = vpop.f32.mrb[1].mxu0  ;;  %772 = vst.msk [vmem:[#allocation2 + $0x110] sm:$0xff] %vm737_vm1, %v1862_v14  ;;  %v606_v10 = vpop.f32.mrb[1].mxu1 }
  0xe3   :  { %738 = vst.msk [vmem:[#allocation2] sm:$0xff] %vm737_vm1, %v478_v13  ;;  %v1831_v15 = vpop.f32.mrb[2].mxu0  ;;  %770 = vst.msk [vmem:[#allocation2 + $0x100] sm:$0xff] %vm737_vm1, %v606_v10  ;;  %v1863_v17 = vpop.f32.mrb[2].mxu1 }
  0xe4   :  { %741 = vst.msk [vmem:[#allocation2 + $0x18] sm:$0xff] %vm737_vm1, %v1831_v15  ;;  %v481_v16 = vpop.f32.mrb[3].mxu0  ;;  %773 = vst.msk [vmem:[#allocation2 + $0x118] sm:$0xff] %vm737_vm1, %v1863_v17  ;;  %v609_v18 = vpop.f32.mrb[3].mxu1 }
  0xe5   :  { %739 = vst.msk [vmem:[#allocation2 + $0x8] sm:$0xff] %vm737_vm1, %v481_v16  ;;  %771 = vst.msk [vmem:[#allocation2 + $0x108] sm:$0xff] %vm737_vm1, %v609_v18 }
  0xe9   :  { %v1004_v20 = vld [vmem:[#allocation2 + $0x10] sm:$0xff]  ;;  %v1834_v21 = vpop.f32.mrb[4].mxu0  ;;  %v1866_v28 = vpop.f32.mrb[4].mxu1 }
  0xea   :  { %v1075_v22 = vadd.f32 %v2216_v19, %v1004_v20  ;;  %v1002_v23 = vld [vmem:[#allocation2] sm:$0xff]  ;;  %744 = vst.msk [vmem:[#allocation2 + $0x30] sm:$0xff] %vm737_vm1, %v1834_v21  ;;  %v494_v24 = vpop.f32.mrb[5].mxu0  ;;  %v1036_v25 = vld [vmem:[#allocation2 + $0x110] sm:$0xff]  ;;  %776 = vst.msk [vmem:[#allocation2 + $0x130] sm:$0xff] %vm737_vm1, %v1866_v28  ;;  %v622_v35 = vpop.f32.mrb[5].mxu1 }
  0xeb   :  { %v1073_v26 = vadd.f32 %v2216_v19, %v1002_v23  ;;  %v1005_v27 = vld [vmem:[#allocation2 + $0x18] sm:$0xff]  ;;  %742 = vst.msk [vmem:[#allocation2 + $0x20] sm:$0xff] %vm737_vm1, %v494_v24  ;;  %v1835_v29 = vpop.f32.mrb[6].mxu0  ;;  %v1107_v31 = vadd.f32 %v2216_v19, %v1036_v25  ;;  %v1034_v32 = vld [vmem:[#allocation2 + $0x100] sm:$0xff]  ;;  %774 = vst.msk [vmem:[#allocation2 + $0x120] sm:$0xff] %vm737_vm1, %v622_v35  ;;  %v1867_v41 = vpop.f32.mrb[6].mxu1 }
  0xec   :  { %v1566_v30 = vpack.c.bf16 %v1075_v22, %v1075_v22  ;;  %v1076_v33 = vadd.f32 %v2216_v19, %v1005_v27  ;;  %v1003_v34 = vld [vmem:[#allocation2 + $0x8] sm:$0xff]  ;;  %745 = vst.msk [vmem:[#allocation2 + $0x38] sm:$0xff] %vm737_vm1, %v1835_v29  ;;  %v497_v36 = vpop.f32.mrb[7].mxu0  ;;  %v1105_v38 = vadd.f32 %v2216_v19, %v1034_v32  ;;  %v1037_v39 = vld [vmem:[#allocation2 + $0x118] sm:$0xff]  ;;  %777 = vst.msk [vmem:[#allocation2 + $0x138] sm:$0xff] %vm737_vm1, %v1867_v41  ;;  %v625_v46 = vpop.f32.mrb[7].mxu1 }
  0xed   :  { %v1564_v37 = vpack.c.bf16 %v1073_v26, %v1073_v26  ;;  %v1074_v40 = vadd.f32 %v2216_v19, %v1003_v34  ;;  %743 = vst.msk [vmem:[#allocation2 + $0x28] sm:$0xff] %vm737_vm1, %v497_v36  ;;  %v1598_v42 = vpack.c.bf16 %v1107_v31, %v1107_v31  ;;  %v1108_v44 = vadd.f32 %v2216_v19, %v1037_v39  ;;  %v1035_v45 = vld [vmem:[#allocation2 + $0x108] sm:$0xff] }
  0xee   :  { %1396 = vst.msk [vmem:[%s2600_s5 + $0x8] sm:$0xf] %vm1393_vm2, %v1566_v30  ;;  %v1567_v43 = vpack.c.bf16 %v1076_v33, %v1076_v33  ;;  %v1596_v47 = vpack.c.bf16 %v1105_v38, %v1105_v38  ;;  %v1106_v49 = vadd.f32 %v2216_v19, %v1035_v45 }
  0xef   :  { %1394 = vst.msk [vmem:[%s2600_s5] sm:$0xf] %vm1393_vm2, %v1564_v37  ;;  %v1565_v48 = vpack.c.bf16 %v1074_v40, %v1074_v40  ;;  %1428 = vst.msk [vmem:[%s2600_s5 + $0x88] sm:$0xf] %vm1393_vm2, %v1598_v42  ;;  %v1599_v50 = vpack.c.bf16 %v1108_v44, %v1108_v44 }
  0xf0   :  { %775 = vst.msk [vmem:[#allocation2 + $0x128] sm:$0xff] %vm737_vm1, %v625_v46  ;;  %v1597_v51 = vpack.c.bf16 %v1106_v49, %v1106_v49 }
  0xf1   :  { %1397 = vst.msk [vmem:[%s2600_s5 + $0xc] sm:$0xf] %vm1393_vm2, %v1567_v43  ;;  %1426 = vst.msk [vmem:[%s2600_s5 + $0x80] sm:$0xf] %vm1393_vm2, %v1596_v47  ;;  %v1008_v52 = vld [vmem:[#allocation2 + $0x30] sm:$0xff]  ;;  %v1838_v53 = vpop.f32.mrb[8].mxu0 }
  0xf2   :  { %1395 = vst.msk [vmem:[%s2600_s5 + $0x4] sm:$0xf] %vm1393_vm2, %v1565_v48  ;;  %1429 = vst.msk [vmem:[%s2600_s5 + $0x8c] sm:$0xf] %vm1393_vm2, %v1599_v50  ;;  %v1079_v54 = vadd.f32 %v2216_v19, %v1008_v52  ;;  %v1006_v55 = vld [vmem:[#allocation2 + $0x20] sm:$0xff]  ;;  %v510_v56 = vpop.f32.mrb[9].mxu0 }
  0xf3   :  { %748 = vst.msk [vmem:[#allocation2 + $0x50] sm:$0xff] %vm737_vm1, %v1838_v53  ;;  %v1040_v57 = vld [vmem:[#allocation2 + $0x130] sm:$0xff]  ;;  %v1077_v58 = vadd.f32 %v2216_v19, %v1006_v55  ;;  %v1009_v59 = vld [vmem:[#allocation2 + $0x38] sm:$0xff]  ;;  %v1870_v60 = vpop.f32.mrb[8].mxu1  ;;  %746 = vst.msk [vmem:[#allocation2 + $0x40] sm:$0xff] %vm737_vm1, %v510_v56  ;;  %v1839_v61 = vpop.f32.mrb[10].mxu0 }
  0xf4   :  { %1427 = vst.msk [vmem:[%s2600_s5 + $0x84] sm:$0xf] %vm1393_vm2, %v1597_v51  ;;  %v1570_v62 = vpack.c.bf16 %v1079_v54, %v1079_v54  ;;  %v1111_v63 = vadd.f32 %v2216_v19, %v1040_v57  ;;  %v1038_v0 = vld [vmem:[#allocation2 + $0x120] sm:$0xff]  ;;  %v1080_v1 = vadd.f32 %v2216_v19, %v1009_v59  ;;  %v1007_v2 = vld [vmem:[#allocation2 + $0x28] sm:$0xff]  ;;  %v638_v3 = vpop.f32.mrb[9].mxu1  ;;  %v513_v5 = vpop.f32.mrb[11].mxu0 }
  0xf5   :  { %780 = vst.msk [vmem:[#allocation2 + $0x150] sm:$0xff] %vm737_vm1, %v1870_v60  ;;  %749 = vst.msk [vmem:[#allocation2 + $0x58] sm:$0xff] %vm737_vm1, %v1839_v61  ;;  %v1568_v6 = vpack.c.bf16 %v1077_v58, %v1077_v58  ;;  %v1109_v7 = vadd.f32 %v2216_v19, %v1038_v0  ;;  %v1041_v8 = vld [vmem:[#allocation2 + $0x138] sm:$0xff]  ;;  %v1078_v9 = vadd.f32 %v2216_v19, %v1007_v2  ;;  %v1871_v11 = vpop.f32.mrb[10].mxu1 }
  0xf6   :  { %778 = vst.msk [vmem:[#allocation2 + $0x140] sm:$0xff] %vm737_vm1, %v638_v3  ;;  %747 = vst.msk [vmem:[#allocation2 + $0x48] sm:$0xff] %vm737_vm1, %v513_v5  ;;  %v1602_v12 = vpack.c.bf16 %v1111_v63, %v1111_v63  ;;  %v1571_v4 = vpack.c.bf16 %v1080_v1, %v1080_v1  ;;  %v1112_v13 = vadd.f32 %v2216_v19, %v1041_v8  ;;  %v641_v15 = vpop.f32.mrb[11].mxu1 }
  0xf7   :  { %1400 = vst.msk [vmem:[%s2600_s5 + $0x18] sm:$0xf] %vm1393_vm2, %v1570_v62  ;;  %v1039_v14 = vld [vmem:[#allocation2 + $0x128] sm:$0xff]  ;;  %1398 = vst.msk [vmem:[%s2600_s5 + $0x10] sm:$0xf] %vm1393_vm2, %v1568_v6  ;;  %v1600_v10 = vpack.c.bf16 %v1109_v7, %v1109_v7  ;;  %v1569_v16 = vpack.c.bf16 %v1078_v9, %v1078_v9 }
  0xf8   :  { %781 = vst.msk [vmem:[#allocation2 + $0x158] sm:$0xff] %vm737_vm1, %v1871_v11  ;;  %v1110_v17 = vadd.f32 %v2216_v19, %v1039_v14  ;;  %779 = vst.msk [vmem:[#allocation2 + $0x148] sm:$0xff] %vm737_vm1, %v641_v15  ;;  %v1603_v18 = vpack.c.bf16 %v1112_v13, %v1112_v13 }
  0xf9   :  { %1432 = vst.msk [vmem:[%s2600_s5 + $0x98] sm:$0xf] %vm1393_vm2, %v1602_v12  ;;  %1401 = vst.msk [vmem:[%s2600_s5 + $0x1c] sm:$0xf] %vm1393_vm2, %v1571_v4  ;;  %v1842_v22 = vpop.f32.mrb[12].mxu0  ;;  %v1874_v29 = vpop.f32.mrb[12].mxu1 }
  0xfa   :  { %1430 = vst.msk [vmem:[%s2600_s5 + $0x90] sm:$0xf] %vm1393_vm2, %v1600_v10  ;;  %1399 = vst.msk [vmem:[%s2600_s5 + $0x14] sm:$0xf] %vm1393_vm2, %v1569_v16  ;;  %v1601_v20 = vpack.c.bf16 %v1110_v17, %v1110_v17  ;;  %v1012_v21 = vld [vmem:[#allocation2 + $0x50] sm:$0xff]  ;;  %v1010_v24 = vld [vmem:[#allocation2 + $0x40] sm:$0xff] }
  0xfb   :  { %1433 = vst.msk [vmem:[%s2600_s5 + $0x9c] sm:$0xf] %vm1393_vm2, %v1603_v18  ;;  %v1083_v23 = vadd.f32 %v2216_v19, %v1012_v21  ;;  %v526_v25 = vpop.f32.mrb[13].mxu0  ;;  %v1081_v27 = vadd.f32 %v2216_v19, %v1010_v24  ;;  %v654_v36 = vpop.f32.mrb[13].mxu1 }
  0xfc   :  { %752 = vst.msk [vmem:[#allocation2 + $0x70] sm:$0xff] %vm737_vm1, %v1842_v22  ;;  %v1044_v26 = vld [vmem:[#allocation2 + $0x150] sm:$0xff]  ;;  %v1013_v28 = vld [vmem:[#allocation2 + $0x58] sm:$0xff]  ;;  %750 = vst.msk [vmem:[#allocation2 + $0x60] sm:$0xff] %vm737_vm1, %v526_v25  ;;  %v1843_v30 = vpop.f32.mrb[14].mxu0  ;;  %v1875_v42 = vpop.f32.mrb[14].mxu1 }
  0xfd   :  { %1431 = vst.msk [vmem:[%s2600_s5 + $0x94] sm:$0xf] %vm1393_vm2, %v1601_v20  ;;  %v1574_v31 = vpack.c.bf16 %v1083_v23, %v1083_v23  ;;  %v1115_v32 = vadd.f32 %v2216_v19, %v1044_v26  ;;  %v1042_v33 = vld [vmem:[#allocation2 + $0x140] sm:$0xff]  ;;  %v1084_v34 = vadd.f32 %v2216_v19, %v1013_v28  ;;  %v1011_v35 = vld [vmem:[#allocation2 + $0x48] sm:$0xff]  ;;  %v529_v37 = vpop.f32.mrb[15].mxu0  ;;  %v1572_v38 = vpack.c.bf16 %v1081_v27, %v1081_v27  ;;  %v657_v47 = vpop.f32.mrb[15].mxu1 }
  0xfe   :  { %784 = vst.msk [vmem:[#allocation2 + $0x170] sm:$0xff] %vm737_vm1, %v1874_v29  ;;  %753 = vst.msk [vmem:[#allocation2 + $0x78] sm:$0xff] %vm737_vm1, %v1843_v30  ;;  %v1113_v39 = vadd.f32 %v2216_v19, %v1042_v33  ;;  %v1082_v41 = vadd.f32 %v2216_v19, %v1011_v35 }
  0xff   :  { %v1045_v40 = vld [vmem:[#allocation2 + $0x158] sm:$0xff]  ;;  %782 = vst.msk [vmem:[#allocation2 + $0x160] sm:$0xff] %vm737_vm1, %v654_v36  ;;  %751 = vst.msk [vmem:[#allocation2 + $0x68] sm:$0xff] %vm737_vm1, %v529_v37  ;;  %v1606_v43 = vpack.c.bf16 %v1115_v32, %v1115_v32  ;;  %v1575_v44 = vpack.c.bf16 %v1084_v34, %v1084_v34  ;;  %v1043_v46 = vld [vmem:[#allocation2 + $0x148] sm:$0xff] }
 0x100   :  { %1404 = vst.msk [vmem:[%s2600_s5 + $0x28] sm:$0xf] %vm1393_vm2, %v1574_v31  ;;  %v1116_v45 = vadd.f32 %v2216_v19, %v1045_v40  ;;  %1402 = vst.msk [vmem:[%s2600_s5 + $0x20] sm:$0xf] %vm1393_vm2, %v1572_v38  ;;  %v1604_v48 = vpack.c.bf16 %v1113_v39, %v1113_v39  ;;  %v1573_v49 = vpack.c.bf16 %v1082_v41, %v1082_v41 }
 0x101   :  { %785 = vst.msk [vmem:[#allocation2 + $0x178] sm:$0xff] %vm737_vm1, %v1875_v42  ;;  %v1114_v50 = vadd.f32 %v2216_v19, %v1043_v46  ;;  %783 = vst.msk [vmem:[#allocation2 + $0x168] sm:$0xff] %vm737_vm1, %v657_v47  ;;  %v1846_v54 = vpop.f32.mrb[16].mxu0  ;;  %v1878_v61 = vpop.f32.mrb[16].mxu1 }
 0x102   :  { %1436 = vst.msk [vmem:[%s2600_s5 + $0xa8] sm:$0xf] %vm1393_vm2, %v1606_v43  ;;  %1405 = vst.msk [vmem:[%s2600_s5 + $0x2c] sm:$0xf] %vm1393_vm2, %v1575_v44  ;;  %v1607_v51 = vpack.c.bf16 %v1116_v45, %v1116_v45  ;;  %v542_v57 = vpop.f32.mrb[17].mxu0  ;;  %v670_v5 = vpop.f32.mrb[17].mxu1 }
 0x103   :  { %1434 = vst.msk [vmem:[%s2600_s5 + $0xa0] sm:$0xf] %vm1393_vm2, %v1604_v48  ;;  %1403 = vst.msk [vmem:[%s2600_s5 + $0x24] sm:$0xf] %vm1393_vm2, %v1573_v49  ;;  %v1605_v52 = vpack.c.bf16 %v1114_v50, %v1114_v50  ;;  %v1016_v53 = vld [vmem:[#allocation2 + $0x70] sm:$0xff]  ;;  %v1014_v56 = vld [vmem:[#allocation2 + $0x60] sm:$0xff] }
 0x104   :  { %1437 = vst.msk [vmem:[%s2600_s5 + $0xac] sm:$0xf] %vm1393_vm2, %v1607_v51  ;;  %v1087_v55 = vadd.f32 %v2216_v19, %v1016_v53  ;;  %v1085_v59 = vadd.f32 %v2216_v19, %v1014_v56  ;;  %v1847_v62 = vpop.f32.mrb[18].mxu0  ;;  %v1879_v12 = vpop.f32.mrb[18].mxu1 }
 0x105   :  { %756 = vst.msk [vmem:[#allocation2 + $0x90] sm:$0xff] %vm737_vm1, %v1846_v54  ;;  %v1048_v58 = vld [vmem:[#allocation2 + $0x170] sm:$0xff]  ;;  %v1017_v60 = vld [vmem:[#allocation2 + $0x78] sm:$0xff]  ;;  %754 = vst.msk [vmem:[#allocation2 + $0x80] sm:$0xff] %vm737_vm1, %v542_v57  ;;  %v545_v6 = vpop.f32.mrb[19].mxu0  ;;  %v673_v10 = vpop.f32.mrb[19].mxu1 }
 0x106   :  { %1435 = vst.msk [vmem:[%s2600_s5 + $0xa4] sm:$0xf] %vm1393_vm2, %v1605_v52  ;;  %v1578_v63 = vpack.c.bf16 %v1087_v55, %v1087_v55  ;;  %v1119_v0 = vadd.f32 %v2216_v19, %v1048_v58  ;;  %v1046_v1 = vld [vmem:[#allocation2 + $0x160] sm:$0xff]  ;;  %v1088_v2 = vadd.f32 %v2216_v19, %v1017_v60  ;;  %v1015_v3 = vld [vmem:[#allocation2 + $0x68] sm:$0xff]  ;;  %v1576_v7 = vpack.c.bf16 %v1085_v59, %v1085_v59 }
 0x107   :  { %788 = vst.msk [vmem:[#allocation2 + $0x190] sm:$0xff] %vm737_vm1, %v1878_v61  ;;  %757 = vst.msk [vmem:[#allocation2 + $0x98] sm:$0xff] %vm737_vm1, %v1847_v62  ;;  %v1117_v8 = vadd.f32 %v2216_v19, %v1046_v1  ;;  %v1086_v11 = vadd.f32 %v2216_v19, %v1015_v3 }
 0x108   :  { %v1049_v9 = vld [vmem:[#allocation2 + $0x178] sm:$0xff]  ;;  %786 = vst.msk [vmem:[#allocation2 + $0x180] sm:$0xff] %vm737_vm1, %v670_v5  ;;  %755 = vst.msk [vmem:[#allocation2 + $0x88] sm:$0xff] %vm737_vm1, %v545_v6  ;;  %v1610_v4 = vpack.c.bf16 %v1119_v0, %v1119_v0  ;;  %v1579_v13 = vpack.c.bf16 %v1088_v2, %v1088_v2  ;;  %v1047_v15 = vld [vmem:[#allocation2 + $0x168] sm:$0xff] }
 0x109   :  { %1408 = vst.msk [vmem:[%s2600_s5 + $0x38] sm:$0xf] %vm1393_vm2, %v1578_v63  ;;  %v1120_v14 = vadd.f32 %v2216_v19, %v1049_v9  ;;  %1406 = vst.msk [vmem:[%s2600_s5 + $0x30] sm:$0xf] %vm1393_vm2, %v1576_v7  ;;  %v1608_v16 = vpack.c.bf16 %v1117_v8, %v1117_v8  ;;  %v1577_v17 = vpack.c.bf16 %v1086_v11, %v1086_v11  ;;  %v1850_v23 = vpop.f32.mrb[20].mxu0  ;;  %v1882_v30 = vpop.f32.mrb[20].mxu1 }
 0x10a   :  { %789 = vst.msk [vmem:[#allocation2 + $0x198] sm:$0xff] %vm737_vm1, %v1879_v12  ;;  %v1118_v18 = vadd.f32 %v2216_v19, %v1047_v15  ;;  %787 = vst.msk [vmem:[#allocation2 + $0x188] sm:$0xff] %vm737_vm1, %v673_v10  ;;  %v558_v26 = vpop.f32.mrb[21].mxu0  ;;  %v686_v37 = vpop.f32.mrb[21].mxu1 }
 0x10b   :  { %1440 = vst.msk [vmem:[%s2600_s5 + $0xb8] sm:$0xf] %vm1393_vm2, %v1610_v4  ;;  %1409 = vst.msk [vmem:[%s2600_s5 + $0x3c] sm:$0xf] %vm1393_vm2, %v1579_v13  ;;  %v1611_v20 = vpack.c.bf16 %v1120_v14, %v1120_v14  ;;  %v1851_v31 = vpop.f32.mrb[22].mxu0  ;;  %v1883_v43 = vpop.f32.mrb[22].mxu1 }
 0x10c   :  { %1438 = vst.msk [vmem:[%s2600_s5 + $0xb0] sm:$0xf] %vm1393_vm2, %v1608_v16  ;;  %1407 = vst.msk [vmem:[%s2600_s5 + $0x34] sm:$0xf] %vm1393_vm2, %v1577_v17  ;;  %v1609_v21 = vpack.c.bf16 %v1118_v18, %v1118_v18  ;;  %v1020_v22 = vld [vmem:[#allocation2 + $0x90] sm:$0xff]  ;;  %v1018_v25 = vld [vmem:[#allocation2 + $0x80] sm:$0xff] }
 0x10d   :  { %1441 = vst.msk [vmem:[%s2600_s5 + $0xbc] sm:$0xf] %vm1393_vm2, %v1611_v20  ;;  %v1091_v24 = vadd.f32 %v2216_v19, %v1020_v22  ;;  %v1089_v28 = vadd.f32 %v2216_v19, %v1018_v25  ;;  %v561_v38 = vpop.f32.mrb[23].mxu0  ;;  %v689_v48 = vpop.f32.mrb[23].mxu1 }
 0x10e   :  { %760 = vst.msk [vmem:[#allocation2 + $0xb0] sm:$0xff] %vm737_vm1, %v1850_v23  ;;  %v1052_v27 = vld [vmem:[#allocation2 + $0x190] sm:$0xff]  ;;  %v1021_v29 = vld [vmem:[#allocation2 + $0x98] sm:$0xff]  ;;  %758 = vst.msk [vmem:[#allocation2 + $0xa0] sm:$0xff] %vm737_vm1, %v558_v26 }
 0x10f   :  { %1439 = vst.msk [vmem:[%s2600_s5 + $0xb4] sm:$0xf] %vm1393_vm2, %v1609_v21  ;;  %v1582_v32 = vpack.c.bf16 %v1091_v24, %v1091_v24  ;;  %v1123_v33 = vadd.f32 %v2216_v19, %v1052_v27  ;;  %v1050_v34 = vld [vmem:[#allocation2 + $0x180] sm:$0xff]  ;;  %v1092_v35 = vadd.f32 %v2216_v19, %v1021_v29  ;;  %v1019_v36 = vld [vmem:[#allocation2 + $0x88] sm:$0xff]  ;;  %v1580_v39 = vpack.c.bf16 %v1089_v28, %v1089_v28 }
 0x110   :  { %792 = vst.msk [vmem:[#allocation2 + $0x1b0] sm:$0xff] %vm737_vm1, %v1882_v30  ;;  %761 = vst.msk [vmem:[#allocation2 + $0xb8] sm:$0xff] %vm737_vm1, %v1851_v31  ;;  %v1121_v40 = vadd.f32 %v2216_v19, %v1050_v34  ;;  %v1090_v42 = vadd.f32 %v2216_v19, %v1019_v36 }
 0x111   :  { %v1053_v41 = vld [vmem:[#allocation2 + $0x198] sm:$0xff]  ;;  %790 = vst.msk [vmem:[#allocation2 + $0x1a0] sm:$0xff] %vm737_vm1, %v686_v37  ;;  %759 = vst.msk [vmem:[#allocation2 + $0xa8] sm:$0xff] %vm737_vm1, %v561_v38  ;;  %v1614_v44 = vpack.c.bf16 %v1123_v33, %v1123_v33  ;;  %v1583_v45 = vpack.c.bf16 %v1092_v35, %v1092_v35  ;;  %v1051_v47 = vld [vmem:[#allocation2 + $0x188] sm:$0xff]  ;;  %v1854_v55 = vpop.f32.mrb[24].mxu0  ;;  %v1886_v62 = vpop.f32.mrb[24].mxu1 }
 0x112   :  { %1412 = vst.msk [vmem:[%s2600_s5 + $0x48] sm:$0xf] %vm1393_vm2, %v1582_v32  ;;  %v1124_v46 = vadd.f32 %v2216_v19, %v1053_v41  ;;  %1410 = vst.msk [vmem:[%s2600_s5 + $0x40] sm:$0xf] %vm1393_vm2, %v1580_v39  ;;  %v1612_v49 = vpack.c.bf16 %v1121_v40, %v1121_v40  ;;  %v1581_v50 = vpack.c.bf16 %v1090_v42, %v1090_v42  ;;  %v574_v58 = vpop.f32.mrb[25].mxu0  ;;  %v702_v6 = vpop.f32.mrb[25].mxu1 }
 0x113   :  { %793 = vst.msk [vmem:[#allocation2 + $0x1b8] sm:$0xff] %vm737_vm1, %v1883_v43  ;;  %v1122_v51 = vadd.f32 %v2216_v19, %v1051_v47  ;;  %791 = vst.msk [vmem:[#allocation2 + $0x1a8] sm:$0xff] %vm737_vm1, %v689_v48  ;;  %v1855_v63 = vpop.f32.mrb[26].mxu0  ;;  %v1887_v4 = vpop.f32.mrb[26].mxu1 }
 0x114   :  { %1444 = vst.msk [vmem:[%s2600_s5 + $0xc8] sm:$0xf] %vm1393_vm2, %v1614_v44  ;;  %1413 = vst.msk [vmem:[%s2600_s5 + $0x4c] sm:$0xf] %vm1393_vm2, %v1583_v45  ;;  %v1615_v52 = vpack.c.bf16 %v1124_v46, %v1124_v46  ;;  %v577_v7 = vpop.f32.mrb[27].mxu0  ;;  %v705_v16 = vpop.f32.mrb[27].mxu1 }
 0x115   :  { %1442 = vst.msk [vmem:[%s2600_s5 + $0xc0] sm:$0xf] %vm1393_vm2, %v1612_v49  ;;  %1411 = vst.msk [vmem:[%s2600_s5 + $0x44] sm:$0xf] %vm1393_vm2, %v1581_v50  ;;  %v1613_v53 = vpack.c.bf16 %v1122_v51, %v1122_v51  ;;  %v1024_v54 = vld [vmem:[#allocation2 + $0xb0] sm:$0xff]  ;;  %v1022_v57 = vld [vmem:[#allocation2 + $0xa0] sm:$0xff] }
 0x116   :  { %1445 = vst.msk [vmem:[%s2600_s5 + $0xcc] sm:$0xf] %vm1393_vm2, %v1615_v52  ;;  %v1095_v56 = vadd.f32 %v2216_v19, %v1024_v54  ;;  %v1093_v60 = vadd.f32 %v2216_v19, %v1022_v57 }
 0x117   :  { %764 = vst.msk [vmem:[#allocation2 + $0xd0] sm:$0xff] %vm737_vm1, %v1854_v55  ;;  %v1056_v59 = vld [vmem:[#allocation2 + $0x1b0] sm:$0xff]  ;;  %v1025_v61 = vld [vmem:[#allocation2 + $0xb8] sm:$0xff]  ;;  %762 = vst.msk [vmem:[#allocation2 + $0xc0] sm:$0xff] %vm737_vm1, %v574_v58 }
 0x118   :  { %1443 = vst.msk [vmem:[%s2600_s5 + $0xc4] sm:$0xf] %vm1393_vm2, %v1613_v53  ;;  %v1586_v0 = vpack.c.bf16 %v1095_v56, %v1095_v56  ;;  %v1127_v1 = vadd.f32 %v2216_v19, %v1056_v59  ;;  %v1054_v2 = vld [vmem:[#allocation2 + $0x1a0] sm:$0xff]  ;;  %v1096_v3 = vadd.f32 %v2216_v19, %v1025_v61  ;;  %v1023_v5 = vld [vmem:[#allocation2 + $0xa8] sm:$0xff]  ;;  %v1584_v8 = vpack.c.bf16 %v1093_v60, %v1093_v60 }
 0x119   :  { %796 = vst.msk [vmem:[#allocation2 + $0x1d0] sm:$0xff] %vm737_vm1, %v1886_v62  ;;  %765 = vst.msk [vmem:[#allocation2 + $0xd8] sm:$0xff] %vm737_vm1, %v1855_v63  ;;  %v1125_v9 = vadd.f32 %v2216_v19, %v1054_v2  ;;  %v1094_v12 = vadd.f32 %v2216_v19, %v1023_v5  ;;  %v1858_v24 = vpop.f32.mrb[28].mxu0  ;;  %v1890_v31 = vpop.f32.mrb[28].mxu1 }
 0x11a   :  { %v1057_v11 = vld [vmem:[#allocation2 + $0x1b8] sm:$0xff]  ;;  %794 = vst.msk [vmem:[#allocation2 + $0x1c0] sm:$0xff] %vm737_vm1, %v702_v6  ;;  %763 = vst.msk [vmem:[#allocation2 + $0xc8] sm:$0xff] %vm737_vm1, %v577_v7  ;;  %v1618_v13 = vpack.c.bf16 %v1127_v1, %v1127_v1  ;;  %v1587_v14 = vpack.c.bf16 %v1096_v3, %v1096_v3  ;;  %v1055_v10 = vld [vmem:[#allocation2 + $0x1a8] sm:$0xff]  ;;  %v590_v27 = vpop.f32.mrb[29].mxu0  ;;  %v718_v38 = vpop.f32.mrb[29].mxu1 }
 0x11b   :  { %1416 = vst.msk [vmem:[%s2600_s5 + $0x58] sm:$0xf] %vm1393_vm2, %v1586_v0  ;;  %v1128_v15 = vadd.f32 %v2216_v19, %v1057_v11  ;;  %1414 = vst.msk [vmem:[%s2600_s5 + $0x50] sm:$0xf] %vm1393_vm2, %v1584_v8  ;;  %v1616_v17 = vpack.c.bf16 %v1125_v9, %v1125_v9  ;;  %v1585_v18 = vpack.c.bf16 %v1094_v12, %v1094_v12  ;;  %v1859_v32 = vpop.f32.mrb[30].mxu0  ;;  %v1891_v44 = vpop.f32.mrb[30].mxu1 }
 0x11c   :  { %797 = vst.msk [vmem:[#allocation2 + $0x1d8] sm:$0xff] %vm737_vm1, %v1887_v4  ;;  %v1126_v20 = vadd.f32 %v2216_v19, %v1055_v10  ;;  %795 = vst.msk [vmem:[#allocation2 + $0x1c8] sm:$0xff] %vm737_vm1, %v705_v16  ;;  %v593_v39 = vpop.f32.mrb[31].mxu0  ;;  %v721_v49 = vpop.f32.mrb[31].mxu1 }
 0x11d   :  { %1448 = vst.msk [vmem:[%s2600_s5 + $0xd8] sm:$0xf] %vm1393_vm2, %v1618_v13  ;;  %1417 = vst.msk [vmem:[%s2600_s5 + $0x5c] sm:$0xf] %vm1393_vm2, %v1587_v14  ;;  %v1619_v21 = vpack.c.bf16 %v1128_v15, %v1128_v15 }
 0x11e   :  { %1446 = vst.msk [vmem:[%s2600_s5 + $0xd0] sm:$0xf] %vm1393_vm2, %v1616_v17  ;;  %1415 = vst.msk [vmem:[%s2600_s5 + $0x54] sm:$0xf] %vm1393_vm2, %v1585_v18  ;;  %v1617_v22 = vpack.c.bf16 %v1126_v20, %v1126_v20  ;;  %v1028_v23 = vld [vmem:[#allocation2 + $0xd0] sm:$0xff]  ;;  %v1026_v26 = vld [vmem:[#allocation2 + $0xc0] sm:$0xff] }
 0x11f   :  { %1449 = vst.msk [vmem:[%s2600_s5 + $0xdc] sm:$0xf] %vm1393_vm2, %v1619_v21  ;;  %v1099_v25 = vadd.f32 %v2216_v19, %v1028_v23  ;;  %v1097_v29 = vadd.f32 %v2216_v19, %v1026_v26 }
 0x120   :  { %768 = vst.msk [vmem:[#allocation2 + $0xf0] sm:$0xff] %vm737_vm1, %v1858_v24  ;;  %v1060_v28 = vld [vmem:[#allocation2 + $0x1d0] sm:$0xff]  ;;  %v1029_v30 = vld [vmem:[#allocation2 + $0xd8] sm:$0xff]  ;;  %766 = vst.msk [vmem:[#allocation2 + $0xe0] sm:$0xff] %vm737_vm1, %v590_v27 }
 0x121   :  { %1447 = vst.msk [vmem:[%s2600_s5 + $0xd4] sm:$0xf] %vm1393_vm2, %v1617_v22  ;;  %v1590_v33 = vpack.c.bf16 %v1099_v25, %v1099_v25  ;;  %v1131_v34 = vadd.f32 %v2216_v19, %v1060_v28  ;;  %v1058_v35 = vld [vmem:[#allocation2 + $0x1c0] sm:$0xff]  ;;  %v1100_v36 = vadd.f32 %v2216_v19, %v1029_v30  ;;  %v1027_v37 = vld [vmem:[#allocation2 + $0xc8] sm:$0xff]  ;;  %v1588_v40 = vpack.c.bf16 %v1097_v29, %v1097_v29 }
 0x122   :  { %800 = vst.msk [vmem:[#allocation2 + $0x1f0] sm:$0xff] %vm737_vm1, %v1890_v31  ;;  %769 = vst.msk [vmem:[#allocation2 + $0xf8] sm:$0xff] %vm737_vm1, %v1859_v32  ;;  %v1129_v41 = vadd.f32 %v2216_v19, %v1058_v35  ;;  %v1098_v43 = vadd.f32 %v2216_v19, %v1027_v37 }
 0x123   :  { %v1061_v42 = vld [vmem:[#allocation2 + $0x1d8] sm:$0xff]  ;;  %798 = vst.msk [vmem:[#allocation2 + $0x1e0] sm:$0xff] %vm737_vm1, %v718_v38  ;;  %767 = vst.msk [vmem:[#allocation2 + $0xe8] sm:$0xff] %vm737_vm1, %v593_v39  ;;  %v1622_v45 = vpack.c.bf16 %v1131_v34, %v1131_v34  ;;  %v1591_v46 = vpack.c.bf16 %v1100_v36, %v1100_v36  ;;  %v1059_v48 = vld [vmem:[#allocation2 + $0x1c8] sm:$0xff] }
 0x124   :  { %1420 = vst.msk [vmem:[%s2600_s5 + $0x68] sm:$0xf] %vm1393_vm2, %v1590_v33  ;;  %v1132_v47 = vadd.f32 %v2216_v19, %v1061_v42  ;;  %1418 = vst.msk [vmem:[%s2600_s5 + $0x60] sm:$0xf] %vm1393_vm2, %v1588_v40  ;;  %v1620_v50 = vpack.c.bf16 %v1129_v41, %v1129_v41  ;;  %v1589_v51 = vpack.c.bf16 %v1098_v43, %v1098_v43 }
 0x125   :  { %801 = vst.msk [vmem:[#allocation2 + $0x1f8] sm:$0xff] %vm737_vm1, %v1891_v44  ;;  %v1130_v52 = vadd.f32 %v2216_v19, %v1059_v48  ;;  %799 = vst.msk [vmem:[#allocation2 + $0x1e8] sm:$0xff] %vm737_vm1, %v721_v49 }
 0x126   :  { %1452 = vst.msk [vmem:[%s2600_s5 + $0xe8] sm:$0xf] %vm1393_vm2, %v1622_v45  ;;  %1421 = vst.msk [vmem:[%s2600_s5 + $0x6c] sm:$0xf] %vm1393_vm2, %v1591_v46  ;;  %v1623_v53 = vpack.c.bf16 %v1132_v47, %v1132_v47 }
 0x127   :  { %1450 = vst.msk [vmem:[%s2600_s5 + $0xe0] sm:$0xf] %vm1393_vm2, %v1620_v50  ;;  %1419 = vst.msk [vmem:[%s2600_s5 + $0x64] sm:$0xf] %vm1393_vm2, %v1589_v51  ;;  %v1621_v54 = vpack.c.bf16 %v1130_v52, %v1130_v52  ;;  %v1032_v55 = vld [vmem:[#allocation2 + $0xf0] sm:$0xff]  ;;  %v1030_v57 = vld [vmem:[#allocation2 + $0xe0] sm:$0xff] }
 0x128   :  { %1453 = vst.msk [vmem:[%s2600_s5 + $0xec] sm:$0xf] %vm1393_vm2, %v1623_v53  ;;  %v1103_v56 = vadd.f32 %v2216_v19, %v1032_v55  ;;  %v1101_v59 = vadd.f32 %v2216_v19, %v1030_v57 }
 0x129   :  { %1451 = vst.msk [vmem:[%s2600_s5 + $0xe4] sm:$0xf] %vm1393_vm2, %v1621_v54  ;;  %v1064_v58 = vld [vmem:[#allocation2 + $0x1f0] sm:$0xff]  ;;  %v1033_v60 = vld [vmem:[#allocation2 + $0xf8] sm:$0xff] }
 0x12a   :  { %v1594_v61 = vpack.c.bf16 %v1103_v56, %v1103_v56  ;;  %v1135_v62 = vadd.f32 %v2216_v19, %v1064_v58  ;;  %v1062_v63 = vld [vmem:[#allocation2 + $0x1e0] sm:$0xff]  ;;  %v1104_v0 = vadd.f32 %v2216_v19, %v1033_v60  ;;  %v1031_v1 = vld [vmem:[#allocation2 + $0xe8] sm:$0xff]  ;;  %v1592_v2 = vpack.c.bf16 %v1101_v59, %v1101_v59 }
 0x12b   :  { %v1133_v3 = vadd.f32 %v2216_v19, %v1062_v63  ;;  %v1102_v6 = vadd.f32 %v2216_v19, %v1031_v1 }
 0x12c   :  { %v1065_v5 = vld [vmem:[#allocation2 + $0x1f8] sm:$0xff]  ;;  %1424 = vst.msk [vmem:[%s2600_s5 + $0x78] sm:$0xf] %vm1393_vm2, %v1594_v61  ;;  %v1626_v7 = vpack.c.bf16 %v1135_v62, %v1135_v62  ;;  %v1595_v8 = vpack.c.bf16 %v1104_v0, %v1104_v0  ;;  %v1063_v11 = vld [vmem:[#allocation2 + $0x1e8] sm:$0xff]  ;;  %1422 = vst.msk [vmem:[%s2600_s5 + $0x70] sm:$0xf] %vm1393_vm2, %v1592_v2 }
 0x12d   :  { %v1136_v9 = vadd.f32 %v2216_v19, %v1065_v5  ;;  %v1624_v12 = vpack.c.bf16 %v1133_v3, %v1133_v3  ;;  %v1593_v4 = vpack.c.bf16 %v1102_v6, %v1102_v6  ;;  %v1134_v13 = vadd.f32 %v2216_v19, %v1063_v11 }
 0x12e   :  { %1456 = vst.msk [vmem:[%s2600_s5 + $0xf8] sm:$0xf] %vm1393_vm2, %v1626_v7  ;;  %1425 = vst.msk [vmem:[%s2600_s5 + $0x7c] sm:$0xf] %vm1393_vm2, %v1595_v8 }
 0x12f   :  { %v1627_v14 = vpack.c.bf16 %v1136_v9, %v1136_v9  ;;  %1454 = vst.msk [vmem:[%s2600_s5 + $0xf0] sm:$0xf] %vm1393_vm2, %v1624_v12  ;;  %1423 = vst.msk [vmem:[%s2600_s5 + $0x74] sm:$0xf] %vm1393_vm2, %v1593_v4  ;;  %v1625_v19 = vpack.c.bf16 %v1134_v13, %v1134_v13 }
 0x131   :  { %1457 = vst.msk [vmem:[%s2600_s5 + $0xfc] sm:$0xf] %vm1393_vm2, %v1627_v14  ;;  %1455 = vst.msk [vmem:[%s2600_s5 + $0xf4] sm:$0xf] %vm1393_vm2, %v1625_v19 }

// kernel: tile.81
= control target key start
LH: loop header
LB: loop body
LE: loop exit
PB: predicated region body
PF: predicated region fallthrough
CT: control target
= control target key end

     0   :  { %s28_s0 = inlined_call_operand.vmem [shape: f32[32], index: 0, kind: input, shape index: {}]   ;;  %s29_s1 = inlined_call_operand.vmem [shape: f32[16,32], index: 1, kind: output, shape index: {}]  }
   0x1   :  { %v4_v0 = vld [vmem:[%s28_s0] ss:$0 sm:$0xff] }
   0x2   :  { %5 = vst [vmem:[%s29_s1] sm:$0xff] %v4_v0  ;;  %8 = vst [vmem:[%s29_s1 + $0x8] sm:$0xff] %v4_v0 }

// kernel: tile.86
= control target key start
LH: loop header
LB: loop body
LE: loop exit
PB: predicated region body
PF: predicated region fallthrough
CT: control target
= control target key end

     0   :  { %s57_s8 = smov 96   ;;  %vm3_vm0 = vcmask 261120   ;;  %s59_s15 = smov 64   ;;  %vm9_vm1 = vcmask 1048320   ;;  %vm15_vm2 = vcmask 785920   ;;  %vm21_vm3 = vcmask 523520   ;;  %s94_s0 = inlined_call_operand.vmem [shape: f32[16,32], index: 0, kind: input, shape index: {}]   ;;  %s95_s1 = inlined_call_operand.vmem [shape: f32[1,512], index: 1, kind: output, shape index: {}]  }
   0x1   :  { %v48_v0 = vld [vmem:[%s94_s0 + $0x3] ss:$4 sm:$0xf]   ;;  %v49_v1 = vld [vmem:[%s94_s0 + $0x2] ss:$4 sm:$0xf]  }
   0x2   :  { %7 = vrot.lane.b32.xlu0 %v48_v0, %s57_s8  ;;  %v50_v2 = vld [vmem:[%s94_s0 + $0x1] ss:$4 sm:$0xf]   ;;  %v2_v3 = vld [vmem:[%s94_s0] ss:$4 sm:$0xf]  }
   0x3   :  { %s58_s0 = smov 32   ;;  %4 = vst.msk [vmem:[#allocation0] ss:$8 sm:$0xf] %vm3_vm0, %v2_v3  }
   0x4   :  { %19 = vrot.lane.b32.xlu1 %v50_v2, %s58_s0 }
   0x6   :  { %13 = vrot.lane.b32.xlu0 %v49_v1, %s59_s15 }
  0x74   :  { %v8_v4 = vpop.permute.xlu0 %7  }
  0x75   :  { %10 = vst.msk [vmem:[#allocation0] ss:$8 sm:$0xf] %vm9_vm1, %v8_v4  }
  0x76   :  { %v20_v5 = vpop.permute.xlu1 %19  }
  0x78   :  { %v14_v6 = vpop.permute.xlu0 %13  }
  0x79   :  { %16 = vst.msk [vmem:[#allocation0] ss:$8 sm:$0xf] %vm15_vm2, %v14_v6  }
  0x7a   :  { %22 = vst.msk [vmem:[#allocation0] ss:$8 sm:$0xf] %vm21_vm3, %v20_v5  }
  0x81   :  { %v26_v7 = vld [vmem:[#allocation0] sm:$0x1]  ;;  %v30_v8 = vld [vmem:[#allocation0 + $0x8] sm:$0x1]  ;;  %v35_v9 = vld [vmem:[#allocation0 + $0x10] sm:$0x1] }
  0x82   :  { %28 = vst [vmem:[%s95_s1] sm:$0x1] %v26_v7  ;;  %51 = vst [vmem:[%s95_s1 + $0x1] sm:$0x1] %v30_v8  ;;  %v41_v10 = vld [vmem:[#allocation0 + $0x18] sm:$0x1] }
  0x83   :  { %52 = vst [vmem:[%s95_s1 + $0x2] sm:$0x1] %v35_v9  ;;  %53 = vst [vmem:[%s95_s1 + $0x3] sm:$0x1] %v41_v10 }

// kernel: _lambda_.15
= control target key start
LH: loop header
LB: loop body
LE: loop exit
PB: predicated region body
PF: predicated region fallthrough
CT: control target
= control target key end

     0   :  { %v74_v5 = vlaneseq  ;;  %s1446_s1 = inlined_call_operand.vmem [shape: bf16[256,32], index: 1, kind: input, shape index: {}]   ;;  %s1447_s0 = inlined_call_operand.vmem [shape: bf16[128,256], index: 0, kind: input, shape index: {}]   ;;  %s1448_s3 = inlined_call_operand.vmem [shape: f32[1,256], index: 3, kind: input, shape index: {}]   ;;  %s1449_s4 = inlined_call_operand.vmem [shape: f32[1,256], index: 4, kind: input, shape index: {}]   ;;  %s1450_s2 = inlined_call_operand.vmem [shape: f32[1,32], index: 2, kind: input, shape index: {}]   ;;  %s1451_s5 = inlined_call_operand.vmem [shape: bf16[128,32], index: 5, kind: output, shape index: {0}]   ;;  %s1452_s6 = inlined_call_operand.vmem [shape: f32[1,32], index: 6, kind: output, shape index: {1}]   ;;  %s1453_s7 = inlined_call_operand.vmem [shape: f32[1,32], index: 7, kind: output, shape index: {2}]  }
   0x1   :  { %v1043_v0 = vld [vmem:[%s1446_s1 + $0x40] sm:$0xff]   ;;  %v1045_v2 = vld [vmem:[%s1446_s1 + $0x48] sm:$0xff]   ;;  %v1047_v4 = vld [vmem:[%s1446_s1 + $0x50] sm:$0xff]  }
   0x2   :  { %v1044_v1 = vld [vmem:[%s1446_s1] sm:$0xff]   ;;  %963 = vmatprep.subr.bf16.mxu0 %v1043_v0  ;;  %1027 = vmatprep.subr.bf16.mxu1 %v1043_v0  ;;  %v1046_v3 = vld [vmem:[%s1446_s1 + $0x8] sm:$0xff]   ;;  %v1048_v6 = vld [vmem:[%s1446_s1 + $0x10] sm:$0xff]   ;;  %v75_v8 = vshrl.u32 %v74_v5, 7 }
   0x3   :  { %964 = vmatpush3.bf16.msra.mxu0 %v1044_v1  ;;  %1035 = vmatpush3.bf16.msra.mxu1 %v1044_v1  ;;  %v1049_v7 = vld [vmem:[%s1446_s1 + $0x58] sm:$0xff]   ;;  %v1051_v10 = vld [vmem:[%s1446_s1 + $0x60] sm:$0xff]   ;;  %v1053_v14 = vld [vmem:[%s1446_s1 + $0x68] sm:$0xff]  }
   0x4   :  { %965 = vmatprep.subr.bf16.mxu0 %v1045_v2  ;;  %1028 = vmatprep.subr.bf16.mxu1 %v1045_v2  ;;  %v1050_v9 = vld [vmem:[%s1446_s1 + $0x18] sm:$0xff]   ;;  %v76_v11 = vsub.s32 0, %v75_v8  ;;  %v1052_v12 = vld [vmem:[%s1446_s1 + $0x20] sm:$0xff]   ;;  %v80_v13 = vsub.s32 1, %v75_v8  ;;  %v25_v16 = vld [vmem:[%s1447_s0 + $0x8] sm:$0xff] }
   0x5   :  { %v24_v15 = vld [vmem:[%s1447_s0] sm:$0xff]  ;;  %v42_v20 = vunpack.c.l.bf16 %v25_v16  ;;  %v43_v21 = vunpack.c.h.bf16 %v25_v16  ;;  %v26_v23 = vld [vmem:[%s1447_s0 + $0x10] sm:$0xff]  ;;  %v27_v24 = vld [vmem:[%s1447_s0 + $0x18] sm:$0xff] }
   0x6   :  { %v72_v17 = vld [vmem:[%s1448_s3] sm:$0x3]  ;;  %v40_v18 = vunpack.c.l.bf16 %v24_v15  ;;  %v41_v19 = vunpack.c.h.bf16 %v24_v15  ;;  %v1054_v29 = vld [vmem:[%s1446_s1 + $0x28] sm:$0xff]   ;;  %v45_v30 = vunpack.c.h.bf16 %v26_v23  ;;  %v47_v31 = vunpack.c.h.bf16 %v27_v24  ;;  %v1055_v34 = vld [vmem:[%s1446_s1 + $0x70] sm:$0xff]  }
   0x7   :  { %966 = vmatpush3.bf16.msra.mxu0 %v1046_v3  ;;  %1036 = vmatpush3.bf16.msra.mxu1 %v1046_v3  ;;  %v116_v22 = vld [vmem:[%s1449_s4] sm:$0x3]  ;;  %v1150_v25 = vrot.slane %v72_v17, %v76_v11  ;;  %v1152_v26 = vrot.slane %v72_v17, %v80_v13  ;;  %v44_v32 = vunpack.c.l.bf16 %v26_v23  ;;  %v46_v33 = vunpack.c.l.bf16 %v27_v24  ;;  %v1056_v48 = vld [vmem:[%s1446_s1 + $0x30] sm:$0xff]   ;;  %v1057_v49 = vld [vmem:[%s1446_s1 + $0x78] sm:$0xff]  }
   0x8   :  { %967 = vmatprep.subr.bf16.mxu0 %v1047_v4  ;;  %1029 = vmatprep.subr.bf16.mxu1 %v1047_v4  ;;  %v1154_v27 = vrot.slane %v116_v22, %v76_v11  ;;  %v1156_v28 = vrot.slane %v116_v22, %v80_v13  ;;  %v1171_v39 = vld [vmem:[%s1447_s0 + $0x40] sm:$0xff]  ;;  %v33_v60 = vld [vmem:[%s1447_s0 + $0x48] sm:$0xff]  ;;  %v1058_v61 = vld [vmem:[%s1446_s1 + $0x38] sm:$0xff]  }
   0x9   :  { %v85_v35 = vmul.f32 %v1152_v26, %v41_v19  ;;  %v87_v36 = vmul.f32 %v1152_v26, %v43_v21  ;;  %v84_v37 = vmul.f32 %v1150_v25, %v40_v18  ;;  %v86_v38 = vmul.f32 %v1150_v25, %v42_v20  ;;  %v28_v5 = vld [vmem:[%s1447_s0 + $0x20] sm:$0xff]  ;;  %v29_v13 = vld [vmem:[%s1447_s0 + $0x28] sm:$0xff] }
   0xa   :  { %v89_v40 = vmul.f32 %v1152_v26, %v45_v30  ;;  %v91_v41 = vmul.f32 %v1152_v26, %v47_v31  ;;  %v88_v42 = vmul.f32 %v1150_v25, %v44_v32  ;;  %v90_v43 = vmul.f32 %v1150_v25, %v46_v33 }
   0xb   :  { %968 = vmatpush3.bf16.msra.mxu0 %v1048_v6  ;;  %1037 = vmatpush3.bf16.msra.mxu1 %v1048_v6  ;;  %v129_v44 = vadd.f32 %v1156_v28, %v85_v35  ;;  %v131_v45 = vadd.f32 %v1156_v28, %v87_v36  ;;  %v128_v46 = vadd.f32 %v1154_v27, %v84_v37  ;;  %v56_v53 = vunpack.c.l.bf16 %v1171_v39 }
   0xc   :  { %969 = vmatprep.subr.bf16.mxu0 %v1049_v7  ;;  %1030 = vmatprep.subr.bf16.mxu1 %v1049_v7  ;;  %v130_v47 = vadd.f32 %v1154_v27, %v86_v38  ;;  %v133_v50 = vadd.f32 %v1156_v28, %v89_v40  ;;  %v135_v51 = vadd.f32 %v1156_v28, %v91_v41  ;;  %v57_v8 = vunpack.c.h.bf16 %v1171_v39 }
   0xd   :  { %v132_v52 = vadd.f32 %v1154_v27, %v88_v42  ;;  %vm161_vm0 = vcmp.gt.f32.partialorder %v129_v44, 0.0  ;;  %vm163_vm1 = vcmp.gt.f32.partialorder %v131_v45, 0.0  ;;  %v193_v54 = vmul.f32 0.2, %v129_v44 }
   0xe   :  { %v195_v55 = vmul.f32 0.2, %v131_v45  ;;  %vm160_vm2 = vcmp.gt.f32.partialorder %v128_v46, 0.0  ;;  %vm162_vm3 = vcmp.gt.f32.partialorder %v130_v47, 0.0  ;;  %v192_v56 = vmul.f32 0.2, %v128_v46 }
   0xf   :  { %970 = vmatpush3.bf16.msra.mxu0 %v1050_v9  ;;  %1038 = vmatpush3.bf16.msra.mxu1 %v1050_v9  ;;  %v194_v57 = vmul.f32 0.2, %v130_v47  ;;  %v225_v58 = vsel %vm161_vm0, %v129_v44, %v193_v54  ;;  %vm165_vm4 = vcmp.gt.f32.partialorder %v133_v50, 0.0  ;;  %vm167_vm5 = vcmp.gt.f32.partialorder %v135_v51, 0.0 }
  0x10   :  { %971 = vmatprep.subr.bf16.mxu0 %v1051_v10  ;;  %1031 = vmatprep.subr.bf16.mxu1 %v1051_v10  ;;  %v227_v59 = vsel %vm163_vm1, %v131_v45, %v195_v55  ;;  %v224_v63 = vsel %vm160_vm2, %v128_v46, %v192_v56  ;;  %v197_v1 = vmul.f32 0.2, %v133_v50  ;;  %v199_v3 = vmul.f32 0.2, %v135_v51  ;;  %v34_v45 = vld [vmem:[%s1447_s0 + $0x50] sm:$0xff]  ;;  %v35_v46 = vld [vmem:[%s1447_s0 + $0x58] sm:$0xff] }
  0x11   :  { %v257_v62 = vpack.c.bf16 %v227_v59, %v225_v58  ;;  %v226_v0 = vsel %vm162_vm3, %v130_v47, %v194_v57  ;;  %v134_v4 = vadd.f32 %v1154_v27, %v90_v43  ;;  %vm164_vm6 = vcmp.gt.f32.partialorder %v132_v52, 0.0 }
  0x12   :  { %v256_v2 = vpack.c.bf16 %v226_v0, %v224_v63  ;;  %v229_v6 = vsel %vm165_vm4, %v133_v50, %v197_v1  ;;  %v196_v7 = vmul.f32 0.2, %v132_v52  ;;  %v58_v9 = vunpack.c.l.bf16 %v33_v60  ;;  %v30_v50 = vld [vmem:[%s1447_s0 + $0x30] sm:$0xff] }
  0x13   :  { %972 = vmatpush3.bf16.msra.mxu0 %v1052_v12  ;;  %1039 = vmatpush3.bf16.msra.mxu1 %v1052_v12  ;;  %v231_v10 = vsel %vm167_vm5, %v135_v51, %v199_v3  ;;  %vm166_vm7 = vcmp.gt.f32.partialorder %v134_v4, 0.0  ;;  %v198_v11 = vmul.f32 0.2, %v134_v4  ;;  %v59_v12 = vunpack.c.h.bf16 %v33_v60  ;;  %v31_v3 = vld [vmem:[%s1447_s0 + $0x38] sm:$0xff] }
  0x14   :  { %973 = vmatprep.subr.bf16.mxu0 %v1053_v14  ;;  %1032 = vmatprep.subr.bf16.mxu1 %v1053_v14  ;;  %v259_v14 = vpack.c.bf16 %v231_v10, %v229_v6  ;;  %v228_v15 = vsel %vm164_vm6, %v132_v52, %v196_v7  ;;  %v101_v16 = vmul.f32 %v1152_v26, %v57_v8  ;;  %v49_v17 = vunpack.c.h.bf16 %v28_v5 }
  0x15   :  { %432 = vmatprep.mubr.bf16.mxu0 %v257_v62  ;;  %v230_v18 = vsel %vm166_vm7, %v134_v4, %v198_v11  ;;  %v103_v19 = vmul.f32 %v1152_v26, %v59_v12  ;;  %v100_v20 = vmul.f32 %v1150_v25, %v56_v53  ;;  %v102_v21 = vmul.f32 %v1150_v25, %v58_v9 }
  0x16   :  { %v258_v22 = vpack.c.bf16 %v230_v18, %v228_v15  ;;  %v145_v23 = vadd.f32 %v1156_v28, %v101_v16  ;;  %v51_v24 = vunpack.c.h.bf16 %v29_v13  ;;  %v48_v33 = vunpack.c.l.bf16 %v28_v5 }
  0x17   :  { %974 = vmatpush3.bf16.msra.mxu0 %v1054_v29  ;;  %1040 = vmatpush3.bf16.msra.mxu1 %v1054_v29  ;;  %v93_v29 = vmul.f32 %v1152_v26, %v49_v17  ;;  %v147_v30 = vadd.f32 %v1156_v28, %v103_v19  ;;  %v144_v31 = vadd.f32 %v1154_v27, %v100_v20  ;;  %v50_v44 = vunpack.c.l.bf16 %v29_v13 }
  0x18   :  { %975 = vmatprep.subr.bf16.mxu0 %v1055_v34  ;;  %1033 = vmatprep.subr.bf16.mxu1 %v1055_v34  ;;  %v146_v32 = vadd.f32 %v1154_v27, %v102_v21  ;;  %vm177_vm8 = vcmp.gt.f32.partialorder %v145_v23, 0.0  ;;  %v209_v34 = vmul.f32 0.2, %v145_v23  ;;  %v95_v35 = vmul.f32 %v1152_v26, %v51_v24 }
  0x19   :  { %v137_v36 = vadd.f32 %v1156_v28, %v93_v29  ;;  %vm179_vm9 = vcmp.gt.f32.partialorder %v147_v30, 0.0  ;;  %v211_v37 = vmul.f32 0.2, %v147_v30  ;;  %vm176_vm10 = vcmp.gt.f32.partialorder %v144_v31, 0.0 }
  0x1a   :  { %vm178_vm11 = vcmp.gt.f32.partialorder %v146_v32, 0.0  ;;  %v241_v38 = vsel %vm177_vm8, %v145_v23, %v209_v34  ;;  %v208_v39 = vmul.f32 0.2, %v144_v31  ;;  %v210_v40 = vmul.f32 0.2, %v146_v32 }
  0x1b   :  { %976 = vmatpush3.bf16.msra.mxu0 %v1056_v48  ;;  %1041 = vmatpush3.bf16.msra.mxu1 %v1056_v48  ;;  %v139_v41 = vadd.f32 %v1156_v28, %v95_v35  ;;  %v243_v42 = vsel %vm179_vm9, %v147_v30, %v211_v37  ;;  %vm169_vm12 = vcmp.gt.f32.partialorder %v137_v36, 0.0  ;;  %v201_v43 = vmul.f32 0.2, %v137_v36  ;;  %v36_v30 = vld [vmem:[%s1447_s0 + $0x60] sm:$0xff] }
  0x1c   :  { %977 = vmatprep.subr.bf16.mxu0 %v1057_v49  ;;  %1034 = vmatprep.subr.bf16.mxu1 %v1057_v49  ;;  %v265_v47 = vpack.c.bf16 %v243_v42, %v241_v38  ;;  %v240_v48 = vsel %vm176_vm10, %v144_v31, %v208_v39  ;;  %v242_v49 = vsel %vm178_vm11, %v146_v32, %v210_v40  ;;  %v61_v56 = vunpack.c.h.bf16 %v34_v45  ;;  %v37_v31 = vld [vmem:[%s1447_s0 + $0x68] sm:$0xff] }
  0x1d   :  { %vm171_vm13 = vcmp.gt.f32.partialorder %v139_v41, 0.0  ;;  %v264_v51 = vpack.c.bf16 %v242_v49, %v240_v48  ;;  %v203_v52 = vmul.f32 0.2, %v139_v41  ;;  %v233_v53 = vsel %vm169_vm12, %v137_v36, %v201_v43 }
  0x1e   :  { %v92_v54 = vmul.f32 %v1150_v25, %v48_v33  ;;  %464 = vmatprep.mubr.bf16.mxu1 %v265_v47  ;;  %v94_v55 = vmul.f32 %v1150_v25, %v50_v44  ;;  %v63_v57 = vunpack.c.h.bf16 %v35_v46  ;;  %v60_v58 = vunpack.c.l.bf16 %v34_v45 }
  0x1f   :  { %978 = vmatpush3.bf16.msra.mxu0 %v1058_v61  ;;  %1042 = vmatpush3.bf16.msra.mxu1 %v1058_v61  ;;  %v235_v59 = vsel %vm171_vm13, %v139_v41, %v203_v52  ;;  %v62_v61 = vunpack.c.l.bf16 %v35_v46  ;;  %v53_v62 = vunpack.c.h.bf16 %v30_v50  ;;  %v105_v1 = vmul.f32 %v1152_v26, %v61_v56 }
  0x20   :  { %v136_v60 = vadd.f32 %v1154_v27, %v92_v54  ;;  %v261_v63 = vpack.c.bf16 %v235_v59, %v233_v53  ;;  %v138_v0 = vadd.f32 %v1154_v27, %v94_v55  ;;  %v104_v5 = vmul.f32 %v1150_v25, %v60_v58 }
  0x21   :  { %v106_v6 = vmul.f32 %v1150_v25, %v62_v61  ;;  %v149_v8 = vadd.f32 %v1156_v28, %v105_v1  ;;  %v55_v13 = vunpack.c.h.bf16 %v31_v3  ;;  %v97_v21 = vmul.f32 %v1152_v26, %v53_v62 }
  0x22   :  { %433 = vmatmul.mubr.bf16.vlgmr.msra.gmra.mrb[0].mxu0 %v256_v2  ;;  %465 = vmatmul.mubr.bf16.vlgmr.msra.gmra.mrb[0].mxu1 %v264_v51  ;;  %v107_v2 = vmul.f32 %v1152_v26, %v63_v57  ;;  %vm168_vm14 = vcmp.gt.f32.partialorder %v136_v60, 0.0  ;;  %v200_v4 = vmul.f32 0.2, %v136_v60  ;;  %vm170_vm15 = vcmp.gt.f32.partialorder %v138_v0, 0.0 }
  0x23   :  { %440 = vmatprep.mubr.bf16.mxu0 %v259_v14  ;;  %v202_v7 = vmul.f32 0.2, %v138_v0  ;;  %v148_v11 = vadd.f32 %v1154_v27, %v104_v5  ;;  %v150_v12 = vadd.f32 %v1154_v27, %v106_v6  ;;  %vm181_vm0 = vcmp.gt.f32.partialorder %v149_v8, 0.0 }
  0x24   :  { %v151_v9 = vadd.f32 %v1156_v28, %v107_v2  ;;  %v232_v10 = vsel %vm168_vm14, %v136_v60, %v200_v4  ;;  %v213_v15 = vmul.f32 0.2, %v149_v8  ;;  %v99_v23 = vmul.f32 %v1152_v26, %v55_v13  ;;  %v39_v60 = vld [vmem:[%s1447_s0 + $0x78] sm:$0xff] }
  0x25   :  { %v234_v14 = vsel %vm170_vm15, %v138_v0, %v202_v7  ;;  %vm180_vm2 = vcmp.gt.f32.partialorder %v148_v11, 0.0  ;;  %vm182_vm3 = vcmp.gt.f32.partialorder %v150_v12, 0.0  ;;  %v212_v19 = vmul.f32 0.2, %v148_v11 }
  0x26   :  { %vm183_vm1 = vcmp.gt.f32.partialorder %v151_v9, 0.0  ;;  %v260_v16 = vpack.c.bf16 %v234_v14, %v232_v10  ;;  %v215_v17 = vmul.f32 0.2, %v151_v9  ;;  %v245_v18 = vsel %vm181_vm0, %v149_v8, %v213_v15 }
  0x27   :  { %v214_v20 = vmul.f32 0.2, %v150_v12  ;;  %v52_v24 = vunpack.c.l.bf16 %v30_v50  ;;  %v54_v29 = vunpack.c.l.bf16 %v31_v3  ;;  %v244_v33 = vsel %vm180_vm2, %v148_v11, %v212_v19  ;;  %v38_v50 = vld [vmem:[%s1447_s0 + $0x70] sm:$0xff] }
  0x28   :  { %v141_v35 = vadd.f32 %v1156_v28, %v97_v21  ;;  %v143_v37 = vadd.f32 %v1156_v28, %v99_v23  ;;  %v65_v41 = vunpack.c.h.bf16 %v36_v30  ;;  %v67_v42 = vunpack.c.h.bf16 %v37_v31 }
  0x29   :  { %v246_v34 = vsel %vm182_vm3, %v150_v12, %v214_v20  ;;  %v96_v38 = vmul.f32 %v1150_v25, %v52_v24  ;;  %v98_v39 = vmul.f32 %v1150_v25, %v54_v29  ;;  %v64_v49 = vunpack.c.l.bf16 %v36_v30 }
  0x2a   :  { %441 = vmatmul.mubr.bf16.gmra.mrb[4].mxu0 %v258_v22  ;;  %v247_v22 = vsel %vm183_vm1, %v151_v9, %v215_v17  ;;  %v266_v36 = vpack.c.bf16 %v246_v34, %v244_v33  ;;  %vm173_vm4 = vcmp.gt.f32.partialorder %v141_v35, 0.0  ;;  %v205_v40 = vmul.f32 0.2, %v141_v35 }
  0x2b   :  { %448 = vmatprep.mubr.bf16.mxu0 %v261_v63  ;;  %v267_v32 = vpack.c.bf16 %v247_v22, %v245_v18  ;;  %vm175_vm5 = vcmp.gt.f32.partialorder %v143_v37, 0.0  ;;  %v207_v43 = vmul.f32 0.2, %v143_v37  ;;  %v140_v44 = vadd.f32 %v1154_v27, %v96_v38 }
  0x2c   :  { %v142_v45 = vadd.f32 %v1154_v27, %v98_v39  ;;  %v237_v46 = vsel %vm173_vm4, %v141_v35, %v205_v40  ;;  %v109_v47 = vmul.f32 %v1152_v26, %v65_v41  ;;  %v111_v48 = vmul.f32 %v1152_v26, %v67_v42  ;;  %v1284_v42 = vld [vmem:[%s1450_s2] ss:$0 sm:$0xff] }
  0x2d   :  { %472 = vmatprep.mubr.bf16.mxu1 %v267_v32  ;;  %v239_v51 = vsel %vm175_vm5, %v143_v37, %v207_v43  ;;  %vm172_vm6 = vcmp.gt.f32.partialorder %v140_v44, 0.0  ;;  %v204_v52 = vmul.f32 0.2, %v140_v44  ;;  %v66_v58 = vunpack.c.l.bf16 %v37_v31 }
  0x2e   :  { %473 = vmatmul.mubr.bf16.gmra.mrb[4].mxu1 %v266_v36  ;;  %vm174_vm7 = vcmp.gt.f32.partialorder %v142_v45, 0.0  ;;  %v263_v53 = vpack.c.bf16 %v239_v51, %v237_v46  ;;  %v206_v54 = vmul.f32 0.2, %v142_v45  ;;  %v153_v55 = vadd.f32 %v1156_v28, %v109_v47 }
  0x2f   :  { %v155_v56 = vadd.f32 %v1156_v28, %v111_v48  ;;  %v236_v57 = vsel %vm172_vm6, %v140_v44, %v204_v52  ;;  %v108_v59 = vmul.f32 %v1150_v25, %v64_v49  ;;  %v69_v61 = vunpack.c.h.bf16 %v38_v50 }
  0x30   :  { %v238_v62 = vsel %vm174_vm7, %v142_v45, %v206_v54  ;;  %vm185_vm8 = vcmp.gt.f32.partialorder %v153_v55, 0.0  ;;  %v217_v63 = vmul.f32 0.2, %v153_v55  ;;  %v110_v2 = vmul.f32 %v1150_v25, %v66_v58 }
  0x31   :  { %vm187_vm9 = vcmp.gt.f32.partialorder %v155_v56, 0.0  ;;  %v262_v0 = vpack.c.bf16 %v238_v62, %v236_v57  ;;  %v219_v1 = vmul.f32 0.2, %v155_v56  ;;  %v152_v3 = vadd.f32 %v1154_v27, %v108_v59 }
  0x32   :  { %449 = vmatmul.mubr.bf16.gmra.mrb[8].mxu0 %v260_v16  ;;  %v249_v4 = vsel %vm185_vm8, %v153_v55, %v217_v63  ;;  %v71_v5 = vunpack.c.h.bf16 %v39_v60  ;;  %v113_v6 = vmul.f32 %v1152_v26, %v69_v61  ;;  %v68_v7 = vunpack.c.l.bf16 %v38_v50 }
  0x33   :  { %456 = vmatprep.mubr.bf16.mxu0 %v263_v53  ;;  %v251_v8 = vsel %vm187_vm9, %v155_v56, %v219_v1  ;;  %v154_v9 = vadd.f32 %v1154_v27, %v110_v2  ;;  %vm184_vm10 = vcmp.gt.f32.partialorder %v152_v3, 0.0  ;;  %v216_v10 = vmul.f32 0.2, %v152_v3 }
  0x34   :  { %v269_v11 = vpack.c.bf16 %v251_v8, %v249_v4  ;;  %v115_v12 = vmul.f32 %v1152_v26, %v71_v5  ;;  %v157_v13 = vadd.f32 %v1156_v28, %v113_v6  ;;  %v70_v14 = vunpack.c.l.bf16 %v39_v60 }
  0x35   :  { %vm186_vm11 = vcmp.gt.f32.partialorder %v154_v9, 0.0  ;;  %v218_v15 = vmul.f32 0.2, %v154_v9  ;;  %v248_v16 = vsel %vm184_vm10, %v152_v3, %v216_v10  ;;  %v112_v17 = vmul.f32 %v1150_v25, %v68_v7 }
  0x36   :  { %480 = vmatprep.mubr.bf16.mxu1 %v269_v11  ;;  %v159_v18 = vadd.f32 %v1156_v28, %v115_v12  ;;  %vm189_vm12 = vcmp.gt.f32.partialorder %v157_v13, 0.0  ;;  %v221_v19 = vmul.f32 0.2, %v157_v13  ;;  %v114_v20 = vmul.f32 %v1150_v25, %v70_v14 }
  0x37   :  { %v250_v21 = vsel %vm186_vm11, %v154_v9, %v218_v15  ;;  %v156_v22 = vadd.f32 %v1154_v27, %v112_v17  ;;  %vm501_vm0 = vcmask 261120   ;;  %vm677_vm1 = vcmask 257024  }
  0x38   :  { %v268_v23 = vpack.c.bf16 %v250_v21, %v248_v16  ;;  %vm191_vm13 = vcmp.gt.f32.partialorder %v159_v18, 0.0  ;;  %v223_v26 = vmul.f32 0.2, %v159_v18  ;;  %v253_v24 = vsel %vm189_vm12, %v157_v13, %v221_v19 }
  0x39   :  { %v158_v29 = vadd.f32 %v1154_v27, %v114_v20  ;;  %vm188_vm14 = vcmp.gt.f32.partialorder %v156_v22, 0.0  ;;  %v220_v30 = vmul.f32 0.2, %v156_v22  ;;  %vm888_vm2 = vcmask 253952  }
  0x3a   :  { %457 = vmatmul.mubr.bf16.gmra.mrb[12].mxu0 %v262_v0  ;;  %481 = vmatmul.mubr.bf16.gmra.mrb[8].mxu1 %v268_v23  ;;  %v255_v31 = vsel %vm191_vm13, %v159_v18, %v223_v26 }
  0x3b   :  { %v271_v32 = vpack.c.bf16 %v255_v31, %v253_v24  ;;  %vm190_vm15 = vcmp.gt.f32.partialorder %v158_v29, 0.0  ;;  %v222_v28 = vmul.f32 0.2, %v158_v29  ;;  %v252_v33 = vsel %vm188_vm14, %v156_v22, %v220_v30 }
  0x3d   :  { %488 = vmatprep.mubr.bf16.mxu1 %v271_v32  ;;  %v254_v34 = vsel %vm190_vm15, %v158_v29, %v222_v28 }
  0x3e   :  { %v270_v25 = vpack.c.bf16 %v254_v34, %v252_v33 }
  0x42   :  { %489 = vmatmul.mubr.bf16.gmra.mrb[12].mxu1 %v270_v25 }
  0xf5   :  { %v979_v35 = vpop.f32.mrb[0].mxu0  ;;  %v1003_v41 = vpop.f32.mrb[0].mxu1 }
  0xf6   :  { %v980_v36 = vpop.f32.mrb[1].mxu0  ;;  %v1004_v44 = vpop.f32.mrb[1].mxu1 }
  0xf7   :  { %v981_v37 = vadd.f32 %v980_v36, %v979_v35  ;;  %v982_v38 = vpop.f32.mrb[2].mxu0  ;;  %v1005_v47 = vadd.f32 %v1004_v44, %v1003_v41  ;;  %v1006_v48 = vpop.f32.mrb[2].mxu1 }
  0xf8   :  { %v983_v39 = vpop.f32.mrb[3].mxu0  ;;  %v1007_v51 = vpop.f32.mrb[3].mxu1 }
  0xf9   :  { %502 = vst.msk [vmem:[#allocation2] sm:$0xff] %vm501_vm0, %v981_v37  ;;  %v984_v27 = vadd.f32 %v983_v39, %v982_v38  ;;  %510 = vst.msk [vmem:[#allocation2 + $0x40] sm:$0xff] %vm501_vm0, %v1005_v47  ;;  %v1008_v54 = vadd.f32 %v1007_v51, %v1006_v48 }
  0xfb   :  { %503 = vst.msk [vmem:[#allocation2 + $0x8] sm:$0xff] %vm501_vm0, %v984_v27  ;;  %511 = vst.msk [vmem:[#allocation2 + $0x48] sm:$0xff] %vm501_vm0, %v1008_v54 }
  0xfd   :  { %v985_v40 = vpop.f32.mrb[4].mxu0 }
  0xfe   :  { %v986_v43 = vpop.f32.mrb[5].mxu0 }
  0xff   :  { %v987_v45 = vadd.f32 %v986_v43, %v985_v40  ;;  %v988_v46 = vpop.f32.mrb[6].mxu0 }
 0x100   :  { %v574_v49 = vld [vmem:[#allocation2] sm:$0xff]  ;;  %v989_v50 = vpop.f32.mrb[7].mxu0 }
 0x101   :  { %v597_v52 = vadd.f32 %v1284_v42, %v574_v49  ;;  %504 = vst.msk [vmem:[#allocation2 + $0x10] sm:$0xff] %vm501_vm0, %v987_v45  ;;  %v990_v53 = vadd.f32 %v989_v50, %v988_v46  ;;  %v582_v0 = vld [vmem:[#allocation2 + $0x40] sm:$0xff]  ;;  %v1009_v5 = vpop.f32.mrb[4].mxu1 }
 0x102   :  { %v575_v55 = vld [vmem:[#allocation2 + $0x8] sm:$0xff]  ;;  %v1302_v3 = vadd.f32 %v1284_v42, %v582_v0  ;;  %v1010_v7 = vpop.f32.mrb[5].mxu1 }
 0x103   :  { %v947_v56 = vpack.c.bf16 %v597_v52, %v597_v52  ;;  %v598_v57 = vadd.f32 %v1284_v42, %v575_v55  ;;  %505 = vst.msk [vmem:[#allocation2 + $0x18] sm:$0xff] %vm501_vm0, %v990_v53  ;;  %v583_v10 = vld [vmem:[#allocation2 + $0x48] sm:$0xff]  ;;  %v1012_v11 = vpop.f32.mrb[6].mxu1  ;;  %v1011_v17 = vadd.f32 %v1010_v7, %v1009_v5  ;;  %v831_v19 = vmul.f32 %v597_v52, %v597_v52 }
 0x104   :  { %v955_v12 = vpack.c.bf16 %v1302_v3, %v1302_v3  ;;  %v1013_v13 = vpop.f32.mrb[7].mxu1  ;;  %v1318_v16 = vadd.f32 %v1284_v42, %v583_v10  ;;  %v794_v29 = vsel %vm501_vm0, %v597_v52, 0.0 }
 0x105   :  { %678 = vst.msk [vmem:[%s1451_s5] sm:$0xf] %vm677_vm1, %v947_v56  ;;  %v948_v58 = vpack.c.bf16 %v598_v57, %v598_v57  ;;  %v991_v59 = vpop.f32.mrb[8].mxu0  ;;  %v832_v15 = vmul.f32 %v598_v57, %v598_v57  ;;  %v1014_v18 = vadd.f32 %v1013_v13, %v1012_v11  ;;  %v795_v20 = vsel %vm501_vm0, %v598_v57, 0.0 }
 0x106   :  { %v992_v60 = vpop.f32.mrb[9].mxu0  ;;  %686 = vst.msk [vmem:[%s1451_s5 + $0x20] sm:$0xf] %vm677_vm1, %v955_v12  ;;  %v956_v22 = vpack.c.bf16 %v1318_v16, %v1318_v16  ;;  %v796_v33 = vadd.f32 %v795_v20, %v794_v29  ;;  %v847_v36 = vsel %vm501_vm0, %v831_v19, 0.0  ;;  %v809_v29 = vsel %vm501_vm0, %v1302_v3, 0.0 }
 0x107   :  { %679 = vst.msk [vmem:[%s1451_s5 + $0x4] sm:$0xf] %vm677_vm1, %v948_v58  ;;  %v993_v61 = vadd.f32 %v992_v60, %v991_v59  ;;  %v994_v62 = vpop.f32.mrb[10].mxu0  ;;  %v848_v30 = vsel %vm501_vm0, %v832_v15, 0.0 }
 0x108   :  { %v576_v63 = vld [vmem:[#allocation2 + $0x10] sm:$0xff]  ;;  %v995_v1 = vpop.f32.mrb[11].mxu0  ;;  %512 = vst.msk [vmem:[#allocation2 + $0x50] sm:$0xff] %vm501_vm0, %v1011_v17  ;;  %513 = vst.msk [vmem:[#allocation2 + $0x58] sm:$0xff] %vm501_vm0, %v1014_v18  ;;  %v849_v40 = vadd.f32 %v848_v30, %v847_v36  ;;  %v839_v17 = vmul.f32 %v1302_v3, %v1302_v3 }
 0x109   :  { %v599_v2 = vadd.f32 %v1284_v42, %v576_v63  ;;  %506 = vst.msk [vmem:[#allocation2 + $0x20] sm:$0xff] %vm501_vm0, %v993_v61  ;;  %v996_v4 = vadd.f32 %v995_v1, %v994_v62 }
 0x10a   :  { %v577_v6 = vld [vmem:[#allocation2 + $0x18] sm:$0xff]  ;;  %687 = vst.msk [vmem:[%s1451_s5 + $0x24] sm:$0xf] %vm677_vm1, %v956_v22  ;;  %v862_v3 = vsel %vm501_vm0, %v839_v17, 0.0 }
 0x10b   :  { %v949_v8 = vpack.c.bf16 %v599_v2, %v599_v2  ;;  %v600_v9 = vadd.f32 %v1284_v42, %v577_v6  ;;  %507 = vst.msk [vmem:[#allocation2 + $0x28] sm:$0xff] %vm501_vm0, %v996_v4  ;;  %v833_v21 = vmul.f32 %v599_v2, %v599_v2  ;;  %v797_v31 = vsel %vm501_vm0, %v599_v2, 0.0 }
 0x10c   :  { %v798_v41 = vadd.f32 %v797_v31, %v796_v33 }
 0x10d   :  { %680 = vst.msk [vmem:[%s1451_s5 + $0x8] sm:$0xf] %vm677_vm1, %v949_v8  ;;  %v950_v14 = vpack.c.bf16 %v600_v9, %v600_v9  ;;  %v997_v24 = vpop.f32.mrb[12].mxu0  ;;  %v850_v37 = vsel %vm501_vm0, %v833_v21, 0.0  ;;  %v834_v38 = vmul.f32 %v600_v9, %v600_v9  ;;  %v799_v44 = vsel %vm501_vm0, %v600_v9, 0.0  ;;  %v1015_v52 = vpop.f32.mrb[8].mxu1 }
 0x10e   :  { %v998_v28 = vpop.f32.mrb[13].mxu0  ;;  %v851_v47 = vadd.f32 %v850_v37, %v849_v40  ;;  %v800_v53 = vadd.f32 %v799_v44, %v798_v41  ;;  %v1016_v56 = vpop.f32.mrb[9].mxu1 }
 0x10f   :  { %681 = vst.msk [vmem:[%s1451_s5 + $0xc] sm:$0xf] %vm677_vm1, %v950_v14  ;;  %v1000_v35 = vpop.f32.mrb[14].mxu0  ;;  %v999_v39 = vadd.f32 %v998_v28, %v997_v24  ;;  %v852_v48 = vsel %vm501_vm0, %v834_v38, 0.0  ;;  %v584_v50 = vld [vmem:[#allocation2 + $0x50] sm:$0xff]  ;;  %v585_v51 = vld [vmem:[#allocation2 + $0x58] sm:$0xff]  ;;  %v1017_v59 = vadd.f32 %v1016_v56, %v1015_v52 }
 0x110   :  { %v578_v23 = vld [vmem:[#allocation2 + $0x20] sm:$0xff]  ;;  %v1001_v27 = vpop.f32.mrb[15].mxu0  ;;  %v1354_v54 = vadd.f32 %v1284_v42, %v584_v50  ;;  %v1357_v55 = vadd.f32 %v1284_v42, %v585_v51  ;;  %v1018_v60 = vpop.f32.mrb[10].mxu1  ;;  %v853_v61 = vadd.f32 %v852_v48, %v851_v47 }
 0x111   :  { %v601_v26 = vadd.f32 %v1284_v42, %v578_v23  ;;  %508 = vst.msk [vmem:[#allocation2 + $0x30] sm:$0xff] %vm501_vm0, %v999_v39  ;;  %v1002_v46 = vadd.f32 %v1001_v27, %v1000_v35  ;;  %v1019_v1 = vpop.f32.mrb[11].mxu1  ;;  %514 = vst.msk [vmem:[#allocation2 + $0x60] sm:$0xff] %vm501_vm0, %v1017_v59  ;;  %v811_v27 = vsel %vm501_vm0, %v1318_v16, 0.0 }
 0x112   :  { %v579_v32 = vld [vmem:[#allocation2 + $0x28] sm:$0xff]  ;;  %v957_v63 = vpack.c.bf16 %v1354_v54, %v1354_v54  ;;  %v958_v0 = vpack.c.bf16 %v1357_v55, %v1357_v55  ;;  %v1020_v4 = vadd.f32 %v1019_v1, %v1018_v60  ;;  %v841_v40 = vmul.f32 %v1354_v54, %v1354_v54 }
 0x113   :  { %v951_v34 = vpack.c.bf16 %v601_v26, %v601_v26  ;;  %v602_v25 = vadd.f32 %v1284_v42, %v579_v32  ;;  %v835_v45 = vmul.f32 %v601_v26, %v601_v26  ;;  %v801_v49 = vsel %vm501_vm0, %v601_v26, 0.0  ;;  %509 = vst.msk [vmem:[#allocation2 + $0x38] sm:$0xff] %vm501_vm0, %v1002_v46 }
 0x114   :  { %v802_v62 = vadd.f32 %v801_v49, %v800_v53  ;;  %688 = vst.msk [vmem:[%s1451_s5 + $0x28] sm:$0xf] %vm677_vm1, %v957_v63  ;;  %689 = vst.msk [vmem:[%s1451_s5 + $0x2c] sm:$0xf] %vm677_vm1, %v958_v0  ;;  %v813_v47 = vsel %vm501_vm0, %v1354_v54, 0.0  ;;  %v842_v48 = vmul.f32 %v1357_v55, %v1357_v55  ;;  %v866_v51 = vsel %vm501_vm0, %v841_v40, 0.0 }
 0x115   :  { %682 = vst.msk [vmem:[%s1451_s5 + $0x10] sm:$0xf] %vm677_vm1, %v951_v34  ;;  %v952_v43 = vpack.c.bf16 %v602_v25, %v602_v25  ;;  %v854_v57 = vsel %vm501_vm0, %v835_v45, 0.0  ;;  %v836_v58 = vmul.f32 %v602_v25, %v602_v25  ;;  %v803_v2 = vsel %vm501_vm0, %v602_v25, 0.0  ;;  %v1021_v15 = vpop.f32.mrb[12].mxu1 }
 0x116   :  { %v855_v5 = vadd.f32 %v854_v57, %v853_v61  ;;  %515 = vst.msk [vmem:[#allocation2 + $0x68] sm:$0xff] %vm501_vm0, %v1020_v4  ;;  %v804_v9 = vadd.f32 %v803_v2, %v802_v62  ;;  %v1022_v20 = vpop.f32.mrb[13].mxu1  ;;  %v840_v34 = vmul.f32 %v1318_v16, %v1318_v16  ;;  %v815_v52 = vsel %vm501_vm0, %v1357_v55, 0.0 }
 0x117   :  { %683 = vst.msk [vmem:[%s1451_s5 + $0x14] sm:$0xf] %vm677_vm1, %v952_v43  ;;  %v856_v7 = vsel %vm501_vm0, %v836_v58, 0.0  ;;  %v1024_v24 = vpop.f32.mrb[14].mxu1  ;;  %v1023_v28 = vadd.f32 %v1022_v20, %v1021_v15  ;;  %v868_v57 = vsel %vm501_vm0, %v842_v48, 0.0 }
 0x118   :  { %v580_v6 = vld [vmem:[#allocation2 + $0x30] sm:$0xff]  ;;  %v857_v18 = vadd.f32 %v856_v7, %v855_v5  ;;  %v586_v32 = vld [vmem:[#allocation2 + $0x60] sm:$0xff]  ;;  %v1025_v33 = vpop.f32.mrb[15].mxu1  ;;  %v864_v46 = vsel %vm501_vm0, %v840_v34, 0.0 }
 0x119   :  { %v603_v8 = vadd.f32 %v1284_v42, %v580_v6  ;;  %v609_v35 = vadd.f32 %v1284_v42, %v586_v32  ;;  %v1026_v36 = vadd.f32 %v1025_v33, %v1024_v24  ;;  %516 = vst.msk [vmem:[#allocation2 + $0x70] sm:$0xff] %vm501_vm0, %v1023_v28 }
 0x11a   :  { %v581_v10 = vld [vmem:[#allocation2 + $0x38] sm:$0xff] }
 0x11b   :  { %v953_v11 = vpack.c.bf16 %v603_v8, %v603_v8  ;;  %v805_v12 = vsel %vm501_vm0, %v603_v8, 0.0  ;;  %v837_v13 = vmul.f32 %v603_v8, %v603_v8  ;;  %v604_v14 = vadd.f32 %v1284_v42, %v581_v10  ;;  %517 = vst.msk [vmem:[#allocation2 + $0x78] sm:$0xff] %vm501_vm0, %v1026_v36 }
 0x11c   :  { %v806_v19 = vadd.f32 %v805_v12, %v804_v9  ;;  %v959_v41 = vpack.c.bf16 %v609_v35, %v609_v35  ;;  %v843_v53 = vmul.f32 %v609_v35, %v609_v35  ;;  %v817_v58 = vsel %vm501_vm0, %v609_v35, 0.0 }
 0x11d   :  { %684 = vst.msk [vmem:[%s1451_s5 + $0x18] sm:$0xf] %vm677_vm1, %v953_v11  ;;  %v858_v21 = vsel %vm501_vm0, %v837_v13, 0.0  ;;  %v954_v22 = vpack.c.bf16 %v604_v14, %v604_v14  ;;  %v807_v23 = vsel %vm501_vm0, %v604_v14, 0.0  ;;  %v838_v26 = vmul.f32 %v604_v14, %v604_v14  ;;  %v587_v39 = vld [vmem:[#allocation2 + $0x68] sm:$0xff] }
 0x11e   :  { %v859_v30 = vadd.f32 %v858_v21, %v857_v18  ;;  %v808_v31 = vadd.f32 %v807_v23, %v806_v19  ;;  %v610_v43 = vadd.f32 %v1284_v42, %v587_v39  ;;  %690 = vst.msk [vmem:[%s1451_s5 + $0x30] sm:$0xf] %vm677_vm1, %v959_v41  ;;  %v870_v55 = vsel %vm501_vm0, %v843_v53, 0.0 }
 0x11f   :  { %685 = vst.msk [vmem:[%s1451_s5 + $0x1c] sm:$0xf] %vm677_vm1, %v954_v22  ;;  %v860_v25 = vsel %vm501_vm0, %v838_v26, 0.0 }
 0x120   :  { %v810_v37 = vadd.f32 %v809_v29, %v808_v31  ;;  %v861_v38 = vadd.f32 %v860_v25, %v859_v30  ;;  %v960_v16 = vpack.c.bf16 %v610_v43, %v610_v43  ;;  %v844_v59 = vmul.f32 %v610_v43, %v610_v43  ;;  %v588_v60 = vld [vmem:[#allocation2 + $0x70] sm:$0xff] }
 0x121   :  { %v611_v63 = vadd.f32 %v1284_v42, %v588_v60  ;;  %v819_v1 = vsel %vm501_vm0, %v610_v43, 0.0 }
 0x122   :  { %v812_v44 = vadd.f32 %v811_v27, %v810_v37  ;;  %v863_v45 = vadd.f32 %v862_v3, %v861_v38  ;;  %691 = vst.msk [vmem:[%s1451_s5 + $0x34] sm:$0xf] %vm677_vm1, %v960_v16  ;;  %v589_v0 = vld [vmem:[#allocation2 + $0x78] sm:$0xff]  ;;  %v872_v8 = vsel %vm501_vm0, %v844_v59, 0.0 }
 0x123   :  { %v612_v2 = vadd.f32 %v1284_v42, %v589_v0  ;;  %v961_v6 = vpack.c.bf16 %v611_v63, %v611_v63  ;;  %v821_v7 = vsel %vm501_vm0, %v611_v63, 0.0  ;;  %v845_v9 = vmul.f32 %v611_v63, %v611_v63 }
 0x124   :  { %v865_v49 = vadd.f32 %v864_v46, %v863_v45  ;;  %v814_v50 = vadd.f32 %v813_v47, %v812_v44 }
 0x125   :  { %v962_v10 = vpack.c.bf16 %v612_v2, %v612_v2  ;;  %v846_v11 = vmul.f32 %v612_v2, %v612_v2  ;;  %692 = vst.msk [vmem:[%s1451_s5 + $0x38] sm:$0xf] %vm677_vm1, %v961_v6  ;;  %v874_v14 = vsel %vm501_vm0, %v845_v9, 0.0  ;;  %v823_v42 = vsel %vm501_vm0, %v612_v2, 0.0 }
 0x126   :  { %v816_v54 = vadd.f32 %v815_v52, %v814_v50  ;;  %v867_v56 = vadd.f32 %v866_v51, %v865_v49 }
 0x127   :  { %693 = vst.msk [vmem:[%s1451_s5 + $0x3c] sm:$0xf] %vm677_vm1, %v962_v10  ;;  %v876_v18 = vsel %vm501_vm0, %v846_v11, 0.0 }
 0x128   :  { %v818_v61 = vadd.f32 %v817_v58, %v816_v54  ;;  %v869_v62 = vadd.f32 %v868_v57, %v867_v56 }
 0x12a   :  { %v871_v4 = vadd.f32 %v870_v55, %v869_v62  ;;  %v820_v5 = vadd.f32 %v819_v1, %v818_v61 }
 0x12c   :  { %v873_v12 = vadd.f32 %v872_v8, %v871_v4  ;;  %v822_v13 = vadd.f32 %v821_v7, %v820_v5 }
 0x12e   :  { %v875_v15 = vadd.f32 %v874_v14, %v873_v12  ;;  %v824_v17 = vadd.f32 %v823_v42, %v822_v13 }
 0x130   :  { %v825_v19 = vrot.slane %v824_v17, 4  ;;  %v877_v20 = vadd.f32 %v876_v18, %v875_v15 }
 0x132   :  { %v826_v21 = vadd.f32 %v825_v19, %v824_v17  ;;  %v878_v22 = vrot.slane %v877_v20, 4 }
 0x134   :  { %v827_v23 = vrot.slane %v826_v21, 2  ;;  %v879_v26 = vadd.f32 %v878_v22, %v877_v20 }
 0x136   :  { %v828_v24 = vadd.f32 %v827_v23, %v826_v21  ;;  %v880_v29 = vrot.slane %v879_v26, 2 }
 0x138   :  { %v829_v30 = vrot.slane %v828_v24, 1  ;;  %v881_v31 = vadd.f32 %v880_v29, %v879_v26 }
 0x13a   :  { %v830_v32 = vadd.f32 %v829_v30, %v828_v24  ;;  %v882_v28 = vrot.slane %v881_v31, 1 }
 0x13c   :  { %v883_v33 = vadd.f32 %v882_v28, %v881_v31  ;;  %889 = vst.msk [vmem:[%s1452_s6] sm:$0x1] %vm888_vm2, %v830_v32 }
 0x13e   :  { %890 = vst.msk [vmem:[%s1453_s7] sm:$0x1] %vm888_vm2, %v883_v33 }

// kernel: tile.91
= control target key start
LH: loop header
LB: loop body
LE: loop exit
PB: predicated region body
PF: predicated region fallthrough
CT: control target
= control target key end

     0   :  { %s28_s0 = inlined_call_operand.vmem [shape: f32[64], index: 0, kind: input, shape index: {}]   ;;  %s29_s1 = inlined_call_operand.vmem [shape: f32[16,64], index: 1, kind: output, shape index: {}]  }
   0x1   :  { %v4_v0 = vld [vmem:[%s28_s0] ss:$0 sm:$0xff] }
   0x2   :  { %5 = vst [vmem:[%s29_s1] sm:$0xff] %v4_v0  ;;  %8 = vst [vmem:[%s29_s1 + $0x8] sm:$0xff] %v4_v0 }

// kernel: tile.96
= control target key start
LH: loop header
LB: loop body
LE: loop exit
PB: predicated region body
PF: predicated region fallthrough
CT: control target
= control target key end

     0   :  { %vm3_vm0 = vcmask 523264   ;;  %vm10_vm1 = vcmask 1048064   ;;  %s116_s0 = inlined_call_operand.vmem [shape: f32[16,64], index: 0, kind: input, shape index: {}]   ;;  %s117_s1 = inlined_call_operand.vmem [shape: f32[1,1024], index: 1, kind: output, shape index: {}]  }
   0x1   :  { %v66_v0 = vld [vmem:[%s116_s0 + $0x1] ss:$2 sm:$0xff]   ;;  %v2_v1 = vld [vmem:[%s116_s0] ss:$2 sm:$0xff]   ;;  %s75_s0 = smov 64  }
   0x2   :  { %8 = vrot.lane.b32.xlu0 %v66_v0, %s75_s0  ;;  %4 = vst.msk [vmem:[#allocation0] ss:$8 sm:$0xf] %vm3_vm0, %v2_v1   ;;  %5 = vst.msk [vmem:[#allocation0] ss:$8 sm:$0xf0] %vm3_vm0, %v2_v1  }
  0x74   :  { %v9_v2 = vpop.permute.xlu0 %8  }
  0x75   :  { %11 = vst.msk [vmem:[#allocation0] ss:$8 sm:$0xf] %vm10_vm1, %v9_v2   ;;  %12 = vst.msk [vmem:[#allocation0] ss:$8 sm:$0xf0] %vm10_vm1, %v9_v2  }
  0x7c   :  { %v16_v3 = vld [vmem:[#allocation0] sm:$0x1]  ;;  %v20_v4 = vld [vmem:[#allocation0 + $0x8] sm:$0x1]  ;;  %v25_v5 = vld [vmem:[#allocation0 + $0x10] sm:$0x1] }
  0x7d   :  { %18 = vst [vmem:[%s117_s1] sm:$0x1] %v16_v3  ;;  %67 = vst [vmem:[%s117_s1 + $0x1] sm:$0x1] %v20_v4  ;;  %v31_v6 = vld [vmem:[#allocation0 + $0x18] sm:$0x1] }
  0x7e   :  { %68 = vst [vmem:[%s117_s1 + $0x2] sm:$0x1] %v25_v5  ;;  %v37_v7 = vld [vmem:[#allocation0 + $0x20] sm:$0x1]  ;;  %v43_v8 = vld [vmem:[#allocation0 + $0x28] sm:$0x1] }
  0x7f   :  { %69 = vst [vmem:[%s117_s1 + $0x3] sm:$0x1] %v31_v6  ;;  %70 = vst [vmem:[%s117_s1 + $0x4] sm:$0x1] %v37_v7  ;;  %v49_v9 = vld [vmem:[#allocation0 + $0x30] sm:$0x1] }
  0x80   :  { %71 = vst [vmem:[%s117_s1 + $0x5] sm:$0x1] %v43_v8  ;;  %v55_v10 = vld [vmem:[#allocation0 + $0x38] sm:$0x1]  ;;  %72 = vst [vmem:[%s117_s1 + $0x6] sm:$0x1] %v49_v9 }
  0x81   :  { %73 = vst [vmem:[%s117_s1 + $0x7] sm:$0x1] %v55_v10 }

// kernel: _lambda_.16
= control target key start
LH: loop header
LB: loop body
LE: loop exit
PB: predicated region body
PF: predicated region fallthrough
CT: control target
= control target key end

     0   :  { %v50_v23 = vlaneseq  ;;  %s1067_s1 = inlined_call_operand.vmem [shape: bf16[512,64], index: 1, kind: input, shape index: {}]   ;;  %s1068_s0 = inlined_call_operand.vmem [shape: bf16[32,512], index: 0, kind: input, shape index: {}]   ;;  %s1069_s3 = inlined_call_operand.vmem [shape: f32[1,512], index: 3, kind: input, shape index: {}]   ;;  %s1070_s4 = inlined_call_operand.vmem [shape: f32[1,512], index: 4, kind: input, shape index: {}]   ;;  %s1071_s2 = inlined_call_operand.vmem [shape: f32[1,64], index: 2, kind: input, shape index: {}]   ;;  %s1072_s5 = inlined_call_operand.vmem [shape: bf16[32,64], index: 5, kind: output, shape index: {0}]   ;;  %s1073_s6 = inlined_call_operand.vmem [shape: f32[1,64], index: 6, kind: output, shape index: {1}]   ;;  %s1074_s7 = inlined_call_operand.vmem [shape: f32[1,64], index: 7, kind: output, shape index: {2}]  }
   0x1   :  { %v784_v0 = vld [vmem:[%s1067_s1 + $0x40] sm:$0xff]   ;;  %v788_v4 = vld [vmem:[%s1067_s1 + $0x48] sm:$0xff]   ;;  %v792_v8 = vld [vmem:[%s1067_s1 + $0x50] sm:$0xff]  }
   0x2   :  { %v785_v1 = vld [vmem:[%s1067_s1 + $0xc0] sm:$0xff]   ;;  %728 = vmatprep.subr.bf16.mxu0 %v784_v0  ;;  %v789_v5 = vld [vmem:[%s1067_s1 + $0xc8] sm:$0xff]   ;;  %v793_v9 = vld [vmem:[%s1067_s1 + $0xd0] sm:$0xff]   ;;  %v51_v28 = vshrl.u32 %v50_v23, 7 }
   0x3   :  { %v786_v2 = vld [vmem:[%s1067_s1] sm:$0xff]   ;;  %756 = vmatprep.subr.bf16.mxu1 %v785_v1  ;;  %v790_v6 = vld [vmem:[%s1067_s1 + $0x8] sm:$0xff]   ;;  %v794_v10 = vld [vmem:[%s1067_s1 + $0x10] sm:$0xff]  }
   0x4   :  { %v787_v3 = vld [vmem:[%s1067_s1 + $0x80] sm:$0xff]   ;;  %729 = vmatpush3.bf16.msra.mxu0 %v786_v2  ;;  %v791_v7 = vld [vmem:[%s1067_s1 + $0x88] sm:$0xff]   ;;  %v795_v11 = vld [vmem:[%s1067_s1 + $0x90] sm:$0xff]   ;;  %v56_v33 = vsub.s32 1, %v51_v28  ;;  %v64_v35 = vsub.s32 3, %v51_v28  ;;  %v52_v39 = vsub.s32 0, %v51_v28 }
   0x5   :  { %757 = vmatpush3.bf16.msra.mxu1 %v787_v3  ;;  %730 = vmatprep.subr.bf16.mxu0 %v788_v4  ;;  %v796_v12 = vld [vmem:[%s1067_s1 + $0x58] sm:$0xff]   ;;  %v800_v16 = vld [vmem:[%s1067_s1 + $0x60] sm:$0xff]   ;;  %v804_v20 = vld [vmem:[%s1067_s1 + $0x68] sm:$0xff]   ;;  %v60_v40 = vsub.s32 2, %v51_v28 }
   0x6   :  { %758 = vmatprep.subr.bf16.mxu1 %v789_v5  ;;  %v797_v13 = vld [vmem:[%s1067_s1 + $0xd8] sm:$0xff]   ;;  %v801_v17 = vld [vmem:[%s1067_s1 + $0xe0] sm:$0xff]   ;;  %v805_v21 = vld [vmem:[%s1067_s1 + $0xe8] sm:$0xff]  }
   0x7   :  { %v798_v14 = vld [vmem:[%s1067_s1 + $0x18] sm:$0xff]   ;;  %v802_v18 = vld [vmem:[%s1067_s1 + $0x20] sm:$0xff]   ;;  %v806_v22 = vld [vmem:[%s1067_s1 + $0x28] sm:$0xff]  }
   0x8   :  { %731 = vmatpush3.bf16.msra.mxu0 %v790_v6  ;;  %v799_v15 = vld [vmem:[%s1067_s1 + $0x98] sm:$0xff]   ;;  %v803_v19 = vld [vmem:[%s1067_s1 + $0xa0] sm:$0xff]   ;;  %v807_v24 = vld [vmem:[%s1067_s1 + $0xa8] sm:$0xff]  }
   0x9   :  { %759 = vmatpush3.bf16.msra.mxu1 %v791_v7  ;;  %732 = vmatprep.subr.bf16.mxu0 %v792_v8  ;;  %v808_v25 = vld [vmem:[%s1067_s1 + $0x70] sm:$0xff]   ;;  %v812_v30 = vld [vmem:[%s1067_s1 + $0x78] sm:$0xff]   ;;  %v24_v36 = vld [vmem:[%s1068_s0] sm:$0xff] }
   0xa   :  { %760 = vmatprep.subr.bf16.mxu1 %v793_v9  ;;  %v809_v26 = vld [vmem:[%s1067_s1 + $0xf0] sm:$0xff]   ;;  %v813_v31 = vld [vmem:[%s1067_s1 + $0xf8] sm:$0xff]   ;;  %v48_v38 = vld [vmem:[%s1069_s3] sm:$0xf]  ;;  %v32_v41 = vunpack.c.l.bf16 %v24_v36  ;;  %v33_v42 = vunpack.c.h.bf16 %v24_v36 }
   0xb   :  { %v810_v27 = vld [vmem:[%s1067_s1 + $0x30] sm:$0xff]   ;;  %v814_v32 = vld [vmem:[%s1067_s1 + $0x38] sm:$0xff]   ;;  %v86_v45 = vld [vmem:[%s1070_s4] sm:$0xf]  ;;  %v970_v48 = vrot.slane %v48_v38, %v56_v33  ;;  %v974_v54 = vrot.slane %v48_v38, %v64_v35  ;;  %v980_v58 = vrot.slane %v48_v38, %v52_v39  ;;  %v986_v62 = vrot.slane %v48_v38, %v60_v40 }
   0xc   :  { %733 = vmatpush3.bf16.msra.mxu0 %v794_v10  ;;  %v811_v29 = vld [vmem:[%s1067_s1 + $0xb0] sm:$0xff]   ;;  %v815_v34 = vld [vmem:[%s1067_s1 + $0xb8] sm:$0xff]   ;;  %v25_v46 = vld [vmem:[%s1068_s0 + $0x8] sm:$0xff]  ;;  %v972_v49 = vrot.slane %v86_v45, %v56_v33  ;;  %v976_v55 = vrot.slane %v86_v45, %v64_v35  ;;  %v982_v59 = vrot.slane %v86_v45, %v52_v39  ;;  %v988_v63 = vrot.slane %v86_v45, %v60_v40 }
   0xd   :  { %761 = vmatpush3.bf16.msra.mxu1 %v795_v11  ;;  %734 = vmatprep.subr.bf16.mxu0 %v796_v12  ;;  %v26_v37 = vld [vmem:[%s1068_s0 + $0x10] sm:$0xff]  ;;  %v27_v47 = vld [vmem:[%s1068_s0 + $0x18] sm:$0xff]  ;;  %v34_v50 = vunpack.c.l.bf16 %v25_v46  ;;  %v35_v51 = vunpack.c.h.bf16 %v25_v46  ;;  %v71_v56 = vmul.f32 %v970_v48, %v33_v42  ;;  %v70_v2 = vmul.f32 %v980_v58, %v32_v41 }
   0xe   :  { %762 = vmatprep.subr.bf16.mxu1 %v797_v13  ;;  %v36_v43 = vunpack.c.l.bf16 %v26_v37  ;;  %v37_v44 = vunpack.c.h.bf16 %v26_v37  ;;  %v38_v52 = vunpack.c.l.bf16 %v27_v47  ;;  %v39_v53 = vunpack.c.h.bf16 %v27_v47  ;;  %v31_v28 = vld [vmem:[%s1068_s0 + $0x38] sm:$0xff] }
   0xf   :  { %v73_v60 = vmul.f32 %v974_v54, %v35_v51  ;;  %v109_v0 = vadd.f32 %v972_v49, %v71_v56  ;;  %v72_v6 = vmul.f32 %v986_v62, %v34_v50  ;;  %v47_v39 = vunpack.c.h.bf16 %v31_v28 }
  0x10   :  { %735 = vmatpush3.bf16.msra.mxu0 %v798_v14  ;;  %v75_v57 = vmul.f32 %v970_v48, %v37_v44  ;;  %v77_v61 = vmul.f32 %v974_v54, %v39_v53  ;;  %v74_v3 = vmul.f32 %v980_v58, %v36_v43  ;;  %v76_v7 = vmul.f32 %v986_v62, %v38_v52 }
  0x11   :  { %763 = vmatpush3.bf16.msra.mxu1 %v799_v15  ;;  %736 = vmatprep.subr.bf16.mxu0 %v800_v16  ;;  %v111_v4 = vadd.f32 %v976_v55, %v73_v60  ;;  %vm125_vm0 = vcmp.gt.f32.partialorder %v109_v0, 0.0  ;;  %v141_v8 = vmul.f32 0.2, %v109_v0  ;;  %v108_v14 = vadd.f32 %v982_v59, %v70_v2 }
  0x12   :  { %764 = vmatprep.subr.bf16.mxu1 %v801_v17  ;;  %v113_v1 = vadd.f32 %v972_v49, %v75_v57  ;;  %v115_v5 = vadd.f32 %v976_v55, %v77_v61  ;;  %v112_v15 = vadd.f32 %v982_v59, %v74_v3  ;;  %v85_v47 = vmul.f32 %v974_v54, %v47_v39 }
  0x13   :  { %vm127_vm2 = vcmp.gt.f32.partialorder %v111_v4, 0.0  ;;  %v143_v10 = vmul.f32 0.2, %v111_v4  ;;  %v157_v12 = vsel %vm125_vm0, %v109_v0, %v141_v8  ;;  %vm124_vm4 = vcmp.gt.f32.partialorder %v108_v14, 0.0 }
  0x14   :  { %737 = vmatpush3.bf16.msra.mxu0 %v802_v18  ;;  %vm129_vm1 = vcmp.gt.f32.partialorder %v113_v1, 0.0  ;;  %v145_v9 = vmul.f32 0.2, %v113_v1  ;;  %vm131_vm3 = vcmp.gt.f32.partialorder %v115_v5, 0.0  ;;  %v147_v11 = vmul.f32 0.2, %v115_v5 }
  0x15   :  { %765 = vmatpush3.bf16.msra.mxu1 %v803_v19  ;;  %738 = vmatprep.subr.bf16.mxu0 %v804_v20  ;;  %v159_v17 = vsel %vm127_vm2, %v111_v4, %v143_v10  ;;  %v110_v19 = vadd.f32 %v988_v63, %v72_v6  ;;  %v28_v20 = vld [vmem:[%s1068_s0 + $0x20] sm:$0xff]  ;;  %vm128_vm5 = vcmp.gt.f32.partialorder %v112_v15, 0.0  ;;  %v123_v57 = vadd.f32 %v976_v55, %v85_v47 }
  0x16   :  { %766 = vmatprep.subr.bf16.mxu1 %v805_v21  ;;  %v161_v13 = vsel %vm129_vm1, %v113_v1, %v145_v9  ;;  %v163_v18 = vsel %vm131_vm3, %v115_v5, %v147_v11  ;;  %v30_v21 = vld [vmem:[%s1068_s0 + $0x30] sm:$0xff]  ;;  %v40_v42 = vunpack.c.l.bf16 %v28_v20  ;;  %v46_v1 = vunpack.c.l.bf16 %v31_v28 }
  0x17   :  { %v173_v16 = vpack.c.bf16 %v161_v13, %v157_v12  ;;  %v175_v23 = vpack.c.bf16 %v163_v18, %v159_v17  ;;  %vm126_vm6 = vcmp.gt.f32.partialorder %v110_v19, 0.0  ;;  %v44_v43 = vunpack.c.l.bf16 %v30_v21 }
  0x18   :  { %739 = vmatpush3.bf16.msra.mxu0 %v806_v22  ;;  %v29_v22 = vld [vmem:[%s1068_s0 + $0x28] sm:$0xff]  ;;  %v78_v51 = vmul.f32 %v980_v58, %v40_v42  ;;  %vm139_vm11 = vcmp.gt.f32.partialorder %v123_v57, 0.0  ;;  %vm538_vm0 = vcmask 523264   ;;  %vm594_vm1 = vcmask 519168  }
  0x19   :  { %767 = vmatpush3.bf16.msra.mxu1 %v807_v24  ;;  %740 = vmatprep.subr.bf16.mxu0 %v808_v25  ;;  %v140_v24 = vmul.f32 0.2, %v108_v14  ;;  %v144_v25 = vmul.f32 0.2, %v112_v15  ;;  %v42_v52 = vunpack.c.l.bf16 %v29_v22  ;;  %vm661_vm2 = vcmask 516096  }
  0x1a   :  { %768 = vmatprep.subr.bf16.mxu1 %v809_v26  ;;  %468 = vmatprep.mubr.bf16.mxu0 %v173_v16  ;;  %v114_v26 = vadd.f32 %v988_v63, %v76_v7  ;;  %v84_v7 = vmul.f32 %v986_v62, %v46_v1 }
  0x1b   :  { %517 = vmatprep.mubr.bf16.mxu1 %v175_v23  ;;  %v160_v33 = vsel %vm128_vm5, %v112_v15, %v144_v25 }
  0x1c   :  { %741 = vmatpush3.bf16.msra.mxu0 %v810_v27  ;;  %v142_v27 = vmul.f32 0.2, %v110_v19  ;;  %vm130_vm7 = vcmp.gt.f32.partialorder %v114_v26, 0.0  ;;  %v122_v12 = vadd.f32 %v988_v63, %v84_v7 }
  0x1d   :  { %769 = vmatpush3.bf16.msra.mxu1 %v811_v29  ;;  %742 = vmatprep.subr.bf16.mxu0 %v812_v30  ;;  %v156_v29 = vsel %vm124_vm4, %v108_v14, %v140_v24  ;;  %v41_v30 = vunpack.c.h.bf16 %v28_v20 }
  0x1e   :  { %770 = vmatprep.subr.bf16.mxu1 %v813_v31  ;;  %v45_v31 = vunpack.c.h.bf16 %v30_v21  ;;  %v158_v35 = vsel %vm126_vm6, %v110_v19, %v142_v27  ;;  %v172_v36 = vpack.c.bf16 %v160_v33, %v156_v29  ;;  %vm138_vm15 = vcmp.gt.f32.partialorder %v122_v12, 0.0 }
  0x1f   :  { %v79_v37 = vmul.f32 %v970_v48, %v41_v30  ;;  %v154_v14 = vmul.f32 0.2, %v122_v12 }
  0x20   :  { %743 = vmatpush3.bf16.msra.mxu0 %v814_v32  ;;  %v43_v32 = vunpack.c.h.bf16 %v29_v22  ;;  %v83_v38 = vmul.f32 %v970_v48, %v45_v31  ;;  %v82_v48 = vmul.f32 %v980_v58, %v44_v43  ;;  %v155_v58 = vmul.f32 0.2, %v123_v57 }
  0x21   :  { %771 = vmatpush3.bf16.msra.mxu1 %v815_v34  ;;  %v146_v34 = vmul.f32 0.2, %v114_v26  ;;  %v117_v45 = vadd.f32 %v972_v49, %v79_v37  ;;  %v170_v16 = vsel %vm138_vm15, %v122_v12, %v154_v14 }
  0x22   :  { %v81_v41 = vmul.f32 %v974_v54, %v43_v32  ;;  %v121_v46 = vadd.f32 %v972_v49, %v83_v38  ;;  %v116_v49 = vadd.f32 %v982_v59, %v78_v51  ;;  %v120_v0 = vadd.f32 %v982_v59, %v82_v48  ;;  %v719_v32 = vld [vmem:[%s1071_s2] ss:$0 sm:$0xff] }
  0x23   :  { %v162_v40 = vsel %vm130_vm7, %v114_v26, %v146_v34  ;;  %469 = vmatmul.mubr.bf16.vlgmr.msra.gmra.mrb[0].mxu0 %v172_v36  ;;  %vm133_vm8 = vcmp.gt.f32.partialorder %v117_v45, 0.0  ;;  %v149_v53 = vmul.f32 0.2, %v117_v45  ;;  %v171_v6 = vsel %vm139_vm11, %v123_v57, %v155_v58 }
  0x24   :  { %v174_v44 = vpack.c.bf16 %v162_v40, %v158_v35  ;;  %v119_v50 = vadd.f32 %v976_v55, %v81_v41  ;;  %vm137_vm9 = vcmp.gt.f32.partialorder %v121_v46, 0.0  ;;  %v153_v56 = vmul.f32 0.2, %v121_v46 }
  0x25   :  { %v165_v61 = vsel %vm133_vm8, %v117_v45, %v149_v53  ;;  %vm132_vm12 = vcmp.gt.f32.partialorder %v116_v49, 0.0  ;;  %vm136_vm13 = vcmp.gt.f32.partialorder %v120_v0, 0.0  ;;  %v148_v4 = vmul.f32 0.2, %v116_v49 }
  0x26   :  { %518 = vmatmul.mubr.bf16.vlgmr.msra.gmra.mrb[0].mxu1 %v174_v44  ;;  %vm135_vm10 = vcmp.gt.f32.partialorder %v119_v50, 0.0  ;;  %v151_v60 = vmul.f32 0.2, %v119_v50  ;;  %v169_v54 = vsel %vm137_vm9, %v121_v46, %v153_v56  ;;  %v152_v5 = vmul.f32 0.2, %v120_v0 }
  0x27   :  { %v177_v2 = vpack.c.bf16 %v169_v54, %v165_v61  ;;  %v80_v55 = vmul.f32 %v986_v62, %v42_v52  ;;  %v164_v9 = vsel %vm132_vm12, %v116_v49, %v148_v4 }
  0x28   :  { %v167_v3 = vsel %vm135_vm10, %v119_v50, %v151_v60  ;;  %v168_v10 = vsel %vm136_vm13, %v120_v0, %v152_v5 }
  0x29   :  { %476 = vmatprep.mubr.bf16.mxu0 %v177_v2  ;;  %v179_v8 = vpack.c.bf16 %v171_v6, %v167_v3  ;;  %v176_v11 = vpack.c.bf16 %v168_v10, %v164_v9  ;;  %v118_v59 = vadd.f32 %v988_v63, %v80_v55 }
  0x2b   :  { %525 = vmatprep.mubr.bf16.mxu1 %v179_v8  ;;  %477 = vmatmul.mubr.bf16.gmra.mrb[4].mxu0 %v176_v11  ;;  %vm134_vm14 = vcmp.gt.f32.partialorder %v118_v59, 0.0  ;;  %v150_v13 = vmul.f32 0.2, %v118_v59 }
  0x2d   :  { %v166_v15 = vsel %vm134_vm14, %v118_v59, %v150_v13 }
  0x2e   :  { %v178_v17 = vpack.c.bf16 %v170_v16, %v166_v15 }
  0x30   :  { %526 = vmatmul.mubr.bf16.gmra.mrb[4].mxu1 %v178_v17 }
  0xf6   :  { %v744_v18 = vpop.f32.mrb[0].mxu0 }
  0xf7   :  { %v745_v62 = vpop.f32.mrb[1].mxu0 }
  0xf8   :  { %v746_v20 = vadd.f32 %v745_v62, %v744_v18  ;;  %v747_v21 = vpop.f32.mrb[2].mxu0 }
  0xf9   :  { %v772_v19 = vpop.f32.mrb[0].mxu1  ;;  %v748_v23 = vpop.f32.mrb[3].mxu0 }
  0xfa   :  { %v773_v22 = vpop.f32.mrb[1].mxu1  ;;  %v749_v63 = vadd.f32 %v748_v23, %v747_v21 }
  0xfb   :  { %v774_v24 = vadd.f32 %v773_v22, %v772_v19  ;;  %v775_v25 = vpop.f32.mrb[2].mxu1 }
  0xfc   :  { %v776_v26 = vpop.f32.mrb[3].mxu1 }
  0xfd   :  { %v520_v27 = vadd.f32 %v774_v24, %v746_v20  ;;  %v777_v28 = vadd.f32 %v776_v26, %v775_v25 }
  0xfe   :  { %v750_v30 = vpop.f32.mrb[4].mxu0 }
  0xff   :  { %539 = vst.msk [vmem:[#allocation2] sm:$0xff] %vm538_vm0, %v520_v27  ;;  %v523_v29 = vadd.f32 %v777_v28, %v749_v63  ;;  %v751_v31 = vpop.f32.mrb[5].mxu0 }
 0x100   :  { %v752_v33 = vadd.f32 %v751_v31, %v750_v30  ;;  %v753_v34 = vpop.f32.mrb[6].mxu0 }
 0x101   :  { %540 = vst.msk [vmem:[#allocation2 + $0x8] sm:$0xff] %vm538_vm0, %v523_v29  ;;  %v754_v35 = vpop.f32.mrb[7].mxu0 }
 0x102   :  { %v755_v37 = vadd.f32 %v754_v35, %v753_v34 }
 0x103   :  { %v778_v39 = vpop.f32.mrb[4].mxu1 }
 0x104   :  { %v779_v41 = vpop.f32.mrb[5].mxu1 }
 0x105   :  { %v781_v44 = vpop.f32.mrb[6].mxu1  ;;  %v780_v45 = vadd.f32 %v779_v41, %v778_v39 }
 0x106   :  { %v563_v36 = vld [vmem:[#allocation2] sm:$0xff]  ;;  %v782_v46 = vpop.f32.mrb[7].mxu1 }
 0x107   :  { %v574_v38 = vadd.f32 %v719_v32, %v563_v36  ;;  %v528_v50 = vadd.f32 %v780_v45, %v752_v33  ;;  %v783_v51 = vadd.f32 %v782_v46, %v781_v44 }
 0x108   :  { %v564_v40 = vld [vmem:[#allocation2 + $0x8] sm:$0xff] }
 0x109   :  { %v724_v42 = vpack.c.bf16 %v574_v38, %v574_v38  ;;  %v575_v43 = vadd.f32 %v719_v32, %v564_v40  ;;  %541 = vst.msk [vmem:[#allocation2 + $0x10] sm:$0xff] %vm538_vm0, %v528_v50  ;;  %v531_v48 = vadd.f32 %v783_v51, %v755_v37  ;;  %v640_v53 = vmul.f32 %v574_v38, %v574_v38 }
 0x10a   :  { %v627_v60 = vsel %vm538_vm0, %v574_v38, 0.0 }
 0x10b   :  { %595 = vst.msk [vmem:[%s1072_s5] sm:$0xf] %vm594_vm1, %v724_v42  ;;  %v725_v47 = vpack.c.bf16 %v575_v43, %v575_v43  ;;  %v641_v52 = vmul.f32 %v575_v43, %v575_v43  ;;  %v628_v56 = vsel %vm538_vm0, %v575_v43, 0.0  ;;  %v644_v54 = vsel %vm538_vm0, %v640_v53, 0.0 }
 0x10c   :  { %542 = vst.msk [vmem:[#allocation2 + $0x18] sm:$0xff] %vm538_vm0, %v531_v48  ;;  %v629_v0 = vadd.f32 %v628_v56, %v627_v60 }
 0x10d   :  { %596 = vst.msk [vmem:[%s1072_s5 + $0x4] sm:$0xf] %vm594_vm1, %v725_v47  ;;  %v645_v49 = vsel %vm538_vm0, %v641_v52, 0.0 }
 0x10e   :  { %v646_v5 = vadd.f32 %v645_v49, %v644_v54 }
 0x110   :  { %v565_v57 = vld [vmem:[#allocation2 + $0x10] sm:$0xff] }
 0x111   :  { %v576_v61 = vadd.f32 %v719_v32, %v565_v57 }
 0x113   :  { %v566_v1 = vld [vmem:[#allocation2 + $0x18] sm:$0xff]  ;;  %v726_v2 = vpack.c.bf16 %v576_v61, %v576_v61  ;;  %v630_v58 = vsel %vm538_vm0, %v576_v61, 0.0  ;;  %v642_v3 = vmul.f32 %v576_v61, %v576_v61 }
 0x114   :  { %v577_v4 = vadd.f32 %v719_v32, %v566_v1  ;;  %v631_v6 = vadd.f32 %v630_v58, %v629_v0 }
 0x115   :  { %597 = vst.msk [vmem:[%s1072_s5 + $0x8] sm:$0xf] %vm594_vm1, %v726_v2  ;;  %v647_v55 = vsel %vm538_vm0, %v642_v3, 0.0 }
 0x116   :  { %v727_v7 = vpack.c.bf16 %v577_v4, %v577_v4  ;;  %v632_v8 = vsel %vm538_vm0, %v577_v4, 0.0  ;;  %v643_v9 = vmul.f32 %v577_v4, %v577_v4  ;;  %v648_v10 = vadd.f32 %v647_v55, %v646_v5 }
 0x117   :  { %v633_v11 = vadd.f32 %v632_v8, %v631_v6 }
 0x118   :  { %598 = vst.msk [vmem:[%s1072_s5 + $0xc] sm:$0xf] %vm594_vm1, %v727_v7  ;;  %v649_v59 = vsel %vm538_vm0, %v643_v9, 0.0 }
 0x119   :  { %v634_v12 = vrot.slane %v633_v11, 4  ;;  %v650_v13 = vadd.f32 %v649_v59, %v648_v10 }
 0x11b   :  { %v635_v14 = vadd.f32 %v634_v12, %v633_v11  ;;  %v651_v15 = vrot.slane %v650_v13, 4 }
 0x11d   :  { %v636_v16 = vrot.slane %v635_v14, 2  ;;  %v652_v17 = vadd.f32 %v651_v15, %v650_v13 }
 0x11f   :  { %v637_v18 = vadd.f32 %v636_v16, %v635_v14  ;;  %v653_v62 = vrot.slane %v652_v17, 2 }
 0x121   :  { %v638_v19 = vrot.slane %v637_v18, 1  ;;  %v654_v20 = vadd.f32 %v653_v62, %v652_v17 }
 0x123   :  { %v639_v21 = vadd.f32 %v638_v19, %v637_v18  ;;  %v655_v22 = vrot.slane %v654_v20, 1 }
 0x125   :  { %v656_v23 = vadd.f32 %v655_v22, %v654_v20  ;;  %662 = vst.msk [vmem:[%s1073_s6] sm:$0x1] %vm661_vm2, %v639_v21 }
 0x127   :  { %663 = vst.msk [vmem:[%s1074_s7] sm:$0x1] %vm661_vm2, %v656_v23 }

// kernel: tile.101
= control target key start
LH: loop header
LB: loop body
LE: loop exit
PB: predicated region body
PF: predicated region fallthrough
CT: control target
= control target key end

     0   :  { %s28_s0 = inlined_call_operand.vmem [shape: f32[128], index: 0, kind: input, shape index: {}]   ;;  %s29_s1 = inlined_call_operand.vmem [shape: f32[16,128], index: 1, kind: output, shape index: {}]  }
   0x1   :  { %v4_v0 = vld [vmem:[%s28_s0] ss:$0 sm:$0xff] }
   0x2   :  { %5 = vst [vmem:[%s29_s1] sm:$0xff] %v4_v0  ;;  %8 = vst [vmem:[%s29_s1 + $0x8] sm:$0xff] %v4_v0 }

// kernel: _lambda_.17
= control target key start
LH: loop header
LB: loop body
LE: loop exit
PB: predicated region body
PF: predicated region fallthrough
CT: control target
= control target key end

     0   :  { %v38_v21 = vlaneseq  ;;  %s1425_s1 = inlined_call_operand.vmem [shape: bf16[1024,128], index: 1, kind: input, shape index: {}]   ;;  %s1426_s0 = inlined_call_operand.vmem [shape: bf16[8,1024], index: 0, kind: input, shape index: {}]   ;;  %s1427_s3 = inlined_call_operand.vmem [shape: f32[1,1024], index: 3, kind: input, shape index: {}]   ;;  %s1428_s4 = inlined_call_operand.vmem [shape: f32[1,1024], index: 4, kind: input, shape index: {}]   ;;  %s1429_s2 = inlined_call_operand.vmem [shape: f32[1,128], index: 2, kind: input, shape index: {}]   ;;  %s1430_s5 = inlined_call_operand.vmem [shape: bf16[8,128], index: 5, kind: output, shape index: {0}]   ;;  %s1431_s6 = inlined_call_operand.vmem [shape: f32[1,128], index: 6, kind: output, shape index: {1}]   ;;  %s1432_s7 = inlined_call_operand.vmem [shape: f32[1,128], index: 7, kind: output, shape index: {2}]  }
   0x1   :  { %v1069_v0 = vld [vmem:[%s1425_s1 + $0x40] sm:$0xff]   ;;  %v1073_v4 = vld [vmem:[%s1425_s1 + $0x48] sm:$0xff]   ;;  %v1077_v8 = vld [vmem:[%s1425_s1 + $0x50] sm:$0xff]  }
   0x2   :  { %v1070_v1 = vld [vmem:[%s1425_s1 + $0xc0] sm:$0xff]   ;;  %981 = vmatprep.subr.bf16.mxu0 %v1069_v0  ;;  %v1074_v5 = vld [vmem:[%s1425_s1 + $0xc8] sm:$0xff]   ;;  %v1078_v9 = vld [vmem:[%s1425_s1 + $0xd0] sm:$0xff]   ;;  %v1248_v26 = vshrl.u32 %v38_v21, 7 }
   0x3   :  { %v1071_v2 = vld [vmem:[%s1425_s1] sm:$0xff]   ;;  %1003 = vmatprep.subr.bf16.mxu1 %v1070_v1  ;;  %v1075_v6 = vld [vmem:[%s1425_s1 + $0x8] sm:$0xff]   ;;  %v1079_v10 = vld [vmem:[%s1425_s1 + $0x10] sm:$0xff]  }
   0x4   :  { %v1072_v3 = vld [vmem:[%s1425_s1 + $0x80] sm:$0xff]   ;;  %982 = vmatpush3.bf16.msra.mxu0 %v1071_v2  ;;  %v1076_v7 = vld [vmem:[%s1425_s1 + $0x88] sm:$0xff]   ;;  %v1080_v11 = vld [vmem:[%s1425_s1 + $0x90] sm:$0xff]   ;;  %v44_v31 = vsub.s32 1, %v1248_v26  ;;  %v52_v33 = vsub.s32 3, %v1248_v26  ;;  %v40_v35 = vsub.s32 0, %v1248_v26 }
   0x5   :  { %1004 = vmatpush3.bf16.msra.mxu1 %v1072_v3  ;;  %983 = vmatprep.subr.bf16.mxu0 %v1073_v4  ;;  %v1081_v12 = vld [vmem:[%s1425_s1 + $0x58] sm:$0xff]   ;;  %v1085_v16 = vld [vmem:[%s1425_s1 + $0x60] sm:$0xff]   ;;  %v1089_v20 = vld [vmem:[%s1425_s1 + $0x68] sm:$0xff]   ;;  %v48_v37 = vsub.s32 2, %v1248_v26 }
   0x6   :  { %1005 = vmatprep.subr.bf16.mxu1 %v1074_v5  ;;  %v1082_v13 = vld [vmem:[%s1425_s1 + $0xd8] sm:$0xff]   ;;  %v1086_v17 = vld [vmem:[%s1425_s1 + $0xe0] sm:$0xff]   ;;  %v1090_v22 = vld [vmem:[%s1425_s1 + $0xe8] sm:$0xff]  }
   0x7   :  { %v1083_v14 = vld [vmem:[%s1425_s1 + $0x18] sm:$0xff]   ;;  %v1087_v18 = vld [vmem:[%s1425_s1 + $0x20] sm:$0xff]   ;;  %v1091_v23 = vld [vmem:[%s1425_s1 + $0x28] sm:$0xff]  }
   0x8   :  { %984 = vmatpush3.bf16.msra.mxu0 %v1075_v6  ;;  %v1084_v15 = vld [vmem:[%s1425_s1 + $0x98] sm:$0xff]   ;;  %v1088_v19 = vld [vmem:[%s1425_s1 + $0xa0] sm:$0xff]   ;;  %v1092_v24 = vld [vmem:[%s1425_s1 + $0xa8] sm:$0xff]  }
   0x9   :  { %1006 = vmatpush3.bf16.msra.mxu1 %v1076_v7  ;;  %985 = vmatprep.subr.bf16.mxu0 %v1077_v8  ;;  %v1093_v25 = vld [vmem:[%s1425_s1 + $0x70] sm:$0xff]   ;;  %v1097_v30 = vld [vmem:[%s1425_s1 + $0x78] sm:$0xff]   ;;  %v24_v38 = vld [vmem:[%s1426_s0] sm:$0xff] }
   0xa   :  { %1007 = vmatprep.subr.bf16.mxu1 %v1078_v9  ;;  %v1094_v27 = vld [vmem:[%s1425_s1 + $0xf0] sm:$0xff]   ;;  %v1098_v32 = vld [vmem:[%s1425_s1 + $0xf8] sm:$0xff]   ;;  %v1281_v39 = vld [vmem:[%s1427_s3] sm:$0xff]  ;;  %v28_v41 = vunpack.c.l.bf16 %v24_v38  ;;  %v29_v42 = vunpack.c.h.bf16 %v24_v38 }
   0xb   :  { %v1095_v28 = vld [vmem:[%s1425_s1 + $0x30] sm:$0xff]   ;;  %v1099_v34 = vld [vmem:[%s1425_s1 + $0x38] sm:$0xff]   ;;  %v1286_v40 = vld [vmem:[%s1428_s4] sm:$0xff]  ;;  %v45_v43 = vrot.slane %v1281_v39, %v44_v31  ;;  %v53_v48 = vrot.slane %v1281_v39, %v52_v33  ;;  %v41_v52 = vrot.slane %v1281_v39, %v40_v35  ;;  %v49_v54 = vrot.slane %v1281_v39, %v48_v37 }
   0xc   :  { %986 = vmatpush3.bf16.msra.mxu0 %v1079_v10  ;;  %v1096_v29 = vld [vmem:[%s1425_s1 + $0xb0] sm:$0xff]   ;;  %v1100_v36 = vld [vmem:[%s1425_s1 + $0xb8] sm:$0xff]   ;;  %v95_v44 = vrot.slane %v1286_v40, %v44_v31  ;;  %v25_v45 = vld [vmem:[%s1426_s0 + $0x8] sm:$0xff]  ;;  %v103_v49 = vrot.slane %v1286_v40, %v52_v33  ;;  %v91_v53 = vrot.slane %v1286_v40, %v40_v35  ;;  %v99_v57 = vrot.slane %v1286_v40, %v48_v37 }
   0xd   :  { %1008 = vmatpush3.bf16.msra.mxu1 %v1080_v11  ;;  %987 = vmatprep.subr.bf16.mxu0 %v1081_v12  ;;  %v30_v46 = vunpack.c.l.bf16 %v25_v45  ;;  %v31_v47 = vunpack.c.h.bf16 %v25_v45  ;;  %v1101_v50 = vld [vmem:[%s1425_s1 + $0x140] sm:$0xff]   ;;  %v79_v51 = vmul.f32 %v45_v43, %v29_v42  ;;  %v78_v59 = vmul.f32 %v41_v52, %v28_v41  ;;  %v1112_v21 = vld [vmem:[%s1425_s1 + $0x190] sm:$0xff]   ;;  %v1124_v38 = vld [vmem:[%s1425_s1 + $0x1a8] sm:$0xff]  }
   0xe   :  { %1009 = vmatprep.subr.bf16.mxu1 %v1082_v13  ;;  %v1102_v55 = vld [vmem:[%s1425_s1 + $0x1c0] sm:$0xff]   ;;  %v1105_v13 = vld [vmem:[%s1425_s1 + $0x148] sm:$0xff]   ;;  %v60_v31 = vsub.s32 5, %v1248_v26  ;;  %v68_v33 = vsub.s32 7, %v1248_v26  ;;  %v56_v35 = vsub.s32 4, %v1248_v26  ;;  %v64_v37 = vsub.s32 6, %v1248_v26 }
   0xf   :  { %v81_v56 = vmul.f32 %v53_v48, %v31_v47  ;;  %v129_v58 = vadd.f32 %v95_v44, %v79_v51  ;;  %v80_v60 = vmul.f32 %v49_v54, %v30_v46  ;;  %v128_v63 = vadd.f32 %v91_v53, %v78_v59  ;;  %v1103_v7 = vld [vmem:[%s1425_s1 + $0x100] sm:$0xff]   ;;  %v1125_v41 = vld [vmem:[%s1425_s1 + $0x170] sm:$0xff]   ;;  %v27_v51 = vld [vmem:[%s1426_s0 + $0x18] sm:$0xff] }
  0x10   :  { %988 = vmatpush3.bf16.msra.mxu0 %v1083_v14  ;;  %v1104_v8 = vld [vmem:[%s1425_s1 + $0x180] sm:$0xff]   ;;  %v1126_v42 = vld [vmem:[%s1425_s1 + $0x1f0] sm:$0xff]   ;;  %v61_v43 = vrot.slane %v1281_v39, %v60_v31  ;;  %v57_v26 = vrot.slane %v1281_v39, %v56_v35  ;;  %v69_v45 = vrot.slane %v1281_v39, %v68_v33  ;;  %v65_v46 = vrot.slane %v1281_v39, %v64_v37  ;;  %v1129_v53 = vld [vmem:[%s1425_s1 + $0x178] sm:$0xff]  }
  0x11   :  { %1010 = vmatpush3.bf16.msra.mxu1 %v1084_v15  ;;  %989 = vmatprep.subr.bf16.mxu0 %v1085_v16  ;;  %v131_v61 = vadd.f32 %v103_v49, %v81_v56  ;;  %vm137_vm0 = vcmp.gt.f32.partialorder %v129_v58, 0.0  ;;  %v145_v62 = vmul.f32 0.2, %v129_v58  ;;  %v130_v0 = vadd.f32 %v99_v57, %v80_v60  ;;  %v1106_v15 = vld [vmem:[%s1425_s1 + $0x1c8] sm:$0xff]   ;;  %v26_v44 = vld [vmem:[%s1426_s0 + $0x10] sm:$0xff] }
  0x12   :  { %1011 = vmatprep.subr.bf16.mxu1 %v1086_v17  ;;  %vm136_vm2 = vcmp.gt.f32.partialorder %v128_v63, 0.0  ;;  %v144_v3 = vmul.f32 0.2, %v128_v63  ;;  %v1107_v16 = vld [vmem:[%s1425_s1 + $0x108] sm:$0xff]   ;;  %v1127_v47 = vld [vmem:[%s1425_s1 + $0x130] sm:$0xff]   ;;  %v32_v48 = vunpack.c.l.bf16 %v26_v44  ;;  %v33_v49 = vunpack.c.h.bf16 %v26_v44 }
  0x13   :  { %vm139_vm1 = vcmp.gt.f32.partialorder %v131_v61, 0.0  ;;  %v147_v1 = vmul.f32 0.2, %v131_v61  ;;  %v153_v2 = vsel %vm137_vm0, %v129_v58, %v145_v62  ;;  %vm138_vm3 = vcmp.gt.f32.partialorder %v130_v0, 0.0  ;;  %v1108_v17 = vld [vmem:[%s1425_s1 + $0x188] sm:$0xff]   ;;  %v1128_v39 = vld [vmem:[%s1425_s1 + $0x1b0] sm:$0xff]  }
  0x14   :  { %990 = vmatpush3.bf16.msra.mxu0 %v1087_v18  ;;  %v161_v4 = vpack.c.bf16 %v153_v2, %v153_v2  ;;  %v146_v6 = vmul.f32 0.2, %v130_v0  ;;  %v152_v10 = vsel %vm136_vm2, %v128_v63, %v144_v3  ;;  %v1109_v18 = vld [vmem:[%s1425_s1 + $0x150] sm:$0xff]   ;;  %v107_v52 = vrot.slane %v1286_v40, %v56_v35  ;;  %v1130_v58 = vld [vmem:[%s1425_s1 + $0x1f8] sm:$0xff]  }
  0x15   :  { %1012 = vmatpush3.bf16.msra.mxu1 %v1088_v19  ;;  %991 = vmatprep.subr.bf16.mxu0 %v1089_v20  ;;  %v155_v5 = vsel %vm139_vm1, %v131_v61, %v147_v1  ;;  %v160_v11 = vpack.c.bf16 %v152_v10, %v152_v10  ;;  %v1110_v19 = vld [vmem:[%s1425_s1 + $0x1d0] sm:$0xff]   ;;  %v34_v54 = vunpack.c.l.bf16 %v27_v51  ;;  %v119_v56 = vrot.slane %v1286_v40, %v68_v33  ;;  %v1131_v63 = vld [vmem:[%s1425_s1 + $0x138] sm:$0xff]  }
  0x16   :  { %1013 = vmatprep.subr.bf16.mxu1 %v1090_v22  ;;  %v163_v9 = vpack.c.bf16 %v155_v5, %v155_v5  ;;  %712 = vmatprep.mubr.bf16.mxu0 %v161_v4  ;;  %v154_v12 = vsel %vm138_vm3, %v130_v0, %v146_v6  ;;  %v1111_v20 = vld [vmem:[%s1425_s1 + $0x110] sm:$0xff]   ;;  %v1113_v22 = vld [vmem:[%s1425_s1 + $0x158] sm:$0xff]   ;;  %v115_v57 = vrot.slane %v1286_v40, %v64_v37 }
  0x17   :  { %v162_v14 = vpack.c.bf16 %v154_v12, %v154_v12  ;;  %v83_v59 = vmul.f32 %v61_v43, %v33_v49  ;;  %v82_v60 = vmul.f32 %v57_v26, %v32_v48  ;;  %v84_v62 = vmul.f32 %v65_v46, %v34_v54 }
  0x18   :  { %992 = vmatpush3.bf16.msra.mxu0 %v1091_v23  ;;  %752 = vmatprep.mubr.bf16.mxu1 %v163_v9  ;;  %v1114_v23 = vld [vmem:[%s1425_s1 + $0x1d8] sm:$0xff]  }
  0x19   :  { %1014 = vmatpush3.bf16.msra.mxu1 %v1092_v24  ;;  %993 = vmatprep.subr.bf16.mxu0 %v1093_v25  ;;  %v1115_v24 = vld [vmem:[%s1425_s1 + $0x118] sm:$0xff]   ;;  %v132_v1 = vadd.f32 %v107_v52, %v82_v60  ;;  %v134_v3 = vadd.f32 %v115_v57, %v84_v62 }
  0x1a   :  { %1015 = vmatprep.subr.bf16.mxu1 %v1094_v27  ;;  %v1116_v25 = vld [vmem:[%s1425_s1 + $0x198] sm:$0xff]   ;;  %v1117_v27 = vld [vmem:[%s1425_s1 + $0x160] sm:$0xff]  }
  0x1b   :  { %vm140_vm5 = vcmp.gt.f32.partialorder %v132_v1, 0.0  ;;  %v148_v5 = vmul.f32 0.2, %v132_v1  ;;  %vm142_vm7 = vcmp.gt.f32.partialorder %v134_v3, 0.0 }
  0x1c   :  { %994 = vmatpush3.bf16.msra.mxu0 %v1095_v28  ;;  %v1118_v28 = vld [vmem:[%s1425_s1 + $0x1e0] sm:$0xff]  }
  0x1d   :  { %1016 = vmatpush3.bf16.msra.mxu1 %v1096_v29  ;;  %995 = vmatprep.subr.bf16.mxu0 %v1097_v30  ;;  %v1119_v29 = vld [vmem:[%s1425_s1 + $0x120] sm:$0xff]   ;;  %v156_v9 = vsel %vm140_vm5, %v132_v1, %v148_v5 }
  0x1e   :  { %1017 = vmatprep.subr.bf16.mxu1 %v1098_v32  ;;  %v1120_v30 = vld [vmem:[%s1425_s1 + $0x1a0] sm:$0xff]   ;;  %v1121_v32 = vld [vmem:[%s1425_s1 + $0x168] sm:$0xff]   ;;  %v164_v12 = vpack.c.bf16 %v156_v9, %v156_v9 }
  0x20   :  { %996 = vmatpush3.bf16.msra.mxu0 %v1099_v34  ;;  %v1122_v34 = vld [vmem:[%s1425_s1 + $0x1e8] sm:$0xff]  }
  0x21   :  { %1018 = vmatpush3.bf16.msra.mxu1 %v1100_v36  ;;  %1025 = vmatprep.subr.bf16.mxu0 %v1101_v50  ;;  %v1123_v36 = vld [vmem:[%s1425_s1 + $0x128] sm:$0xff]   ;;  %v111_v50 = vrot.slane %v1286_v40, %v60_v31  ;;  %v1132_v40 = vld [vmem:[%s1425_s1 + $0x1b8] sm:$0xff]  }
  0x22   :  { %1047 = vmatprep.subr.bf16.mxu1 %v1102_v55  ;;  %v35_v55 = vunpack.c.h.bf16 %v27_v51 }
  0x23   :  { %713 = vmatmul.mubr.bf16.vlgmr.msra.gmra.mrb[0].mxu0 %v160_v11  ;;  %v133_v0 = vadd.f32 %v111_v50, %v83_v59 }
  0x24   :  { %753 = vmatmul.mubr.bf16.vlgmr.msra.gmra.mrb[0].mxu1 %v162_v14  ;;  %1026 = vmatpush3.bf16.msra.mxu0 %v1103_v7  ;;  %v85_v61 = vmul.f32 %v69_v45, %v35_v55  ;;  %v150_v7 = vmul.f32 0.2, %v134_v3 }
  0x25   :  { %1048 = vmatpush3.bf16.msra.mxu1 %v1104_v8  ;;  %1027 = vmatprep.subr.bf16.mxu0 %v1105_v13  ;;  %vm141_vm4 = vcmp.gt.f32.partialorder %v133_v0, 0.0  ;;  %v149_v4 = vmul.f32 0.2, %v133_v0 }
  0x26   :  { %1049 = vmatprep.subr.bf16.mxu1 %v1106_v15  ;;  %v135_v2 = vadd.f32 %v119_v56, %v85_v61  ;;  %v158_v13 = vsel %vm142_vm7, %v134_v3, %v150_v7 }
  0x27   :  { %v157_v8 = vsel %vm141_vm4, %v133_v0, %v149_v4  ;;  %v166_v15 = vpack.c.bf16 %v158_v13, %v158_v13 }
  0x28   :  { %1028 = vmatpush3.bf16.msra.mxu0 %v1107_v16  ;;  %vm143_vm6 = vcmp.gt.f32.partialorder %v135_v2, 0.0  ;;  %v151_v6 = vmul.f32 0.2, %v135_v2  ;;  %v165_v10 = vpack.c.bf16 %v157_v8, %v157_v8 }
  0x29   :  { %1050 = vmatpush3.bf16.msra.mxu1 %v1108_v17  ;;  %1029 = vmatprep.subr.bf16.mxu0 %v1109_v18 }
  0x2a   :  { %1051 = vmatprep.subr.bf16.mxu1 %v1110_v19  ;;  %v159_v11 = vsel %vm143_vm6, %v135_v2, %v151_v6  ;;  %792 = vmatprep.mubr.bf16.mxu0 %v165_v10 }
  0x2b   :  { %v167_v14 = vpack.c.bf16 %v159_v11, %v159_v11 }
  0x2c   :  { %1030 = vmatpush3.bf16.msra.mxu0 %v1111_v20 }
  0x2d   :  { %1052 = vmatpush3.bf16.msra.mxu1 %v1112_v21  ;;  %1031 = vmatprep.subr.bf16.mxu0 %v1113_v22 }
  0x2e   :  { %1053 = vmatprep.subr.bf16.mxu1 %v1114_v23  ;;  %832 = vmatprep.mubr.bf16.mxu1 %v167_v14 }
  0x30   :  { %1032 = vmatpush3.bf16.msra.mxu0 %v1115_v24 }
  0x31   :  { %1054 = vmatpush3.bf16.msra.mxu1 %v1116_v25  ;;  %1033 = vmatprep.subr.bf16.mxu0 %v1117_v27 }
  0x32   :  { %1055 = vmatprep.subr.bf16.mxu1 %v1118_v28 }
  0x34   :  { %1034 = vmatpush3.bf16.msra.mxu0 %v1119_v29 }
  0x35   :  { %1056 = vmatpush3.bf16.msra.mxu1 %v1120_v30  ;;  %1035 = vmatprep.subr.bf16.mxu0 %v1121_v32 }
  0x36   :  { %1057 = vmatprep.subr.bf16.mxu1 %v1122_v34 }
  0x38   :  { %1036 = vmatpush3.bf16.msra.mxu0 %v1123_v36 }
  0x39   :  { %1058 = vmatpush3.bf16.msra.mxu1 %v1124_v38  ;;  %1037 = vmatprep.subr.bf16.mxu0 %v1125_v41  ;;  %v980_v41 = vld [vmem:[%s1429_s2] ss:$0 sm:$0xff] }
  0x3a   :  { %1059 = vmatprep.subr.bf16.mxu1 %v1126_v42 }
  0x3c   :  { %1038 = vmatpush3.bf16.msra.mxu0 %v1127_v47 }
  0x3d   :  { %1060 = vmatpush3.bf16.msra.mxu1 %v1128_v39  ;;  %1039 = vmatprep.subr.bf16.mxu0 %v1129_v53 }
  0x3e   :  { %1061 = vmatprep.subr.bf16.mxu1 %v1130_v58 }
  0x40   :  { %1040 = vmatpush3.bf16.msra.mxu0 %v1131_v63 }
  0x41   :  { %1062 = vmatpush3.bf16.msra.mxu1 %v1132_v40 }
  0x43   :  { %793 = vmatmul.mubr.bf16.vlgmr.msra.gmra.mrb[4].mxu0 %v164_v12 }
  0x44   :  { %833 = vmatmul.mubr.bf16.vlgmr.msra.gmra.mrb[4].mxu1 %v166_v15 }
  0xf6   :  { %v997_v16 = vpop.f32.mrb[0].mxu0 }
  0xf7   :  { %v1019_v17 = vpop.f32.mrb[0].mxu1  ;;  %v998_v18 = vpop.f32.mrb[1].mxu0 }
  0xf8   :  { %v999_v19 = vadd.f32 %v998_v18, %v997_v16  ;;  %v1020_v20 = vpop.f32.mrb[1].mxu1  ;;  %v1000_v21 = vpop.f32.mrb[2].mxu0 }
  0xf9   :  { %v1021_v22 = vadd.f32 %v1020_v20, %v1019_v17  ;;  %v1022_v23 = vpop.f32.mrb[2].mxu1  ;;  %v1001_v24 = vpop.f32.mrb[3].mxu0 }
  0xfa   :  { %v1023_v25 = vpop.f32.mrb[3].mxu1 }
  0xfb   :  { %v755_v27 = vadd.f32 %v1021_v22, %v999_v19 }
 0x116   :  { %v1041_v28 = vpop.f32.mrb[4].mxu0 }
 0x117   :  { %v1063_v29 = vpop.f32.mrb[4].mxu1  ;;  %v1042_v30 = vpop.f32.mrb[5].mxu0 }
 0x118   :  { %v1043_v31 = vadd.f32 %v1042_v30, %v1041_v28  ;;  %v1064_v32 = vpop.f32.mrb[5].mxu1  ;;  %v1044_v33 = vpop.f32.mrb[6].mxu0 }
 0x119   :  { %v1065_v34 = vadd.f32 %v1064_v32, %v1063_v29  ;;  %v1066_v35 = vpop.f32.mrb[6].mxu1  ;;  %v1045_v36 = vpop.f32.mrb[7].mxu0 }
 0x11a   :  { %v795_v37 = vadd.f32 %v1043_v31, %v755_v27  ;;  %v1067_v38 = vpop.f32.mrb[7].mxu1 }
 0x11c   :  { %v835_v42 = vadd.f32 %v1065_v34, %v795_v37 }
 0x11e   :  { %v863_v43 = vadd.f32 %v980_v41, %v835_v42 }
 0x120   :  { %v864_v26 = vpack.c.bf16 %v863_v43, %v863_v43  ;;  %v875_v44 = vrot.slane %v863_v43, 4  ;;  %v881_v45 = vmul.f32 %v863_v43, %v863_v43 }
 0x122   :  { %865 = vst [vmem:[%s1430_s5] sm:$0xf] %v864_v26  ;;  %v876_v46 = vadd.f32 %v875_v44, %v863_v43  ;;  %v882_v47 = vrot.slane %v881_v45, 4 }
 0x124   :  { %v877_v48 = vrot.slane %v876_v46, 2  ;;  %v883_v49 = vadd.f32 %v882_v47, %v881_v45 }
 0x126   :  { %v878_v50 = vadd.f32 %v877_v48, %v876_v46  ;;  %v884_v51 = vrot.slane %v883_v49, 2 }
 0x128   :  { %v879_v52 = vrot.slane %v878_v50, 1  ;;  %v885_v39 = vadd.f32 %v884_v51, %v883_v49 }
 0x12a   :  { %v880_v53 = vadd.f32 %v879_v52, %v878_v50  ;;  %v886_v54 = vrot.slane %v885_v39, 1 }
 0x12c   :  { %v887_v55 = vadd.f32 %v886_v54, %v885_v39  ;;  %892 = vst [vmem:[%s1431_s6] sm:$0x1] %v880_v53 }
 0x12e   :  { %893 = vst [vmem:[%s1432_s7] sm:$0x1] %v887_v55 }

// kernel: _lambda_.18
= control target key start
LH: loop header
LB: loop body
LE: loop exit
PB: predicated region body
PF: predicated region fallthrough
CT: control target
= control target key end

     0   :  { %s1561_s18 = smov 0   ;;  %s1563_s19 = smov 0   ;;  %s1720_s0 = inlined_call_operand.vmem [shape: bf16[8,2048], index: 0, kind: input, shape index: {}]   ;;  %s1721_s1 = inlined_call_operand.vmem [shape: bf16[2048,128], index: 1, kind: input, shape index: {}]   ;;  %s1722_s2 = inlined_call_operand.vmem [shape: f32[1,128], index: 2, kind: input, shape index: {}]   ;;  %s1723_s3 = inlined_call_operand.vmem [shape: f32[1,2048], index: 3, kind: input, shape index: {}]   ;;  %s1724_s4 = inlined_call_operand.vmem [shape: f32[1,2048], index: 4, kind: input, shape index: {}]   ;;  %s1725_s5 = inlined_call_operand.vmem [shape: bf16[8,128], index: 5, kind: output, shape index: {}]  }
   0x1   :  { %s1565_s20 = smov 0  }
   0x2 LB: > { %s24_s21 = sadd.s32 1, %s1525_s19  ;;  %p1253_p0 = scmp.ge.s32.totalorder %s1529_s20, 1  ;;  %s1529_s20 = sphi %s1565_s20, %s15_s20   ;;  %s1525_s19 = sphi %s1563_s19, %s1727_s19   ;;  %s1521_s18 = sphi %s1561_s18, %s1726_s18  }
   0x3   : > { %p25_p1 = scmp.ge.s32.totalorder %s24_s21, 2  ;;  %p237_p2 = scmp.lt.s32.totalorder %s1529_s20, 3 }
   0x5   : > { %s1729_s21 = smov (%p25_p1, %s24_s21), 0  ;;  %p238_p3 = pnand %p1253_p0, %p237_p2 }
   0x6   : > { %s1256_s22 = sshll.u32 (!%p238_p3), %s1521_s18, 7  ;;  %s1254_s27 = sshll.u32 (!%p238_p3), %s1521_s18, 3  ;;  %v326_v21 = vlaneseq (!%p238_p3) }
   0x7   : > { %241 = sbr.rel (%p238_p3) target bundleno = 325 (0x145), region = 40  ;;  %p292_p4 = scmp.lt.s32.totalorder (!%p238_p3), %s1256_s22, 255 }
   0x8   : > { %p284_p5 = scmp.lt.s32.totalorder (!%p238_p3), %s1254_s27, 15  ;;  %v1615_v26 = vshrl.u32 (!%p238_p3), %v326_v21, 7  ;;  %p1324_p6 = scmp.ne.s32.totalorder (!%p238_p3), %s1521_s18, 0 }
   0xa   : > { %v332_v31 = vsub.s32 (!%p238_p3), 1, %v1615_v26  ;;  %v340_v33 = vsub.s32 (!%p238_p3), 3, %v1615_v26  ;;  %v328_v35 = vsub.s32 (!%p238_p3), 0, %v1615_v26  ;;  %v336_v37 = vsub.s32 (!%p238_p3), 2, %v1615_v26 }
   0xe   : > { %s1731_s22 = smov (!%p292_p4, %s1256_s22), 255  ;;  %s1733_s27 = smov (!%p284_p5, %s1254_s27), 15 }
   0xf   : > { %s1257_s23 = sshll.u32 %s1731_s22, 2  ;;  %s1255_s28 = sshll.u32 %s1733_s27, 2 }
  0x10   : > { %s1585_s26 = scalar_lea.vmem %s1721_s1, %s1257_s23  ;;  %s1625_s6 = scalar_lea.vmem %s1720_s0, %s1255_s28 }
  0x11   : > { %v1443_v0 = vld [vmem:[%s1585_s26 + $0x40] sm:$0xff]   ;;  %v1447_v4 = vld [vmem:[%s1585_s26 + $0x48] sm:$0xff]   ;;  %v1451_v8 = vld [vmem:[%s1585_s26 + $0x50] sm:$0xff]   ;;  %s300_s9 = scalar_lea.vmem %s1723_s3, %s1733_s27  ;;  %s305_s12 = scalar_lea.vmem %s1724_s4, %s1733_s27 }
  0x12   : > { %v1444_v1 = vld [vmem:[%s1585_s26 + $0xc0] sm:$0xff]   ;;  %1331 = vmatprep.subr.bf16.mxu0 %v1443_v0  ;;  %v1448_v5 = vld [vmem:[%s1585_s26 + $0xc8] sm:$0xff]   ;;  %v1452_v9 = vld [vmem:[%s1585_s26 + $0xd0] sm:$0xff]  }
  0x13   : > { %v1445_v2 = vld [vmem:[%s1585_s26] sm:$0xff]   ;;  %1353 = vmatprep.subr.bf16.mxu1 %v1444_v1  ;;  %v1449_v6 = vld [vmem:[%s1585_s26 + $0x8] sm:$0xff]   ;;  %v1453_v10 = vld [vmem:[%s1585_s26 + $0x10] sm:$0xff]  }
  0x14   : > { %v1446_v3 = vld [vmem:[%s1585_s26 + $0x80] sm:$0xff]   ;;  %1332 = vmatpush3.bf16.msra.mxu0 %v1445_v2  ;;  %v1450_v7 = vld [vmem:[%s1585_s26 + $0x88] sm:$0xff]   ;;  %v1454_v11 = vld [vmem:[%s1585_s26 + $0x90] sm:$0xff]  }
  0x15   : > { %1354 = vmatpush3.bf16.msra.mxu1 %v1446_v3  ;;  %1333 = vmatprep.subr.bf16.mxu0 %v1447_v4  ;;  %v1455_v12 = vld [vmem:[%s1585_s26 + $0x58] sm:$0xff]   ;;  %v1459_v16 = vld [vmem:[%s1585_s26 + $0x60] sm:$0xff]   ;;  %v1463_v20 = vld [vmem:[%s1585_s26 + $0x68] sm:$0xff]  }
  0x16   : > { %1355 = vmatprep.subr.bf16.mxu1 %v1448_v5  ;;  %v1456_v13 = vld [vmem:[%s1585_s26 + $0xd8] sm:$0xff]   ;;  %v1460_v17 = vld [vmem:[%s1585_s26 + $0xe0] sm:$0xff]   ;;  %v1464_v22 = vld [vmem:[%s1585_s26 + $0xe8] sm:$0xff]  }
  0x17   : > { %v1457_v14 = vld [vmem:[%s1585_s26 + $0x18] sm:$0xff]   ;;  %v1461_v18 = vld [vmem:[%s1585_s26 + $0x20] sm:$0xff]   ;;  %v1465_v23 = vld [vmem:[%s1585_s26 + $0x28] sm:$0xff]  }
  0x18   : > { %1334 = vmatpush3.bf16.msra.mxu0 %v1449_v6  ;;  %v1458_v15 = vld [vmem:[%s1585_s26 + $0x98] sm:$0xff]   ;;  %v1462_v19 = vld [vmem:[%s1585_s26 + $0xa0] sm:$0xff]   ;;  %v1466_v24 = vld [vmem:[%s1585_s26 + $0xa8] sm:$0xff]  }
  0x19   : > { %1356 = vmatpush3.bf16.msra.mxu1 %v1450_v7  ;;  %1335 = vmatprep.subr.bf16.mxu0 %v1451_v8  ;;  %v1467_v25 = vld [vmem:[%s1585_s26 + $0x70] sm:$0xff]   ;;  %v1471_v30 = vld [vmem:[%s1585_s26 + $0x78] sm:$0xff]   ;;  %v312_v38 = vld [vmem:[%s1625_s6] sm:$0xff] }
  0x1a   : > { %1357 = vmatprep.subr.bf16.mxu1 %v1452_v9  ;;  %v1468_v27 = vld [vmem:[%s1585_s26 + $0xf0] sm:$0xff]   ;;  %v1472_v32 = vld [vmem:[%s1585_s26 + $0xf8] sm:$0xff]   ;;  %v1643_v39 = vld [vmem:[%s300_s9] sm:$0xff]  ;;  %v316_v41 = vunpack.c.l.bf16 %v312_v38  ;;  %v317_v42 = vunpack.c.h.bf16 %v312_v38 }
  0x1b   : > { %v1469_v28 = vld [vmem:[%s1585_s26 + $0x30] sm:$0xff]   ;;  %v1473_v34 = vld [vmem:[%s1585_s26 + $0x38] sm:$0xff]   ;;  %v1645_v40 = vld [vmem:[%s305_s12] sm:$0xff]  ;;  %v333_v43 = vrot.slane %v1643_v39, %v332_v31  ;;  %v341_v48 = vrot.slane %v1643_v39, %v340_v33  ;;  %v329_v52 = vrot.slane %v1643_v39, %v328_v35  ;;  %v337_v54 = vrot.slane %v1643_v39, %v336_v37 }
  0x1c   : > { %1336 = vmatpush3.bf16.msra.mxu0 %v1453_v10  ;;  %v1470_v29 = vld [vmem:[%s1585_s26 + $0xb0] sm:$0xff]   ;;  %v1474_v36 = vld [vmem:[%s1585_s26 + $0xb8] sm:$0xff]   ;;  %v383_v44 = vrot.slane %v1645_v40, %v332_v31  ;;  %v313_v45 = vld [vmem:[%s1625_s6 + $0x8] sm:$0xff]  ;;  %v391_v49 = vrot.slane %v1645_v40, %v340_v33  ;;  %v379_v53 = vrot.slane %v1645_v40, %v328_v35  ;;  %v387_v57 = vrot.slane %v1645_v40, %v336_v37 }
  0x1d   : > { %1358 = vmatpush3.bf16.msra.mxu1 %v1454_v11  ;;  %1337 = vmatprep.subr.bf16.mxu0 %v1455_v12  ;;  %v318_v46 = vunpack.c.l.bf16 %v313_v45  ;;  %v319_v47 = vunpack.c.h.bf16 %v313_v45  ;;  %v1475_v50 = vld [vmem:[%s1585_s26 + $0x140] sm:$0xff]   ;;  %v367_v51 = vmul.f32 %v333_v43, %v317_v42  ;;  %v366_v59 = vmul.f32 %v329_v52, %v316_v41  ;;  %v1486_v21 = vld [vmem:[%s1585_s26 + $0x190] sm:$0xff]   ;;  %v1498_v38 = vld [vmem:[%s1585_s26 + $0x1a8] sm:$0xff]  }
  0x1e   : > { %1359 = vmatprep.subr.bf16.mxu1 %v1456_v13  ;;  %v1476_v55 = vld [vmem:[%s1585_s26 + $0x1c0] sm:$0xff]   ;;  %v1479_v13 = vld [vmem:[%s1585_s26 + $0x148] sm:$0xff]   ;;  %v348_v31 = vsub.s32 5, %v1615_v26  ;;  %v356_v33 = vsub.s32 7, %v1615_v26  ;;  %v344_v35 = vsub.s32 4, %v1615_v26  ;;  %v352_v37 = vsub.s32 6, %v1615_v26 }
  0x1f   : > { %v369_v56 = vmul.f32 %v341_v48, %v319_v47  ;;  %v417_v58 = vadd.f32 %v383_v44, %v367_v51  ;;  %v368_v60 = vmul.f32 %v337_v54, %v318_v46  ;;  %v416_v63 = vadd.f32 %v379_v53, %v366_v59  ;;  %v1477_v7 = vld [vmem:[%s1585_s26 + $0x100] sm:$0xff]   ;;  %v1499_v41 = vld [vmem:[%s1585_s26 + $0x170] sm:$0xff]   ;;  %v315_v51 = vld [vmem:[%s1625_s6 + $0x18] sm:$0xff] }
  0x20   : > { %1338 = vmatpush3.bf16.msra.mxu0 %v1457_v14  ;;  %v1478_v8 = vld [vmem:[%s1585_s26 + $0x180] sm:$0xff]   ;;  %v1500_v42 = vld [vmem:[%s1585_s26 + $0x1f0] sm:$0xff]   ;;  %v349_v43 = vrot.slane %v1643_v39, %v348_v31  ;;  %v345_v44 = vrot.slane %v1643_v39, %v344_v35  ;;  %v357_v46 = vrot.slane %v1643_v39, %v356_v33  ;;  %v353_v47 = vrot.slane %v1643_v39, %v352_v37  ;;  %v1503_v54 = vld [vmem:[%s1585_s26 + $0x178] sm:$0xff]  }
  0x21   : > { %1360 = vmatpush3.bf16.msra.mxu1 %v1458_v15  ;;  %1339 = vmatprep.subr.bf16.mxu0 %v1459_v16  ;;  %v419_v61 = vadd.f32 %v391_v49, %v369_v56  ;;  %vm425_vm0 = vcmp.gt.f32.partialorder %v417_v58, 0.0  ;;  %v433_v62 = vmul.f32 0.2, %v417_v58  ;;  %v418_v0 = vadd.f32 %v387_v57, %v368_v60  ;;  %v1480_v15 = vld [vmem:[%s1585_s26 + $0x1c8] sm:$0xff]   ;;  %v314_v45 = vld [vmem:[%s1625_s6 + $0x10] sm:$0xff] }
  0x22   : > { %1361 = vmatprep.subr.bf16.mxu1 %v1460_v17  ;;  %vm424_vm2 = vcmp.gt.f32.partialorder %v416_v63, 0.0  ;;  %v432_v3 = vmul.f32 0.2, %v416_v63  ;;  %v1481_v16 = vld [vmem:[%s1585_s26 + $0x108] sm:$0xff]   ;;  %v1501_v26 = vld [vmem:[%s1585_s26 + $0x130] sm:$0xff]   ;;  %v320_v48 = vunpack.c.l.bf16 %v314_v45  ;;  %v321_v49 = vunpack.c.h.bf16 %v314_v45 }
  0x23   : > { %vm427_vm1 = vcmp.gt.f32.partialorder %v419_v61, 0.0  ;;  %v435_v1 = vmul.f32 0.2, %v419_v61  ;;  %v441_v2 = vsel %vm425_vm0, %v417_v58, %v433_v62  ;;  %vm426_vm3 = vcmp.gt.f32.partialorder %v418_v0, 0.0  ;;  %v1482_v17 = vld [vmem:[%s1585_s26 + $0x188] sm:$0xff]   ;;  %v1502_v53 = vld [vmem:[%s1585_s26 + $0x1b0] sm:$0xff]  }
  0x24   : > { %1340 = vmatpush3.bf16.msra.mxu0 %v1461_v18  ;;  %v449_v4 = vpack.c.bf16 %v441_v2, %v441_v2  ;;  %v434_v6 = vmul.f32 0.2, %v418_v0  ;;  %v440_v10 = vsel %vm424_vm2, %v416_v63, %v432_v3  ;;  %v1483_v18 = vld [vmem:[%s1585_s26 + $0x150] sm:$0xff]   ;;  %v395_v52 = vrot.slane %v1645_v40, %v344_v35  ;;  %v1504_v58 = vld [vmem:[%s1585_s26 + $0x1f8] sm:$0xff]  }
  0x25   : > { %1362 = vmatpush3.bf16.msra.mxu1 %v1462_v19  ;;  %1341 = vmatprep.subr.bf16.mxu0 %v1463_v20  ;;  %v443_v5 = vsel %vm427_vm1, %v419_v61, %v435_v1  ;;  %v448_v11 = vpack.c.bf16 %v440_v10, %v440_v10  ;;  %v1484_v19 = vld [vmem:[%s1585_s26 + $0x1d0] sm:$0xff]   ;;  %v323_v56 = vunpack.c.h.bf16 %v315_v51  ;;  %v407_v39 = vrot.slane %v1645_v40, %v356_v33  ;;  %v1505_v63 = vld [vmem:[%s1585_s26 + $0x138] sm:$0xff]  }
  0x26   : > { %1363 = vmatprep.subr.bf16.mxu1 %v1464_v22  ;;  %v451_v9 = vpack.c.bf16 %v443_v5, %v443_v5  ;;  %1000 = vmatprep.mubr.bf16.mxu0 %v449_v4  ;;  %v442_v12 = vsel %vm426_vm3, %v418_v0, %v434_v6  ;;  %v1485_v20 = vld [vmem:[%s1585_s26 + $0x110] sm:$0xff]   ;;  %v1487_v22 = vld [vmem:[%s1585_s26 + $0x158] sm:$0xff]   ;;  %v403_v57 = vrot.slane %v1645_v40, %v352_v37 }
  0x27   : > { %v450_v14 = vpack.c.bf16 %v442_v12, %v442_v12  ;;  %v371_v59 = vmul.f32 %v349_v43, %v321_v49  ;;  %v370_v60 = vmul.f32 %v345_v44, %v320_v48  ;;  %v373_v61 = vmul.f32 %v357_v46, %v323_v56  ;;  %v1506_v2 = vld [vmem:[%s1585_s26 + $0x1b8] sm:$0xff]  }
  0x28   : > { %1342 = vmatpush3.bf16.msra.mxu0 %v1465_v23  ;;  %1040 = vmatprep.mubr.bf16.mxu1 %v451_v9  ;;  %v1488_v23 = vld [vmem:[%s1585_s26 + $0x1d8] sm:$0xff]  }
  0x29   : > { %1364 = vmatpush3.bf16.msra.mxu1 %v1466_v24  ;;  %1343 = vmatprep.subr.bf16.mxu0 %v1467_v25  ;;  %v1489_v24 = vld [vmem:[%s1585_s26 + $0x118] sm:$0xff]   ;;  %v420_v1 = vadd.f32 %v395_v52, %v370_v60  ;;  %v423_v3 = vadd.f32 %v407_v39, %v373_v61 }
  0x2a   : > { %1365 = vmatprep.subr.bf16.mxu1 %v1468_v27  ;;  %v1490_v25 = vld [vmem:[%s1585_s26 + $0x198] sm:$0xff]   ;;  %v1491_v27 = vld [vmem:[%s1585_s26 + $0x160] sm:$0xff]  }
  0x2b   : > { %vm428_vm5 = vcmp.gt.f32.partialorder %v420_v1, 0.0  ;;  %vm431_vm6 = vcmp.gt.f32.partialorder %v423_v3, 0.0  ;;  %v439_v6 = vmul.f32 0.2, %v423_v3 }
  0x2c   : > { %1344 = vmatpush3.bf16.msra.mxu0 %v1469_v28  ;;  %v1492_v28 = vld [vmem:[%s1585_s26 + $0x1e0] sm:$0xff]  }
  0x2d   : > { %1366 = vmatpush3.bf16.msra.mxu1 %v1470_v29  ;;  %1345 = vmatprep.subr.bf16.mxu0 %v1471_v30  ;;  %v1493_v29 = vld [vmem:[%s1585_s26 + $0x120] sm:$0xff]  }
  0x2e   : > { %1367 = vmatprep.subr.bf16.mxu1 %v1472_v32  ;;  %v1494_v30 = vld [vmem:[%s1585_s26 + $0x1a0] sm:$0xff]   ;;  %v1495_v32 = vld [vmem:[%s1585_s26 + $0x168] sm:$0xff]  }
  0x30   : > { %1346 = vmatpush3.bf16.msra.mxu0 %v1473_v34  ;;  %v1496_v34 = vld [vmem:[%s1585_s26 + $0x1e8] sm:$0xff]  }
  0x31   : > { %1368 = vmatpush3.bf16.msra.mxu1 %v1474_v36  ;;  %1375 = vmatprep.subr.bf16.mxu0 %v1475_v50  ;;  %v1497_v36 = vld [vmem:[%s1585_s26 + $0x128] sm:$0xff]   ;;  %v399_v50 = vrot.slane %v1645_v40, %v348_v31  ;;  %v436_v40 = vmul.f32 0.2, %v420_v1 }
  0x32   : > { %1397 = vmatprep.subr.bf16.mxu1 %v1476_v55  ;;  %v322_v55 = vunpack.c.l.bf16 %v315_v51 }
  0x33   : > { %1001 = vmatmul.mubr.bf16.vlgmr.msra.gmra.mrb[0].mxu0 %v448_v11  ;;  %v421_v0 = vadd.f32 %v399_v50, %v371_v59  ;;  %v444_v9 = vsel %vm428_vm5, %v420_v1, %v436_v40  ;;  %v447_v11 = vsel %vm431_vm6, %v423_v3, %v439_v6 }
  0x34   : > { %1041 = vmatmul.mubr.bf16.vlgmr.msra.gmra.mrb[0].mxu1 %v450_v14  ;;  %1376 = vmatpush3.bf16.msra.mxu0 %v1477_v7  ;;  %v372_v62 = vmul.f32 %v353_v47, %v322_v55  ;;  %v452_v12 = vpack.c.bf16 %v444_v9, %v444_v9  ;;  %v455_v14 = vpack.c.bf16 %v447_v11, %v447_v11 }
  0x35   : > { %1398 = vmatpush3.bf16.msra.mxu1 %v1478_v8  ;;  %1377 = vmatprep.subr.bf16.mxu0 %v1479_v13  ;;  %vm429_vm4 = vcmp.gt.f32.partialorder %v421_v0, 0.0  ;;  %v437_v5 = vmul.f32 0.2, %v421_v0 }
  0x36   : > { %1399 = vmatprep.subr.bf16.mxu1 %v1480_v15  ;;  %v422_v4 = vadd.f32 %v403_v57, %v372_v62  ;;  %1120 = vmatprep.mubr.bf16.mxu1 %v455_v14 }
  0x37   : > { %v445_v8 = vsel %vm429_vm4, %v421_v0, %v437_v5 }
  0x38   : > { %1378 = vmatpush3.bf16.msra.mxu0 %v1481_v16  ;;  %vm430_vm7 = vcmp.gt.f32.partialorder %v422_v4, 0.0  ;;  %v438_v7 = vmul.f32 0.2, %v422_v4  ;;  %v453_v10 = vpack.c.bf16 %v445_v8, %v445_v8 }
  0x39   : > { %1400 = vmatpush3.bf16.msra.mxu1 %v1482_v17  ;;  %1379 = vmatprep.subr.bf16.mxu0 %v1483_v18 }
  0x3a   : > { %1401 = vmatprep.subr.bf16.mxu1 %v1484_v19  ;;  %v446_v13 = vsel %vm430_vm7, %v422_v4, %v438_v7  ;;  %1080 = vmatprep.mubr.bf16.mxu0 %v453_v10 }
  0x3b   : > { %v454_v15 = vpack.c.bf16 %v446_v13, %v446_v13 }
  0x3c   : > { %1380 = vmatpush3.bf16.msra.mxu0 %v1485_v20 }
  0x3d   : > { %1402 = vmatpush3.bf16.msra.mxu1 %v1486_v21  ;;  %1381 = vmatprep.subr.bf16.mxu0 %v1487_v22 }
  0x3e   : > { %1403 = vmatprep.subr.bf16.mxu1 %v1488_v23 }
  0x40   : > { %1382 = vmatpush3.bf16.msra.mxu0 %v1489_v24 }
  0x41   : > { %1404 = vmatpush3.bf16.msra.mxu1 %v1490_v25  ;;  %1383 = vmatprep.subr.bf16.mxu0 %v1491_v27 }
  0x42   : > { %1405 = vmatprep.subr.bf16.mxu1 %v1492_v28 }
  0x44   : > { %1384 = vmatpush3.bf16.msra.mxu0 %v1493_v29 }
  0x45   : > { %1406 = vmatpush3.bf16.msra.mxu1 %v1494_v30  ;;  %1385 = vmatprep.subr.bf16.mxu0 %v1495_v32 }
  0x46   : > { %1407 = vmatprep.subr.bf16.mxu1 %v1496_v34 }
  0x48   : > { %1386 = vmatpush3.bf16.msra.mxu0 %v1497_v36 }
  0x49   : > { %1408 = vmatpush3.bf16.msra.mxu1 %v1498_v38  ;;  %1387 = vmatprep.subr.bf16.mxu0 %v1499_v41 }
  0x4a   : > { %1409 = vmatprep.subr.bf16.mxu1 %v1500_v42 }
  0x4c   : > { %1388 = vmatpush3.bf16.msra.mxu0 %v1501_v26 }
  0x4d   : > { %1410 = vmatpush3.bf16.msra.mxu1 %v1502_v53  ;;  %1389 = vmatprep.subr.bf16.mxu0 %v1503_v54 }
  0x4e   : > { %1411 = vmatprep.subr.bf16.mxu1 %v1504_v58 }
  0x50   : > { %1390 = vmatpush3.bf16.msra.mxu0 %v1505_v63 }
  0x51   : > { %1412 = vmatpush3.bf16.msra.mxu1 %v1506_v2 }
  0x53   : > { %1081 = vmatmul.mubr.bf16.vlgmr.msra.gmra.mrb[4].mxu0 %v452_v12 }
  0x54   : > { %1121 = vmatmul.mubr.bf16.vlgmr.msra.gmra.mrb[4].mxu1 %v454_v15 }
 0x106   : > { %v1347_v16 = vpop.f32.mrb[0].mxu0 }
 0x107   : > { %v1369_v17 = vpop.f32.mrb[0].mxu1  ;;  %v1348_v18 = vpop.f32.mrb[1].mxu0 }
 0x108   : > { %v1349_v19 = vadd.f32 %v1348_v18, %v1347_v16  ;;  %v1370_v20 = vpop.f32.mrb[1].mxu1  ;;  %v1350_v21 = vpop.f32.mrb[2].mxu0 }
 0x109   : > { %v1371_v22 = vadd.f32 %v1370_v20, %v1369_v17  ;;  %v1372_v23 = vpop.f32.mrb[2].mxu1  ;;  %v1351_v24 = vpop.f32.mrb[3].mxu0 }
 0x10a   : > { %v1373_v25 = vpop.f32.mrb[3].mxu1 }
 0x10b   : > { %v1043_v27 = vadd.f32 %v1371_v22, %v1349_v19 }
 0x126   : > { %v1391_v28 = vpop.f32.mrb[4].mxu0  ;;  %1131 = sbr.rel (%p1324_p6) target bundleno = 303 (0x12f), region = 44 }
 0x127   : > { %v1413_v29 = vpop.f32.mrb[4].mxu1  ;;  %v1392_v30 = vpop.f32.mrb[5].mxu0 }
 0x128   : > { %v1393_v31 = vadd.f32 %v1392_v30, %v1391_v28  ;;  %v1414_v32 = vpop.f32.mrb[5].mxu1  ;;  %v1394_v33 = vpop.f32.mrb[6].mxu0 }
 0x129   : > { %v1415_v34 = vadd.f32 %v1414_v32, %v1413_v29  ;;  %v1416_v35 = vpop.f32.mrb[6].mxu1  ;;  %v1395_v36 = vpop.f32.mrb[7].mxu0 }
 0x12a   : > { %v1083_v37 = vadd.f32 %v1393_v31, %v1043_v27  ;;  %v1417_v38 = vpop.f32.mrb[7].mxu1 }
 0x12c   : > { %v1123_v41 = vadd.f32 %v1415_v34, %v1083_v37 }
 0x12e   : > { %1132 = vst [vmem:[#allocation2] sm:$0xff] %v1123_v41 }
 0x12f PF: > { %p1325_p7 = scmp.eq.s32.totalorder %s1521_s18, 0 }
 0x131   : > { %1136 = sbr.rel (%p1325_p7) target bundleno = 313 (0x139), region = 48 }
 0x135   : > { %v1137_v42 = vld [vmem:[#allocation2] sm:$0xff] (!%p1325_p7) }
 0x136   : > { %v1138_v43 = vadd.f32 (!%p1325_p7), %v1137_v42, %v1123_v41 }
 0x138   : > { %1139 = vst [vmem:[#allocation2] sm:$0xff] %v1138_v43 }
 0x139 PF: > { %p1326_p8 = scmp.ne.s32.totalorder %s1521_s18, 1 }
 0x13a   : > { %v1327_v45 = vld [vmem:[%s1722_s2] ss:$0 sm:$0xff] (!%p1326_p8) }
 0x13b   : > { %1143 = sbr.rel (%p1326_p8) target bundleno = 325 (0x145), region = 52 }
 0x13f   : > { %v1144_v44 = vld [vmem:[#allocation2] sm:$0xff] (!%p1326_p8) }
 0x140   : > { %v1152_v46 = vadd.f32 (!%p1326_p8), %v1327_v45, %v1144_v44 }
 0x142   : > { %v1153_v47 = vpack.c.bf16 %v1152_v46, %v1152_v46 }
 0x144   : > { %1154 = vst [vmem:[%s1725_s5] sm:$0xf] %v1153_v47 }
 0x145 PF: > { %s15_s20 = sadd.s32 1, %s1529_s20   ;;  %s1726_s18 = smov %s1525_s19 }
 0x146   : > { %p12_p9 = scmp.ge.s32.totalorder %s15_s20, 4   ;;  %s1727_s19 = smov %s1729_s21 }
 0x148   :  { %14 = sbr.rel (!%p12_p9) target bundleno = 2 (0x2), region = 91 }

// kernel: _lambda_.19
= control target key start
LH: loop header
LB: loop body
LE: loop exit
PB: predicated region body
PF: predicated region fallthrough
CT: control target
= control target key end

     0   :  { %v28_v37 = vlaneseq  ;;  %s1884_s1 = inlined_call_operand.vmem [shape: bf16[512,512], index: 1, kind: input, shape index: {}]   ;;  %s1885_s0 = inlined_call_operand.vmem [shape: bf16[8,512], index: 0, kind: input, shape index: {}]   ;;  %s1886_s3 = inlined_call_operand.vmem [shape: f32[1,512], index: 3, kind: input, shape index: {}]   ;;  %s1887_s4 = inlined_call_operand.vmem [shape: f32[1,512], index: 4, kind: input, shape index: {}, may-alias: {2,4}]   ;;  %s1888_s2 = inlined_call_operand.vmem [shape: f32[1,512], index: 2, kind: input, shape index: {}, may-alias: {2,4}]   ;;  %s1889_s5 = inlined_call_operand.vmem [shape: bf16[8,512], index: 5, kind: output, shape index: {}]  }
   0x1   :  { %v1229_v0 = vld [vmem:[%s1884_s1 + $0x4] ss:$16 sps:$4 sm:$0xff]   ;;  %v1233_v2 = vld [vmem:[%s1884_s1] ss:$16 sps:$4 sm:$0xff]   ;;  %v21_v57 = vld [vmem:[%s1885_s0 + $0x8] sm:$0xff] }
   0x2   :  { %v1231_v1 = vld [vmem:[%s1884_s1 + $0x204] ss:$16 sps:$4 sm:$0xff]   ;;  %854 = vmatprep.subr.bf16.mxu0 %v1229_v0  ;;  %v1234_v3 = vld [vmem:[%s1884_s1 + $0x200] ss:$16 sps:$4 sm:$0xff]   ;;  %v29_v42 = vshrl.u32 %v28_v37, 7  ;;  %v25_v62 = vunpack.c.h.bf16 %v21_v57 }
   0x3   :  { %895 = vmatprep.subr.bf16.mxu1 %v1231_v1  ;;  %v1235_v4 = vld [vmem:[%s1884_s1 + $0x24] ss:$16 sps:$4 sm:$0xff]   ;;  %855 = vmatpush1.bf16.msra.mxu0 %v1233_v2  ;;  %v1239_v6 = vld [vmem:[%s1884_s1 + $0x20] ss:$16 sps:$4 sm:$0xff]   ;;  %v1330_v37 = vld [vmem:[%s1884_s1 + $0x20c] ss:$16 sps:$4 sm:$0xff]  }
   0x4   :  { %896 = vmatpush1.bf16.msra.mxu1 %v1234_v3  ;;  %v1237_v5 = vld [vmem:[%s1884_s1 + $0x224] ss:$16 sps:$4 sm:$0xff]   ;;  %856 = vmatprep.subr.bf16.mxu0 %v1235_v4  ;;  %v1240_v7 = vld [vmem:[%s1884_s1 + $0x220] ss:$16 sps:$4 sm:$0xff]   ;;  %v1586_v47 = vsub.s32 1, %v29_v42  ;;  %v1591_v49 = vsub.s32 3, %v29_v42 }
   0x5   :  { %897 = vmatprep.subr.bf16.mxu1 %v1237_v5  ;;  %v1241_v8 = vld [vmem:[%s1884_s1 + $0x44] ss:$16 sps:$4 sm:$0xff]   ;;  %v1245_v10 = vld [vmem:[%s1884_s1 + $0x40] ss:$16 sps:$4 sm:$0xff]   ;;  %v1602_v53 = vsub.s32 0, %v29_v42  ;;  %v1613_v58 = vsub.s32 2, %v29_v42 }
   0x6   :  { %v1243_v9 = vld [vmem:[%s1884_s1 + $0x244] ss:$16 sps:$4 sm:$0xff]   ;;  %v1246_v11 = vld [vmem:[%s1884_s1 + $0x240] ss:$16 sps:$4 sm:$0xff]   ;;  %v1333_v42 = vld [vmem:[%s1884_s1 + $0x2c] ss:$16 sps:$4 sm:$0xff]  }
   0x7   :  { %857 = vmatpush1.bf16.msra.mxu0 %v1239_v6  ;;  %v1247_v12 = vld [vmem:[%s1884_s1 + $0x64] ss:$16 sps:$4 sm:$0xff]   ;;  %v1251_v14 = vld [vmem:[%s1884_s1 + $0x60] ss:$16 sps:$4 sm:$0xff]   ;;  %v24_v6 = vunpack.c.l.bf16 %v21_v57  ;;  %v1351_v57 = vld [vmem:[%s1884_s1 + $0x8c] ss:$16 sps:$4 sm:$0xff]  }
   0x8   :  { %898 = vmatpush1.bf16.msra.mxu1 %v1240_v7  ;;  %858 = vmatprep.subr.bf16.mxu0 %v1241_v8  ;;  %v1249_v13 = vld [vmem:[%s1884_s1 + $0x264] ss:$16 sps:$4 sm:$0xff]   ;;  %v1252_v15 = vld [vmem:[%s1884_s1 + $0x260] ss:$16 sps:$4 sm:$0xff]  }
   0x9   :  { %899 = vmatprep.subr.bf16.mxu1 %v1243_v9  ;;  %v1253_v16 = vld [vmem:[%s1884_s1 + $0x84] ss:$16 sps:$4 sm:$0xff]   ;;  %v1257_v18 = vld [vmem:[%s1884_s1 + $0x80] ss:$16 sps:$4 sm:$0xff]  }
   0xa   :  { %v1255_v17 = vld [vmem:[%s1884_s1 + $0x284] ss:$16 sps:$4 sm:$0xff]   ;;  %v1258_v19 = vld [vmem:[%s1884_s1 + $0x280] ss:$16 sps:$4 sm:$0xff]  }
   0xb   :  { %859 = vmatpush1.bf16.msra.mxu0 %v1245_v10  ;;  %v1259_v20 = vld [vmem:[%s1884_s1 + $0xa4] ss:$16 sps:$4 sm:$0xff]   ;;  %v1263_v22 = vld [vmem:[%s1884_s1 + $0xa0] ss:$16 sps:$4 sm:$0xff]  }
   0xc   :  { %900 = vmatpush1.bf16.msra.mxu1 %v1246_v11  ;;  %860 = vmatprep.subr.bf16.mxu0 %v1247_v12  ;;  %v1261_v21 = vld [vmem:[%s1884_s1 + $0x2a4] ss:$16 sps:$4 sm:$0xff]   ;;  %v1264_v23 = vld [vmem:[%s1884_s1 + $0x2a0] ss:$16 sps:$4 sm:$0xff]  }
   0xd   :  { %901 = vmatprep.subr.bf16.mxu1 %v1249_v13  ;;  %v1265_v24 = vld [vmem:[%s1884_s1 + $0xc4] ss:$16 sps:$4 sm:$0xff]   ;;  %v1269_v26 = vld [vmem:[%s1884_s1 + $0xc0] ss:$16 sps:$4 sm:$0xff]  }
   0xe   :  { %v1267_v25 = vld [vmem:[%s1884_s1 + $0x2c4] ss:$16 sps:$4 sm:$0xff]   ;;  %v1270_v27 = vld [vmem:[%s1884_s1 + $0x2c0] ss:$16 sps:$4 sm:$0xff]  }
   0xf   :  { %861 = vmatpush1.bf16.msra.mxu0 %v1251_v14  ;;  %v1271_v28 = vld [vmem:[%s1884_s1 + $0xe4] ss:$16 sps:$4 sm:$0xff]   ;;  %v1275_v30 = vld [vmem:[%s1884_s1 + $0xe0] ss:$16 sps:$4 sm:$0xff]  }
  0x10   :  { %902 = vmatpush1.bf16.msra.mxu1 %v1252_v15  ;;  %862 = vmatprep.subr.bf16.mxu0 %v1253_v16  ;;  %v1273_v29 = vld [vmem:[%s1884_s1 + $0x2e4] ss:$16 sps:$4 sm:$0xff]   ;;  %v1276_v31 = vld [vmem:[%s1884_s1 + $0x2e0] ss:$16 sps:$4 sm:$0xff]  }
  0x11   :  { %903 = vmatprep.subr.bf16.mxu1 %v1255_v17  ;;  %v1277_v32 = vld [vmem:[%s1884_s1 + $0x104] ss:$16 sps:$4 sm:$0xff]   ;;  %v1281_v34 = vld [vmem:[%s1884_s1 + $0x100] ss:$16 sps:$4 sm:$0xff]  }
  0x12   :  { %v1279_v33 = vld [vmem:[%s1884_s1 + $0x304] ss:$16 sps:$4 sm:$0xff]   ;;  %v1282_v35 = vld [vmem:[%s1884_s1 + $0x300] ss:$16 sps:$4 sm:$0xff]  }
  0x13   :  { %863 = vmatpush1.bf16.msra.mxu0 %v1257_v18  ;;  %v1283_v36 = vld [vmem:[%s1884_s1 + $0x124] ss:$16 sps:$4 sm:$0xff]   ;;  %v1287_v39 = vld [vmem:[%s1884_s1 + $0x120] ss:$16 sps:$4 sm:$0xff]  }
  0x14   :  { %904 = vmatpush1.bf16.msra.mxu1 %v1258_v19  ;;  %864 = vmatprep.subr.bf16.mxu0 %v1259_v20  ;;  %v1285_v38 = vld [vmem:[%s1884_s1 + $0x324] ss:$16 sps:$4 sm:$0xff]   ;;  %v1288_v40 = vld [vmem:[%s1884_s1 + $0x320] ss:$16 sps:$4 sm:$0xff]  }
  0x15   :  { %905 = vmatprep.subr.bf16.mxu1 %v1261_v21  ;;  %v1289_v41 = vld [vmem:[%s1884_s1 + $0x144] ss:$16 sps:$4 sm:$0xff]   ;;  %v1293_v44 = vld [vmem:[%s1884_s1 + $0x140] ss:$16 sps:$4 sm:$0xff]  }
  0x16   :  { %v1291_v43 = vld [vmem:[%s1884_s1 + $0x344] ss:$16 sps:$4 sm:$0xff]   ;;  %v1294_v45 = vld [vmem:[%s1884_s1 + $0x340] ss:$16 sps:$4 sm:$0xff]  }
  0x17   :  { %865 = vmatpush1.bf16.msra.mxu0 %v1263_v22  ;;  %v1295_v46 = vld [vmem:[%s1884_s1 + $0x164] ss:$16 sps:$4 sm:$0xff]   ;;  %v1299_v50 = vld [vmem:[%s1884_s1 + $0x160] ss:$16 sps:$4 sm:$0xff]  }
  0x18   :  { %906 = vmatpush1.bf16.msra.mxu1 %v1264_v23  ;;  %866 = vmatprep.subr.bf16.mxu0 %v1265_v24  ;;  %v1297_v48 = vld [vmem:[%s1884_s1 + $0x364] ss:$16 sps:$4 sm:$0xff]   ;;  %v1300_v51 = vld [vmem:[%s1884_s1 + $0x360] ss:$16 sps:$4 sm:$0xff]  }
  0x19   :  { %907 = vmatprep.subr.bf16.mxu1 %v1267_v25  ;;  %v20_v52 = vld [vmem:[%s1885_s0] sm:$0xff] }
  0x1a   :  { %v23_v54 = vunpack.c.h.bf16 %v20_v52  ;;  %v26_v55 = vld [vmem:[%s1886_s3] sm:$0xf]  ;;  %v1301_v59 = vld [vmem:[%s1884_s1 + $0x184] ss:$16 sps:$4 sm:$0xff]   ;;  %v22_v2 = vunpack.c.l.bf16 %v20_v52  ;;  %v1345_v52 = vld [vmem:[%s1884_s1 + $0x6c] ss:$16 sps:$4 sm:$0xff]  }
  0x1b   :  { %867 = vmatpush1.bf16.msra.mxu0 %v1269_v26  ;;  %v52_v56 = vld [vmem:[%s1887_s4] sm:$0xf]  ;;  %v35_v60 = vrot.slane %v26_v55, %v1586_v47  ;;  %v1303_v63 = vld [vmem:[%s1884_s1 + $0x384] ss:$16 sps:$4 sm:$0xff]   ;;  %v43_v0 = vrot.slane %v26_v55, %v1591_v49  ;;  %v31_v8 = vrot.slane %v26_v55, %v1602_v53  ;;  %v39_v9 = vrot.slane %v26_v55, %v1613_v58  ;;  %v1343_v55 = vld [vmem:[%s1884_s1 + $0x68] ss:$16 sps:$4 sm:$0xff]  }
  0x1c   :  { %908 = vmatpush1.bf16.msra.mxu1 %v1270_v27  ;;  %868 = vmatprep.subr.bf16.mxu0 %v1271_v28  ;;  %v61_v61 = vrot.slane %v52_v56, %v1586_v47  ;;  %v69_v1 = vrot.slane %v52_v56, %v1591_v49  ;;  %v1305_v4 = vld [vmem:[%s1884_s1 + $0x180] ss:$16 sps:$4 sm:$0xff]   ;;  %v1307_v10 = vld [vmem:[%s1884_s1 + $0x1a4] ss:$16 sps:$4 sm:$0xff]   ;;  %v57_v15 = vrot.slane %v52_v56, %v1602_v53 }
  0x1d   :  { %909 = vmatprep.subr.bf16.mxu1 %v1273_v29  ;;  %v49_v3 = vmul.f32 %v35_v60, %v23_v54  ;;  %v1306_v5 = vld [vmem:[%s1884_s1 + $0x380] ss:$16 sps:$4 sm:$0xff]   ;;  %v51_v7 = vmul.f32 %v43_v0, %v25_v62  ;;  %v1309_v12 = vld [vmem:[%s1884_s1 + $0x3a4] ss:$16 sps:$4 sm:$0xff]   ;;  %v48_v18 = vmul.f32 %v31_v8, %v22_v2  ;;  %v50_v19 = vmul.f32 %v39_v9, %v24_v6  ;;  %v1348_v54 = vld [vmem:[%s1884_s1 + $0x26c] ss:$16 sps:$4 sm:$0xff]  }
  0x1e   :  { %v1311_v16 = vld [vmem:[%s1884_s1 + $0x1a0] ss:$16 sps:$4 sm:$0xff]   ;;  %v65_v20 = vrot.slane %v52_v56, %v1613_v58  ;;  %v1313_v22 = vld [vmem:[%s1884_s1 + $0x1c4] ss:$16 sps:$4 sm:$0xff]   ;;  %v1346_v56 = vld [vmem:[%s1884_s1 + $0x268] ss:$16 sps:$4 sm:$0xff]  }
  0x1f   :  { %869 = vmatpush1.bf16.msra.mxu0 %v1275_v30  ;;  %v75_v11 = vadd.f32 %v61_v61, %v49_v3  ;;  %v77_v13 = vadd.f32 %v69_v1, %v51_v7  ;;  %v1312_v21 = vld [vmem:[%s1884_s1 + $0x3a0] ss:$16 sps:$4 sm:$0xff]   ;;  %v1315_v24 = vld [vmem:[%s1884_s1 + $0x3c4] ss:$16 sps:$4 sm:$0xff]   ;;  %v74_v28 = vadd.f32 %v57_v15, %v48_v18  ;;  %v1349_v60 = vld [vmem:[%s1884_s1 + $0x88] ss:$16 sps:$4 sm:$0xff]  }
  0x20   :  { %910 = vmatpush1.bf16.msra.mxu1 %v1276_v31  ;;  %870 = vmatprep.subr.bf16.mxu0 %v1277_v32  ;;  %v1317_v26 = vld [vmem:[%s1884_s1 + $0x1c0] ss:$16 sps:$4 sm:$0xff]   ;;  %v76_v29 = vadd.f32 %v65_v20, %v50_v19  ;;  %v1319_v30 = vld [vmem:[%s1884_s1 + $0x1e4] ss:$16 sps:$4 sm:$0xff]   ;;  %v1352_v61 = vld [vmem:[%s1884_s1 + $0x288] ss:$16 sps:$4 sm:$0xff]  }
  0x21   :  { %911 = vmatprep.subr.bf16.mxu1 %v1279_v33  ;;  %v79_v14 = vmax.f32 %v75_v11, 0.0  ;;  %v81_v17 = vmax.f32 %v77_v13, 0.0  ;;  %v1318_v27 = vld [vmem:[%s1884_s1 + $0x3c0] ss:$16 sps:$4 sm:$0xff]   ;;  %v1321_v31 = vld [vmem:[%s1884_s1 + $0x3e4] ss:$16 sps:$4 sm:$0xff]  }
  0x22   :  { %v1323_v32 = vld [vmem:[%s1884_s1 + $0x1e0] ss:$16 sps:$4 sm:$0xff]   ;;  %v1357_v62 = vld [vmem:[%s1884_s1 + $0xac] ss:$16 sps:$4 sm:$0xff]   ;;  %v1355_v0 = vld [vmem:[%s1884_s1 + $0xa8] ss:$16 sps:$4 sm:$0xff]  }
  0x23   :  { %871 = vmatpush1.bf16.msra.mxu0 %v1281_v34  ;;  %v83_v23 = vpack.c.bf16 %v79_v14, %v79_v14  ;;  %v85_v25 = vpack.c.bf16 %v81_v17, %v81_v17  ;;  %v1324_v33 = vld [vmem:[%s1884_s1 + $0x3e0] ss:$16 sps:$4 sm:$0xff]   ;;  %v78_v34 = vmax.f32 %v74_v28, 0.0  ;;  %v1358_v1 = vld [vmem:[%s1884_s1 + $0x2a8] ss:$16 sps:$4 sm:$0xff]  }
  0x24   :  { %912 = vmatpush1.bf16.msra.mxu1 %v1282_v35  ;;  %872 = vmatprep.subr.bf16.mxu0 %v1283_v36  ;;  %v80_v35 = vmax.f32 %v76_v29, 0.0  ;;  %v1327_v36 = vld [vmem:[%s1884_s1 + $0xc] ss:$16 sps:$4 sm:$0xff]   ;;  %v1367_v8 = vld [vmem:[%s1884_s1 + $0xe8] ss:$16 sps:$4 sm:$0xff]  }
  0x25   :  { %913 = vmatprep.subr.bf16.mxu1 %v1285_v38  ;;  %886 = vmatprep.mubr.bf16.mxu0 %v83_v23  ;;  %v1677_v38 = vpack.c.bf16 %v78_v34, %v78_v34  ;;  %v1363_v2 = vld [vmem:[%s1884_s1 + $0xcc] ss:$16 sps:$4 sm:$0xff]   ;;  %v1370_v9 = vld [vmem:[%s1884_s1 + $0x2e8] ss:$16 sps:$4 sm:$0xff]  }
  0x26   :  { %927 = vmatprep.mubr.bf16.mxu1 %v85_v25  ;;  %v1366_v3 = vld [vmem:[%s1884_s1 + $0x2cc] ss:$16 sps:$4 sm:$0xff]   ;;  %v1376_v13 = vld [vmem:[%s1884_s1 + $0x308] ss:$16 sps:$4 sm:$0xff]  }
  0x27   :  { %873 = vmatpush1.bf16.msra.mxu0 %v1287_v39  ;;  %v1679_v39 = vpack.c.bf16 %v80_v35, %v80_v35  ;;  %v1369_v6 = vld [vmem:[%s1884_s1 + $0xec] ss:$16 sps:$4 sm:$0xff]   ;;  %v1382_v17 = vld [vmem:[%s1884_s1 + $0x328] ss:$16 sps:$4 sm:$0xff]  }
  0x28   :  { %914 = vmatpush1.bf16.msra.mxu1 %v1288_v40  ;;  %874 = vmatprep.subr.bf16.mxu0 %v1289_v41  ;;  %v1325_v40 = vld [vmem:[%s1884_s1 + $0x8] ss:$16 sps:$4 sm:$0xff]   ;;  %v1372_v7 = vld [vmem:[%s1884_s1 + $0x2ec] ss:$16 sps:$4 sm:$0xff]  }
  0x29   :  { %915 = vmatprep.subr.bf16.mxu1 %v1291_v43  ;;  %v1328_v41 = vld [vmem:[%s1884_s1 + $0x208] ss:$16 sps:$4 sm:$0xff]   ;;  %v1336_v43 = vld [vmem:[%s1884_s1 + $0x22c] ss:$16 sps:$4 sm:$0xff]  }
  0x2a   :  { %v1378_v11 = vld [vmem:[%s1884_s1 + $0x30c] ss:$16 sps:$4 sm:$0xff]   ;;  %v1385_v20 = vld [vmem:[%s1884_s1 + $0x148] ss:$16 sps:$4 sm:$0xff]  }
  0x2b   :  { %875 = vmatpush1.bf16.msra.mxu0 %v1293_v44  ;;  %v1331_v44 = vld [vmem:[%s1884_s1 + $0x28] ss:$16 sps:$4 sm:$0xff]   ;;  %v1381_v14 = vld [vmem:[%s1884_s1 + $0x12c] ss:$16 sps:$4 sm:$0xff]  }
  0x2c   :  { %916 = vmatpush1.bf16.msra.mxu1 %v1294_v45  ;;  %876 = vmatprep.subr.bf16.mxu0 %v1295_v46  ;;  %v1334_v45 = vld [vmem:[%s1884_s1 + $0x228] ss:$16 sps:$4 sm:$0xff]   ;;  %v1339_v46 = vld [vmem:[%s1884_s1 + $0x4c] ss:$16 sps:$4 sm:$0xff]  }
  0x2d   :  { %917 = vmatprep.subr.bf16.mxu1 %v1297_v48  ;;  %v1342_v48 = vld [vmem:[%s1884_s1 + $0x24c] ss:$16 sps:$4 sm:$0xff]   ;;  %v1397_v28 = vld [vmem:[%s1884_s1 + $0x188] ss:$16 sps:$4 sm:$0xff]  }
  0x2e   :  { %v1384_v15 = vld [vmem:[%s1884_s1 + $0x32c] ss:$16 sps:$4 sm:$0xff]   ;;  %v1400_v29 = vld [vmem:[%s1884_s1 + $0x388] ss:$16 sps:$4 sm:$0xff]  }
  0x2f   :  { %877 = vmatpush1.bf16.msra.mxu0 %v1299_v50  ;;  %v1337_v50 = vld [vmem:[%s1884_s1 + $0x48] ss:$16 sps:$4 sm:$0xff]   ;;  %v1387_v18 = vld [vmem:[%s1884_s1 + $0x14c] ss:$16 sps:$4 sm:$0xff]  }
  0x30   :  { %918 = vmatpush1.bf16.msra.mxu1 %v1300_v51  ;;  %878 = vmatprep.subr.bf16.mxu0 %v1301_v59  ;;  %v1340_v51 = vld [vmem:[%s1884_s1 + $0x248] ss:$16 sps:$4 sm:$0xff]   ;;  %v1354_v59 = vld [vmem:[%s1884_s1 + $0x28c] ss:$16 sps:$4 sm:$0xff]  }
  0x31   :  { %919 = vmatprep.subr.bf16.mxu1 %v1303_v63  ;;  %v1360_v63 = vld [vmem:[%s1884_s1 + $0x2ac] ss:$16 sps:$4 sm:$0xff]  }
  0x32   :  { %v1390_v19 = vld [vmem:[%s1884_s1 + $0x34c] ss:$16 sps:$4 sm:$0xff]  }
  0x33   :  { %879 = vmatpush1.bf16.msra.mxu0 %v1305_v4  ;;  %v1361_v4 = vld [vmem:[%s1884_s1 + $0xc8] ss:$16 sps:$4 sm:$0xff]   ;;  %v1411_v34 = vld [vmem:[%s1884_s1 + $0x1cc] ss:$16 sps:$4 sm:$0xff]  }
  0x34   :  { %920 = vmatpush1.bf16.msra.mxu1 %v1306_v5  ;;  %880 = vmatprep.subr.bf16.mxu0 %v1307_v10  ;;  %v1364_v5 = vld [vmem:[%s1884_s1 + $0x2c8] ss:$16 sps:$4 sm:$0xff]   ;;  %v1375_v10 = vld [vmem:[%s1884_s1 + $0x10c] ss:$16 sps:$4 sm:$0xff]  }
  0x35   :  { %921 = vmatprep.subr.bf16.mxu1 %v1309_v12  ;;  %v1373_v12 = vld [vmem:[%s1884_s1 + $0x108] ss:$16 sps:$4 sm:$0xff]   ;;  %v1414_v35 = vld [vmem:[%s1884_s1 + $0x3cc] ss:$16 sps:$4 sm:$0xff]  }
  0x37   :  { %881 = vmatpush1.bf16.msra.mxu0 %v1311_v16  ;;  %v1379_v16 = vld [vmem:[%s1884_s1 + $0x128] ss:$16 sps:$4 sm:$0xff]  }
  0x38   :  { %922 = vmatpush1.bf16.msra.mxu1 %v1312_v21  ;;  %882 = vmatprep.subr.bf16.mxu0 %v1313_v22  ;;  %v1388_v21 = vld [vmem:[%s1884_s1 + $0x348] ss:$16 sps:$4 sm:$0xff]   ;;  %v1393_v22 = vld [vmem:[%s1884_s1 + $0x16c] ss:$16 sps:$4 sm:$0xff]  }
  0x39   :  { %923 = vmatprep.subr.bf16.mxu1 %v1315_v24  ;;  %v1391_v24 = vld [vmem:[%s1884_s1 + $0x168] ss:$16 sps:$4 sm:$0xff]  }
  0x3b   :  { %883 = vmatpush1.bf16.msra.mxu0 %v1317_v26  ;;  %v1399_v26 = vld [vmem:[%s1884_s1 + $0x18c] ss:$16 sps:$4 sm:$0xff]  }
  0x3c   :  { %924 = vmatpush1.bf16.msra.mxu1 %v1318_v27  ;;  %884 = vmatprep.subr.bf16.mxu0 %v1319_v30  ;;  %v1402_v27 = vld [vmem:[%s1884_s1 + $0x38c] ss:$16 sps:$4 sm:$0xff]  }
  0x3d   :  { %925 = vmatprep.subr.bf16.mxu1 %v1321_v31  ;;  %v1405_v30 = vld [vmem:[%s1884_s1 + $0x1ac] ss:$16 sps:$4 sm:$0xff]  }
  0x3e   :  { %v1408_v31 = vld [vmem:[%s1884_s1 + $0x3ac] ss:$16 sps:$4 sm:$0xff]  }
  0x3f   :  { %885 = vmatpush1.bf16.msra.mxu0 %v1323_v32  ;;  %v1403_v32 = vld [vmem:[%s1884_s1 + $0x1a8] ss:$16 sps:$4 sm:$0xff]  }
  0x40   :  { %926 = vmatpush1.bf16.msra.mxu1 %v1324_v33  ;;  %936 = vmatprep.subr.bf16.mxu0 %v1327_v36  ;;  %v1406_v33 = vld [vmem:[%s1884_s1 + $0x3a8] ss:$16 sps:$4 sm:$0xff]  }
  0x41   :  { %977 = vmatprep.subr.bf16.mxu1 %v1330_v37  ;;  %v1409_v36 = vld [vmem:[%s1884_s1 + $0x1c8] ss:$16 sps:$4 sm:$0xff]  }
  0x42   :  { %887 = vmatmul.mubr.bf16.vlgmr.msra.gmra.mrb[0].mxu0 %v1677_v38  ;;  %v1412_v37 = vld [vmem:[%s1884_s1 + $0x3c8] ss:$16 sps:$4 sm:$0xff]  }
  0x43   :  { %928 = vmatmul.mubr.bf16.vlgmr.msra.gmra.mrb[0].mxu1 %v1679_v39  ;;  %937 = vmatpush1.bf16.msra.mxu0 %v1325_v40  ;;  %v1417_v40 = vld [vmem:[%s1884_s1 + $0x1ec] ss:$16 sps:$4 sm:$0xff]  }
  0x44   :  { %978 = vmatpush1.bf16.msra.mxu1 %v1328_v41  ;;  %938 = vmatprep.subr.bf16.mxu0 %v1333_v42  ;;  %v1420_v41 = vld [vmem:[%s1884_s1 + $0x3ec] ss:$16 sps:$4 sm:$0xff]   ;;  %v1415_v42 = vld [vmem:[%s1884_s1 + $0x1e8] ss:$16 sps:$4 sm:$0xff]  }
  0x45   :  { %979 = vmatprep.subr.bf16.mxu1 %v1336_v43  ;;  %968 = vmatprep.mubr.bf16.mxu0 %v83_v23  ;;  %v1396_v23 = vld [vmem:[%s1884_s1 + $0x36c] ss:$16 sps:$4 sm:$0xff]   ;;  %v1418_v43 = vld [vmem:[%s1884_s1 + $0x3e8] ss:$16 sps:$4 sm:$0xff]  }
  0x46   :  { %1009 = vmatprep.mubr.bf16.mxu1 %v85_v25  ;;  %v1394_v25 = vld [vmem:[%s1884_s1 + $0x368] ss:$16 sps:$4 sm:$0xff]  }
  0x47   :  { %939 = vmatpush1.bf16.msra.mxu0 %v1331_v44  ;;  %v1049_v44 = vld [vmem:[%s1888_s2] sm:$0xf] }
  0x48   :  { %980 = vmatpush1.bf16.msra.mxu1 %v1334_v45  ;;  %940 = vmatprep.subr.bf16.mxu0 %v1339_v46  ;;  %v1054_v45 = vrot.slane %v1049_v44, %v1602_v53  ;;  %v1062_v53 = vrot.slane %v1049_v44, %v1613_v58 }
  0x49   :  { %981 = vmatprep.subr.bf16.mxu1 %v1342_v48 }
  0x4b   :  { %941 = vmatpush1.bf16.msra.mxu0 %v1337_v50  ;;  %v1058_v50 = vrot.slane %v1049_v44, %v1586_v47  ;;  %v1066_v47 = vrot.slane %v1049_v44, %v1591_v49 }
  0x4c   :  { %982 = vmatpush1.bf16.msra.mxu1 %v1340_v51  ;;  %942 = vmatprep.subr.bf16.mxu0 %v1345_v52 }
  0x4d   :  { %983 = vmatprep.subr.bf16.mxu1 %v1348_v54 }
  0x4f   :  { %943 = vmatpush1.bf16.msra.mxu0 %v1343_v55 }
  0x50   :  { %984 = vmatpush1.bf16.msra.mxu1 %v1346_v56  ;;  %944 = vmatprep.subr.bf16.mxu0 %v1351_v57 }
  0x51   :  { %985 = vmatprep.subr.bf16.mxu1 %v1354_v59 }
  0x53   :  { %945 = vmatpush1.bf16.msra.mxu0 %v1349_v60 }
  0x54   :  { %986 = vmatpush1.bf16.msra.mxu1 %v1352_v61  ;;  %946 = vmatprep.subr.bf16.mxu0 %v1357_v62 }
  0x55   :  { %987 = vmatprep.subr.bf16.mxu1 %v1360_v63 }
  0x57   :  { %947 = vmatpush1.bf16.msra.mxu0 %v1355_v0 }
  0x58   :  { %988 = vmatpush1.bf16.msra.mxu1 %v1358_v1  ;;  %948 = vmatprep.subr.bf16.mxu0 %v1363_v2 }
  0x59   :  { %989 = vmatprep.subr.bf16.mxu1 %v1366_v3 }
  0x5b   :  { %949 = vmatpush1.bf16.msra.mxu0 %v1361_v4 }
  0x5c   :  { %990 = vmatpush1.bf16.msra.mxu1 %v1364_v5  ;;  %950 = vmatprep.subr.bf16.mxu0 %v1369_v6 }
  0x5d   :  { %991 = vmatprep.subr.bf16.mxu1 %v1372_v7 }
  0x5f   :  { %951 = vmatpush1.bf16.msra.mxu0 %v1367_v8 }
  0x60   :  { %992 = vmatpush1.bf16.msra.mxu1 %v1370_v9  ;;  %952 = vmatprep.subr.bf16.mxu0 %v1375_v10 }
  0x61   :  { %993 = vmatprep.subr.bf16.mxu1 %v1378_v11 }
  0x63   :  { %953 = vmatpush1.bf16.msra.mxu0 %v1373_v12 }
  0x64   :  { %994 = vmatpush1.bf16.msra.mxu1 %v1376_v13  ;;  %954 = vmatprep.subr.bf16.mxu0 %v1381_v14 }
  0x65   :  { %995 = vmatprep.subr.bf16.mxu1 %v1384_v15 }
  0x67   :  { %955 = vmatpush1.bf16.msra.mxu0 %v1379_v16 }
  0x68   :  { %996 = vmatpush1.bf16.msra.mxu1 %v1382_v17  ;;  %956 = vmatprep.subr.bf16.mxu0 %v1387_v18 }
  0x69   :  { %997 = vmatprep.subr.bf16.mxu1 %v1390_v19 }
  0x6b   :  { %957 = vmatpush1.bf16.msra.mxu0 %v1385_v20 }
  0x6c   :  { %998 = vmatpush1.bf16.msra.mxu1 %v1388_v21  ;;  %958 = vmatprep.subr.bf16.mxu0 %v1393_v22 }
  0x6d   :  { %999 = vmatprep.subr.bf16.mxu1 %v1396_v23 }
  0x6f   :  { %959 = vmatpush1.bf16.msra.mxu0 %v1391_v24 }
  0x70   :  { %1000 = vmatpush1.bf16.msra.mxu1 %v1394_v25  ;;  %960 = vmatprep.subr.bf16.mxu0 %v1399_v26 }
  0x71   :  { %1001 = vmatprep.subr.bf16.mxu1 %v1402_v27 }
  0x73   :  { %961 = vmatpush1.bf16.msra.mxu0 %v1397_v28 }
  0x74   :  { %1002 = vmatpush1.bf16.msra.mxu1 %v1400_v29  ;;  %962 = vmatprep.subr.bf16.mxu0 %v1405_v30 }
  0x75   :  { %1003 = vmatprep.subr.bf16.mxu1 %v1408_v31 }
  0x77   :  { %963 = vmatpush1.bf16.msra.mxu0 %v1403_v32 }
  0x78   :  { %1004 = vmatpush1.bf16.msra.mxu1 %v1406_v33  ;;  %964 = vmatprep.subr.bf16.mxu0 %v1411_v34 }
  0x79   :  { %1005 = vmatprep.subr.bf16.mxu1 %v1414_v35 }
  0x7b   :  { %965 = vmatpush1.bf16.msra.mxu0 %v1409_v36 }
  0x7c   :  { %1006 = vmatpush1.bf16.msra.mxu1 %v1412_v37  ;;  %966 = vmatprep.subr.bf16.mxu0 %v1417_v40 }
  0x7d   :  { %1007 = vmatprep.subr.bf16.mxu1 %v1420_v41 }
  0x7f   :  { %967 = vmatpush1.bf16.msra.mxu0 %v1415_v42 }
  0x80   :  { %1008 = vmatpush1.bf16.msra.mxu1 %v1418_v43 }
  0x82   :  { %969 = vmatmul.mubr.bf16.vlgmr.msra.gmra.mrb[4].mxu0 %v1677_v38 }
  0x83   :  { %1010 = vmatmul.mubr.bf16.vlgmr.msra.gmra.mrb[4].mxu1 %v1679_v39 }
 0x115   :  { %v888_v46 = vpop.f32.mrb[0].mxu0 }
 0x116   :  { %v929_v48 = vpop.f32.mrb[0].mxu1  ;;  %v890_v52 = vpop.f32.mrb[1].mxu0 }
 0x117   :  { %v930_v51 = vadd.f32 %v929_v48, %v888_v46  ;;  %v931_v54 = vpop.f32.mrb[1].mxu1  ;;  %v892_v56 = vpop.f32.mrb[2].mxu0 }
 0x118   :  { %v932_v55 = vadd.f32 %v931_v54, %v890_v52  ;;  %v933_v57 = vpop.f32.mrb[2].mxu1  ;;  %v893_v38 = vpop.f32.mrb[3].mxu0 }
 0x119   :  { %v1071_v59 = vadd.f32 %v1054_v45, %v930_v51  ;;  %v934_v60 = vpop.f32.mrb[3].mxu1 }
 0x11a   :  { %v1072_v39 = vadd.f32 %v1058_v50, %v932_v55 }
 0x11c   :  { %v1227_v61 = vpack.c.bf16 %v1072_v39, %v1071_v59 }
 0x11e   :  { %1091 = vst [vmem:[%s1889_s5] sm:$0xff] %v1227_v61 }
 0x155   :  { %v970_v62 = vpop.f32.mrb[4].mxu0 }
 0x156   :  { %v1011_v63 = vpop.f32.mrb[4].mxu1  ;;  %v972_v1 = vpop.f32.mrb[5].mxu0 }
 0x157   :  { %v1012_v0 = vadd.f32 %v1011_v63, %v970_v62  ;;  %v1013_v2 = vpop.f32.mrb[5].mxu1  ;;  %v974_v4 = vpop.f32.mrb[6].mxu0 }
 0x158   :  { %v1014_v3 = vadd.f32 %v1013_v2, %v972_v1  ;;  %v1015_v5 = vpop.f32.mrb[6].mxu1  ;;  %v975_v7 = vpop.f32.mrb[7].mxu0 }
 0x159   :  { %v1073_v6 = vadd.f32 %v1062_v53, %v1012_v0  ;;  %v1016_v8 = vpop.f32.mrb[7].mxu1 }
 0x15a   :  { %v1074_v9 = vadd.f32 %v1066_v47, %v1014_v3 }
 0x15c   :  { %v1228_v10 = vpack.c.bf16 %v1074_v9, %v1073_v6 }
 0x15e   :  { %1092 = vst [vmem:[%s1889_s5 + $0x8] sm:$0xff] %v1228_v10 }

// kernel: _lambda_.20
= control target key start
LH: loop header
LB: loop body
LE: loop exit
PB: predicated region body
PF: predicated region fallthrough
CT: control target
= control target key end

     0   :  { %v144_v7 = vmov 1966171168   ;;  %v49_v9 = vlaneseq  ;;  %s169_s0 = inlined_call_operand.vmem [shape: bf16[8,256], index: 0, kind: input, shape index: {}]   ;;  %s170_s1 = inlined_call_operand.vmem [shape: f32[1,256], index: 1, kind: output, shape index: {0}]   ;;  %s171_s2 = inlined_call_operand.vmem [shape: f32[1,256], index: 2, kind: output, shape index: {1}]  }
   0x1   :  { %v10_v0 = vld [vmem:[%s169_s0] sm:$0xff]  ;;  %v47_v8 = vunpack.c.l.s4 %v144_v7 }
   0x2   :  { %v11_v1 = vunpack.c.l.bf16 %v10_v0  ;;  %v12_v2 = vunpack.c.h.bf16 %v10_v0  ;;  %v50_v19 = vshrl.u32 %v49_v9, 7  ;;  %vm63_vm0 = vcmp.lt.s32.totalorder %v49_v9, 256 }
   0x3   :  { %v48_v18 = vunpack.c.0.s8 %v47_v8 }
   0x4   :  { %v13_v3 = vrot.slane %v11_v1, 4  ;;  %v19_v4 = vrot.slane %v12_v2, 4  ;;  %v25_v5 = vmul.f32 %v11_v1, %v11_v1  ;;  %v26_v6 = vmul.f32 %v12_v2, %v12_v2 }
   0x5   :  { %v51_v28 = vsub.s32 %v48_v18, %v50_v19 }
   0x6   :  { %v14_v10 = vadd.f32 %v13_v3, %v11_v1  ;;  %v20_v11 = vadd.f32 %v19_v4, %v12_v2  ;;  %v27_v12 = vrot.slane %v25_v5, 4  ;;  %v33_v13 = vrot.slane %v26_v6, 4 }
   0x8   :  { %v15_v14 = vrot.slane %v14_v10, 2  ;;  %v21_v15 = vrot.slane %v20_v11, 2  ;;  %v28_v16 = vadd.f32 %v27_v12, %v25_v5  ;;  %v34_v17 = vadd.f32 %v33_v13, %v26_v6 }
   0xa   :  { %v16_v20 = vadd.f32 %v15_v14, %v14_v10  ;;  %v22_v21 = vadd.f32 %v21_v15, %v20_v11  ;;  %v29_v22 = vrot.slane %v28_v16, 2  ;;  %v35_v23 = vrot.slane %v34_v17, 2 }
   0xc   :  { %v17_v24 = vrot.slane %v16_v20, 1  ;;  %v23_v25 = vrot.slane %v22_v21, 1  ;;  %v30_v26 = vadd.f32 %v29_v22, %v28_v16  ;;  %v36_v27 = vadd.f32 %v35_v23, %v34_v17 }
   0xe   :  { %v18_v29 = vadd.f32 %v17_v24, %v16_v20  ;;  %v24_v30 = vadd.f32 %v23_v25, %v22_v21  ;;  %v31_v31 = vrot.slane %v30_v26, 1  ;;  %v37_v32 = vrot.slane %v36_v27, 1 }
  0x10   :  { %v45_v33 = vcombine.low %v18_v29, %v24_v30  ;;  %v32_v34 = vadd.f32 %v31_v31, %v30_v26  ;;  %v38_v35 = vadd.f32 %v37_v32, %v36_v27 }
  0x12   :  { %v52_v36 = vrot.slane %v45_v33, %v51_v28  ;;  %v68_v37 = vcombine.low %v32_v34, %v38_v35 }
  0x14   :  { %v59_v38 = vrot.slane %v52_v36, %v51_v28  ;;  %v75_v39 = vrot.slane %v68_v37, %v51_v28 }
  0x16   :  { %65 = vst.msk [vmem:[%s170_s1] sm:$0x3] %vm63_vm0, %v59_v38  ;;  %v82_v40 = vrot.slane %v75_v39, %v51_v28 }
  0x18   :  { %84 = vst.msk [vmem:[%s171_s2] sm:$0x3] %vm63_vm0, %v82_v40 }

// kernel: tile.125
= control target key start
LH: loop header
LB: loop body
LE: loop exit
PB: predicated region body
PF: predicated region fallthrough
CT: control target
= control target key end

     0   :  { %s22_s0 = inlined_call_operand.vmem [shape: f32[128], index: 0, kind: input, shape index: {}]   ;;  %s23_s1 = inlined_call_operand.vmem [shape: f32[4,128], index: 1, kind: output, shape index: {}]  }
   0x1   :  { %v4_v0 = vld [vmem:[%s22_s0] ss:$0 sm:$0xff] }
   0x2   :  { %5 = vst [vmem:[%s23_s1] sm:$0xf] %v4_v0 }

// kernel: _lambda_.21
= control target key start
LH: loop header
LB: loop body
LE: loop exit
PB: predicated region body
PF: predicated region fallthrough
CT: control target
= control target key end

     0   :  { %v58_v37 = vlaneseq  ;;  %s2228_s1 = inlined_call_operand.vmem [shape: bf16[1024,256], index: 1, kind: input, shape index: {}]   ;;  %s2229_s0 = inlined_call_operand.vmem [shape: bf16[24,1024], index: 0, kind: input, shape index: {}]   ;;  %s2230_s3 = inlined_call_operand.vmem [shape: f32[1,1024], index: 3, kind: input, shape index: {}]   ;;  %s2231_s4 = inlined_call_operand.vmem [shape: f32[1,1024], index: 4, kind: input, shape index: {}]   ;;  %s2232_s2 = inlined_call_operand.vmem [shape: f32[1,256], index: 2, kind: input, shape index: {}]   ;;  %s2233_s5 = inlined_call_operand.vmem [shape: bf16[24,256], index: 5, kind: output, shape index: {}]  }
   0x1   :  { %v1432_v0 = vld [vmem:[%s2228_s1 + $0x4] ss:$8 sps:$4 sm:$0xff]   ;;  %v1436_v2 = vld [vmem:[%s2228_s1] ss:$8 sps:$4 sm:$0xff]   ;;  %v1438_v4 = vld [vmem:[%s2228_s1 + $0x14] ss:$8 sps:$4 sm:$0xff]  }
   0x2   :  { %v1434_v1 = vld [vmem:[%s2228_s1 + $0x204] ss:$8 sps:$4 sm:$0xff]   ;;  %996 = vmatprep.subr.bf16.mxu1 %v1432_v0  ;;  %v1437_v3 = vld [vmem:[%s2228_s1 + $0x200] ss:$8 sps:$4 sm:$0xff]   ;;  %v1440_v5 = vld [vmem:[%s2228_s1 + $0x214] ss:$8 sps:$4 sm:$0xff]  }
   0x3   :  { %1098 = vmatprep.subr.bf16.mxu0 %v1434_v1  ;;  %997 = vmatpush1.bf16.msra.mxu1 %v1436_v2  ;;  %v1442_v6 = vld [vmem:[%s2228_s1 + $0x10] ss:$8 sps:$4 sm:$0xff]   ;;  %v1444_v8 = vld [vmem:[%s2228_s1 + $0x24] ss:$8 sps:$4 sm:$0xff]   ;;  %v1448_v10 = vld [vmem:[%s2228_s1 + $0x20] ss:$8 sps:$4 sm:$0xff]  }
   0x4   :  { %1099 = vmatpush1.bf16.msra.mxu0 %v1437_v3  ;;  %998 = vmatprep.subr.bf16.mxu1 %v1438_v4  ;;  %v1443_v7 = vld [vmem:[%s2228_s1 + $0x210] ss:$8 sps:$4 sm:$0xff]   ;;  %v1446_v9 = vld [vmem:[%s2228_s1 + $0x224] ss:$8 sps:$4 sm:$0xff]   ;;  %v1449_v11 = vld [vmem:[%s2228_s1 + $0x220] ss:$8 sps:$4 sm:$0xff]  }
   0x5   :  { %1100 = vmatprep.subr.bf16.mxu0 %v1440_v5  ;;  %v1450_v12 = vld [vmem:[%s2228_s1 + $0x34] ss:$8 sps:$4 sm:$0xff]   ;;  %v1454_v14 = vld [vmem:[%s2228_s1 + $0x30] ss:$8 sps:$4 sm:$0xff]   ;;  %v1456_v16 = vld [vmem:[%s2228_s1 + $0x44] ss:$8 sps:$4 sm:$0xff]  }
   0x6   :  { %v1452_v13 = vld [vmem:[%s2228_s1 + $0x234] ss:$8 sps:$4 sm:$0xff]   ;;  %v1455_v15 = vld [vmem:[%s2228_s1 + $0x230] ss:$8 sps:$4 sm:$0xff]   ;;  %v1458_v17 = vld [vmem:[%s2228_s1 + $0x244] ss:$8 sps:$4 sm:$0xff]  }
   0x7   :  { %999 = vmatpush1.bf16.msra.mxu1 %v1442_v6  ;;  %v1460_v18 = vld [vmem:[%s2228_s1 + $0x40] ss:$8 sps:$4 sm:$0xff]   ;;  %v1462_v20 = vld [vmem:[%s2228_s1 + $0x54] ss:$8 sps:$4 sm:$0xff]   ;;  %v1466_v22 = vld [vmem:[%s2228_s1 + $0x50] ss:$8 sps:$4 sm:$0xff]  }
   0x8   :  { %1101 = vmatpush1.bf16.msra.mxu0 %v1443_v7  ;;  %1000 = vmatprep.subr.bf16.mxu1 %v1444_v8  ;;  %v1461_v19 = vld [vmem:[%s2228_s1 + $0x240] ss:$8 sps:$4 sm:$0xff]   ;;  %v1464_v21 = vld [vmem:[%s2228_s1 + $0x254] ss:$8 sps:$4 sm:$0xff]   ;;  %v1467_v23 = vld [vmem:[%s2228_s1 + $0x250] ss:$8 sps:$4 sm:$0xff]  }
   0x9   :  { %1102 = vmatprep.subr.bf16.mxu0 %v1446_v9  ;;  %v1468_v24 = vld [vmem:[%s2228_s1 + $0x64] ss:$8 sps:$4 sm:$0xff]   ;;  %v1472_v26 = vld [vmem:[%s2228_s1 + $0x60] ss:$8 sps:$4 sm:$0xff]   ;;  %v1474_v28 = vld [vmem:[%s2228_s1 + $0x74] ss:$8 sps:$4 sm:$0xff]  }
   0xa   :  { %v1470_v25 = vld [vmem:[%s2228_s1 + $0x264] ss:$8 sps:$4 sm:$0xff]   ;;  %v1473_v27 = vld [vmem:[%s2228_s1 + $0x260] ss:$8 sps:$4 sm:$0xff]   ;;  %v1476_v29 = vld [vmem:[%s2228_s1 + $0x274] ss:$8 sps:$4 sm:$0xff]  }
   0xb   :  { %1001 = vmatpush1.bf16.msra.mxu1 %v1448_v10  ;;  %v1478_v30 = vld [vmem:[%s2228_s1 + $0x70] ss:$8 sps:$4 sm:$0xff]   ;;  %v1480_v32 = vld [vmem:[%s2228_s1 + $0x84] ss:$8 sps:$4 sm:$0xff]   ;;  %v1484_v34 = vld [vmem:[%s2228_s1 + $0x80] ss:$8 sps:$4 sm:$0xff]  }
   0xc   :  { %1103 = vmatpush1.bf16.msra.mxu0 %v1449_v11  ;;  %1002 = vmatprep.subr.bf16.mxu1 %v1450_v12  ;;  %v1479_v31 = vld [vmem:[%s2228_s1 + $0x270] ss:$8 sps:$4 sm:$0xff]   ;;  %v1482_v33 = vld [vmem:[%s2228_s1 + $0x284] ss:$8 sps:$4 sm:$0xff]   ;;  %v1485_v35 = vld [vmem:[%s2228_s1 + $0x280] ss:$8 sps:$4 sm:$0xff]  }
   0xd   :  { %1104 = vmatprep.subr.bf16.mxu0 %v1452_v13  ;;  %v1486_v36 = vld [vmem:[%s2228_s1 + $0x94] ss:$8 sps:$4 sm:$0xff]   ;;  %v1490_v39 = vld [vmem:[%s2228_s1 + $0x90] ss:$8 sps:$4 sm:$0xff]   ;;  %v1492_v41 = vld [vmem:[%s2228_s1 + $0xa4] ss:$8 sps:$4 sm:$0xff]  }
   0xe   :  { %v1488_v38 = vld [vmem:[%s2228_s1 + $0x294] ss:$8 sps:$4 sm:$0xff]   ;;  %v1491_v40 = vld [vmem:[%s2228_s1 + $0x290] ss:$8 sps:$4 sm:$0xff]   ;;  %v1777_v42 = vshrl.u32 %v58_v37, 7  ;;  %v20_v53 = vld [vmem:[%s2229_s0] sm:$0xff] }
   0xf   :  { %1003 = vmatpush1.bf16.msra.mxu1 %v1454_v14  ;;  %v1494_v43 = vld [vmem:[%s2228_s1 + $0x2a4] ss:$8 sps:$4 sm:$0xff]   ;;  %v1496_v44 = vld [vmem:[%s2228_s1 + $0xa0] ss:$8 sps:$4 sm:$0xff]   ;;  %v1498_v46 = vld [vmem:[%s2228_s1 + $0xb4] ss:$8 sps:$4 sm:$0xff]   ;;  %v33_v55 = vunpack.c.h.bf16 %v20_v53  ;;  %v32_v63 = vunpack.c.l.bf16 %v20_v53 }
  0x10   :  { %1105 = vmatpush1.bf16.msra.mxu0 %v1455_v15  ;;  %1004 = vmatprep.subr.bf16.mxu1 %v1456_v16  ;;  %v1497_v45 = vld [vmem:[%s2228_s1 + $0x2a0] ss:$8 sps:$4 sm:$0xff]   ;;  %v1792_v47 = vsub.s32 1, %v1777_v42  ;;  %v1500_v48 = vld [vmem:[%s2228_s1 + $0x2b4] ss:$8 sps:$4 sm:$0xff]   ;;  %v80_v49 = vsub.s32 5, %v1777_v42 }
  0x11   :  { %1106 = vmatprep.subr.bf16.mxu0 %v1458_v17  ;;  %v1799_v50 = vsub.s32 0, %v1777_v42  ;;  %v1502_v51 = vld [vmem:[%s2228_s1 + $0xb0] ss:$8 sps:$4 sm:$0xff]   ;;  %v24_v54 = vld [vmem:[%s2229_s0 + $0x20] sm:$0xff]  ;;  %v76_v4 = vsub.s32 4, %v1777_v42  ;;  %v68_v12 = vsub.s32 2, %v1777_v42 }
  0x12   :  { %v1503_v52 = vld [vmem:[%s2228_s1 + $0x2b0] ss:$8 sps:$4 sm:$0xff]   ;;  %v1816_v56 = vld [vmem:[%s2230_s3] sm:$0xff]  ;;  %v41_v59 = vunpack.c.h.bf16 %v24_v54  ;;  %v40_v9 = vunpack.c.l.bf16 %v24_v54  ;;  %v1522_v53 = vld [vmem:[%s2228_s1 + $0xf4] ss:$8 sps:$4 sm:$0xff]  }
  0x13   :  { %1005 = vmatpush1.bf16.msra.mxu1 %v1460_v18  ;;  %v1821_v57 = vld [vmem:[%s2231_s4] sm:$0xff]  ;;  %v1828_v60 = vrot.slane %v1816_v56, %v1792_v47  ;;  %v22_v0 = vld [vmem:[%s2229_s0 + $0x10] sm:$0xff]  ;;  %v1844_v2 = vrot.slane %v1816_v56, %v80_v49  ;;  %v1848_v3 = vrot.slane %v1816_v56, %v1799_v50 }
  0x14   :  { %1107 = vmatpush1.bf16.msra.mxu0 %v1461_v19  ;;  %1006 = vmatprep.subr.bf16.mxu1 %v1462_v20  ;;  %v1504_v58 = vld [vmem:[%s2228_s1 + $0xc4] ss:$8 sps:$4 sm:$0xff]   ;;  %v1832_v61 = vrot.slane %v1821_v57, %v1792_v47  ;;  %v26_v1 = vld [vmem:[%s2229_s0 + $0x30] sm:$0xff]  ;;  %v37_v7 = vunpack.c.h.bf16 %v22_v0  ;;  %v1854_v8 = vrot.slane %v1821_v57, %v80_v49  ;;  %v36_v10 = vunpack.c.l.bf16 %v22_v0  ;;  %v1508_v13 = vld [vmem:[%s2228_s1 + $0xc0] ss:$8 sps:$4 sm:$0xff]  }
  0x15   :  { %1108 = vmatprep.subr.bf16.mxu0 %v1464_v21  ;;  %v1506_v62 = vld [vmem:[%s2228_s1 + $0x2c4] ss:$8 sps:$4 sm:$0xff]   ;;  %v99_v5 = vmul.f32 %v1828_v60, %v33_v55  ;;  %v107_v6 = vmul.f32 %v1828_v60, %v41_v59  ;;  %v45_v11 = vunpack.c.h.bf16 %v26_v1  ;;  %v1509_v14 = vld [vmem:[%s2228_s1 + $0x2c0] ss:$8 sps:$4 sm:$0xff]   ;;  %v44_v17 = vunpack.c.l.bf16 %v26_v1  ;;  %v1510_v19 = vld [vmem:[%s2228_s1 + $0xd4] ss:$8 sps:$4 sm:$0xff]  }
  0x16   :  { %v103_v18 = vmul.f32 %v1844_v2, %v37_v7  ;;  %v1512_v20 = vld [vmem:[%s2228_s1 + $0x2d4] ss:$8 sps:$4 sm:$0xff]   ;;  %v1922_v54 = vrot.slane %v1821_v57, %v68_v12  ;;  %v1526_v59 = vld [vmem:[%s2228_s1 + $0xf0] ss:$8 sps:$4 sm:$0xff]   ;;  %v1528_v7 = vld [vmem:[%s2228_s1 + $0x100] ss:$8 sps:$4 sm:$0xff]  }
  0x17   :  { %1007 = vmatpush1.bf16.msra.mxu1 %v1466_v22  ;;  %v165_v15 = vadd.f32 %v1832_v61, %v99_v5  ;;  %v173_v16 = vadd.f32 %v1832_v61, %v107_v6  ;;  %v111_v21 = vmul.f32 %v1844_v2, %v45_v11  ;;  %v98_v22 = vmul.f32 %v1848_v3, %v32_v63  ;;  %v1530_v5 = vld [vmem:[%s2228_s1 + $0x104] ss:$8 sps:$4 sm:$0xff]   ;;  %v1531_v11 = vld [vmem:[%s2228_s1 + $0x300] ss:$8 sps:$4 sm:$0xff]  }
  0x18   :  { %1109 = vmatpush1.bf16.msra.mxu0 %v1467_v23  ;;  %1008 = vmatprep.subr.bf16.mxu1 %v1468_v24  ;;  %v1875_v23 = vrot.slane %v1816_v56, %v76_v4  ;;  %v84_v24 = vsub.s32 6, %v1777_v42  ;;  %v1533_v6 = vld [vmem:[%s2228_s1 + $0x304] ss:$8 sps:$4 sm:$0xff]  }
  0x19   :  { %1110 = vmatprep.subr.bf16.mxu0 %v1470_v25  ;;  %v189_v25 = vmax.f32 %v165_v15, 0.0  ;;  %v1537_v15 = vld [vmem:[%s2228_s1 + $0x310] ss:$8 sps:$4 sm:$0xff]  }
  0x1a   :  { %v110_v37 = vmul.f32 %v1875_v23, %v44_v17  ;;  %v1925_v55 = vrot.slane %v1821_v57, %v84_v24  ;;  %v1545_v17 = vld [vmem:[%s2228_s1 + $0x324] ss:$8 sps:$4 sm:$0xff]  }
  0x1b   :  { %1009 = vmatpush1.bf16.msra.mxu1 %v1472_v26  ;;  %v197_v26 = vmax.f32 %v173_v16, 0.0  ;;  %v1542_v16 = vld [vmem:[%s2228_s1 + $0x124] ss:$8 sps:$4 sm:$0xff]  }
  0x1c   :  { %1111 = vmatpush1.bf16.msra.mxu0 %v1473_v27  ;;  %1010 = vmatprep.subr.bf16.mxu1 %v1474_v28  ;;  %v169_v27 = vadd.f32 %v1854_v8, %v103_v18  ;;  %v1881_v28 = vrot.slane %v1821_v57, %v1799_v50  ;;  %v1540_v18 = vld [vmem:[%s2228_s1 + $0x120] ss:$8 sps:$4 sm:$0xff]  }
  0x1d   :  { %1112 = vmatprep.subr.bf16.mxu0 %v1476_v29  ;;  %v177_v29 = vadd.f32 %v1854_v8, %v111_v21  ;;  %v1551_v21 = vld [vmem:[%s2228_s1 + $0x334] ss:$8 sps:$4 sm:$0xff]  }
  0x1f   :  { %1011 = vmatpush1.bf16.msra.mxu1 %v1478_v30  ;;  %v106_v30 = vmul.f32 %v1848_v3, %v40_v9 }
  0x20   :  { %1113 = vmatpush1.bf16.msra.mxu0 %v1479_v31  ;;  %1012 = vmatprep.subr.bf16.mxu1 %v1480_v32  ;;  %v102_v31 = vmul.f32 %v1875_v23, %v36_v10  ;;  %v1887_v32 = vrot.slane %v1821_v57, %v76_v4  ;;  %v1527_v4 = vld [vmem:[%s2228_s1 + $0x2f0] ss:$8 sps:$4 sm:$0xff]  }
  0x21   :  { %1114 = vmatprep.subr.bf16.mxu0 %v1482_v33  ;;  %v1514_v33 = vld [vmem:[%s2228_s1 + $0xd0] ss:$8 sps:$4 sm:$0xff]  }
  0x22   :  { %v168_v49 = vadd.f32 %v1887_v32, %v102_v31  ;;  %v1560_v31 = vld [vmem:[%s2228_s1 + $0x154] ss:$8 sps:$4 sm:$0xff]  }
  0x23   :  { %1013 = vmatpush1.bf16.msra.mxu1 %v1484_v34  ;;  %v1515_v34 = vld [vmem:[%s2228_s1 + $0x2d0] ss:$8 sps:$4 sm:$0xff]  }
  0x24   :  { %1115 = vmatpush1.bf16.msra.mxu0 %v1485_v35  ;;  %1014 = vmatprep.subr.bf16.mxu1 %v1486_v36  ;;  %v213_v35 = vpack.c.bf16 %v197_v26, %v189_v25  ;;  %v193_v36 = vmax.f32 %v169_v27, 0.0  ;;  %v192_v0 = vmax.f32 %v168_v49, 0.0  ;;  %v1554_v25 = vld [vmem:[%s2228_s1 + $0x144] ss:$8 sps:$4 sm:$0xff]   ;;  %v1552_v27 = vld [vmem:[%s2228_s1 + $0x140] ss:$8 sps:$4 sm:$0xff]  }
  0x25   :  { %1116 = vmatprep.subr.bf16.mxu0 %v1488_v38  ;;  %v1897_v38 = vrot.slane %v1816_v56, %v68_v12  ;;  %v1536_v12 = vld [vmem:[%s2228_s1 + $0x114] ss:$8 sps:$4 sm:$0xff]   ;;  %v1557_v26 = vld [vmem:[%s2228_s1 + $0x344] ss:$8 sps:$4 sm:$0xff]  }
  0x26   :  { %1028 = vmatprep.mubr.bf16.mxu1 %v213_v35  ;;  %v1563_v35 = vld [vmem:[%s2228_s1 + $0x354] ss:$8 sps:$4 sm:$0xff]   ;;  %v1566_v49 = vld [vmem:[%s2228_s1 + $0x164] ss:$8 sps:$4 sm:$0xff]  }
  0x27   :  { %1015 = vmatpush1.bf16.msra.mxu1 %v1490_v39  ;;  %v1516_v39 = vld [vmem:[%s2228_s1 + $0xe4] ss:$8 sps:$4 sm:$0xff]  }
  0x28   :  { %1117 = vmatpush1.bf16.msra.mxu0 %v1491_v40  ;;  %1016 = vmatprep.subr.bf16.mxu1 %v1492_v41  ;;  %v1518_v40 = vld [vmem:[%s2228_s1 + $0x2e4] ss:$8 sps:$4 sm:$0xff]   ;;  %v201_v41 = vmax.f32 %v177_v29, 0.0  ;;  %v1555_v29 = vld [vmem:[%s2228_s1 + $0x340] ss:$8 sps:$4 sm:$0xff]  }
  0x29   :  { %1118 = vmatprep.subr.bf16.mxu0 %v1494_v43  ;;  %v164_v43 = vadd.f32 %v1881_v28, %v98_v22  ;;  %v1546_v22 = vld [vmem:[%s2228_s1 + $0x130] ss:$8 sps:$4 sm:$0xff]  }
  0x2b   :  { %1017 = vmatpush1.bf16.msra.mxu1 %v1496_v44  ;;  %v1907_v44 = vrot.slane %v1816_v56, %v84_v24  ;;  %v1549_v24 = vld [vmem:[%s2228_s1 + $0x330] ss:$8 sps:$4 sm:$0xff]  }
  0x2c   :  { %1119 = vmatpush1.bf16.msra.mxu0 %v1497_v45  ;;  %1018 = vmatprep.subr.bf16.mxu1 %v1498_v46  ;;  %v1520_v45 = vld [vmem:[%s2228_s1 + $0xe0] ss:$8 sps:$4 sm:$0xff]   ;;  %v217_v46 = vpack.c.bf16 %v201_v41, %v193_v36  ;;  %v1558_v41 = vld [vmem:[%s2228_s1 + $0x150] ss:$8 sps:$4 sm:$0xff]  }
  0x2d   :  { %1120 = vmatprep.subr.bf16.mxu0 %v1500_v48  ;;  %v172_v48 = vadd.f32 %v1881_v28, %v106_v30  ;;  %v28_v30 = vld [vmem:[%s2229_s0 + $0x40] sm:$0xff] }
  0x2e   :  { %1130 = vmatprep.mubr.bf16.mxu0 %v217_v46  ;;  %v88_v46 = vsub.s32 7, %v1777_v42 }
  0x2f   :  { %1019 = vmatpush1.bf16.msra.mxu1 %v1502_v51  ;;  %v176_v51 = vadd.f32 %v1887_v32, %v110_v37  ;;  %v196_v63 = vmax.f32 %v172_v48, 0.0 }
  0x30   :  { %1121 = vmatpush1.bf16.msra.mxu0 %v1503_v52  ;;  %1020 = vmatprep.subr.bf16.mxu1 %v1504_v58  ;;  %v1521_v52 = vld [vmem:[%s2228_s1 + $0x2e0] ss:$8 sps:$4 sm:$0xff]   ;;  %v1524_v58 = vld [vmem:[%s2228_s1 + $0x2f4] ss:$8 sps:$4 sm:$0xff]  }
  0x31   :  { %1122 = vmatprep.subr.bf16.mxu0 %v1506_v62  ;;  %v188_v62 = vmax.f32 %v164_v43, 0.0  ;;  %v200_v1 = vmax.f32 %v176_v51, 0.0 }
  0x33   :  { %1021 = vmatpush1.bf16.msra.mxu1 %v1508_v13  ;;  %v212_v9 = vpack.c.bf16 %v196_v63, %v188_v62  ;;  %v216_v10 = vpack.c.bf16 %v200_v1, %v192_v0  ;;  %v1539_v13 = vld [vmem:[%s2228_s1 + $0x314] ss:$8 sps:$4 sm:$0xff]  }
  0x34   :  { %1123 = vmatpush1.bf16.msra.mxu0 %v1509_v14  ;;  %1022 = vmatprep.subr.bf16.mxu1 %v1510_v19  ;;  %v1534_v14 = vld [vmem:[%s2228_s1 + $0x110] ss:$8 sps:$4 sm:$0xff]   ;;  %v1543_v19 = vld [vmem:[%s2228_s1 + $0x320] ss:$8 sps:$4 sm:$0xff]   ;;  %v1572_v0 = vld [vmem:[%s2228_s1 + $0x174] ss:$8 sps:$4 sm:$0xff]  }
  0x35   :  { %1124 = vmatprep.subr.bf16.mxu0 %v1512_v20  ;;  %v1548_v20 = vld [vmem:[%s2228_s1 + $0x134] ss:$8 sps:$4 sm:$0xff]  }
  0x37   :  { %1023 = vmatpush1.bf16.msra.mxu1 %v1514_v33  ;;  %v49_v33 = vunpack.c.h.bf16 %v28_v30 }
  0x38   :  { %1125 = vmatpush1.bf16.msra.mxu0 %v1515_v34  ;;  %1024 = vmatprep.subr.bf16.mxu1 %v1516_v39  ;;  %v48_v34 = vunpack.c.l.bf16 %v28_v30  ;;  %v30_v39 = vld [vmem:[%s2229_s0 + $0x50] sm:$0xff] }
  0x39   :  { %1126 = vmatprep.subr.bf16.mxu0 %v1518_v40  ;;  %v115_v36 = vmul.f32 %v1828_v60, %v49_v33  ;;  %v72_v40 = vsub.s32 3, %v1777_v42  ;;  %v53_v43 = vunpack.c.h.bf16 %v30_v39  ;;  %v1561_v60 = vld [vmem:[%s2228_s1 + $0x350] ss:$8 sps:$4 sm:$0xff]   ;;  %v1569_v42 = vld [vmem:[%s2228_s1 + $0x364] ss:$8 sps:$4 sm:$0xff]  }
  0x3a   :  { %v114_v37 = vmul.f32 %v1848_v3, %v48_v34 }
  0x3b   :  { %1025 = vmatpush1.bf16.msra.mxu1 %v1520_v45  ;;  %v52_v45 = vunpack.c.l.bf16 %v30_v39  ;;  %v181_v3 = vadd.f32 %v1832_v61, %v115_v36  ;;  %v119_v51 = vmul.f32 %v1844_v2, %v53_v43  ;;  %v2029_v61 = vrot.slane %v1816_v56, %v72_v40  ;;  %v1576_v39 = vld [vmem:[%s2228_s1 + $0x180] ss:$8 sps:$4 sm:$0xff]  }
  0x3c   :  { %1127 = vmatpush1.bf16.msra.mxu0 %v1521_v52  ;;  %1026 = vmatprep.subr.bf16.mxu1 %v1522_v53  ;;  %v180_v48 = vadd.f32 %v1881_v28, %v114_v37  ;;  %v1564_v28 = vld [vmem:[%s2228_s1 + $0x160] ss:$8 sps:$4 sm:$0xff]   ;;  %v2040_v2 = vrot.slane %v1821_v57, %v72_v40 }
  0x3d   :  { %1128 = vmatprep.subr.bf16.mxu0 %v1524_v58  ;;  %v118_v52 = vmul.f32 %v1875_v23, %v52_v45  ;;  %v205_v53 = vmax.f32 %v181_v3, 0.0  ;;  %v185_v62 = vadd.f32 %v1854_v8, %v119_v51  ;;  %v2043_v23 = vrot.slane %v1816_v56, %v88_v46  ;;  %v21_v8 = vld [vmem:[%s2229_s0 + $0x8] sm:$0xff]  ;;  %v1575_v56 = vld [vmem:[%s2228_s1 + $0x374] ss:$8 sps:$4 sm:$0xff]  }
  0x3e   :  { %v204_v58 = vmax.f32 %v180_v48, 0.0  ;;  %v1579_v40 = vld [vmem:[%s2228_s1 + $0x380] ss:$8 sps:$4 sm:$0xff]   ;;  %v1584_v3 = vld [vmem:[%s2228_s1 + $0x194] ss:$8 sps:$4 sm:$0xff]  }
  0x3f   :  { %1027 = vmatpush1.bf16.msra.mxu1 %v1526_v59  ;;  %v1567_v59 = vld [vmem:[%s2228_s1 + $0x360] ss:$8 sps:$4 sm:$0xff]   ;;  %v184_v63 = vadd.f32 %v1887_v32, %v118_v52  ;;  %v221_v1 = vpack.c.bf16 %v205_v53, %v205_v53  ;;  %v31_v52 = vld [vmem:[%s2229_s0 + $0x58] sm:$0xff] }
  0x40   :  { %1129 = vmatpush1.bf16.msra.mxu0 %v1527_v4  ;;  %1047 = vmatprep.subr.bf16.mxu1 %v1530_v5  ;;  %v220_v4 = vpack.c.bf16 %v204_v58, %v204_v58  ;;  %v25_v32 = vld [vmem:[%s2229_s0 + $0x28] sm:$0xff]  ;;  %v2055_v5 = vrot.slane %v1821_v57, %v88_v46  ;;  %v1587_v53 = vld [vmem:[%s2228_s1 + $0x394] ss:$8 sps:$4 sm:$0xff]  }
  0x41   :  { %1149 = vmatprep.subr.bf16.mxu0 %v1533_v6  ;;  %v209_v6 = vmax.f32 %v185_v62, 0.0  ;;  %v42_v57 = vunpack.c.l.bf16 %v25_v32 }
  0x42   :  { %1029 = vmatmul.mubr.bf16.vlgmr.msra.gmra.mrb[0].mxu1 %v212_v9  ;;  %v34_v9 = vunpack.c.l.bf16 %v21_v8 }
  0x43   :  { %1131 = vmatmul.mubr.bf16.vlgmr.msra.gmra.mrb[0].mxu0 %v216_v10  ;;  %1048 = vmatpush1.bf16.msra.mxu1 %v1528_v7  ;;  %v208_v7 = vmax.f32 %v184_v63, 0.0  ;;  %v35_v10 = vunpack.c.h.bf16 %v21_v8  ;;  %v54_v8 = vunpack.c.l.bf16 %v31_v52 }
  0x44   :  { %1150 = vmatpush1.bf16.msra.mxu0 %v1531_v11  ;;  %1049 = vmatprep.subr.bf16.mxu1 %v1536_v12  ;;  %v23_v11 = vld [vmem:[%s2229_s0 + $0x18] sm:$0xff] }
  0x45   :  { %1151 = vmatprep.subr.bf16.mxu0 %v1539_v13  ;;  %v27_v12 = vld [vmem:[%s2229_s0 + $0x38] sm:$0xff]  ;;  %1038 = vmatprep.mubr.bf16.mxu1 %v221_v1  ;;  %v43_v13 = vunpack.c.h.bf16 %v25_v32 }
  0x46   :  { %v1582_v32 = vld [vmem:[%s2228_s1 + $0x190] ss:$8 sps:$4 sm:$0xff]  }
  0x47   :  { %1050 = vmatpush1.bf16.msra.mxu1 %v1534_v14  ;;  %v38_v14 = vunpack.c.l.bf16 %v23_v11 }
  0x48   :  { %1152 = vmatpush1.bf16.msra.mxu0 %v1537_v15  ;;  %1051 = vmatprep.subr.bf16.mxu1 %v1542_v16  ;;  %v39_v15 = vunpack.c.h.bf16 %v23_v11  ;;  %v225_v16 = vpack.c.bf16 %v209_v6, %v209_v6  ;;  %v1593_v11 = vld [vmem:[%s2228_s1 + $0x3a4] ss:$8 sps:$4 sm:$0xff]  }
  0x49   :  { %1153 = vmatprep.subr.bf16.mxu0 %v1545_v17  ;;  %v224_v17 = vpack.c.bf16 %v208_v7, %v208_v7 }
  0x4a   :  { %1039 = vmatmul.mubr.bf16.gmra.mrb[4].mxu1 %v220_v4  ;;  %v105_v33 = vmul.f32 %v2043_v23, %v39_v15  ;;  %1140 = vmatprep.mubr.bf16.mxu0 %v225_v16  ;;  %v1597_v15 = vld [vmem:[%s2228_s1 + $0x3b0] ss:$8 sps:$4 sm:$0xff]   ;;  %v1602_v16 = vld [vmem:[%s2228_s1 + $0x1c4] ss:$8 sps:$4 sm:$0xff]  }
  0x4b   :  { %1052 = vmatpush1.bf16.msra.mxu1 %v1540_v18  ;;  %v100_v18 = vmul.f32 %v1897_v38, %v34_v9  ;;  %1141 = vmatmul.mubr.bf16.gmra.mrb[4].mxu0 %v224_v17  ;;  %v1605_v17 = vld [vmem:[%s2228_s1 + $0x3c4] ss:$8 sps:$4 sm:$0xff]  }
  0x4c   :  { %1154 = vmatpush1.bf16.msra.mxu0 %v1543_v19  ;;  %1053 = vmatprep.subr.bf16.mxu1 %v1548_v20  ;;  %v101_v19 = vmul.f32 %v2029_v61, %v35_v10  ;;  %v1570_v20 = vld [vmem:[%s2228_s1 + $0x170] ss:$8 sps:$4 sm:$0xff]   ;;  %v171_v43 = vadd.f32 %v2055_v5, %v105_v33  ;;  %v1590_v10 = vld [vmem:[%s2228_s1 + $0x1a4] ss:$8 sps:$4 sm:$0xff]   ;;  %v1612_v33 = vld [vmem:[%s2228_s1 + $0x1e0] ss:$8 sps:$4 sm:$0xff]  }
  0x4d   :  { %1155 = vmatprep.subr.bf16.mxu0 %v1551_v21  ;;  %v1573_v21 = vld [vmem:[%s2228_s1 + $0x370] ss:$8 sps:$4 sm:$0xff]   ;;  %v166_v37 = vadd.f32 %v1922_v54, %v100_v18  ;;  %v1600_v18 = vld [vmem:[%s2228_s1 + $0x1c0] ss:$8 sps:$4 sm:$0xff]  }
  0x4e   :  { %v167_v30 = vadd.f32 %v2040_v2, %v101_v19  ;;  %v195_v58 = vmax.f32 %v171_v43, 0.0  ;;  %v1603_v19 = vld [vmem:[%s2228_s1 + $0x3c0] ss:$8 sps:$4 sm:$0xff]  }
  0x4f   :  { %1054 = vmatpush1.bf16.msra.mxu1 %v1546_v22  ;;  %v108_v22 = vmul.f32 %v1897_v38, %v42_v57 }
  0x50   :  { %1156 = vmatpush1.bf16.msra.mxu0 %v1549_v24  ;;  %1055 = vmatprep.subr.bf16.mxu1 %v1554_v25  ;;  %v109_v24 = vmul.f32 %v2029_v61, %v43_v13  ;;  %v46_v25 = vunpack.c.l.bf16 %v27_v12 }
  0x51   :  { %1157 = vmatprep.subr.bf16.mxu0 %v1557_v26  ;;  %v47_v26 = vunpack.c.h.bf16 %v27_v12  ;;  %v174_v45 = vadd.f32 %v1922_v54, %v108_v22  ;;  %v120_v12 = vmul.f32 %v1907_v44, %v54_v8  ;;  %v1608_v22 = vld [vmem:[%s2228_s1 + $0x1d4] ss:$8 sps:$4 sm:$0xff]  }
  0x52   :  { %v175_v34 = vadd.f32 %v2040_v2, %v109_v24  ;;  %v1611_v24 = vld [vmem:[%s2228_s1 + $0x3d4] ss:$8 sps:$4 sm:$0xff]  }
  0x53   :  { %1056 = vmatpush1.bf16.msra.mxu1 %v1552_v27  ;;  %v1578_v27 = vld [vmem:[%s2228_s1 + $0x184] ss:$8 sps:$4 sm:$0xff]   ;;  %v113_v36 = vmul.f32 %v2043_v23, %v47_v26  ;;  %v2137_v13 = vadd.f32 %v1925_v55, %v120_v12  ;;  %v1609_v26 = vld [vmem:[%s2228_s1 + $0x3d0] ss:$8 sps:$4 sm:$0xff]  }
  0x54   :  { %1158 = vmatpush1.bf16.msra.mxu0 %v1555_v29  ;;  %1057 = vmatprep.subr.bf16.mxu1 %v1560_v31  ;;  %v1581_v29 = vld [vmem:[%s2228_s1 + $0x384] ss:$8 sps:$4 sm:$0xff]   ;;  %v104_v31 = vmul.f32 %v1907_v44, %v38_v14  ;;  %v199_v48 = vmax.f32 %v175_v34, 0.0  ;;  %v1591_v14 = vld [vmem:[%s2228_s1 + $0x3a0] ss:$8 sps:$4 sm:$0xff]  }
  0x55   :  { %1159 = vmatprep.subr.bf16.mxu0 %v1563_v35  ;;  %v112_v35 = vmul.f32 %v1907_v44, %v46_v25  ;;  %v1596_v44 = vld [vmem:[%s2228_s1 + $0x1b4] ss:$8 sps:$4 sm:$0xff]   ;;  %v1606_v25 = vld [vmem:[%s2228_s1 + $0x1d0] ss:$8 sps:$4 sm:$0xff]  }
  0x56   :  { %v170_v46 = vadd.f32 %v1925_v55, %v104_v31  ;;  %v1617_v31 = vld [vmem:[%s2228_s1 + $0x3e4] ss:$8 sps:$4 sm:$0xff]  }
  0x57   :  { %1058 = vmatpush1.bf16.msra.mxu1 %v1558_v41  ;;  %v191_v41 = vmax.f32 %v167_v30, 0.0  ;;  %v178_v51 = vadd.f32 %v1925_v55, %v112_v35  ;;  %v1594_v55 = vld [vmem:[%s2228_s1 + $0x1b0] ss:$8 sps:$4 sm:$0xff]   ;;  %v1614_v30 = vld [vmem:[%s2228_s1 + $0x1e4] ss:$8 sps:$4 sm:$0xff]  }
  0x58   :  { %1160 = vmatpush1.bf16.msra.mxu0 %v1561_v60  ;;  %1059 = vmatprep.subr.bf16.mxu1 %v1566_v49  ;;  %v2101_v60 = vld [vmem:[%s2229_s0 + $0x48] sm:$0xff]  ;;  %v179_v49 = vadd.f32 %v2055_v5, %v113_v36  ;;  %v1620_v35 = vld [vmem:[%s2228_s1 + $0x1f4] ss:$8 sps:$4 sm:$0xff]  }
  0x59   :  { %1161 = vmatprep.subr.bf16.mxu0 %v1569_v42  ;;  %v190_v42 = vmax.f32 %v166_v37, 0.0  ;;  %v215_v62 = vpack.c.bf16 %v199_v48, %v191_v41  ;;  %v50_v1 = vunpack.c.l.bf16 %v2101_v60  ;;  %v1623_v36 = vld [vmem:[%s2228_s1 + $0x3f4] ss:$8 sps:$4 sm:$0xff]   ;;  %v1618_v37 = vld [vmem:[%s2228_s1 + $0x1f0] ss:$8 sps:$4 sm:$0xff]  }
  0x5a   :  { %v203_v63 = vmax.f32 %v179_v49, 0.0 }
  0x5b   :  { %1060 = vmatpush1.bf16.msra.mxu1 %v1564_v28  ;;  %v198_v28 = vmax.f32 %v174_v45, 0.0  ;;  %v116_v9 = vmul.f32 %v1897_v38, %v50_v1  ;;  %1079 = vmatprep.mubr.bf16.mxu1 %v215_v62  ;;  %v1588_v38 = vld [vmem:[%s2228_s1 + $0x1a0] ss:$8 sps:$4 sm:$0xff]   ;;  %v210_v45 = vmax.f32 %v2137_v13, 0.0 }
  0x5c   :  { %1162 = vmatpush1.bf16.msra.mxu0 %v1567_v59  ;;  %1061 = vmatprep.subr.bf16.mxu1 %v1572_v0  ;;  %v194_v59 = vmax.f32 %v170_v46, 0.0  ;;  %v202_v0 = vmax.f32 %v178_v51, 0.0  ;;  %v219_v6 = vpack.c.bf16 %v203_v63, %v195_v58 }
  0x5d   :  { %1163 = vmatprep.subr.bf16.mxu0 %v1575_v56  ;;  %v2115_v4 = vpack.c.bf16 %v198_v28, %v190_v42  ;;  %v1585_v56 = vld [vmem:[%s2228_s1 + $0x390] ss:$8 sps:$4 sm:$0xff]   ;;  %v2134_v57 = vadd.f32 %v1922_v54, %v116_v9  ;;  %v1599_v54 = vld [vmem:[%s2228_s1 + $0x3b4] ss:$8 sps:$4 sm:$0xff]   ;;  %v1241_v28 = vld [vmem:[%s2232_s2] sm:$0x3] }
  0x5e   :  { %v2123_v7 = vpack.c.bf16 %v202_v0, %v194_v59  ;;  %1181 = vmatprep.mubr.bf16.mxu0 %v219_v6  ;;  %v1246_v59 = vrot.slane %v1241_v28, %v1799_v50  ;;  %v1250_v0 = vrot.slane %v1241_v28, %v1792_v47 }
  0x5f   :  { %1062 = vmatpush1.bf16.msra.mxu1 %v1570_v20  ;;  %v51_v20 = vunpack.c.h.bf16 %v2101_v60  ;;  %v206_v43 = vmax.f32 %v2134_v57, 0.0  ;;  %v226_v60 = vpack.c.bf16 %v210_v45, %v210_v45 }
  0x60   :  { %1164 = vmatpush1.bf16.msra.mxu0 %v1573_v21  ;;  %1063 = vmatprep.subr.bf16.mxu1 %v1578_v27  ;;  %v55_v21 = vunpack.c.h.bf16 %v31_v52 }
  0x61   :  { %1165 = vmatprep.subr.bf16.mxu0 %v1581_v29  ;;  %v117_v27 = vmul.f32 %v2029_v61, %v51_v20  ;;  %v1615_v61 = vld [vmem:[%s2228_s1 + $0x3e0] ss:$8 sps:$4 sm:$0xff]   ;;  %v222_v46 = vpack.c.bf16 %v206_v43, %v206_v43 }
  0x62   :  { %v121_v29 = vmul.f32 %v2043_v23, %v55_v21 }
  0x63   :  { %1064 = vmatpush1.bf16.msra.mxu1 %v1576_v39  ;;  %v183_v23 = vadd.f32 %v2040_v2, %v117_v27  ;;  %v1621_v2 = vld [vmem:[%s2228_s1 + $0x3f0] ss:$8 sps:$4 sm:$0xff]  }
  0x64   :  { %1166 = vmatpush1.bf16.msra.mxu0 %v1579_v40  ;;  %1065 = vmatprep.subr.bf16.mxu1 %v1584_v3  ;;  %v187_v34 = vadd.f32 %v2055_v5, %v121_v29 }
  0x65   :  { %1167 = vmatprep.subr.bf16.mxu0 %v1587_v53  ;;  %v207_v5 = vmax.f32 %v183_v23, 0.0 }
  0x66   :  { %v211_v39 = vmax.f32 %v187_v34, 0.0 }
  0x67   :  { %1066 = vmatpush1.bf16.msra.mxu1 %v1582_v32  ;;  %v223_v40 = vpack.c.bf16 %v207_v5, %v207_v5 }
  0x68   :  { %1168 = vmatpush1.bf16.msra.mxu0 %v1585_v56  ;;  %1067 = vmatprep.subr.bf16.mxu1 %v1590_v10  ;;  %v227_v41 = vpack.c.bf16 %v211_v39, %v211_v39 }
  0x69   :  { %1169 = vmatprep.subr.bf16.mxu0 %v1593_v11 }
  0x6b   :  { %1068 = vmatpush1.bf16.msra.mxu1 %v1588_v38 }
  0x6c   :  { %1170 = vmatpush1.bf16.msra.mxu0 %v1591_v14  ;;  %1069 = vmatprep.subr.bf16.mxu1 %v1596_v44 }
  0x6d   :  { %1171 = vmatprep.subr.bf16.mxu0 %v1599_v54 }
  0x6f   :  { %1070 = vmatpush1.bf16.msra.mxu1 %v1594_v55 }
  0x70   :  { %1172 = vmatpush1.bf16.msra.mxu0 %v1597_v15  ;;  %1071 = vmatprep.subr.bf16.mxu1 %v1602_v16 }
  0x71   :  { %1173 = vmatprep.subr.bf16.mxu0 %v1605_v17 }
  0x73   :  { %1072 = vmatpush1.bf16.msra.mxu1 %v1600_v18 }
  0x74   :  { %1174 = vmatpush1.bf16.msra.mxu0 %v1603_v19  ;;  %1073 = vmatprep.subr.bf16.mxu1 %v1608_v22 }
  0x75   :  { %1175 = vmatprep.subr.bf16.mxu0 %v1611_v24 }
  0x77   :  { %1074 = vmatpush1.bf16.msra.mxu1 %v1606_v25 }
  0x78   :  { %1176 = vmatpush1.bf16.msra.mxu0 %v1609_v26  ;;  %1075 = vmatprep.subr.bf16.mxu1 %v1614_v30 }
  0x79   :  { %1177 = vmatprep.subr.bf16.mxu0 %v1617_v31 }
  0x7b   :  { %1076 = vmatpush1.bf16.msra.mxu1 %v1612_v33 }
  0x7c   :  { %1178 = vmatpush1.bf16.msra.mxu0 %v1615_v61  ;;  %1077 = vmatprep.subr.bf16.mxu1 %v1620_v35 }
  0x7d   :  { %1179 = vmatprep.subr.bf16.mxu0 %v1623_v36 }
  0x7f   :  { %1078 = vmatpush1.bf16.msra.mxu1 %v1618_v37 }
  0x80   :  { %1180 = vmatpush1.bf16.msra.mxu0 %v1621_v2 }
  0x82   :  { %1080 = vmatmul.mubr.bf16.vlgmr.msra.gmra.mrb[0].mxu1 %v2115_v4 }
  0x83   :  { %1182 = vmatmul.mubr.bf16.vlgmr.msra.gmra.mrb[0].mxu0 %v2123_v7  ;;  %1089 = vmatprep.mubr.bf16.mxu1 %v223_v40 }
  0x84   :  { %1191 = vmatprep.mubr.bf16.mxu0 %v227_v41 }
  0x8a   :  { %1090 = vmatmul.mubr.bf16.gmra.mrb[8].mxu1 %v222_v46 }
  0x8b   :  { %1192 = vmatmul.mubr.bf16.gmra.mrb[8].mxu0 %v226_v60 }
 0x11d   :  { %v1040_v3 = vpop.f32.mrb[4].mxu1 }
 0x11e   :  { %v1042_v48 = vpop.f32.mrb[5].mxu1  ;;  %v1142_v51 = vpop.f32.mrb[4].mxu0 }
 0x11f   :  { %v1044_v49 = vpop.f32.mrb[6].mxu1  ;;  %v1144_v52 = vpop.f32.mrb[5].mxu0 }
 0x120   :  { %v1045_v42 = vpop.f32.mrb[7].mxu1  ;;  %v1146_v53 = vpop.f32.mrb[6].mxu0 }
 0x121   :  { %v1147_v58 = vpop.f32.mrb[7].mxu0 }
 0x155   :  { %v1081_v62 = vpop.f32.mrb[0].mxu1 }
 0x156   :  { %v1183_v63 = vpop.f32.mrb[0].mxu0  ;;  %v1083_v4 = vpop.f32.mrb[1].mxu1 }
 0x157   :  { %v1420_v1 = vadd.f32 %v1183_v63, %v1081_v62  ;;  %v1185_v8 = vpop.f32.mrb[1].mxu0  ;;  %v1085_v56 = vpop.f32.mrb[2].mxu1 }
 0x158   :  { %v1421_v32 = vadd.f32 %v1185_v8, %v1083_v4  ;;  %v1187_v6 = vpop.f32.mrb[2].mxu0  ;;  %v1087_v10 = vpop.f32.mrb[3].mxu1 }
 0x159   :  { %v1253_v7 = vadd.f32 %v1420_v1, %v1246_v59  ;;  %v1422_v9 = vadd.f32 %v1187_v6, %v1085_v56  ;;  %v1189_v11 = vpop.f32.mrb[3].mxu0 }
 0x15a   :  { %v1254_v12 = vadd.f32 %v1421_v32, %v1250_v0  ;;  %v1423_v57 = vadd.f32 %v1189_v11, %v1087_v10 }
 0x15b   :  { %v1255_v13 = vadd.f32 %v1422_v9, %v1246_v59 }
 0x15c   :  { %v1417_v38 = vpack.c.bf16 %v1254_v12, %v1253_v7  ;;  %v1256_v14 = vadd.f32 %v1423_v57, %v1250_v0 }
 0x15d   :  { %v1091_v50 = vpop.f32.mrb[8].mxu1 }
 0x15e   :  { %1279 = vst [vmem:[%s2233_s5] sm:$0xff] %v1417_v38  ;;  %v1418_v47 = vpack.c.bf16 %v1256_v14, %v1255_v13  ;;  %v1193_v44 = vpop.f32.mrb[8].mxu0  ;;  %v1092_v54 = vadd.f32 %v1091_v50, %v1040_v3  ;;  %v1093_v55 = vpop.f32.mrb[9].mxu1 }
 0x15f   :  { %v1195_v15 = vpop.f32.mrb[9].mxu0  ;;  %v1094_v16 = vadd.f32 %v1093_v55, %v1042_v48  ;;  %v1095_v17 = vpop.f32.mrb[10].mxu1 }
 0x160   :  { %1280 = vst [vmem:[%s2233_s5 + $0x8] sm:$0xff] %v1418_v47  ;;  %v1197_v18 = vpop.f32.mrb[10].mxu0  ;;  %v1143_v19 = vadd.f32 %v1142_v51, %v1092_v54  ;;  %v1096_v20 = vpop.f32.mrb[11].mxu1 }
 0x161   :  { %v1198_v21 = vpop.f32.mrb[11].mxu0  ;;  %v1145_v22 = vadd.f32 %v1144_v52, %v1094_v16 }
 0x162   :  { %v1194_v24 = vadd.f32 %v1193_v44, %v1143_v19 }
 0x163   :  { %v1196_v25 = vadd.f32 %v1195_v15, %v1145_v22 }
 0x164   :  { %v1257_v26 = vadd.f32 %v1246_v59, %v1194_v24 }
 0x165   :  { %v1258_v27 = vadd.f32 %v1250_v0, %v1196_v25 }
 0x167   :  { %v1419_v29 = vpack.c.bf16 %v1258_v27, %v1257_v26 }
 0x169   :  { %1281 = vst [vmem:[%s2233_s5 + $0x10] sm:$0xff] %v1419_v29 }

// kernel: tile.137
= control target key start
LH: loop header
LB: loop body
LE: loop exit
PB: predicated region body
PF: predicated region fallthrough
CT: control target
= control target key end

     0   :  { %s6_s8 = smov 3  ;;  %vm8_vm0 = vcmask 523264   ;;  %s30_s9 = smov 64   ;;  %vm15_vm1 = vcmask 1048064   ;;  %s50_s0 = inlined_call_operand.vmem [shape: f32[4,64], index: 0, kind: input, shape index: {}]   ;;  %s51_s1 = inlined_call_operand.vmem [shape: f32[1,256], index: 1, kind: output, shape index: {}]  }
   0x1   :  { %v4_v0 = vld [vmem:[%s50_s0] sm:$0xf]  ;;  %s11_s0 = smov 3 }
   0x2   :  { %5 = vst [vmem:[#allocation1] sm:$0xf] %v4_v0 }
   0x9   :  { %v12_v1 = vld [vmem:[#allocation1 + $0x1] ss:$2 sm:%s11_s0]   ;;  %v7_v2 = vld [vmem:[#allocation1] ss:$2 sm:%s6_s8]  }
   0xa   :  { %13 = vrot.lane.b32.xlu0 %v12_v1, %s30_s9  ;;  %9 = vst.msk [vmem:[#allocation0] ss:$8 sm:$0x3] %vm8_vm0, %v7_v2  }
  0x7c   :  { %v14_v3 = vpop.permute.xlu0 %13  }
  0x7d   :  { %16 = vst.msk [vmem:[#allocation0] ss:$8 sm:$0x3] %vm15_vm1, %v14_v3  }
  0x84   :  { %v20_v4 = vld [vmem:[#allocation0] sm:$0x1]  ;;  %v24_v5 = vld [vmem:[#allocation0 + $0x8] sm:$0x1] }
  0x85   :  { %22 = vst [vmem:[%s51_s1] sm:$0x1] %v20_v4  ;;  %28 = vst [vmem:[%s51_s1 + $0x1] sm:$0x1] %v24_v5 }

// kernel: tile.135
= control target key start
LH: loop header
LB: loop body
LE: loop exit
PB: predicated region body
PF: predicated region fallthrough
CT: control target
= control target key end

     0   :  { %s22_s0 = inlined_call_operand.vmem [shape: f32[64], index: 0, kind: input, shape index: {}]   ;;  %s23_s1 = inlined_call_operand.vmem [shape: f32[4,64], index: 1, kind: output, shape index: {}]  }
   0x1   :  { %v4_v0 = vld [vmem:[%s22_s0] ss:$0 sm:$0xff] }
   0x2   :  { %5 = vst [vmem:[%s23_s1] sm:$0xf] %v4_v0 }

// kernel: _lambda_.23
= control target key start
LH: loop header
LB: loop body
LE: loop exit
PB: predicated region body
PF: predicated region fallthrough
CT: control target
= control target key end

     0   :  { %v65_v23 = vlaneseq  ;;  %s1128_s1 = inlined_call_operand.vmem [shape: bf16[512,128], index: 1, kind: input, shape index: {}]   ;;  %s1129_s0 = inlined_call_operand.vmem [shape: bf16[56,512], index: 0, kind: input, shape index: {}]   ;;  %s1130_s3 = inlined_call_operand.vmem [shape: f32[1,512], index: 3, kind: input, shape index: {}]   ;;  %s1131_s4 = inlined_call_operand.vmem [shape: f32[1,512], index: 4, kind: input, shape index: {}]   ;;  %s1132_s2 = inlined_call_operand.vmem [shape: f32[1,128], index: 2, kind: input, shape index: {}]   ;;  %s1133_s5 = inlined_call_operand.vmem [shape: bf16[56,128], index: 5, kind: output, shape index: {}]  }
   0x1   :  { %v835_v0 = vld [vmem:[%s1128_s1 + $0x40] sm:$0xff]   ;;  %v839_v4 = vld [vmem:[%s1128_s1 + $0x48] sm:$0xff]   ;;  %v843_v8 = vld [vmem:[%s1128_s1 + $0x50] sm:$0xff]  }
   0x2   :  { %v836_v1 = vld [vmem:[%s1128_s1 + $0xc0] sm:$0xff]   ;;  %755 = vmatprep.subr.bf16.mxu0 %v835_v0  ;;  %v840_v5 = vld [vmem:[%s1128_s1 + $0xc8] sm:$0xff]   ;;  %v844_v9 = vld [vmem:[%s1128_s1 + $0xd0] sm:$0xff]   ;;  %v66_v28 = vshrl.u32 %v65_v23, 7 }
   0x3   :  { %v837_v2 = vld [vmem:[%s1128_s1] sm:$0xff]   ;;  %795 = vmatprep.subr.bf16.mxu1 %v836_v1  ;;  %v841_v6 = vld [vmem:[%s1128_s1 + $0x8] sm:$0xff]   ;;  %v845_v10 = vld [vmem:[%s1128_s1 + $0x10] sm:$0xff]  }
   0x4   :  { %v838_v3 = vld [vmem:[%s1128_s1 + $0x80] sm:$0xff]   ;;  %756 = vmatpush3.bf16.msra.mxu0 %v837_v2  ;;  %v842_v7 = vld [vmem:[%s1128_s1 + $0x88] sm:$0xff]   ;;  %v846_v11 = vld [vmem:[%s1128_s1 + $0x90] sm:$0xff]   ;;  %v71_v33 = vsub.s32 1, %v66_v28  ;;  %v79_v35 = vsub.s32 3, %v66_v28  ;;  %v67_v39 = vsub.s32 0, %v66_v28 }
   0x5   :  { %796 = vmatpush3.bf16.msra.mxu1 %v838_v3  ;;  %757 = vmatprep.subr.bf16.mxu0 %v839_v4  ;;  %v847_v12 = vld [vmem:[%s1128_s1 + $0x58] sm:$0xff]   ;;  %v851_v16 = vld [vmem:[%s1128_s1 + $0x60] sm:$0xff]   ;;  %v855_v20 = vld [vmem:[%s1128_s1 + $0x68] sm:$0xff]   ;;  %v75_v40 = vsub.s32 2, %v66_v28 }
   0x6   :  { %797 = vmatprep.subr.bf16.mxu1 %v840_v5  ;;  %v848_v13 = vld [vmem:[%s1128_s1 + $0xd8] sm:$0xff]   ;;  %v852_v17 = vld [vmem:[%s1128_s1 + $0xe0] sm:$0xff]   ;;  %v856_v21 = vld [vmem:[%s1128_s1 + $0xe8] sm:$0xff]  }
   0x7   :  { %v849_v14 = vld [vmem:[%s1128_s1 + $0x18] sm:$0xff]   ;;  %v853_v18 = vld [vmem:[%s1128_s1 + $0x20] sm:$0xff]   ;;  %v857_v22 = vld [vmem:[%s1128_s1 + $0x28] sm:$0xff]  }
   0x8   :  { %758 = vmatpush3.bf16.msra.mxu0 %v841_v6  ;;  %v850_v15 = vld [vmem:[%s1128_s1 + $0x98] sm:$0xff]   ;;  %v854_v19 = vld [vmem:[%s1128_s1 + $0xa0] sm:$0xff]   ;;  %v858_v24 = vld [vmem:[%s1128_s1 + $0xa8] sm:$0xff]  }
   0x9   :  { %798 = vmatpush3.bf16.msra.mxu1 %v842_v7  ;;  %759 = vmatprep.subr.bf16.mxu0 %v843_v8  ;;  %v859_v25 = vld [vmem:[%s1128_s1 + $0x70] sm:$0xff]   ;;  %v863_v30 = vld [vmem:[%s1128_s1 + $0x78] sm:$0xff]   ;;  %v21_v36 = vld [vmem:[%s1129_s0] sm:$0xff] }
   0xa   :  { %799 = vmatprep.subr.bf16.mxu1 %v844_v9  ;;  %v860_v26 = vld [vmem:[%s1128_s1 + $0xf0] sm:$0xff]   ;;  %v864_v31 = vld [vmem:[%s1128_s1 + $0xf8] sm:$0xff]   ;;  %v63_v38 = vld [vmem:[%s1130_s3] sm:$0xf]  ;;  %v35_v41 = vunpack.c.l.bf16 %v21_v36  ;;  %v36_v42 = vunpack.c.h.bf16 %v21_v36 }
   0xb   :  { %v861_v27 = vld [vmem:[%s1128_s1 + $0x30] sm:$0xff]   ;;  %v865_v32 = vld [vmem:[%s1128_s1 + $0x38] sm:$0xff]   ;;  %v113_v45 = vld [vmem:[%s1131_s4] sm:$0xf]  ;;  %v1011_v48 = vrot.slane %v63_v38, %v71_v33  ;;  %v1015_v54 = vrot.slane %v63_v38, %v79_v35  ;;  %v1021_v58 = vrot.slane %v63_v38, %v67_v39  ;;  %v1027_v62 = vrot.slane %v63_v38, %v75_v40 }
   0xc   :  { %760 = vmatpush3.bf16.msra.mxu0 %v845_v10  ;;  %v862_v29 = vld [vmem:[%s1128_s1 + $0xb0] sm:$0xff]   ;;  %v866_v34 = vld [vmem:[%s1128_s1 + $0xb8] sm:$0xff]   ;;  %v22_v46 = vld [vmem:[%s1129_s0 + $0x8] sm:$0xff]  ;;  %v1013_v49 = vrot.slane %v113_v45, %v71_v33  ;;  %v1017_v55 = vrot.slane %v113_v45, %v79_v35  ;;  %v1023_v59 = vrot.slane %v113_v45, %v67_v39  ;;  %v1029_v63 = vrot.slane %v113_v45, %v75_v40 }
   0xd   :  { %800 = vmatpush3.bf16.msra.mxu1 %v846_v11  ;;  %761 = vmatprep.subr.bf16.mxu0 %v847_v12  ;;  %v23_v37 = vld [vmem:[%s1129_s0 + $0x10] sm:$0xff]  ;;  %v24_v47 = vld [vmem:[%s1129_s0 + $0x18] sm:$0xff]  ;;  %v37_v50 = vunpack.c.l.bf16 %v22_v46  ;;  %v38_v51 = vunpack.c.h.bf16 %v22_v46  ;;  %v86_v56 = vmul.f32 %v1011_v48, %v36_v42  ;;  %v85_v2 = vmul.f32 %v1021_v58, %v35_v41  ;;  %v25_v8 = vld [vmem:[%s1129_s0 + $0x20] sm:$0xff] }
   0xe   :  { %801 = vmatprep.subr.bf16.mxu1 %v848_v13  ;;  %v39_v43 = vunpack.c.l.bf16 %v23_v37  ;;  %v40_v44 = vunpack.c.h.bf16 %v23_v37  ;;  %v41_v52 = vunpack.c.l.bf16 %v24_v47  ;;  %v42_v53 = vunpack.c.h.bf16 %v24_v47  ;;  %v27_v13 = vld [vmem:[%s1129_s0 + $0x30] sm:$0xff] }
   0xf   :  { %v88_v60 = vmul.f32 %v1015_v54, %v38_v51  ;;  %v136_v0 = vadd.f32 %v1013_v49, %v86_v56  ;;  %v87_v6 = vmul.f32 %v1027_v62, %v37_v50  ;;  %v135_v11 = vadd.f32 %v1023_v59, %v85_v2  ;;  %v30_v2 = vld [vmem:[%s1129_s0 + $0x48] sm:$0xff] }
  0x10   :  { %762 = vmatpush3.bf16.msra.mxu0 %v849_v14  ;;  %v90_v57 = vmul.f32 %v1011_v48, %v40_v44  ;;  %v92_v61 = vmul.f32 %v1015_v54, %v42_v53  ;;  %v89_v3 = vmul.f32 %v1021_v58, %v39_v43  ;;  %v91_v7 = vmul.f32 %v1027_v62, %v41_v52  ;;  %v29_v44 = vld [vmem:[%s1129_s0 + $0x40] sm:$0xff] }
  0x11   :  { %802 = vmatpush3.bf16.msra.mxu1 %v850_v15  ;;  %763 = vmatprep.subr.bf16.mxu0 %v851_v16  ;;  %v138_v4 = vadd.f32 %v1017_v55, %v88_v60  ;;  %v164_v9 = vmax.f32 %v136_v0, 0.0  ;;  %v137_v16 = vadd.f32 %v1029_v63, %v87_v6  ;;  %v44_v23 = vunpack.c.h.bf16 %v25_v8 }
  0x12   :  { %803 = vmatprep.subr.bf16.mxu1 %v852_v17  ;;  %v140_v1 = vadd.f32 %v1013_v49, %v90_v57  ;;  %v142_v5 = vadd.f32 %v1017_v55, %v92_v61  ;;  %v139_v12 = vadd.f32 %v1023_v59, %v89_v3  ;;  %v141_v17 = vadd.f32 %v1029_v63, %v91_v7  ;;  %v31_v57 = vld [vmem:[%s1129_s0 + $0x50] sm:$0xff]  ;;  %v32_v3 = vld [vmem:[%s1129_s0 + $0x58] sm:$0xff] }
  0x13   :  { %v166_v14 = vmax.f32 %v138_v4, 0.0  ;;  %v47_v35 = vunpack.c.l.bf16 %v27_v13 }
  0x14   :  { %764 = vmatpush3.bf16.msra.mxu0 %v853_v18  ;;  %v168_v10 = vmax.f32 %v140_v1, 0.0  ;;  %v170_v15 = vmax.f32 %v142_v5, 0.0  ;;  %v26_v18 = vld [vmem:[%s1129_s0 + $0x28] sm:$0xff]  ;;  %v52_v1 = vunpack.c.h.bf16 %v29_v44 }
  0x15   :  { %804 = vmatpush3.bf16.msra.mxu1 %v854_v19  ;;  %765 = vmatprep.subr.bf16.mxu0 %v855_v20  ;;  %v28_v19 = vld [vmem:[%s1129_s0 + $0x38] sm:$0xff]  ;;  %v45_v39 = vunpack.c.l.bf16 %v26_v18  ;;  %v97_v42 = vmul.f32 %v1021_v58, %v47_v35 }
  0x16   :  { %805 = vmatprep.subr.bf16.mxu1 %v856_v21  ;;  %v192_v20 = vpack.c.bf16 %v168_v10, %v164_v9  ;;  %v163_v21 = vmax.f32 %v135_v11, 0.0  ;;  %v49_v43 = vunpack.c.l.bf16 %v28_v19  ;;  %v56_v10 = vunpack.c.h.bf16 %v31_v57 }
  0x17   :  { %v95_v50 = vmul.f32 %v1027_v62, %v45_v39  ;;  %v147_v53 = vadd.f32 %v1023_v59, %v97_v42  ;;  %v102_v11 = vmul.f32 %v1011_v48, %v52_v1 }
  0x18   :  { %766 = vmatpush3.bf16.msra.mxu0 %v857_v22  ;;  %v167_v22 = vmax.f32 %v139_v12, 0.0  ;;  %495 = vmatprep.mubr.bf16.mxu0 %v192_v20  ;;  %v99_v56 = vmul.f32 %v1027_v62, %v49_v43 }
  0x19   :  { %806 = vmatpush3.bf16.msra.mxu1 %v858_v24  ;;  %767 = vmatprep.subr.bf16.mxu0 %v859_v25  ;;  %v194_v24 = vpack.c.bf16 %v170_v15, %v166_v14  ;;  %v165_v25 = vmax.f32 %v137_v16, 0.0  ;;  %v145_v0 = vadd.f32 %v1029_v63, %v95_v50  ;;  %v175_v6 = vmax.f32 %v147_v53, 0.0 }
  0x1a   :  { %807 = vmatprep.subr.bf16.mxu1 %v860_v26  ;;  %v169_v26 = vmax.f32 %v141_v17, 0.0  ;;  %v191_v28 = vpack.c.bf16 %v167_v22, %v163_v21  ;;  %v149_v7 = vadd.f32 %v1029_v63, %v99_v56  ;;  %v54_v14 = vunpack.c.h.bf16 %v30_v2 }
  0x1b   :  { %559 = vmatprep.mubr.bf16.mxu1 %v194_v24  ;;  %v173_v9 = vmax.f32 %v145_v0, 0.0  ;;  %v58_v15 = vunpack.c.h.bf16 %v32_v3  ;;  %v106_v16 = vmul.f32 %v1011_v48, %v56_v10  ;;  %v152_v17 = vadd.f32 %v1013_v49, %v102_v11  ;;  %v33_v24 = vld [vmem:[%s1129_s0 + $0x60] sm:$0xff] }
  0x1c   :  { %768 = vmatpush3.bf16.msra.mxu0 %v861_v27  ;;  %v48_v27 = vunpack.c.h.bf16 %v27_v13  ;;  %v177_v13 = vmax.f32 %v149_v7, 0.0  ;;  %v104_v21 = vmul.f32 %v1015_v54, %v54_v14  ;;  %v59_v56 = vunpack.c.l.bf16 %v33_v24 }
  0x1d   :  { %808 = vmatpush3.bf16.msra.mxu1 %v862_v29  ;;  %769 = vmatprep.subr.bf16.mxu0 %v863_v30  ;;  %v94_v29 = vmul.f32 %v1011_v48, %v44_v23  ;;  %v46_v30 = vunpack.c.h.bf16 %v26_v18  ;;  %v51_v18 = vunpack.c.l.bf16 %v29_v44  ;;  %v108_v22 = vmul.f32 %v1015_v54, %v58_v15 }
  0x1e   :  { %809 = vmatprep.subr.bf16.mxu1 %v864_v31  ;;  %v50_v31 = vunpack.c.h.bf16 %v28_v19  ;;  %v98_v33 = vmul.f32 %v1011_v48, %v48_v27  ;;  %v55_v19 = vunpack.c.l.bf16 %v31_v57  ;;  %v197_v20 = vpack.c.bf16 %v177_v13, %v173_v9 }
  0x1f   :  { %v144_v36 = vadd.f32 %v1013_v49, %v94_v29  ;;  %v96_v37 = vmul.f32 %v1015_v54, %v46_v30  ;;  %v53_v23 = vunpack.c.l.bf16 %v30_v2  ;;  %v101_v27 = vmul.f32 %v1021_v58, %v51_v18 }
  0x20   :  { %770 = vmatpush3.bf16.msra.mxu0 %v865_v32  ;;  %v193_v32 = vpack.c.bf16 %v169_v26, %v165_v25  ;;  %v100_v38 = vmul.f32 %v1015_v54, %v50_v31  ;;  %v148_v40 = vadd.f32 %v1013_v49, %v98_v33  ;;  %v156_v25 = vadd.f32 %v1013_v49, %v106_v16 }
  0x21   :  { %810 = vmatpush3.bf16.msra.mxu1 %v866_v34  ;;  %v43_v34 = vunpack.c.l.bf16 %v25_v8  ;;  %v172_v45 = vmax.f32 %v144_v36, 0.0  ;;  %v146_v46 = vadd.f32 %v1017_v55, %v96_v37  ;;  %v180_v26 = vmax.f32 %v152_v17, 0.0  ;;  %v34_v37 = vld [vmem:[%s1129_s0 + $0x68] sm:$0xff] }
  0x22   :  { %v150_v47 = vadd.f32 %v1017_v55, %v100_v38  ;;  %v176_v51 = vmax.f32 %v148_v40, 0.0  ;;  %v154_v29 = vadd.f32 %v1017_v55, %v104_v21  ;;  %v158_v30 = vadd.f32 %v1017_v55, %v108_v22 }
  0x23   :  { %496 = vmatmul.mubr.bf16.vlgmr.msra.gmra.mrb[0].mxu0 %v191_v28  ;;  %v93_v41 = vmul.f32 %v1021_v58, %v43_v34  ;;  %v174_v60 = vmax.f32 %v146_v46, 0.0  ;;  %v105_v28 = vmul.f32 %v1021_v58, %v55_v19  ;;  %v57_v31 = vunpack.c.l.bf16 %v32_v3  ;;  %v723_v19 = vld [vmem:[%s1132_s2] ss:$0 sm:$0xff] }
  0x24   :  { %560 = vmatmul.mubr.bf16.vlgmr.msra.gmra.mrb[0].mxu1 %v193_v32  ;;  %v178_v61 = vmax.f32 %v150_v47, 0.0  ;;  %v196_v4 = vpack.c.bf16 %v176_v51, %v172_v45  ;;  %v103_v32 = vmul.f32 %v1027_v62, %v53_v23  ;;  %v184_v33 = vmax.f32 %v156_v25, 0.0 }
  0x25   :  { %v143_v52 = vadd.f32 %v1023_v59, %v93_v41  ;;  %v151_v34 = vadd.f32 %v1023_v59, %v101_v27  ;;  %v155_v35 = vadd.f32 %v1023_v59, %v105_v28  ;;  %v60_v36 = vunpack.c.h.bf16 %v33_v24 }
  0x26   :  { %v198_v8 = vpack.c.bf16 %v178_v61, %v174_v60  ;;  %503 = vmatprep.mubr.bf16.mxu0 %v196_v4  ;;  %v182_v38 = vmax.f32 %v154_v29, 0.0  ;;  %v186_v39 = vmax.f32 %v158_v30, 0.0  ;;  %v107_v40 = vmul.f32 %v1027_v62, %v57_v31 }
  0x27   :  { %v171_v5 = vmax.f32 %v143_v52, 0.0  ;;  %v153_v41 = vadd.f32 %v1029_v63, %v103_v32  ;;  %v200_v42 = vpack.c.bf16 %v184_v33, %v180_v26  ;;  %v179_v43 = vmax.f32 %v151_v34, 0.0 }
  0x28   :  { %567 = vmatprep.mubr.bf16.mxu1 %v198_v8  ;;  %v183_v44 = vmax.f32 %v155_v35, 0.0  ;;  %v110_v45 = vmul.f32 %v1011_v48, %v60_v36  ;;  %v202_v46 = vpack.c.bf16 %v186_v39, %v182_v38  ;;  %v157_v47 = vadd.f32 %v1029_v63, %v107_v40 }
  0x29   :  { %v195_v12 = vpack.c.bf16 %v175_v6, %v171_v5  ;;  %v181_v50 = vmax.f32 %v153_v41, 0.0  ;;  %v62_v51 = vunpack.c.h.bf16 %v34_v37  ;;  %v61_v57 = vunpack.c.l.bf16 %v34_v37 }
  0x2a   :  { %v199_v52 = vpack.c.bf16 %v183_v44, %v179_v43  ;;  %v160_v53 = vadd.f32 %v1013_v49, %v110_v45  ;;  %v185_v60 = vmax.f32 %v157_v47, 0.0  ;;  %v109_v1 = vmul.f32 %v1021_v58, %v59_v56 }
  0x2b   :  { %504 = vmatmul.mubr.bf16.gmra.mrb[4].mxu0 %v195_v12  ;;  %v112_v61 = vmul.f32 %v1015_v54, %v62_v51  ;;  %v111_v48 = vmul.f32 %v1027_v62, %v61_v57 }
  0x2c   :  { %568 = vmatmul.mubr.bf16.gmra.mrb[4].mxu1 %v197_v20  ;;  %511 = vmatprep.mubr.bf16.mxu0 %v200_v42  ;;  %v188_v0 = vmax.f32 %v160_v53, 0.0  ;;  %v201_v2 = vpack.c.bf16 %v185_v60, %v181_v50  ;;  %v159_v5 = vadd.f32 %v1023_v59, %v109_v1 }
  0x2d   :  { %575 = vmatprep.mubr.bf16.mxu1 %v202_v46  ;;  %v162_v3 = vadd.f32 %v1017_v55, %v112_v61  ;;  %v161_v49 = vadd.f32 %v1029_v63, %v111_v48 }
  0x2e   :  { %v204_v4 = vpack.c.bf16 %v188_v0, %v188_v0  ;;  %v187_v7 = vmax.f32 %v159_v5, 0.0 }
  0x2f   :  { %v190_v6 = vmax.f32 %v162_v3, 0.0  ;;  %v189_v8 = vmax.f32 %v161_v49, 0.0 }
  0x30   :  { %v203_v9 = vpack.c.bf16 %v187_v7, %v187_v7 }
  0x31   :  { %v206_v54 = vpack.c.bf16 %v190_v6, %v190_v6  ;;  %v205_v10 = vpack.c.bf16 %v189_v8, %v189_v8 }
  0x33   :  { %512 = vmatmul.mubr.bf16.gmra.mrb[8].mxu0 %v199_v52 }
  0x34   :  { %576 = vmatmul.mubr.bf16.gmra.mrb[8].mxu1 %v201_v2  ;;  %519 = vmatprep.mubr.bf16.mxu0 %v204_v4 }
  0x35   :  { %583 = vmatprep.mubr.bf16.mxu1 %v206_v54 }
  0x3b   :  { %520 = vmatmul.mubr.bf16.gmra.mrb[12].mxu0 %v203_v9 }
  0x3c   :  { %584 = vmatmul.mubr.bf16.gmra.mrb[12].mxu1 %v205_v10 }
  0xf6   :  { %v771_v58 = vpop.f32.mrb[0].mxu0 }
  0xf7   :  { %v811_v62 = vpop.f32.mrb[0].mxu1  ;;  %v772_v11 = vpop.f32.mrb[1].mxu0 }
  0xf8   :  { %v773_v55 = vadd.f32 %v772_v11, %v771_v58  ;;  %v812_v12 = vpop.f32.mrb[1].mxu1  ;;  %v774_v13 = vpop.f32.mrb[2].mxu0 }
  0xf9   :  { %v813_v59 = vadd.f32 %v812_v12, %v811_v62  ;;  %v814_v14 = vpop.f32.mrb[2].mxu1  ;;  %v775_v63 = vpop.f32.mrb[3].mxu0 }
  0xfa   :  { %v776_v15 = vadd.f32 %v775_v63, %v774_v13  ;;  %v815_v16 = vpop.f32.mrb[3].mxu1 }
  0xfb   :  { %v562_v17 = vadd.f32 %v813_v59, %v773_v55  ;;  %v816_v18 = vadd.f32 %v815_v16, %v814_v14 }
  0xfd   :  { %v565_v20 = vadd.f32 %v816_v18, %v776_v15  ;;  %v644_v21 = vadd.f32 %v723_v19, %v562_v17 }
  0xfe   :  { %v777_v23 = vpop.f32.mrb[4].mxu0 }
  0xff   :  { %v645_v22 = vadd.f32 %v723_v19, %v565_v20  ;;  %v778_v24 = vpop.f32.mrb[5].mxu0  ;;  %v817_v26 = vpop.f32.mrb[4].mxu1 }
 0x100   :  { %v779_v27 = vadd.f32 %v778_v24, %v777_v23  ;;  %v780_v28 = vpop.f32.mrb[6].mxu0  ;;  %v818_v29 = vpop.f32.mrb[5].mxu1 }
 0x101   :  { %v741_v25 = vpack.c.bf16 %v645_v22, %v644_v21  ;;  %v781_v30 = vpop.f32.mrb[7].mxu0  ;;  %v819_v31 = vadd.f32 %v818_v29, %v817_v26  ;;  %v820_v32 = vpop.f32.mrb[6].mxu1 }
 0x102   :  { %v782_v33 = vadd.f32 %v781_v30, %v780_v28  ;;  %v821_v34 = vpop.f32.mrb[7].mxu1 }
 0x103   :  { %742 = vst [vmem:[%s1133_s5] sm:$0xff] %v741_v25   ;;  %v570_v35 = vadd.f32 %v819_v31, %v779_v27  ;;  %v822_v36 = vadd.f32 %v821_v34, %v820_v32 }
 0x105   :  { %v573_v37 = vadd.f32 %v822_v36, %v782_v33  ;;  %v646_v39 = vadd.f32 %v723_v19, %v570_v35 }
 0x106   :  { %v783_v38 = vpop.f32.mrb[8].mxu0 }
 0x107   :  { %v647_v40 = vadd.f32 %v723_v19, %v573_v37  ;;  %v784_v41 = vpop.f32.mrb[9].mxu0  ;;  %v823_v45 = vpop.f32.mrb[8].mxu1 }
 0x108   :  { %v785_v42 = vadd.f32 %v784_v41, %v783_v38  ;;  %v786_v43 = vpop.f32.mrb[10].mxu0  ;;  %v824_v47 = vpop.f32.mrb[9].mxu1 }
 0x109   :  { %v746_v44 = vpack.c.bf16 %v647_v40, %v646_v39  ;;  %v787_v46 = vpop.f32.mrb[11].mxu0  ;;  %v825_v51 = vadd.f32 %v824_v47, %v823_v45  ;;  %v826_v52 = vpop.f32.mrb[10].mxu1 }
 0x10a   :  { %v788_v50 = vadd.f32 %v787_v46, %v786_v43  ;;  %v827_v53 = vpop.f32.mrb[11].mxu1 }
 0x10b   :  { %753 = vst [vmem:[%s1133_s5 + $0x8] sm:$0xff] %v746_v44   ;;  %v578_v56 = vadd.f32 %v825_v51, %v785_v42  ;;  %v828_v57 = vadd.f32 %v827_v53, %v826_v52 }
 0x10d   :  { %v581_v61 = vadd.f32 %v828_v57, %v788_v50  ;;  %v648_v2 = vadd.f32 %v723_v19, %v578_v56 }
 0x10e   :  { %v789_v60 = vpop.f32.mrb[12].mxu0 }
 0x10f   :  { %v790_v0 = vpop.f32.mrb[13].mxu0  ;;  %v649_v3 = vadd.f32 %v723_v19, %v581_v61  ;;  %v829_v4 = vpop.f32.mrb[12].mxu1 }
 0x110   :  { %v791_v1 = vadd.f32 %v790_v0, %v789_v60  ;;  %v792_v48 = vpop.f32.mrb[14].mxu0  ;;  %v830_v49 = vpop.f32.mrb[13].mxu1 }
 0x111   :  { %v793_v5 = vpop.f32.mrb[15].mxu0  ;;  %v751_v6 = vpack.c.bf16 %v649_v3, %v648_v2  ;;  %v831_v7 = vadd.f32 %v830_v49, %v829_v4  ;;  %v832_v8 = vpop.f32.mrb[14].mxu1 }
 0x112   :  { %v833_v54 = vpop.f32.mrb[15].mxu1 }
 0x113   :  { %754 = vst [vmem:[%s1133_s5 + $0x10] sm:$0xff] %v751_v6   ;;  %v586_v9 = vadd.f32 %v831_v7, %v791_v1 }
 0x115   :  { %v650_v10 = vadd.f32 %v723_v19, %v586_v9 }
 0x117   :  { %v737_v58 = vpack.c.bf16 %v650_v10, %v650_v10 }
 0x119   :  { %686 = vst [vmem:[%s1133_s5 + $0x18] sm:$0xf] %v737_v58 }

// kernel: _lambda_.24
= control target key start
LH: loop header
LB: loop body
LE: loop exit
PB: predicated region body
PF: predicated region fallthrough
CT: control target
= control target key end

     0   :  { %v153_v18 = vmov 1966171168   ;;  %v58_v20 = vlaneseq  ;;  %s181_s0 = inlined_call_operand.vmem [shape: bf16[16,256], index: 0, kind: input, shape index: {}]   ;;  %s182_s1 = inlined_call_operand.vmem [shape: f32[1,256], index: 1, kind: output, shape index: {0}]   ;;  %s183_s2 = inlined_call_operand.vmem [shape: f32[1,256], index: 2, kind: output, shape index: {1}]  }
   0x1   :  { %v10_v0 = vld [vmem:[%s181_s0] sm:$0xff]  ;;  %v11_v1 = vld [vmem:[%s181_s0 + $0x8] sm:$0xff]  ;;  %v56_v19 = vunpack.c.l.s4 %v153_v18 }
   0x2   :  { %v12_v2 = vunpack.c.l.bf16 %v10_v0  ;;  %v13_v3 = vunpack.c.h.bf16 %v10_v0  ;;  %v14_v4 = vunpack.c.l.bf16 %v11_v1  ;;  %v15_v5 = vunpack.c.h.bf16 %v11_v1 }
   0x3   :  { %v57_v29 = vunpack.c.0.s8 %v56_v19  ;;  %v59_v30 = vshrl.u32 %v58_v20, 7  ;;  %vm72_vm0 = vcmp.lt.s32.totalorder %v58_v20, 256 }
   0x4   :  { %v16_v6 = vadd.f32 %v14_v4, %v12_v2  ;;  %v23_v7 = vadd.f32 %v15_v5, %v13_v3  ;;  %v30_v8 = vmul.f32 %v12_v2, %v12_v2  ;;  %v31_v9 = vmul.f32 %v13_v3, %v13_v3 }
   0x5   :  { %v32_v10 = vmul.f32 %v14_v4, %v14_v4  ;;  %v33_v11 = vmul.f32 %v15_v5, %v15_v5  ;;  %v60_v39 = vsub.s32 %v57_v29, %v59_v30 }
   0x6   :  { %v17_v12 = vrot.slane %v16_v6, 4  ;;  %v24_v13 = vrot.slane %v23_v7, 4 }
   0x7   :  { %v34_v14 = vadd.f32 %v32_v10, %v30_v8  ;;  %v41_v15 = vadd.f32 %v33_v11, %v31_v9 }
   0x8   :  { %v18_v16 = vadd.f32 %v17_v12, %v16_v6  ;;  %v25_v17 = vadd.f32 %v24_v13, %v23_v7 }
   0x9   :  { %v35_v21 = vrot.slane %v34_v14, 4  ;;  %v42_v22 = vrot.slane %v41_v15, 4 }
   0xa   :  { %v19_v23 = vrot.slane %v18_v16, 2  ;;  %v26_v24 = vrot.slane %v25_v17, 2 }
   0xb   :  { %v36_v25 = vadd.f32 %v35_v21, %v34_v14  ;;  %v43_v26 = vadd.f32 %v42_v22, %v41_v15 }
   0xc   :  { %v20_v27 = vadd.f32 %v19_v23, %v18_v16  ;;  %v27_v28 = vadd.f32 %v26_v24, %v25_v17 }
   0xd   :  { %v37_v31 = vrot.slane %v36_v25, 2  ;;  %v44_v32 = vrot.slane %v43_v26, 2 }
   0xe   :  { %v21_v33 = vrot.slane %v20_v27, 1  ;;  %v28_v34 = vrot.slane %v27_v28, 1 }
   0xf   :  { %v38_v35 = vadd.f32 %v37_v31, %v36_v25  ;;  %v45_v36 = vadd.f32 %v44_v32, %v43_v26 }
  0x10   :  { %v22_v37 = vadd.f32 %v21_v33, %v20_v27  ;;  %v29_v38 = vadd.f32 %v28_v34, %v27_v28 }
  0x11   :  { %v39_v40 = vrot.slane %v38_v35, 1  ;;  %v46_v41 = vrot.slane %v45_v36, 1 }
  0x12   :  { %v54_v42 = vcombine.low %v22_v37, %v29_v38 }
  0x13   :  { %v40_v43 = vadd.f32 %v39_v40, %v38_v35  ;;  %v47_v44 = vadd.f32 %v46_v41, %v45_v36 }
  0x14   :  { %v61_v45 = vrot.slane %v54_v42, %v60_v39 }
  0x15   :  { %v77_v46 = vcombine.low %v40_v43, %v47_v44 }
  0x16   :  { %v68_v47 = vrot.slane %v61_v45, %v60_v39 }
  0x17   :  { %v84_v48 = vrot.slane %v77_v46, %v60_v39 }
  0x18   :  { %74 = vst.msk [vmem:[%s182_s1] sm:$0x3] %vm72_vm0, %v68_v47 }
  0x19   :  { %v91_v49 = vrot.slane %v84_v48, %v60_v39 }
  0x1b   :  { %93 = vst.msk [vmem:[%s183_s2] sm:$0x3] %vm72_vm0, %v91_v49 }

// kernel: _lambda_.25
= control target key start
LH: loop header
LB: loop body
LE: loop exit
PB: predicated region body
PF: predicated region fallthrough
CT: control target
= control target key end

     0   :  { %v86_v5 = vlaneseq  ;;  %vm508_vm0 = vcmask 523264   ;;  %vm735_vm1 = vcmask 519168   ;;  %s1308_s1 = inlined_call_operand.vmem [shape: bf16[256,64], index: 1, kind: input, shape index: {}]   ;;  %s1309_s0 = inlined_call_operand.vmem [shape: bf16[168,256], index: 0, kind: input, shape index: {}]   ;;  %s1310_s3 = inlined_call_operand.vmem [shape: f32[1,256], index: 3, kind: input, shape index: {}]   ;;  %s1311_s4 = inlined_call_operand.vmem [shape: f32[1,256], index: 4, kind: input, shape index: {}]   ;;  %s1312_s2 = inlined_call_operand.vmem [shape: f32[1,64], index: 2, kind: input, shape index: {}]   ;;  %s1313_s5 = inlined_call_operand.vmem [shape: bf16[168,64], index: 5, kind: output, shape index: {}]  }
   0x1   :  { %v918_v0 = vld [vmem:[%s1308_s1 + $0x40] sm:$0xff]   ;;  %v920_v2 = vld [vmem:[%s1308_s1 + $0x48] sm:$0xff]   ;;  %v922_v4 = vld [vmem:[%s1308_s1 + $0x50] sm:$0xff]  }
   0x2   :  { %v919_v1 = vld [vmem:[%s1308_s1] sm:$0xff]   ;;  %820 = vmatprep.subr.bf16.mxu0 %v918_v0  ;;  %902 = vmatprep.subr.bf16.mxu1 %v918_v0  ;;  %v921_v3 = vld [vmem:[%s1308_s1 + $0x8] sm:$0xff]   ;;  %v923_v6 = vld [vmem:[%s1308_s1 + $0x10] sm:$0xff]   ;;  %v87_v8 = vshrl.u32 %v86_v5, 7 }
   0x3   :  { %821 = vmatpush3.bf16.msra.mxu0 %v919_v1  ;;  %910 = vmatpush3.bf16.msra.mxu1 %v919_v1  ;;  %v924_v7 = vld [vmem:[%s1308_s1 + $0x58] sm:$0xff]   ;;  %v926_v10 = vld [vmem:[%s1308_s1 + $0x60] sm:$0xff]   ;;  %v928_v14 = vld [vmem:[%s1308_s1 + $0x68] sm:$0xff]  }
   0x4   :  { %822 = vmatprep.subr.bf16.mxu0 %v920_v2  ;;  %903 = vmatprep.subr.bf16.mxu1 %v920_v2  ;;  %v925_v9 = vld [vmem:[%s1308_s1 + $0x18] sm:$0xff]   ;;  %v88_v11 = vsub.s32 0, %v87_v8  ;;  %v927_v12 = vld [vmem:[%s1308_s1 + $0x20] sm:$0xff]   ;;  %v92_v13 = vsub.s32 1, %v87_v8  ;;  %v22_v16 = vld [vmem:[%s1309_s0 + $0x8] sm:$0xff] }
   0x5   :  { %v21_v15 = vld [vmem:[%s1309_s0] sm:$0xff]  ;;  %v44_v20 = vunpack.c.l.bf16 %v22_v16  ;;  %v45_v21 = vunpack.c.h.bf16 %v22_v16  ;;  %v34_v24 = vld [vmem:[%s1309_s0 + $0x68] sm:$0xff]  ;;  %v23_v29 = vld [vmem:[%s1309_s0 + $0x10] sm:$0xff] }
   0x6   :  { %v84_v17 = vld [vmem:[%s1310_s3] sm:$0x3]  ;;  %v42_v18 = vunpack.c.l.bf16 %v21_v15  ;;  %v43_v19 = vunpack.c.h.bf16 %v21_v15  ;;  %v1029_v30 = vld [vmem:[%s1309_s0 + $0x18] sm:$0xff]  ;;  %v929_v31 = vld [vmem:[%s1308_s1 + $0x28] sm:$0xff]   ;;  %v68_v34 = vunpack.c.l.bf16 %v34_v24  ;;  %v69_v35 = vunpack.c.h.bf16 %v34_v24 }
   0x7   :  { %823 = vmatpush3.bf16.msra.mxu0 %v921_v3  ;;  %911 = vmatpush3.bf16.msra.mxu1 %v921_v3  ;;  %v138_v22 = vld [vmem:[%s1311_s4] sm:$0x3]  ;;  %v1015_v25 = vrot.slane %v84_v17, %v88_v11  ;;  %v1017_v26 = vrot.slane %v84_v17, %v92_v13  ;;  %v930_v36 = vld [vmem:[%s1308_s1 + $0x70] sm:$0xff]   ;;  %v47_v40 = vunpack.c.h.bf16 %v23_v29  ;;  %v49_v44 = vunpack.c.h.bf16 %v1029_v30  ;;  %v932_v54 = vld [vmem:[%s1308_s1 + $0x78] sm:$0xff]  }
   0x8   :  { %824 = vmatprep.subr.bf16.mxu0 %v922_v4  ;;  %904 = vmatprep.subr.bf16.mxu1 %v922_v4  ;;  %v33_v23 = vld [vmem:[%s1309_s0 + $0x60] sm:$0xff]  ;;  %v1019_v27 = vrot.slane %v138_v22, %v88_v11  ;;  %v1021_v28 = vrot.slane %v138_v22, %v92_v13  ;;  %v931_v49 = vld [vmem:[%s1308_s1 + $0x30] sm:$0xff]   ;;  %v46_v53 = vunpack.c.l.bf16 %v23_v29  ;;  %v36_v4 = vld [vmem:[%s1309_s0 + $0x78] sm:$0xff] }
   0x9   :  { %v66_v32 = vunpack.c.l.bf16 %v33_v23  ;;  %v67_v33 = vunpack.c.h.bf16 %v33_v23  ;;  %v97_v37 = vmul.f32 %v1017_v26, %v43_v19  ;;  %v99_v38 = vmul.f32 %v1017_v26, %v45_v21  ;;  %v35_v3 = vld [vmem:[%s1309_s0 + $0x70] sm:$0xff]  ;;  %v25_v5 = vld [vmem:[%s1309_s0 + $0x20] sm:$0xff]  ;;  %v26_v15 = vld [vmem:[%s1309_s0 + $0x28] sm:$0xff] }
   0xa   :  { %v96_v39 = vmul.f32 %v1015_v25, %v42_v18  ;;  %v98_v41 = vmul.f32 %v1015_v25, %v44_v20  ;;  %v123_v43 = vmul.f32 %v1017_v26, %v69_v35  ;;  %v101_v48 = vmul.f32 %v1017_v26, %v47_v40 }
   0xb   :  { %825 = vmatpush3.bf16.msra.mxu0 %v923_v6  ;;  %912 = vmatpush3.bf16.msra.mxu1 %v923_v6  ;;  %v121_v42 = vmul.f32 %v1017_v26, %v67_v33  ;;  %v151_v45 = vadd.f32 %v1021_v28, %v97_v37  ;;  %v153_v46 = vadd.f32 %v1021_v28, %v99_v38  ;;  %v933_v6 = vld [vmem:[%s1308_s1 + $0x38] sm:$0xff]   ;;  %v71_v17 = vunpack.c.h.bf16 %v35_v3 }
   0xc   :  { %826 = vmatprep.subr.bf16.mxu0 %v924_v7  ;;  %905 = vmatprep.subr.bf16.mxu1 %v924_v7  ;;  %v150_v47 = vadd.f32 %v1019_v27, %v96_v39  ;;  %v152_v50 = vadd.f32 %v1019_v27, %v98_v41  ;;  %v177_v52 = vadd.f32 %v1021_v28, %v123_v43  ;;  %v73_v18 = vunpack.c.h.bf16 %v36_v4 }
   0xd   :  { %v175_v51 = vadd.f32 %v1021_v28, %v121_v42  ;;  %v193_v55 = vmax.f32 %v151_v45, 0.0  ;;  %v195_v56 = vmax.f32 %v153_v46, 0.0  ;;  %v103_v58 = vmul.f32 %v1017_v26, %v49_v44  ;;  %v37_v44 = vld [vmem:[%s1309_s0 + $0x80] sm:$0xff] }
   0xe   :  { %v192_v57 = vmax.f32 %v150_v47, 0.0  ;;  %v194_v59 = vmax.f32 %v152_v50, 0.0  ;;  %v219_v61 = vmax.f32 %v177_v52, 0.0  ;;  %v155_v62 = vadd.f32 %v1021_v28, %v101_v48 }
   0xf   :  { %827 = vmatpush3.bf16.msra.mxu0 %v925_v9  ;;  %913 = vmatpush3.bf16.msra.mxu1 %v925_v9  ;;  %v217_v60 = vmax.f32 %v175_v51, 0.0  ;;  %v235_v63 = vpack.c.bf16 %v195_v56, %v193_v55  ;;  %v157_v0 = vadd.f32 %v1021_v28, %v103_v58  ;;  %v120_v1 = vmul.f32 %v1015_v25, %v66_v32 }
  0x10   :  { %828 = vmatprep.subr.bf16.mxu0 %v926_v10  ;;  %906 = vmatprep.subr.bf16.mxu1 %v926_v10  ;;  %v122_v2 = vmul.f32 %v1015_v25, %v68_v34  ;;  %v234_v7 = vpack.c.bf16 %v194_v59, %v192_v57  ;;  %v197_v9 = vmax.f32 %v155_v62, 0.0  ;;  %v48_v10 = vunpack.c.l.bf16 %v1029_v30  ;;  %v28_v59 = vld [vmem:[%s1309_s0 + $0x38] sm:$0xff] }
  0x11   :  { %v247_v8 = vpack.c.bf16 %v219_v61, %v217_v60  ;;  %416 = vmatprep.mubr.bf16.mxu0 %v235_v63  ;;  %v199_v11 = vmax.f32 %v157_v0, 0.0  ;;  %v51_v19 = vunpack.c.h.bf16 %v25_v5  ;;  %v125_v29 = vmul.f32 %v1017_v26, %v71_v17 }
  0x12   :  { %v176_v13 = vadd.f32 %v1019_v27, %v122_v2  ;;  %v102_v16 = vmul.f32 %v1015_v25, %v48_v10  ;;  %v127_v30 = vmul.f32 %v1017_v26, %v73_v18  ;;  %v70_v35 = vunpack.c.l.bf16 %v35_v3 }
  0x13   :  { %829 = vmatpush3.bf16.msra.mxu0 %v927_v12  ;;  %914 = vmatpush3.bf16.msra.mxu1 %v927_v12  ;;  %v174_v12 = vadd.f32 %v1019_v27, %v120_v1  ;;  %v237_v20 = vpack.c.bf16 %v199_v11, %v197_v9  ;;  %v105_v34 = vmul.f32 %v1017_v26, %v51_v19  ;;  %v72_v41 = vunpack.c.l.bf16 %v36_v4 }
  0x14   :  { %830 = vmatprep.subr.bf16.mxu0 %v928_v14  ;;  %907 = vmatprep.subr.bf16.mxu1 %v928_v14  ;;  %v100_v14 = vmul.f32 %v1015_v25, %v46_v53  ;;  %v218_v22 = vmax.f32 %v176_v13, 0.0  ;;  %v156_v24 = vadd.f32 %v1019_v27, %v102_v16  ;;  %v179_v37 = vadd.f32 %v1021_v28, %v125_v29  ;;  %v40_v29 = vld [vmem:[%s1309_s0 + $0x98] sm:$0xff] }
  0x15   :  { %464 = vmatprep.mubr.bf16.mxu1 %v247_v8  ;;  %v216_v21 = vmax.f32 %v174_v12, 0.0  ;;  %v181_v38 = vadd.f32 %v1021_v28, %v127_v30  ;;  %v159_v40 = vadd.f32 %v1021_v28, %v105_v34  ;;  %v124_v42 = vmul.f32 %v1015_v25, %v70_v35  ;;  %v29_v34 = vld [vmem:[%s1309_s0 + $0x40] sm:$0xff] }
  0x16   :  { %v154_v23 = vadd.f32 %v1019_v27, %v100_v14  ;;  %v50_v43 = vunpack.c.l.bf16 %v25_v5  ;;  %v221_v46 = vmax.f32 %v179_v37, 0.0  ;;  %v126_v51 = vmul.f32 %v1015_v25, %v72_v41 }
  0x17   :  { %831 = vmatpush3.bf16.msra.mxu0 %v929_v31  ;;  %915 = vmatpush3.bf16.msra.mxu1 %v929_v31  ;;  %v53_v31 = vunpack.c.h.bf16 %v26_v15  ;;  %v246_v32 = vpack.c.bf16 %v218_v22, %v216_v21  ;;  %v223_v47 = vmax.f32 %v181_v38, 0.0  ;;  %v201_v50 = vmax.f32 %v159_v40, 0.0 }
  0x18   :  { %832 = vmatprep.subr.bf16.mxu0 %v930_v36  ;;  %908 = vmatprep.subr.bf16.mxu1 %v930_v36  ;;  %v196_v33 = vmax.f32 %v154_v23, 0.0  ;;  %v198_v36 = vmax.f32 %v156_v24, 0.0  ;;  %v178_v52 = vadd.f32 %v1019_v27, %v124_v42  ;;  %v52_v53 = vunpack.c.l.bf16 %v26_v15 }
  0x19   :  { %v107_v39 = vmul.f32 %v1017_v26, %v53_v31  ;;  %v249_v55 = vpack.c.bf16 %v223_v47, %v221_v46  ;;  %v104_v57 = vmul.f32 %v1015_v25, %v50_v43  ;;  %v75_v58 = vunpack.c.h.bf16 %v37_v44 }
  0x1a   :  { %v236_v45 = vpack.c.bf16 %v198_v36, %v196_v33  ;;  %v180_v60 = vadd.f32 %v1019_v27, %v126_v51  ;;  %v220_v61 = vmax.f32 %v178_v52, 0.0  ;;  %v106_v62 = vmul.f32 %v1015_v25, %v52_v53 }
  0x1b   :  { %833 = vmatpush3.bf16.msra.mxu0 %v931_v49  ;;  %916 = vmatpush3.bf16.msra.mxu1 %v931_v49  ;;  %v161_v48 = vadd.f32 %v1021_v28, %v107_v39  ;;  %v38_v49 = vld [vmem:[%s1309_s0 + $0x88] sm:$0xff]  ;;  %v158_v1 = vadd.f32 %v1019_v27, %v104_v57  ;;  %v129_v2 = vmul.f32 %v1017_v26, %v75_v58  ;;  %v74_v11 = vunpack.c.l.bf16 %v37_v44 }
  0x1c   :  { %834 = vmatprep.subr.bf16.mxu0 %v932_v54  ;;  %909 = vmatprep.subr.bf16.mxu1 %v932_v54  ;;  %v27_v54 = vld [vmem:[%s1309_s0 + $0x30] sm:$0xff]  ;;  %v77_v63 = vunpack.c.h.bf16 %v38_v49  ;;  %v222_v4 = vmax.f32 %v180_v60, 0.0  ;;  %v160_v5 = vadd.f32 %v1019_v27, %v106_v62  ;;  %v76_v18 = vunpack.c.l.bf16 %v38_v49  ;;  %v30_v39 = vld [vmem:[%s1309_s0 + $0x48] sm:$0xff] }
  0x1d   :  { %v203_v56 = vmax.f32 %v161_v48, 0.0  ;;  %v55_v3 = vunpack.c.h.bf16 %v27_v54  ;;  %v200_v8 = vmax.f32 %v158_v1, 0.0  ;;  %v183_v9 = vadd.f32 %v1021_v28, %v129_v2 }
  0x1e   :  { %v248_v12 = vpack.c.bf16 %v222_v4, %v220_v61  ;;  %v202_v13 = vmax.f32 %v160_v5, 0.0  ;;  %v128_v19 = vmul.f32 %v1015_v25, %v74_v11  ;;  %v54_v24 = vunpack.c.l.bf16 %v27_v54  ;;  %v31_v5 = vld [vmem:[%s1309_s0 + $0x50] sm:$0xff] }
  0x1f   :  { %835 = vmatpush3.bf16.msra.mxu0 %v933_v6  ;;  %917 = vmatpush3.bf16.msra.mxu1 %v933_v6  ;;  %v239_v0 = vpack.c.bf16 %v203_v56, %v201_v50  ;;  %v131_v6 = vmul.f32 %v1017_v26, %v77_v63  ;;  %v109_v10 = vmul.f32 %v1017_v26, %v55_v3  ;;  %v225_v16 = vmax.f32 %v183_v9, 0.0 }
  0x20   :  { %v238_v21 = vpack.c.bf16 %v202_v13, %v200_v8  ;;  %v130_v31 = vmul.f32 %v1015_v25, %v76_v18  ;;  %v56_v33 = vunpack.c.l.bf16 %v28_v59  ;;  %v108_v37 = vmul.f32 %v1015_v25, %v54_v24 }
  0x21   :  { %v185_v14 = vadd.f32 %v1021_v28, %v131_v6  ;;  %v163_v17 = vadd.f32 %v1021_v28, %v109_v10  ;;  %v81_v43 = vunpack.c.h.bf16 %v40_v29  ;;  %v59_v47 = vunpack.c.h.bf16 %v29_v34  ;;  %v32_v10 = vld [vmem:[%s1309_s0 + $0x58] sm:$0xff] }
  0x22   :  { %417 = vmatmul.mubr.bf16.vlgmr.msra.gmra.mrb[0].mxu0 %v234_v7  ;;  %465 = vmatmul.mubr.bf16.vlgmr.msra.gmra.mrb[0].mxu1 %v246_v32  ;;  %v57_v7 = vunpack.c.h.bf16 %v28_v59  ;;  %v182_v32 = vadd.f32 %v1019_v27, %v128_v19  ;;  %v184_v40 = vadd.f32 %v1019_v27, %v130_v31  ;;  %v110_v42 = vmul.f32 %v1015_v25, %v56_v33 }
  0x23   :  { %424 = vmatprep.mubr.bf16.mxu0 %v237_v20  ;;  %472 = vmatprep.mubr.bf16.mxu1 %v249_v55  ;;  %v39_v20 = vld [vmem:[%s1309_s0 + $0x90] sm:$0xff]  ;;  %v227_v22 = vmax.f32 %v185_v14, 0.0  ;;  %v205_v30 = vmax.f32 %v163_v17, 0.0  ;;  %v135_v50 = vmul.f32 %v1017_v26, %v81_v43  ;;  %v61_v51 = vunpack.c.h.bf16 %v30_v39 }
  0x24   :  { %v111_v15 = vmul.f32 %v1017_v26, %v57_v7  ;;  %v79_v38 = vunpack.c.h.bf16 %v39_v20  ;;  %v224_v41 = vmax.f32 %v182_v32, 0.0  ;;  %v226_v48 = vmax.f32 %v184_v40, 0.0 }
  0x25   :  { %v251_v35 = vpack.c.bf16 %v227_v22, %v225_v16  ;;  %v164_v49 = vadd.f32 %v1019_v27, %v110_v42  ;;  %v113_v54 = vmul.f32 %v1017_v26, %v59_v47  ;;  %v78_v55 = vunpack.c.l.bf16 %v39_v20 }
  0x26   :  { %v165_v23 = vadd.f32 %v1021_v28, %v111_v15  ;;  %v133_v46 = vmul.f32 %v1017_v26, %v79_v38  ;;  %v250_v56 = vpack.c.bf16 %v226_v48, %v224_v41  ;;  %v189_v58 = vadd.f32 %v1021_v28, %v135_v50 }
  0x27   :  { %v206_v57 = vmax.f32 %v164_v49, 0.0  ;;  %v115_v59 = vmul.f32 %v1017_v26, %v61_v51  ;;  %v167_v61 = vadd.f32 %v1021_v28, %v113_v54  ;;  %v80_v62 = vunpack.c.l.bf16 %v40_v29 }
  0x28   :  { %v207_v36 = vmax.f32 %v165_v23, 0.0  ;;  %v187_v53 = vadd.f32 %v1021_v28, %v133_v46  ;;  %v132_v63 = vmul.f32 %v1015_v25, %v78_v55  ;;  %v231_v2 = vmax.f32 %v189_v58, 0.0 }
  0x29   :  { %v169_v3 = vadd.f32 %v1021_v28, %v115_v59  ;;  %v58_v4 = vunpack.c.l.bf16 %v29_v34  ;;  %v209_v6 = vmax.f32 %v167_v61, 0.0  ;;  %v134_v7 = vmul.f32 %v1015_v25, %v80_v62 }
  0x2a   :  { %425 = vmatmul.mubr.bf16.gmra.mrb[4].mxu0 %v236_v45  ;;  %473 = vmatmul.mubr.bf16.gmra.mrb[4].mxu1 %v248_v12  ;;  %v241_v44 = vpack.c.bf16 %v207_v36, %v205_v30  ;;  %v162_v45 = vadd.f32 %v1019_v27, %v108_v37  ;;  %v229_v60 = vmax.f32 %v187_v53, 0.0  ;;  %v186_v8 = vadd.f32 %v1019_v27, %v132_v63 }
  0x2b   :  { %432 = vmatprep.mubr.bf16.mxu0 %v239_v0  ;;  %480 = vmatprep.mubr.bf16.mxu1 %v251_v35  ;;  %v41_v0 = vld [vmem:[%s1309_s0 + $0xa0] sm:$0xff]  ;;  %v60_v9 = vunpack.c.l.bf16 %v30_v39  ;;  %v211_v12 = vmax.f32 %v169_v3, 0.0  ;;  %v112_v13 = vmul.f32 %v1015_v25, %v58_v4  ;;  %v188_v15 = vadd.f32 %v1019_v27, %v134_v7 }
  0x2c   :  { %v204_v52 = vmax.f32 %v162_v45, 0.0  ;;  %v253_v11 = vpack.c.bf16 %v231_v2, %v229_v60  ;;  %v83_v14 = vunpack.c.h.bf16 %v41_v0  ;;  %v228_v16 = vmax.f32 %v186_v8, 0.0  ;;  %v1184_v2 = vld [vmem:[%s1312_s2] ss:$0 sm:$0xff] }
  0x2d   :  { %v114_v17 = vmul.f32 %v1015_v25, %v60_v9  ;;  %v63_v18 = vunpack.c.h.bf16 %v31_v5  ;;  %v243_v19 = vpack.c.bf16 %v211_v12, %v209_v6  ;;  %v166_v20 = vadd.f32 %v1019_v27, %v112_v13 }
  0x2e   :  { %v240_v1 = vpack.c.bf16 %v206_v57, %v204_v52  ;;  %v65_v22 = vunpack.c.h.bf16 %v32_v10  ;;  %v230_v23 = vmax.f32 %v188_v15, 0.0  ;;  %v82_v30 = vunpack.c.l.bf16 %v41_v0 }
  0x2f   :  { %v168_v24 = vadd.f32 %v1019_v27, %v114_v17  ;;  %v117_v29 = vmul.f32 %v1017_v26, %v63_v18  ;;  %v208_v31 = vmax.f32 %v166_v20, 0.0  ;;  %v62_v34 = vunpack.c.l.bf16 %v31_v5 }
  0x30   :  { %v119_v33 = vmul.f32 %v1017_v26, %v65_v22  ;;  %v252_v35 = vpack.c.bf16 %v230_v23, %v228_v16  ;;  %v136_v38 = vmul.f32 %v1015_v25, %v82_v30  ;;  %v64_v41 = vunpack.c.l.bf16 %v32_v10 }
  0x31   :  { %v210_v36 = vmax.f32 %v168_v24, 0.0  ;;  %v171_v37 = vadd.f32 %v1021_v28, %v117_v29  ;;  %v116_v42 = vmul.f32 %v1015_v25, %v62_v34 }
  0x32   :  { %433 = vmatmul.mubr.bf16.gmra.mrb[8].mxu0 %v238_v21  ;;  %481 = vmatmul.mubr.bf16.gmra.mrb[8].mxu1 %v250_v56  ;;  %v137_v21 = vmul.f32 %v1017_v26, %v83_v14  ;;  %v173_v40 = vadd.f32 %v1021_v28, %v119_v33  ;;  %v190_v45 = vadd.f32 %v1019_v27, %v136_v38 }
  0x33   :  { %440 = vmatprep.mubr.bf16.mxu0 %v241_v44  ;;  %488 = vmatprep.mubr.bf16.mxu1 %v253_v11  ;;  %v242_v43 = vpack.c.bf16 %v210_v36, %v208_v31  ;;  %v213_v44 = vmax.f32 %v171_v37, 0.0  ;;  %v118_v47 = vmul.f32 %v1015_v25, %v64_v41  ;;  %v170_v48 = vadd.f32 %v1019_v27, %v116_v42 }
  0x34   :  { %v191_v32 = vadd.f32 %v1021_v28, %v137_v21  ;;  %v215_v26 = vmax.f32 %v173_v40, 0.0  ;;  %v232_v49 = vmax.f32 %v190_v45, 0.0 }
  0x35   :  { %v172_v51 = vadd.f32 %v1019_v27, %v118_v47  ;;  %v212_v52 = vmax.f32 %v170_v48, 0.0 }
  0x36   :  { %v233_v39 = vmax.f32 %v191_v32, 0.0  ;;  %v245_v50 = vpack.c.bf16 %v215_v26, %v213_v44  ;;  %v254_v28 = vpack.c.bf16 %v232_v49, %v232_v49 }
  0x37   :  { %v214_v53 = vmax.f32 %v172_v51, 0.0 }
  0x38   :  { %v255_v46 = vpack.c.bf16 %v233_v39, %v233_v39 }
  0x39   :  { %v244_v54 = vpack.c.bf16 %v214_v53, %v212_v52 }
  0x3a   :  { %441 = vmatmul.mubr.bf16.gmra.mrb[12].mxu0 %v240_v1  ;;  %489 = vmatmul.mubr.bf16.gmra.mrb[12].mxu1 %v252_v35 }
  0x3b   :  { %448 = vmatprep.mubr.bf16.mxu0 %v243_v19  ;;  %496 = vmatprep.mubr.bf16.mxu1 %v255_v46 }
  0x42   :  { %449 = vmatmul.mubr.bf16.gmra.mrb[16].mxu0 %v242_v43  ;;  %497 = vmatmul.mubr.bf16.gmra.mrb[16].mxu1 %v254_v28 }
  0x43   :  { %456 = vmatprep.mubr.bf16.mxu0 %v245_v50 }
  0x4a   :  { %457 = vmatmul.mubr.bf16.gmra.mrb[20].mxu0 %v244_v54 }
  0xf5   :  { %v836_v55 = vpop.f32.mrb[0].mxu0  ;;  %v872_v56 = vpop.f32.mrb[0].mxu1 }
  0xf6   :  { %v837_v57 = vpop.f32.mrb[1].mxu0  ;;  %v873_v25 = vpop.f32.mrb[1].mxu1 }
  0xf7   :  { %v838_v58 = vadd.f32 %v837_v57, %v836_v55  ;;  %v839_v59 = vpop.f32.mrb[2].mxu0  ;;  %v874_v60 = vadd.f32 %v873_v25, %v872_v56  ;;  %v875_v61 = vpop.f32.mrb[2].mxu1 }
  0xf8   :  { %v840_v62 = vpop.f32.mrb[3].mxu0  ;;  %v876_v63 = vpop.f32.mrb[3].mxu1 }
  0xf9   :  { %509 = vst.msk [vmem:[#allocation2] sm:$0xff] %vm508_vm0, %v838_v58  ;;  %v841_v27 = vadd.f32 %v840_v62, %v839_v59  ;;  %521 = vst.msk [vmem:[#allocation2 + $0x60] sm:$0xff] %vm508_vm0, %v874_v60  ;;  %v877_v0 = vadd.f32 %v876_v63, %v875_v61 }
  0xfb   :  { %510 = vst.msk [vmem:[#allocation2 + $0x8] sm:$0xff] %vm508_vm0, %v841_v27  ;;  %522 = vst.msk [vmem:[#allocation2 + $0x68] sm:$0xff] %vm508_vm0, %v877_v0 }
  0xfd   :  { %v842_v1 = vpop.f32.mrb[4].mxu0  ;;  %v878_v6 = vpop.f32.mrb[4].mxu1 }
  0xfe   :  { %v843_v3 = vpop.f32.mrb[5].mxu0  ;;  %v879_v10 = vpop.f32.mrb[5].mxu1 }
  0xff   :  { %v844_v4 = vadd.f32 %v843_v3, %v842_v1  ;;  %v845_v5 = vpop.f32.mrb[6].mxu0  ;;  %v880_v14 = vadd.f32 %v879_v10, %v878_v6  ;;  %v881_v15 = vpop.f32.mrb[6].mxu1 }
 0x100   :  { %v601_v7 = vld [vmem:[#allocation2] sm:$0xff]  ;;  %v846_v9 = vpop.f32.mrb[7].mxu0  ;;  %v882_v18 = vpop.f32.mrb[7].mxu1 }
 0x101   :  { %v613_v8 = vld [vmem:[#allocation2 + $0x60] sm:$0xff]  ;;  %v629_v11 = vadd.f32 %v1184_v2, %v601_v7  ;;  %511 = vst.msk [vmem:[#allocation2 + $0x10] sm:$0xff] %vm508_vm0, %v844_v4  ;;  %v847_v13 = vadd.f32 %v846_v9, %v845_v5  ;;  %523 = vst.msk [vmem:[#allocation2 + $0x70] sm:$0xff] %vm508_vm0, %v880_v14  ;;  %v883_v23 = vadd.f32 %v882_v18, %v881_v15 }
 0x102   :  { %v641_v12 = vadd.f32 %v1184_v2, %v613_v8  ;;  %v602_v16 = vld [vmem:[#allocation2 + $0x8] sm:$0xff] }
 0x103   :  { %v614_v17 = vld [vmem:[#allocation2 + $0x68] sm:$0xff]  ;;  %v799_v19 = vpack.c.bf16 %v629_v11, %v629_v11  ;;  %v630_v20 = vadd.f32 %v1184_v2, %v602_v16  ;;  %512 = vst.msk [vmem:[#allocation2 + $0x18] sm:$0xff] %vm508_vm0, %v847_v13  ;;  %524 = vst.msk [vmem:[#allocation2 + $0x78] sm:$0xff] %vm508_vm0, %v883_v23 }
 0x104   :  { %v811_v21 = vpack.c.bf16 %v641_v12, %v641_v12  ;;  %v642_v22 = vadd.f32 %v1184_v2, %v614_v17 }
 0x105   :  { %736 = vst.msk [vmem:[%s1313_s5] sm:$0xf] %vm735_vm1, %v799_v19  ;;  %v800_v24 = vpack.c.bf16 %v630_v20, %v630_v20  ;;  %v848_v30 = vpop.f32.mrb[8].mxu0  ;;  %v884_v36 = vpop.f32.mrb[8].mxu1 }
 0x106   :  { %748 = vst.msk [vmem:[%s1313_s5 + $0x30] sm:$0xf] %vm735_vm1, %v811_v21  ;;  %v812_v29 = vpack.c.bf16 %v642_v22, %v642_v22  ;;  %v849_v31 = vpop.f32.mrb[9].mxu0  ;;  %v885_v39 = vpop.f32.mrb[9].mxu1 }
 0x107   :  { %737 = vst.msk [vmem:[%s1313_s5 + $0x4] sm:$0xf] %vm735_vm1, %v800_v24  ;;  %v850_v32 = vadd.f32 %v849_v31, %v848_v30  ;;  %v851_v33 = vpop.f32.mrb[10].mxu0  ;;  %v886_v42 = vadd.f32 %v885_v39, %v884_v36  ;;  %v887_v43 = vpop.f32.mrb[10].mxu1 }
 0x108   :  { %749 = vst.msk [vmem:[%s1313_s5 + $0x34] sm:$0xf] %vm735_vm1, %v812_v29  ;;  %v603_v34 = vld [vmem:[#allocation2 + $0x10] sm:$0xff]  ;;  %v852_v35 = vpop.f32.mrb[11].mxu0  ;;  %v888_v26 = vpop.f32.mrb[11].mxu1 }
 0x109   :  { %v631_v37 = vadd.f32 %v1184_v2, %v603_v34  ;;  %513 = vst.msk [vmem:[#allocation2 + $0x20] sm:$0xff] %vm508_vm0, %v850_v32  ;;  %v853_v38 = vadd.f32 %v852_v35, %v851_v33  ;;  %v615_v41 = vld [vmem:[#allocation2 + $0x70] sm:$0xff]  ;;  %525 = vst.msk [vmem:[#allocation2 + $0x80] sm:$0xff] %vm508_vm0, %v886_v42  ;;  %v889_v47 = vadd.f32 %v888_v26, %v887_v43 }
 0x10a   :  { %v604_v40 = vld [vmem:[#allocation2 + $0x18] sm:$0xff]  ;;  %v643_v46 = vadd.f32 %v1184_v2, %v615_v41 }
 0x10b   :  { %v801_v44 = vpack.c.bf16 %v631_v37, %v631_v37  ;;  %v632_v45 = vadd.f32 %v1184_v2, %v604_v40  ;;  %514 = vst.msk [vmem:[#allocation2 + $0x28] sm:$0xff] %vm508_vm0, %v853_v38  ;;  %v616_v50 = vld [vmem:[#allocation2 + $0x78] sm:$0xff]  ;;  %526 = vst.msk [vmem:[#allocation2 + $0x88] sm:$0xff] %vm508_vm0, %v889_v47 }
 0x10c   :  { %v813_v49 = vpack.c.bf16 %v643_v46, %v643_v46  ;;  %v644_v28 = vadd.f32 %v1184_v2, %v616_v50 }
 0x10d   :  { %738 = vst.msk [vmem:[%s1313_s5 + $0x8] sm:$0xf] %vm735_vm1, %v801_v44  ;;  %v802_v48 = vpack.c.bf16 %v632_v45, %v632_v45  ;;  %v854_v51 = vpop.f32.mrb[12].mxu0  ;;  %v890_v59 = vpop.f32.mrb[12].mxu1 }
 0x10e   :  { %v855_v52 = vpop.f32.mrb[13].mxu0  ;;  %750 = vst.msk [vmem:[%s1313_s5 + $0x38] sm:$0xf] %vm735_vm1, %v813_v49  ;;  %v814_v56 = vpack.c.bf16 %v644_v28, %v644_v28  ;;  %v891_v61 = vpop.f32.mrb[13].mxu1 }
 0x10f   :  { %739 = vst.msk [vmem:[%s1313_s5 + $0xc] sm:$0xf] %vm735_vm1, %v802_v48  ;;  %v856_v53 = vadd.f32 %v855_v52, %v854_v51  ;;  %v857_v54 = vpop.f32.mrb[14].mxu0  ;;  %v892_v0 = vadd.f32 %v891_v61, %v890_v59  ;;  %v893_v1 = vpop.f32.mrb[14].mxu1 }
 0x110   :  { %v605_v55 = vld [vmem:[#allocation2 + $0x20] sm:$0xff]  ;;  %v858_v57 = vpop.f32.mrb[15].mxu0  ;;  %751 = vst.msk [vmem:[%s1313_s5 + $0x3c] sm:$0xf] %vm735_vm1, %v814_v56  ;;  %v894_v4 = vpop.f32.mrb[15].mxu1 }
 0x111   :  { %v633_v25 = vadd.f32 %v1184_v2, %v605_v55  ;;  %515 = vst.msk [vmem:[#allocation2 + $0x30] sm:$0xff] %vm508_vm0, %v856_v53  ;;  %v859_v58 = vadd.f32 %v858_v57, %v857_v54  ;;  %v617_v27 = vld [vmem:[#allocation2 + $0x80] sm:$0xff]  ;;  %527 = vst.msk [vmem:[#allocation2 + $0x90] sm:$0xff] %vm508_vm0, %v892_v0  ;;  %v895_v8 = vadd.f32 %v894_v4, %v893_v1 }
 0x112   :  { %v606_v60 = vld [vmem:[#allocation2 + $0x28] sm:$0xff]  ;;  %v645_v3 = vadd.f32 %v1184_v2, %v617_v27 }
 0x113   :  { %v803_v62 = vpack.c.bf16 %v633_v25, %v633_v25  ;;  %v634_v63 = vadd.f32 %v1184_v2, %v606_v60  ;;  %516 = vst.msk [vmem:[#allocation2 + $0x38] sm:$0xff] %vm508_vm0, %v859_v58  ;;  %v618_v6 = vld [vmem:[#allocation2 + $0x88] sm:$0xff]  ;;  %528 = vst.msk [vmem:[#allocation2 + $0x98] sm:$0xff] %vm508_vm0, %v895_v8 }
 0x114   :  { %v815_v9 = vpack.c.bf16 %v645_v3, %v645_v3  ;;  %v646_v10 = vadd.f32 %v1184_v2, %v618_v6 }
 0x115   :  { %740 = vst.msk [vmem:[%s1313_s5 + $0x10] sm:$0xf] %vm735_vm1, %v803_v62  ;;  %v804_v5 = vpack.c.bf16 %v634_v63, %v634_v63  ;;  %v860_v7 = vpop.f32.mrb[16].mxu0  ;;  %v896_v19 = vpop.f32.mrb[16].mxu1 }
 0x116   :  { %v861_v11 = vpop.f32.mrb[17].mxu0  ;;  %752 = vst.msk [vmem:[%s1313_s5 + $0x40] sm:$0xf] %vm735_vm1, %v815_v9  ;;  %v816_v15 = vpack.c.bf16 %v646_v10, %v646_v10  ;;  %v897_v21 = vpop.f32.mrb[17].mxu1 }
 0x117   :  { %741 = vst.msk [vmem:[%s1313_s5 + $0x14] sm:$0xf] %vm735_vm1, %v804_v5  ;;  %v862_v12 = vadd.f32 %v861_v11, %v860_v7  ;;  %v863_v13 = vpop.f32.mrb[18].mxu0  ;;  %v898_v24 = vadd.f32 %v897_v21, %v896_v19  ;;  %v899_v29 = vpop.f32.mrb[18].mxu1 }
 0x118   :  { %v607_v14 = vld [vmem:[#allocation2 + $0x30] sm:$0xff]  ;;  %v864_v16 = vpop.f32.mrb[19].mxu0  ;;  %753 = vst.msk [vmem:[%s1313_s5 + $0x44] sm:$0xf] %vm735_vm1, %v816_v15  ;;  %v900_v31 = vpop.f32.mrb[19].mxu1 }
 0x119   :  { %v635_v17 = vadd.f32 %v1184_v2, %v607_v14  ;;  %517 = vst.msk [vmem:[#allocation2 + $0x40] sm:$0xff] %vm508_vm0, %v862_v12  ;;  %v865_v18 = vadd.f32 %v864_v16, %v863_v13  ;;  %v619_v30 = vld [vmem:[#allocation2 + $0x90] sm:$0xff]  ;;  %529 = vst.msk [vmem:[#allocation2 + $0xa0] sm:$0xff] %vm508_vm0, %v898_v24 }
 0x11a   :  { %v608_v20 = vld [vmem:[#allocation2 + $0x38] sm:$0xff]  ;;  %v647_v33 = vadd.f32 %v1184_v2, %v619_v30 }
 0x11b   :  { %v805_v22 = vpack.c.bf16 %v635_v17, %v635_v17  ;;  %v636_v23 = vadd.f32 %v1184_v2, %v608_v20  ;;  %518 = vst.msk [vmem:[#allocation2 + $0x48] sm:$0xff] %vm508_vm0, %v865_v18  ;;  %v620_v35 = vld [vmem:[#allocation2 + $0x98] sm:$0xff] }
 0x11c   :  { %v817_v37 = vpack.c.bf16 %v647_v33, %v647_v33  ;;  %v648_v38 = vadd.f32 %v1184_v2, %v620_v35 }
 0x11d   :  { %742 = vst.msk [vmem:[%s1313_s5 + $0x18] sm:$0xf] %vm735_vm1, %v805_v22  ;;  %v806_v32 = vpack.c.bf16 %v636_v23, %v636_v23  ;;  %v866_v34 = vpop.f32.mrb[20].mxu0 }
 0x11e   :  { %v867_v36 = vpop.f32.mrb[21].mxu0  ;;  %754 = vst.msk [vmem:[%s1313_s5 + $0x48] sm:$0xf] %vm735_vm1, %v817_v37  ;;  %v818_v44 = vpack.c.bf16 %v648_v38, %v648_v38 }
 0x11f   :  { %743 = vst.msk [vmem:[%s1313_s5 + $0x1c] sm:$0xf] %vm735_vm1, %v806_v32  ;;  %v868_v39 = vadd.f32 %v867_v36, %v866_v34  ;;  %v869_v40 = vpop.f32.mrb[22].mxu0 }
 0x120   :  { %v609_v41 = vld [vmem:[#allocation2 + $0x40] sm:$0xff]  ;;  %v870_v42 = vpop.f32.mrb[23].mxu0  ;;  %755 = vst.msk [vmem:[%s1313_s5 + $0x4c] sm:$0xf] %vm735_vm1, %v818_v44 }
 0x121   :  { %v637_v43 = vadd.f32 %v1184_v2, %v609_v41  ;;  %519 = vst.msk [vmem:[#allocation2 + $0x50] sm:$0xff] %vm508_vm0, %v868_v39  ;;  %v871_v45 = vadd.f32 %v870_v42, %v869_v40  ;;  %v621_v48 = vld [vmem:[#allocation2 + $0xa0] sm:$0xff] }
 0x122   :  { %v610_v46 = vld [vmem:[#allocation2 + $0x48] sm:$0xff]  ;;  %v649_v50 = vadd.f32 %v1184_v2, %v621_v48 }
 0x123   :  { %v807_v26 = vpack.c.bf16 %v637_v43, %v637_v43  ;;  %v638_v47 = vadd.f32 %v1184_v2, %v610_v46  ;;  %520 = vst.msk [vmem:[#allocation2 + $0x58] sm:$0xff] %vm508_vm0, %v871_v45 }
 0x124   :  { %v819_v51 = vpack.c.bf16 %v649_v50, %v649_v50 }
 0x125   :  { %744 = vst.msk [vmem:[%s1313_s5 + $0x20] sm:$0xf] %vm735_vm1, %v807_v26  ;;  %v808_v49 = vpack.c.bf16 %v638_v47, %v638_v47 }
 0x126   :  { %756 = vst.msk [vmem:[%s1313_s5 + $0x50] sm:$0xf] %vm735_vm1, %v819_v51 }
 0x127   :  { %745 = vst.msk [vmem:[%s1313_s5 + $0x24] sm:$0xf] %vm735_vm1, %v808_v49 }
 0x128   :  { %v611_v28 = vld [vmem:[#allocation2 + $0x50] sm:$0xff] }
 0x129   :  { %v639_v52 = vadd.f32 %v1184_v2, %v611_v28 }
 0x12a   :  { %v612_v53 = vld [vmem:[#allocation2 + $0x58] sm:$0xff] }
 0x12b   :  { %v809_v54 = vpack.c.bf16 %v639_v52, %v639_v52  ;;  %v640_v55 = vadd.f32 %v1184_v2, %v612_v53 }
 0x12d   :  { %746 = vst.msk [vmem:[%s1313_s5 + $0x28] sm:$0xf] %vm735_vm1, %v809_v54  ;;  %v810_v56 = vpack.c.bf16 %v640_v55, %v640_v55 }
 0x12f   :  { %747 = vst.msk [vmem:[%s1313_s5 + $0x2c] sm:$0xf] %vm735_vm1, %v810_v56 }

// kernel: _lambda_.26
= control target key start
LH: loop header
LB: loop body
LE: loop exit
PB: predicated region body
PF: predicated region fallthrough
CT: control target
= control target key end

     0   :  { %v191_v20 = vmov 1966171168   ;;  %v76_v22 = vlaneseq  ;;  %v192_v29 = vmov 1935823168   ;;  %s226_s0 = inlined_call_operand.vmem [shape: bf16[32,256], index: 0, kind: input, shape index: {}]   ;;  %s227_s1 = inlined_call_operand.vmem [shape: f32[1,256], index: 1, kind: output, shape index: {0}]   ;;  %s228_s2 = inlined_call_operand.vmem [shape: f32[1,256], index: 2, kind: output, shape index: {1}]  }
   0x1   :  { %v10_v0 = vld [vmem:[%s226_s0] sm:$0xff]  ;;  %v11_v1 = vld [vmem:[%s226_s0 + $0x8] sm:$0xff]  ;;  %v12_v2 = vld [vmem:[%s226_s0 + $0x10] sm:$0xff]  ;;  %v74_v21 = vunpack.c.l.s4 %v191_v20  ;;  %v179_v30 = vunpack.c.l.s4 %v192_v29 }
   0x2   :  { %v13_v3 = vld [vmem:[%s226_s0 + $0x18] sm:$0xff]  ;;  %v14_v4 = vunpack.c.l.bf16 %v10_v0  ;;  %v15_v5 = vunpack.c.h.bf16 %v10_v0  ;;  %v16_v6 = vunpack.c.l.bf16 %v11_v1  ;;  %v17_v7 = vunpack.c.h.bf16 %v11_v1 }
   0x3   :  { %v18_v8 = vunpack.c.l.bf16 %v12_v2  ;;  %v19_v9 = vunpack.c.h.bf16 %v12_v2  ;;  %v20_v10 = vunpack.c.l.bf16 %v13_v3  ;;  %v21_v11 = vunpack.c.h.bf16 %v13_v3 }
   0x4   :  { %v22_v12 = vadd.f32 %v16_v6, %v14_v4  ;;  %v31_v13 = vadd.f32 %v17_v7, %v15_v5  ;;  %171 = vmul.bf16.f32.vacc0 %v10_v0, %v10_v0  ;;  %v180_v31 = vunpack.c.0.s8 %v179_v30 }
   0x5   :  { %172 = vmac.bf16.f32.vacc0 %v11_v1, %v11_v1  ;;  %v182_v32 = vshrl.u32 %v76_v22, 7  ;;  %v75_v40 = vunpack.c.0.s8 %v74_v21  ;;  %vm90_vm0 = vcmp.lt.s32.totalorder %v76_v22, 256 }
   0x6   :  { %v23_v14 = vadd.f32 %v22_v12, %v18_v8  ;;  %v32_v15 = vadd.f32 %v31_v13, %v19_v9  ;;  %173 = vmac.bf16.f32.vacc0 %v12_v2, %v12_v2 }
   0x7   :  { %174 = vmac.bf16.f32.vacc0 %v13_v3, %v13_v3  ;;  %v183_v33 = vsub.s32 %v180_v31, %v182_v32  ;;  %v78_v49 = vsub.s32 %v75_v40, %v182_v32 }
   0x8   :  { %v24_v16 = vadd.f32 %v23_v14, %v20_v10  ;;  %v33_v17 = vadd.f32 %v32_v15, %v21_v11 }
   0x9   :  { %v175_v25 = vmovacc.add.low.vacc0 }
   0xa   :  { %v25_v18 = vrot.slane %v24_v16, 4  ;;  %v34_v19 = vrot.slane %v33_v17, 4  ;;  %v176_v26 = vmovacc.add.high.vacc0 }
   0xc   :  { %v26_v23 = vadd.f32 %v25_v18, %v24_v16  ;;  %v35_v24 = vadd.f32 %v34_v19, %v33_v17  ;;  %v177_v27 = vcombine.low %v175_v25, %v176_v26  ;;  %v178_v28 = vcombine.high %v175_v25, %v176_v26 }
   0xe   :  { %v184_v34 = vrot.slane %v177_v27, %v183_v33  ;;  %v190_v35 = vrot.slane %v178_v28, %v183_v33  ;;  %v27_v36 = vrot.slane %v26_v23, 2  ;;  %v36_v37 = vrot.slane %v35_v24, 2 }
  0x10   :  { %v51_v38 = vrot.slane %v184_v34, 4  ;;  %v60_v39 = vrot.slane %v190_v35, 4  ;;  %v28_v41 = vadd.f32 %v27_v36, %v26_v23  ;;  %v37_v42 = vadd.f32 %v36_v37, %v35_v24 }
  0x12   :  { %v52_v43 = vadd.f32 %v184_v34, %v51_v38  ;;  %v61_v44 = vadd.f32 %v190_v35, %v60_v39  ;;  %v29_v45 = vrot.slane %v28_v41, 1  ;;  %v38_v46 = vrot.slane %v37_v42, 1 }
  0x14   :  { %v53_v47 = vrot.slane %v52_v43, 2  ;;  %v62_v48 = vrot.slane %v61_v44, 2  ;;  %v30_v50 = vadd.f32 %v29_v45, %v28_v41  ;;  %v39_v51 = vadd.f32 %v38_v46, %v37_v42 }
  0x16   :  { %v54_v52 = vadd.f32 %v53_v47, %v52_v43  ;;  %v63_v53 = vadd.f32 %v62_v48, %v61_v44  ;;  %v72_v54 = vcombine.low %v30_v50, %v39_v51 }
  0x18   :  { %v55_v55 = vrot.slane %v54_v52, 1  ;;  %v64_v56 = vrot.slane %v63_v53, 1  ;;  %v79_v57 = vrot.slane %v72_v54, %v78_v49 }
  0x1a   :  { %v56_v58 = vadd.f32 %v55_v55, %v54_v52  ;;  %v65_v59 = vadd.f32 %v64_v56, %v63_v53  ;;  %v86_v60 = vrot.slane %v79_v57, %v78_v49 }
  0x1c   :  { %v95_v61 = vcombine.low %v56_v58, %v65_v59  ;;  %92 = vst.msk [vmem:[%s227_s1] sm:$0x3] %vm90_vm0, %v86_v60 }
  0x1e   :  { %v102_v62 = vrot.slane %v95_v61, %v78_v49 }
  0x20   :  { %v109_v63 = vrot.slane %v102_v62, %v78_v49 }
  0x22   :  { %111 = vst.msk [vmem:[%s228_s2] sm:$0x3] %vm90_vm0, %v109_v63 }

// kernel: tile.141
= control target key start
LH: loop header
LB: loop body
LE: loop exit
PB: predicated region body
PF: predicated region fallthrough
CT: control target
= control target key end

     0   :  { %s22_s0 = inlined_call_operand.vmem [shape: f32[32], index: 0, kind: input, shape index: {}]   ;;  %s23_s1 = inlined_call_operand.vmem [shape: f32[4,32], index: 1, kind: output, shape index: {}]  }
   0x1   :  { %v4_v0 = vld [vmem:[%s22_s0] ss:$0 sm:$0xff] }
   0x2   :  { %5 = vst [vmem:[%s23_s1] sm:$0xf] %v4_v0 }

// kernel: tile.146
= control target key start
LH: loop header
LB: loop body
LE: loop exit
PB: predicated region body
PF: predicated region fallthrough
CT: control target
= control target key end

     0   :  { %vm7_vm0 = vcmask 261120   ;;  %s37_s8 = smov 32   ;;  %s38_s9 = smov 64   ;;  %vm13_vm1 = vcmask 1048320   ;;  %vm19_vm2 = vcmask 785920   ;;  %vm25_vm3 = vcmask 523520   ;;  %s55_s0 = inlined_call_operand.vmem [shape: f32[4,32], index: 0, kind: input, shape index: {}]   ;;  %s56_s1 = inlined_call_operand.vmem [shape: f32[1,128], index: 1, kind: output, shape index: {}]  }
   0x1   :  { %v4_v0 = vld [vmem:[%s55_s0] sm:$0xf]  ;;  %s36_s0 = smov 96  }
   0x2   :  { %5 = vst [vmem:[#allocation1] sm:$0xf] %v4_v0 }
   0x9   :  { %v10_v1 = vld [vmem:[#allocation1 + $0x3] sm:$0x1]   ;;  %v22_v2 = vld [vmem:[#allocation1 + $0x1] sm:$0x1]   ;;  %v6_v3 = vld [vmem:[#allocation1] sm:$0x1]  }
   0xa   :  { %11 = vrot.lane.b32.xlu0 %v10_v1, %s36_s0  ;;  %23 = vrot.lane.b32.xlu1 %v22_v2, %s37_s8  ;;  %v16_v4 = vld [vmem:[#allocation1 + $0x2] sm:$0x1]   ;;  %8 = vst.msk [vmem:[#allocation0] sm:$0x1] %vm7_vm0, %v6_v3  }
   0xe   :  { %17 = vrot.lane.b32.xlu0 %v16_v4, %s38_s9 }
  0x7c   :  { %v12_v5 = vpop.permute.xlu0 %11   ;;  %v24_v6 = vpop.permute.xlu1 %23  }
  0x7d   :  { %14 = vst.msk [vmem:[#allocation0] sm:$0x1] %vm13_vm1, %v12_v5  }
  0x80   :  { %v18_v7 = vpop.permute.xlu0 %17  }
  0x81   :  { %20 = vst.msk [vmem:[#allocation0] sm:$0x1] %vm19_vm2, %v18_v7  }
  0x82   :  { %26 = vst.msk [vmem:[#allocation0] sm:$0x1] %vm25_vm3, %v24_v6  }
  0x89   :  { %v30_v8 = vld [vmem:[#allocation0] sm:$0x1] }
  0x8a   :  { %32 = vst [vmem:[%s56_s1] sm:$0x1] %v30_v8 }

// kernel: _lambda_.27
= control target key start
LH: loop header
LB: loop body
LE: loop exit
PB: predicated region body
PF: predicated region fallthrough
CT: control target
= control target key end

     0   :  { %s1603_s18 = smov 0   ;;  %s1605_s19 = smov 0   ;;  %s1987_s0 = inlined_call_operand.vmem [shape: bf16[592,128], index: 0, kind: input, shape index: {}]   ;;  %s1988_s1 = inlined_call_operand.vmem [shape: bf16[128,12], index: 1, kind: input, shape index: {}]   ;;  %s1989_s2 = inlined_call_operand.vmem [shape: f32[1,12], index: 2, kind: input, shape index: {}]   ;;  %s1990_s3 = inlined_call_operand.vmem [shape: f32[1,128], index: 3, kind: input, shape index: {}]   ;;  %s1991_s4 = inlined_call_operand.vmem [shape: f32[1,128], index: 4, kind: input, shape index: {}]   ;;  %s1992_s5 = inlined_call_operand.vmem [shape: f32[592,12], index: 5, kind: output, shape index: {}]  }
   0x1   :  { %s1607_s20 = smov 0  }
   0x2 LB: > { %s27_s21 = sadd.s32 1, %s1565_s19  ;;  %p1199_p0 = scmp.ge.s32.totalorder %s1569_s20, 1  ;;  %s1569_s20 = sphi %s1607_s20, %s15_s20   ;;  %s1565_s19 = sphi %s1605_s19, %s1994_s19   ;;  %s1561_s18 = sphi %s1603_s18, %s1993_s18  }
   0x3   : > { %p29_p1 = scmp.ge.s32.totalorder %s27_s21, 2  ;;  %p232_p2 = scmp.lt.s32.totalorder %s1569_s20, 3 }
   0x5   : > { %s1996_s21 = smov (%p29_p1, %s27_s21), 0  ;;  %p233_p3 = pnand %p1199_p0, %p232_p2 }
   0x6   : > { %v1465_v0 = vld [vmem:[%s1988_s1] sm:$0xff] (!%p233_p3)   ;;  %v1571_v1 = vmov (!%p233_p3), 0.0   ;;  %v1466_v2 = vld [vmem:[%s1988_s1 + $0x8] sm:$0xff] (!%p233_p3)   ;;  %s274_s26 = smul.u32 (!%p233_p3), 37, %s1561_s18  ;;  %vm1572_vm0 = vmmov (!%p233_p3), 0   ;;  %v1467_v3 = vld [vmem:[%s1988_s1 + $0x10] sm:$0xff] (!%p233_p3)  }
   0x7   : > { %236 = sbr.rel (%p233_p3) target bundleno = 347 (0x15b), region = 40  ;;  %1331 = vmatprep.subr.bf16.mxu0 (!%p233_p3), %v1571_v1  ;;  %1423 = vmatprep.subr.bf16.mxu1 (!%p233_p3), %v1571_v1  ;;  %v1468_v4 = vld [vmem:[%s1988_s1 + $0x18] sm:$0xff] (!%p233_p3)   ;;  %v1469_v11 = vld [vmem:[%s1988_s1 + $0x20] sm:$0xff] (!%p233_p3)   ;;  %v1470_v19 = vld [vmem:[%s1988_s1 + $0x28] sm:$0xff] (!%p233_p3)   ;;  %vm772_vm1 = vcmask (!%p233_p3), 97280  }
   0x8   : > { %1332 = vmatpush3.bf16.msra.mxu0 (!%p233_p3), %v1465_v0  ;;  %1431 = vmatpush3.bf16.msra.mxu1 (!%p233_p3), %v1465_v0  ;;  %p275_p4 = scmp.lt.s32.totalorder (!%p233_p3), %s274_s26, 73  ;;  %v1661_v12 = vld [vmem:[%s1990_s3] ss:$0 sm:$0xff] (!%p233_p3)  ;;  %v1471_v29 = vld [vmem:[%s1988_s1 + $0x30] sm:$0xff] (!%p233_p3)   ;;  %v1472_v39 = vld [vmem:[%s1988_s1 + $0x38] sm:$0xff] (!%p233_p3)  }
   0x9   : > { %1333 = vmatprep.subr.bf16.mxu0 (!%p233_p3), %v1571_v1  ;;  %1424 = vmatprep.subr.bf16.mxu1 (!%p233_p3), %v1571_v1  ;;  %v1677_v20 = vld [vmem:[%s1991_s4] ss:$0 sm:$0xff] (!%p233_p3) }
   0xa   : > { %1347 = vmatprep.mubr.msk.bf16.mxu0 (!%p233_p3), %vm1572_vm0, %v1571_v1  ;;  %1387 = vmatprep.mubr.msk.bf16.mxu1 (!%p233_p3), %vm1572_vm0, %v1571_v1 }
   0xc   : > { %1334 = vmatpush3.bf16.msra.mxu0 (!%p233_p3), %v1466_v2  ;;  %1432 = vmatpush3.bf16.msra.mxu1 (!%p233_p3), %v1466_v2 }
   0xd   : > { %1335 = vmatprep.subr.bf16.mxu0 (!%p233_p3), %v1571_v1  ;;  %1425 = vmatprep.subr.bf16.mxu1 (!%p233_p3), %v1571_v1 }
   0xe   : > { %s1998_s26 = smov (!%p275_p4, %s274_s26), 73 }
   0xf   : > { %s1200_s29 = sshll.u32 %s1998_s26, 2  ;;  %s1201_s28 = sshll.u32 %s1998_s26, 3 }
  0x10   : > { %s1646_s7 = scalar_lea.vmem %s1987_s0, %s1200_s29  ;;  %1336 = vmatpush3.bf16.msra.mxu0 %v1467_v3  ;;  %1433 = vmatpush3.bf16.msra.mxu1 %v1467_v3  ;;  %s1844_s30 = scalar_lea.vmem %s1992_s5, %s1201_s28 }
  0x11   : > { %v1216_v5 = vld [vmem:[%s1646_s7] sm:$0xff]   ;;  %v1296_v6 = vld [vmem:[%s1646_s7 + $0x50] sm:$0xff]   ;;  %1337 = vmatprep.subr.bf16.mxu0 %v1571_v1  ;;  %1426 = vmatprep.subr.bf16.mxu1 %v1571_v1  ;;  %v1287_v13 = vld [vmem:[%s1646_s7 + $0x8] sm:$0xff]  }
  0x12   : > { %v1217_v7 = vunpack.c.l.bf16 %v1216_v5  ;;  %v1218_v8 = vunpack.c.h.bf16 %v1216_v5  ;;  %v1257_v9 = vunpack.c.l.bf16 %v1296_v6  ;;  %v1258_v10 = vunpack.c.h.bf16 %v1296_v6  ;;  %v1297_v18 = vld [vmem:[%s1646_s7 + $0x58] sm:$0xff]   ;;  %v1288_v34 = vld [vmem:[%s1646_s7 + $0x10] sm:$0xff]   ;;  %v1298_v40 = vld [vmem:[%s1646_s7 + $0x60] sm:$0xff]  }
  0x13   : > { %v1221_v21 = vunpack.c.l.bf16 %v1287_v13  ;;  %v1222_v22 = vunpack.c.h.bf16 %v1287_v13  ;;  %v1261_v23 = vunpack.c.l.bf16 %v1297_v18  ;;  %v1262_v24 = vunpack.c.h.bf16 %v1297_v18  ;;  %v1289_v51 = vld [vmem:[%s1646_s7 + $0x18] sm:$0xff]   ;;  %v1299_v53 = vld [vmem:[%s1646_s7 + $0x68] sm:$0xff]   ;;  %v1290_v5 = vld [vmem:[%s1646_s7 + $0x20] sm:$0xff]  }
  0x14   : > { %1338 = vmatpush3.bf16.msra.mxu0 %v1468_v4  ;;  %1434 = vmatpush3.bf16.msra.mxu1 %v1468_v4  ;;  %v383_v14 = vmul.f32 %v1217_v7, %v1661_v12  ;;  %v384_v15 = vmul.f32 %v1218_v8, %v1661_v12  ;;  %v403_v16 = vmul.f32 %v1257_v9, %v1661_v12  ;;  %v1225_v42 = vunpack.c.l.bf16 %v1288_v34  ;;  %v1294_v18 = vld [vmem:[%s1646_s7 + $0x40] sm:$0xff]  }
  0x15   : > { %1339 = vmatprep.subr.bf16.mxu0 %v1571_v1  ;;  %1427 = vmatprep.subr.bf16.mxu1 %v1571_v1  ;;  %v404_v17 = vmul.f32 %v1258_v10, %v1661_v12  ;;  %v385_v30 = vmul.f32 %v1221_v21, %v1661_v12  ;;  %v386_v31 = vmul.f32 %v1222_v22, %v1661_v12  ;;  %v1226_v46 = vunpack.c.h.bf16 %v1288_v34  ;;  %v1300_v22 = vld [vmem:[%s1646_s7 + $0x70] sm:$0xff]  }
  0x16   : > { %v427_v25 = vadd.f32 %v1677_v20, %v383_v14  ;;  %v428_v26 = vadd.f32 %v1677_v20, %v384_v15  ;;  %v447_v27 = vadd.f32 %v1677_v20, %v403_v16  ;;  %v405_v32 = vmul.f32 %v1261_v23, %v1661_v12 }
  0x17   : > { %v448_v28 = vadd.f32 %v1677_v20, %v404_v17  ;;  %v406_v33 = vmul.f32 %v1262_v24, %v1661_v12  ;;  %v429_v41 = vadd.f32 %v1677_v20, %v385_v30  ;;  %v430_v43 = vadd.f32 %v1677_v20, %v386_v31 }
  0x18   : > { %1340 = vmatpush3.bf16.msra.mxu0 %v1469_v11  ;;  %1435 = vmatpush3.bf16.msra.mxu1 %v1469_v11  ;;  %v464_v35 = vmax.f32 %v427_v25, 0.0  ;;  %v465_v36 = vmax.f32 %v428_v26, 0.0  ;;  %v484_v37 = vmax.f32 %v447_v27, 0.0  ;;  %v449_v44 = vadd.f32 %v1677_v20, %v405_v32 }
  0x19   : > { %1341 = vmatprep.subr.bf16.mxu0 %v1571_v1  ;;  %1428 = vmatprep.subr.bf16.mxu1 %v1571_v1  ;;  %v485_v38 = vmax.f32 %v448_v28, 0.0  ;;  %v450_v45 = vadd.f32 %v1677_v20, %v406_v33  ;;  %v1265_v49 = vunpack.c.l.bf16 %v1298_v40  ;;  %v1266_v50 = vunpack.c.h.bf16 %v1298_v40  ;;  %v338_v28 = vld [vmem:[%s1646_s7 + $0x90] sm:$0xf]  ;;  %v1295_v33 = vld [vmem:[%s1646_s7 + $0x48] sm:$0xff]  }
  0x1a   : > { %v501_v47 = vpack.c.bf16 %v465_v36, %v464_v35  ;;  %v466_v52 = vmax.f32 %v429_v41, 0.0  ;;  %v467_v54 = vmax.f32 %v430_v43, 0.0  ;;  %v387_v55 = vmul.f32 %v1225_v42, %v1661_v12  ;;  %v1291_v43 = vld [vmem:[%s1646_s7 + $0x28] sm:$0xff]  }
  0x1b   : > { %v511_v48 = vpack.c.bf16 %v485_v38, %v484_v37  ;;  %v388_v56 = vmul.f32 %v1226_v46, %v1661_v12  ;;  %v1229_v57 = vunpack.c.l.bf16 %v1289_v51  ;;  %v486_v58 = vmax.f32 %v449_v44, 0.0 }
  0x1c   : > { %1342 = vmatpush3.bf16.msra.mxu0 %v1470_v19  ;;  %1436 = vmatpush3.bf16.msra.mxu1 %v1470_v19  ;;  %v487_v59 = vmax.f32 %v450_v45, 0.0  ;;  %v407_v60 = vmul.f32 %v1265_v49, %v1661_v12  ;;  %v408_v61 = vmul.f32 %v1266_v50, %v1661_v12  ;;  %v1230_v62 = vunpack.c.h.bf16 %v1289_v51 }
  0x1d   : > { %1343 = vmatprep.subr.bf16.mxu0 %v1571_v1  ;;  %1429 = vmatprep.subr.bf16.mxu1 %v1571_v1  ;;  %v1269_v63 = vunpack.c.l.bf16 %v1299_v53  ;;  %v431_v0 = vadd.f32 %v1677_v20, %v387_v55  ;;  %v432_v2 = vadd.f32 %v1677_v20, %v388_v56  ;;  %v389_v3 = vmul.f32 %v1229_v57, %v1661_v12 }
  0x1e   : > { %v1270_v4 = vunpack.c.h.bf16 %v1299_v53  ;;  %v502_v6 = vpack.c.bf16 %v467_v54, %v466_v52  ;;  %v512_v7 = vpack.c.bf16 %v487_v59, %v486_v58  ;;  %v451_v8 = vadd.f32 %v1677_v20, %v407_v60  ;;  %v1301_v52 = vld [vmem:[%s1646_s7 + $0x78] sm:$0xff]  }
  0x1f   : > { %v452_v9 = vadd.f32 %v1677_v20, %v408_v61  ;;  %v390_v10 = vmul.f32 %v1230_v62, %v1661_v12  ;;  %v409_v11 = vmul.f32 %v1269_v63, %v1661_v12  ;;  %v1233_v13 = vunpack.c.l.bf16 %v1290_v5 }
  0x20   : > { %1344 = vmatpush3.bf16.msra.mxu0 %v1471_v29  ;;  %1437 = vmatpush3.bf16.msra.mxu1 %v1471_v29  ;;  %v468_v14 = vmax.f32 %v431_v0, 0.0  ;;  %v469_v15 = vmax.f32 %v432_v2, 0.0  ;;  %v433_v16 = vadd.f32 %v1677_v20, %v389_v3  ;;  %v410_v17 = vmul.f32 %v1270_v4, %v1661_v12 }
  0x21   : > { %1345 = vmatprep.subr.bf16.mxu0 %v1571_v1  ;;  %1430 = vmatprep.subr.bf16.mxu1 %v1571_v1  ;;  %v488_v19 = vmax.f32 %v451_v8, 0.0  ;;  %v489_v21 = vmax.f32 %v452_v9, 0.0  ;;  %v434_v23 = vadd.f32 %v1677_v20, %v390_v10  ;;  %v453_v24 = vadd.f32 %v1677_v20, %v409_v11 }
  0x22   : > { %v1234_v25 = vunpack.c.h.bf16 %v1290_v5  ;;  %v391_v26 = vmul.f32 %v1233_v13, %v1661_v12  ;;  %v1249_v27 = vunpack.c.l.bf16 %v1294_v18  ;;  %v503_v29 = vpack.c.bf16 %v469_v15, %v468_v14  ;;  %v1292_v15 = vld [vmem:[%s1646_s7 + $0x30] sm:$0xff]  }
  0x23   : > { %v470_v30 = vmax.f32 %v433_v16, 0.0  ;;  %v454_v31 = vadd.f32 %v1677_v20, %v410_v17  ;;  %v1273_v32 = vunpack.c.l.bf16 %v1300_v22  ;;  %v513_v34 = vpack.c.bf16 %v489_v21, %v488_v19 }
  0x24   : > { %1346 = vmatpush3.bf16.msra.mxu0 %v1472_v39  ;;  %1438 = vmatpush3.bf16.msra.mxu1 %v1472_v39  ;;  %v1274_v35 = vunpack.c.h.bf16 %v1300_v22  ;;  %v1250_v36 = vunpack.c.h.bf16 %v1294_v18  ;;  %v399_v37 = vmul.f32 %v1249_v27, %v1661_v12  ;;  %v471_v38 = vmax.f32 %v434_v23, 0.0  ;;  %v1302_v22 = vld [vmem:[%s1646_s7 + $0x80] sm:$0xff]  }
  0x25   : > { %v490_v39 = vmax.f32 %v453_v24, 0.0  ;;  %v392_v40 = vmul.f32 %v1234_v25, %v1661_v12  ;;  %v375_v41 = vunpack.c.l.bf16 %v338_v28  ;;  %v435_v42 = vadd.f32 %v1677_v20, %v391_v26 }
  0x26   : > { %v400_v44 = vmul.f32 %v1250_v36, %v1661_v12  ;;  %v443_v45 = vadd.f32 %v1677_v20, %v399_v37  ;;  %v1253_v46 = vunpack.c.l.bf16 %v1295_v33  ;;  %v1254_v50 = vunpack.c.h.bf16 %v1295_v33 }
  0x27   : > { %1348 = vmatmul.mubr.bf16.vlgmr.msra.gmra.mrb[0].mxu0 %v501_v47  ;;  %1388 = vmatmul.mubr.bf16.vlgmr.msra.gmra.mrb[0].mxu1 %v511_v48  ;;  %v491_v47 = vmax.f32 %v454_v31, 0.0  ;;  %v411_v48 = vmul.f32 %v1273_v32, %v1661_v12  ;;  %v419_v49 = vmul.f32 %v1661_v12, %v375_v41  ;;  %v412_v51 = vmul.f32 %v1274_v35, %v1661_v12  ;;  %v1293_v41 = vld [vmem:[%s1646_s7 + $0x38] sm:$0xff]  }
  0x28   : > { %1351 = vmatprep.mubr.msk.bf16.mxu0 %vm1572_vm0, %v1571_v1  ;;  %1391 = vmatprep.mubr.msk.bf16.mxu1 %vm1572_vm0, %v1571_v1  ;;  %v444_v53 = vadd.f32 %v1677_v20, %v400_v44  ;;  %v480_v54 = vmax.f32 %v443_v45, 0.0  ;;  %v401_v55 = vmul.f32 %v1253_v46, %v1661_v12  ;;  %v504_v56 = vpack.c.bf16 %v471_v38, %v470_v30 }
  0x29   : > { %v1237_v57 = vunpack.c.l.bf16 %v1291_v43  ;;  %v1754_v58 = vadd.f32 %v1677_v20, %v419_v49  ;;  %v402_v59 = vmul.f32 %v1254_v50, %v1661_v12  ;;  %v436_v60 = vadd.f32 %v1677_v20, %v392_v40 }
  0x2a   : > { %v1238_v61 = vunpack.c.h.bf16 %v1291_v43  ;;  %v481_v62 = vmax.f32 %v444_v53, 0.0  ;;  %v445_v63 = vadd.f32 %v1677_v20, %v401_v55  ;;  %v514_v0 = vpack.c.bf16 %v491_v47, %v490_v39 }
  0x2b   : > { %v1277_v2 = vunpack.c.l.bf16 %v1301_v52  ;;  %v1278_v3 = vunpack.c.h.bf16 %v1301_v52  ;;  %v446_v4 = vadd.f32 %v1677_v20, %v402_v59  ;;  %v455_v5 = vadd.f32 %v1677_v20, %v411_v48 }
  0x2c   : > { %v482_v8 = vmax.f32 %v445_v63, 0.0  ;;  %v393_v10 = vmul.f32 %v1237_v57, %v1661_v12  ;;  %v394_v11 = vmul.f32 %v1238_v61, %v1661_v12  ;;  %v472_v17 = vmax.f32 %v435_v42, 0.0  ;;  %v1303_v42 = vld [vmem:[%s1646_s7 + $0x88] sm:$0xff]  }
  0x2d   : > { %v483_v9 = vmax.f32 %v446_v4, 0.0  ;;  %v413_v13 = vmul.f32 %v1277_v2, %v1661_v12  ;;  %v414_v14 = vmul.f32 %v1278_v3, %v1661_v12  ;;  %v473_v18 = vmax.f32 %v436_v60, 0.0 }
  0x2e   : > { %v492_v19 = vmax.f32 %v455_v5, 0.0  ;;  %v437_v23 = vadd.f32 %v1677_v20, %v393_v10  ;;  %v438_v24 = vadd.f32 %v1677_v20, %v394_v11  ;;  %v1241_v25 = vunpack.c.l.bf16 %v1292_v15 }
  0x2f   : > { %1352 = vmatmul.mubr.bf16.gmra.mrb[4].mxu0 %v502_v6  ;;  %1392 = vmatmul.mubr.bf16.gmra.mrb[4].mxu1 %v512_v7  ;;  %v456_v6 = vadd.f32 %v1677_v20, %v412_v51  ;;  %v1762_v7 = vpack.c.bf16 %v481_v62, %v480_v54  ;;  %v1769_v16 = vpack.c.bf16 %v483_v9, %v482_v8  ;;  %v1242_v28 = vunpack.c.h.bf16 %v1292_v15 }
  0x30   : > { %1355 = vmatprep.mubr.msk.bf16.mxu0 %vm1572_vm0, %v1571_v1  ;;  %1395 = vmatprep.mubr.msk.bf16.mxu1 %vm1572_vm0, %v1571_v1  ;;  %v457_v26 = vadd.f32 %v1677_v20, %v413_v13  ;;  %v458_v27 = vadd.f32 %v1677_v20, %v414_v14  ;;  %v1281_v31 = vunpack.c.l.bf16 %v1302_v22  ;;  %v1282_v32 = vunpack.c.h.bf16 %v1302_v22 }
  0x31   : > { %v493_v21 = vmax.f32 %v456_v6, 0.0  ;;  %v474_v33 = vmax.f32 %v437_v23, 0.0  ;;  %v395_v35 = vmul.f32 %v1241_v25, %v1661_v12  ;;  %v396_v38 = vmul.f32 %v1242_v28, %v1661_v12 }
  0x32   : > { %v494_v36 = vmax.f32 %v457_v26, 0.0  ;;  %v495_v37 = vmax.f32 %v458_v27, 0.0  ;;  %v415_v39 = vmul.f32 %v1281_v31, %v1661_v12  ;;  %v416_v40 = vmul.f32 %v1282_v32, %v1661_v12 }
  0x33   : > { %v515_v30 = vpack.c.bf16 %v493_v21, %v492_v19  ;;  %v439_v44 = vadd.f32 %v1677_v20, %v395_v35  ;;  %v440_v46 = vadd.f32 %v1677_v20, %v396_v38  ;;  %v1245_v47 = vunpack.c.l.bf16 %v1293_v41 }
  0x34   : > { %v516_v45 = vpack.c.bf16 %v495_v37, %v494_v36  ;;  %v1246_v48 = vunpack.c.h.bf16 %v1293_v41  ;;  %v459_v49 = vadd.f32 %v1677_v20, %v415_v39  ;;  %v460_v50 = vadd.f32 %v1677_v20, %v416_v40 }
  0x35   : > { %v1285_v51 = vunpack.c.l.bf16 %v1303_v42  ;;  %v1286_v52 = vunpack.c.h.bf16 %v1303_v42  ;;  %v476_v53 = vmax.f32 %v439_v44, 0.0  ;;  %v477_v54 = vmax.f32 %v440_v46, 0.0 }
  0x36   : > { %v397_v55 = vmul.f32 %v1245_v47, %v1661_v12  ;;  %v496_v57 = vmax.f32 %v459_v49, 0.0  ;;  %v497_v59 = vmax.f32 %v460_v50, 0.0  ;;  %v500_v11 = vmax.f32 %v1754_v58, 0.0 }
  0x37   : > { %1356 = vmatmul.mubr.bf16.gmra.mrb[8].mxu0 %v503_v29  ;;  %1396 = vmatmul.mubr.bf16.gmra.mrb[8].mxu1 %v513_v34  ;;  %v505_v29 = vpack.c.bf16 %v473_v18, %v472_v17  ;;  %v475_v34 = vmax.f32 %v438_v24, 0.0  ;;  %v417_v60 = vmul.f32 %v1285_v51, %v1661_v12  ;;  %v418_v61 = vmul.f32 %v1286_v52, %v1661_v12 }
  0x38   : > { %1359 = vmatprep.mubr.msk.bf16.mxu0 %vm1572_vm0, %v1571_v1  ;;  %1399 = vmatprep.mubr.msk.bf16.mxu1 %vm1572_vm0, %v1571_v1  ;;  %v507_v62 = vpack.c.bf16 %v477_v54, %v476_v53  ;;  %v441_v63 = vadd.f32 %v1677_v20, %v397_v55 }
  0x39   : > { %v506_v43 = vpack.c.bf16 %v475_v34, %v474_v33  ;;  %v461_v3 = vadd.f32 %v1677_v20, %v417_v60  ;;  %v462_v4 = vadd.f32 %v1677_v20, %v418_v61 }
  0x3a   : > { %v478_v5 = vmax.f32 %v441_v63, 0.0 }
  0x3b   : > { %v498_v6 = vmax.f32 %v461_v3, 0.0  ;;  %v499_v8 = vmax.f32 %v462_v4, 0.0 }
  0x3d   : > { %v518_v10 = vpack.c.bf16 %v499_v8, %v498_v6 }
  0x3f   : > { %1360 = vmatmul.mubr.bf16.gmra.mrb[12].mxu0 %v504_v56  ;;  %1400 = vmatmul.mubr.bf16.gmra.mrb[12].mxu1 %v514_v0  ;;  %v398_v56 = vmul.f32 %v1246_v48, %v1661_v12  ;;  %v517_v0 = vpack.c.bf16 %v497_v59, %v496_v57 }
  0x40   : > { %1363 = vmatprep.mubr.msk.bf16.mxu0 %vm1572_vm0, %v1571_v1  ;;  %1403 = vmatprep.mubr.msk.bf16.mxu1 %vm1572_vm0, %v1571_v1 }
  0x41   : > { %v442_v2 = vadd.f32 %v1677_v20, %v398_v56  ;;  %v519_v20 = vpack.c.bf16 %v500_v11, %v500_v11 }
  0x43   : > { %v479_v12 = vmax.f32 %v442_v2, 0.0 }
  0x45   : > { %v508_v9 = vpack.c.bf16 %v479_v12, %v478_v5 }
  0x47   : > { %1364 = vmatmul.mubr.bf16.gmra.mrb[16].mxu0 %v505_v29  ;;  %1404 = vmatmul.mubr.bf16.gmra.mrb[16].mxu1 %v515_v30 }
  0x48   : > { %1367 = vmatprep.mubr.msk.bf16.mxu0 %vm1572_vm0, %v1571_v1  ;;  %1407 = vmatprep.mubr.msk.bf16.mxu1 %vm1572_vm0, %v1571_v1 }
  0x4f   : > { %1368 = vmatmul.mubr.bf16.gmra.mrb[20].mxu0 %v506_v43  ;;  %1408 = vmatmul.mubr.bf16.gmra.mrb[20].mxu1 %v516_v45 }
  0x50   : > { %1371 = vmatprep.mubr.msk.bf16.mxu0 %vm1572_vm0, %v1571_v1  ;;  %1411 = vmatprep.mubr.msk.bf16.mxu1 %vm1572_vm0, %v1571_v1 }
  0x57   : > { %1372 = vmatmul.mubr.bf16.gmra.mrb[24].mxu0 %v507_v62  ;;  %1412 = vmatmul.mubr.bf16.gmra.mrb[24].mxu1 %v517_v0 }
  0x58   : > { %1375 = vmatprep.mubr.msk.bf16.mxu0 %vm1572_vm0, %v1571_v1  ;;  %1415 = vmatprep.mubr.msk.bf16.mxu1 %vm1572_vm0, %v1571_v1 }
  0x5f   : > { %1376 = vmatmul.mubr.bf16.gmra.mrb[28].mxu0 %v508_v9  ;;  %1416 = vmatmul.mubr.bf16.gmra.mrb[28].mxu1 %v518_v10 }
  0x60   : > { %1379 = vmatprep.mubr.msk.bf16.mxu0 %vm1572_vm0, %v1571_v1  ;;  %1419 = vmatprep.mubr.msk.bf16.mxu1 %vm1572_vm0, %v1571_v1 }
  0x67   : > { %1380 = vmatmul.mubr.bf16.gmra.mrb[32].mxu0 %v1762_v7  ;;  %1420 = vmatmul.mubr.bf16.gmra.mrb[32].mxu1 %v519_v20 }
  0x68   : > { %1383 = vmatprep.mubr.msk.bf16.mxu0 %vm1572_vm0, %v1571_v1  ;;  %v1826_v1 = vld [vmem:[%s1989_s2] ss:$0 sm:$0xff] }
  0x6f   : > { %1384 = vmatmul.mubr.bf16.gmra.mrb[36].mxu0 %v1769_v16 }
  0xfa   : > { %v618_v13 = vpop.f32.mrb[0].mxu0  ;;  %v698_v14 = vpop.f32.mrb[0].mxu1 }
  0xfb   : > { %773 = vst.msk [vmem:[#allocation2] sm:$0xff] %vm772_vm1, %v618_v13  ;;  %v1349_v58 = vpop.f32.mrb[1].mxu0  ;;  %793 = vst.msk [vmem:[#allocation2 + $0xa0] sm:$0xff] %vm772_vm1, %v698_v14  ;;  %v1389_v15 = vpop.f32.mrb[1].mxu1 }
  0xfc   : > { %v621_v17 = vpop.f32.mrb[2].mxu0  ;;  %v701_v18 = vpop.f32.mrb[2].mxu1 }
  0xfd   : > { %774 = vst.msk [vmem:[#allocation2 + $0x8] sm:$0xff] %vm772_vm1, %v621_v17  ;;  %v1350_v7 = vpop.f32.mrb[3].mxu0  ;;  %794 = vst.msk [vmem:[#allocation2 + $0xa8] sm:$0xff] %vm772_vm1, %v701_v18  ;;  %v1390_v19 = vpop.f32.mrb[3].mxu1 }
 0x102   : > { %v929_v16 = vld [vmem:[#allocation2] sm:$0xff]  ;;  %v626_v22 = vpop.f32.mrb[4].mxu0  ;;  %v706_v23 = vpop.f32.mrb[4].mxu1 }
 0x103   : > { %v949_v21 = vld [vmem:[#allocation2 + $0xa0] sm:$0xff]  ;;  %v973_v24 = vadd.f32 %v1826_v1, %v929_v16  ;;  %775 = vst.msk [vmem:[#allocation2 + $0x10] sm:$0xff] %vm772_vm1, %v626_v22  ;;  %v1353_v26 = vpop.f32.mrb[5].mxu0  ;;  %795 = vst.msk [vmem:[#allocation2 + $0xb0] sm:$0xff] %vm772_vm1, %v706_v23  ;;  %v1393_v27 = vpop.f32.mrb[5].mxu1 }
 0x104   : > { %v993_v25 = vadd.f32 %v1826_v1, %v949_v21  ;;  %v930_v28 = vld [vmem:[#allocation2 + $0x8] sm:$0xff]  ;;  %v629_v30 = vpop.f32.mrb[6].mxu0  ;;  %v709_v31 = vpop.f32.mrb[6].mxu1 }
 0x105   : > { %v950_v29 = vld [vmem:[#allocation2 + $0xa8] sm:$0xff]  ;;  %1473 = vtanh.f32 %v973_v24  ;;  %v974_v32 = vadd.f32 %v1826_v1, %v930_v28  ;;  %776 = vst.msk [vmem:[#allocation2 + $0x18] sm:$0xff] %vm772_vm1, %v629_v30  ;;  %v1354_v34 = vpop.f32.mrb[7].mxu0  ;;  %796 = vst.msk [vmem:[#allocation2 + $0xb8] sm:$0xff] %vm772_vm1, %v709_v31  ;;  %v1394_v35 = vpop.f32.mrb[7].mxu1 }
 0x106   : > { %v994_v33 = vadd.f32 %v1826_v1, %v950_v29  ;;  %1475 = vtanh.f32 %v993_v25 }
 0x107   : > { %1477 = vtanh.f32 %v974_v32 }
 0x108   : > { %1479 = vtanh.f32 %v994_v33 }
 0x10a   : > { %v931_v36 = vld [vmem:[#allocation2 + $0x10] sm:$0xff]  ;;  %v634_v38 = vpop.f32.mrb[8].mxu0  ;;  %v714_v39 = vpop.f32.mrb[8].mxu1 }
 0x10b   : > { %v951_v37 = vld [vmem:[#allocation2 + $0xb0] sm:$0xff]  ;;  %v975_v40 = vadd.f32 %v1826_v1, %v931_v36  ;;  %777 = vst.msk [vmem:[#allocation2 + $0x20] sm:$0xff] %vm772_vm1, %v634_v38  ;;  %v1357_v42 = vpop.f32.mrb[9].mxu0  ;;  %797 = vst.msk [vmem:[#allocation2 + $0xc0] sm:$0xff] %vm772_vm1, %v714_v39  ;;  %v1397_v43 = vpop.f32.mrb[9].mxu1 }
 0x10c   : > { %v995_v41 = vadd.f32 %v1826_v1, %v951_v37  ;;  %v932_v44 = vld [vmem:[#allocation2 + $0x18] sm:$0xff]  ;;  %v637_v46 = vpop.f32.mrb[10].mxu0  ;;  %v717_v47 = vpop.f32.mrb[10].mxu1 }
 0x10d   : > { %v952_v45 = vld [vmem:[#allocation2 + $0xb8] sm:$0xff]  ;;  %1481 = vtanh.f32 %v975_v40  ;;  %v976_v48 = vadd.f32 %v1826_v1, %v932_v44  ;;  %778 = vst.msk [vmem:[#allocation2 + $0x28] sm:$0xff] %vm772_vm1, %v637_v46  ;;  %v1358_v50 = vpop.f32.mrb[11].mxu0  ;;  %798 = vst.msk [vmem:[#allocation2 + $0xc8] sm:$0xff] %vm772_vm1, %v717_v47  ;;  %v1398_v51 = vpop.f32.mrb[11].mxu1 }
 0x10e   : > { %v996_v49 = vadd.f32 %v1826_v1, %v952_v45  ;;  %1483 = vtanh.f32 %v995_v41 }
 0x10f   : > { %v1474_v52 = vpop.eup %1473  ;;  %1485 = vtanh.f32 %v976_v48 }
 0x110   : > { %v1476_v53 = vpop.eup %1475  ;;  %1048 = vst.msk [vmem:[%s1844_s30] sm:$0xff] %vm772_vm1, %v1474_v52  ;;  %1487 = vtanh.f32 %v996_v49 }
 0x111   : > { %v1478_v54 = vpop.eup %1477  ;;  %1068 = vst.msk [vmem:[%s1844_s30 + $0xa0] sm:$0xff] %vm772_vm1, %v1476_v53 }
 0x112   : > { %v1480_v55 = vpop.eup %1479  ;;  %1049 = vst.msk [vmem:[%s1844_s30 + $0x8] sm:$0xff] %vm772_vm1, %v1478_v54  ;;  %v933_v56 = vld [vmem:[#allocation2 + $0x20] sm:$0xff]  ;;  %v642_v59 = vpop.f32.mrb[12].mxu0 }
 0x113   : > { %v953_v57 = vld [vmem:[#allocation2 + $0xc0] sm:$0xff]  ;;  %v722_v60 = vpop.f32.mrb[12].mxu1  ;;  %1069 = vst.msk [vmem:[%s1844_s30 + $0xa8] sm:$0xff] %vm772_vm1, %v1480_v55  ;;  %v977_v61 = vadd.f32 %v1826_v1, %v933_v56  ;;  %779 = vst.msk [vmem:[#allocation2 + $0x30] sm:$0xff] %vm772_vm1, %v642_v59  ;;  %v1361_v63 = vpop.f32.mrb[13].mxu0 }
 0x114   : > { %v997_v62 = vadd.f32 %v1826_v1, %v953_v57  ;;  %799 = vst.msk [vmem:[#allocation2 + $0xd0] sm:$0xff] %vm772_vm1, %v722_v60  ;;  %v1401_v0 = vpop.f32.mrb[13].mxu1  ;;  %v934_v2 = vld [vmem:[#allocation2 + $0x28] sm:$0xff]  ;;  %v645_v4 = vpop.f32.mrb[14].mxu0 }
 0x115   : > { %v954_v3 = vld [vmem:[#allocation2 + $0xc8] sm:$0xff]  ;;  %v725_v5 = vpop.f32.mrb[14].mxu1  ;;  %1489 = vtanh.f32 %v977_v61  ;;  %v978_v12 = vadd.f32 %v1826_v1, %v934_v2  ;;  %780 = vst.msk [vmem:[#allocation2 + $0x38] sm:$0xff] %vm772_vm1, %v645_v4  ;;  %v1362_v8 = vpop.f32.mrb[15].mxu0 }
 0x116   : > { %v998_v6 = vadd.f32 %v1826_v1, %v954_v3  ;;  %800 = vst.msk [vmem:[#allocation2 + $0xd8] sm:$0xff] %vm772_vm1, %v725_v5  ;;  %v1402_v9 = vpop.f32.mrb[15].mxu1  ;;  %1491 = vtanh.f32 %v997_v62 }
 0x117   : > { %v1482_v10 = vpop.eup %1481  ;;  %1493 = vtanh.f32 %v978_v12 }
 0x118   : > { %v1484_v11 = vpop.eup %1483  ;;  %1050 = vst.msk [vmem:[%s1844_s30 + $0x10] sm:$0xff] %vm772_vm1, %v1482_v10  ;;  %1495 = vtanh.f32 %v998_v6 }
 0x119   : > { %v1486_v20 = vpop.eup %1485  ;;  %1070 = vst.msk [vmem:[%s1844_s30 + $0xb0] sm:$0xff] %vm772_vm1, %v1484_v11 }
 0x11a   : > { %v1488_v13 = vpop.eup %1487  ;;  %1051 = vst.msk [vmem:[%s1844_s30 + $0x18] sm:$0xff] %vm772_vm1, %v1486_v20  ;;  %v935_v14 = vld [vmem:[#allocation2 + $0x30] sm:$0xff]  ;;  %v650_v15 = vpop.f32.mrb[16].mxu0 }
 0x11b   : > { %v955_v58 = vld [vmem:[#allocation2 + $0xd0] sm:$0xff]  ;;  %v730_v17 = vpop.f32.mrb[16].mxu1  ;;  %1071 = vst.msk [vmem:[%s1844_s30 + $0xb8] sm:$0xff] %vm772_vm1, %v1488_v13  ;;  %v979_v18 = vadd.f32 %v1826_v1, %v935_v14  ;;  %781 = vst.msk [vmem:[#allocation2 + $0x40] sm:$0xff] %vm772_vm1, %v650_v15  ;;  %v1365_v19 = vpop.f32.mrb[17].mxu0 }
 0x11c   : > { %v999_v7 = vadd.f32 %v1826_v1, %v955_v58  ;;  %801 = vst.msk [vmem:[#allocation2 + $0xe0] sm:$0xff] %vm772_vm1, %v730_v17  ;;  %v1405_v16 = vpop.f32.mrb[17].mxu1  ;;  %v936_v21 = vld [vmem:[#allocation2 + $0x38] sm:$0xff]  ;;  %v653_v23 = vpop.f32.mrb[18].mxu0 }
 0x11d   : > { %v956_v22 = vld [vmem:[#allocation2 + $0xd8] sm:$0xff]  ;;  %v733_v24 = vpop.f32.mrb[18].mxu1  ;;  %1497 = vtanh.f32 %v979_v18  ;;  %v980_v25 = vadd.f32 %v1826_v1, %v936_v21  ;;  %782 = vst.msk [vmem:[#allocation2 + $0x48] sm:$0xff] %vm772_vm1, %v653_v23  ;;  %v1366_v27 = vpop.f32.mrb[19].mxu0 }
 0x11e   : > { %v1000_v26 = vadd.f32 %v1826_v1, %v956_v22  ;;  %802 = vst.msk [vmem:[#allocation2 + $0xe8] sm:$0xff] %vm772_vm1, %v733_v24  ;;  %v1406_v28 = vpop.f32.mrb[19].mxu1  ;;  %1499 = vtanh.f32 %v999_v7 }
 0x11f   : > { %v1490_v29 = vpop.eup %1489  ;;  %1501 = vtanh.f32 %v980_v25 }
 0x120   : > { %v1492_v30 = vpop.eup %1491  ;;  %1052 = vst.msk [vmem:[%s1844_s30 + $0x20] sm:$0xff] %vm772_vm1, %v1490_v29  ;;  %1503 = vtanh.f32 %v1000_v26 }
 0x121   : > { %v1494_v31 = vpop.eup %1493  ;;  %1072 = vst.msk [vmem:[%s1844_s30 + $0xc0] sm:$0xff] %vm772_vm1, %v1492_v30 }
 0x122   : > { %v1496_v32 = vpop.eup %1495  ;;  %1053 = vst.msk [vmem:[%s1844_s30 + $0x28] sm:$0xff] %vm772_vm1, %v1494_v31  ;;  %v937_v33 = vld [vmem:[#allocation2 + $0x40] sm:$0xff]  ;;  %v658_v35 = vpop.f32.mrb[20].mxu0 }
 0x123   : > { %v957_v34 = vld [vmem:[#allocation2 + $0xe0] sm:$0xff]  ;;  %v738_v36 = vpop.f32.mrb[20].mxu1  ;;  %1073 = vst.msk [vmem:[%s1844_s30 + $0xc8] sm:$0xff] %vm772_vm1, %v1496_v32  ;;  %v981_v37 = vadd.f32 %v1826_v1, %v937_v33  ;;  %783 = vst.msk [vmem:[#allocation2 + $0x50] sm:$0xff] %vm772_vm1, %v658_v35  ;;  %v1369_v39 = vpop.f32.mrb[21].mxu0 }
 0x124   : > { %v1001_v38 = vadd.f32 %v1826_v1, %v957_v34  ;;  %803 = vst.msk [vmem:[#allocation2 + $0xf0] sm:$0xff] %vm772_vm1, %v738_v36  ;;  %v1409_v40 = vpop.f32.mrb[21].mxu1  ;;  %v938_v41 = vld [vmem:[#allocation2 + $0x48] sm:$0xff]  ;;  %v661_v43 = vpop.f32.mrb[22].mxu0 }
 0x125   : > { %v958_v42 = vld [vmem:[#allocation2 + $0xe8] sm:$0xff]  ;;  %v741_v44 = vpop.f32.mrb[22].mxu1  ;;  %1505 = vtanh.f32 %v981_v37  ;;  %v982_v45 = vadd.f32 %v1826_v1, %v938_v41  ;;  %784 = vst.msk [vmem:[#allocation2 + $0x58] sm:$0xff] %vm772_vm1, %v661_v43  ;;  %v1370_v47 = vpop.f32.mrb[23].mxu0 }
 0x126   : > { %v1002_v46 = vadd.f32 %v1826_v1, %v958_v42  ;;  %804 = vst.msk [vmem:[#allocation2 + $0xf8] sm:$0xff] %vm772_vm1, %v741_v44  ;;  %v1410_v48 = vpop.f32.mrb[23].mxu1  ;;  %1507 = vtanh.f32 %v1001_v38 }
 0x127   : > { %v1498_v49 = vpop.eup %1497  ;;  %1509 = vtanh.f32 %v982_v45 }
 0x128   : > { %v1500_v50 = vpop.eup %1499  ;;  %1054 = vst.msk [vmem:[%s1844_s30 + $0x30] sm:$0xff] %vm772_vm1, %v1498_v49  ;;  %1511 = vtanh.f32 %v1002_v46 }
 0x129   : > { %v1502_v51 = vpop.eup %1501  ;;  %1074 = vst.msk [vmem:[%s1844_s30 + $0xd0] sm:$0xff] %vm772_vm1, %v1500_v50 }
 0x12a   : > { %v1504_v52 = vpop.eup %1503  ;;  %1055 = vst.msk [vmem:[%s1844_s30 + $0x38] sm:$0xff] %vm772_vm1, %v1502_v51  ;;  %v939_v53 = vld [vmem:[#allocation2 + $0x50] sm:$0xff]  ;;  %v666_v55 = vpop.f32.mrb[24].mxu0 }
 0x12b   : > { %v959_v54 = vld [vmem:[#allocation2 + $0xf0] sm:$0xff]  ;;  %v746_v56 = vpop.f32.mrb[24].mxu1  ;;  %1075 = vst.msk [vmem:[%s1844_s30 + $0xd8] sm:$0xff] %vm772_vm1, %v1504_v52  ;;  %v983_v57 = vadd.f32 %v1826_v1, %v939_v53  ;;  %785 = vst.msk [vmem:[#allocation2 + $0x60] sm:$0xff] %vm772_vm1, %v666_v55  ;;  %v1373_v60 = vpop.f32.mrb[25].mxu0 }
 0x12c   : > { %v1003_v59 = vadd.f32 %v1826_v1, %v959_v54  ;;  %805 = vst.msk [vmem:[#allocation2 + $0x100] sm:$0xff] %vm772_vm1, %v746_v56  ;;  %v1413_v61 = vpop.f32.mrb[25].mxu1  ;;  %v940_v62 = vld [vmem:[#allocation2 + $0x58] sm:$0xff]  ;;  %v669_v0 = vpop.f32.mrb[26].mxu0 }
 0x12d   : > { %v960_v63 = vld [vmem:[#allocation2 + $0xf8] sm:$0xff]  ;;  %v749_v2 = vpop.f32.mrb[26].mxu1  ;;  %1513 = vtanh.f32 %v983_v57  ;;  %v984_v3 = vadd.f32 %v1826_v1, %v940_v62  ;;  %786 = vst.msk [vmem:[#allocation2 + $0x68] sm:$0xff] %vm772_vm1, %v669_v0  ;;  %v1374_v5 = vpop.f32.mrb[27].mxu0 }
 0x12e   : > { %v1004_v4 = vadd.f32 %v1826_v1, %v960_v63  ;;  %806 = vst.msk [vmem:[#allocation2 + $0x108] sm:$0xff] %vm772_vm1, %v749_v2  ;;  %v1414_v12 = vpop.f32.mrb[27].mxu1  ;;  %1515 = vtanh.f32 %v1003_v59 }
 0x12f   : > { %v1506_v6 = vpop.eup %1505  ;;  %1517 = vtanh.f32 %v984_v3 }
 0x130   : > { %v1508_v8 = vpop.eup %1507  ;;  %1056 = vst.msk [vmem:[%s1844_s30 + $0x40] sm:$0xff] %vm772_vm1, %v1506_v6  ;;  %1519 = vtanh.f32 %v1004_v4 }
 0x131   : > { %v1510_v9 = vpop.eup %1509  ;;  %1076 = vst.msk [vmem:[%s1844_s30 + $0xe0] sm:$0xff] %vm772_vm1, %v1508_v8 }
 0x132   : > { %v1512_v10 = vpop.eup %1511  ;;  %1057 = vst.msk [vmem:[%s1844_s30 + $0x48] sm:$0xff] %vm772_vm1, %v1510_v9  ;;  %v941_v11 = vld [vmem:[#allocation2 + $0x60] sm:$0xff]  ;;  %v674_v13 = vpop.f32.mrb[28].mxu0 }
 0x133   : > { %v961_v20 = vld [vmem:[#allocation2 + $0x100] sm:$0xff]  ;;  %v754_v14 = vpop.f32.mrb[28].mxu1  ;;  %1077 = vst.msk [vmem:[%s1844_s30 + $0xe8] sm:$0xff] %vm772_vm1, %v1512_v10  ;;  %v985_v58 = vadd.f32 %v1826_v1, %v941_v11  ;;  %787 = vst.msk [vmem:[#allocation2 + $0x70] sm:$0xff] %vm772_vm1, %v674_v13  ;;  %v1377_v17 = vpop.f32.mrb[29].mxu0 }
 0x134   : > { %v1005_v15 = vadd.f32 %v1826_v1, %v961_v20  ;;  %807 = vst.msk [vmem:[#allocation2 + $0x110] sm:$0xff] %vm772_vm1, %v754_v14  ;;  %v1417_v18 = vpop.f32.mrb[29].mxu1  ;;  %v942_v7 = vld [vmem:[#allocation2 + $0x68] sm:$0xff]  ;;  %v677_v16 = vpop.f32.mrb[30].mxu0 }
 0x135   : > { %v962_v19 = vld [vmem:[#allocation2 + $0x108] sm:$0xff]  ;;  %v757_v21 = vpop.f32.mrb[30].mxu1  ;;  %1521 = vtanh.f32 %v985_v58  ;;  %v986_v22 = vadd.f32 %v1826_v1, %v942_v7  ;;  %788 = vst.msk [vmem:[#allocation2 + $0x78] sm:$0xff] %vm772_vm1, %v677_v16  ;;  %v1378_v24 = vpop.f32.mrb[31].mxu0 }
 0x136   : > { %v1006_v23 = vadd.f32 %v1826_v1, %v962_v19  ;;  %808 = vst.msk [vmem:[#allocation2 + $0x118] sm:$0xff] %vm772_vm1, %v757_v21  ;;  %v1418_v25 = vpop.f32.mrb[31].mxu1  ;;  %1523 = vtanh.f32 %v1005_v15 }
 0x137   : > { %v1514_v26 = vpop.eup %1513  ;;  %1525 = vtanh.f32 %v986_v22 }
 0x138   : > { %v1516_v27 = vpop.eup %1515  ;;  %1058 = vst.msk [vmem:[%s1844_s30 + $0x50] sm:$0xff] %vm772_vm1, %v1514_v26  ;;  %1527 = vtanh.f32 %v1006_v23 }
 0x139   : > { %v1518_v28 = vpop.eup %1517  ;;  %1078 = vst.msk [vmem:[%s1844_s30 + $0xf0] sm:$0xff] %vm772_vm1, %v1516_v27 }
 0x13a   : > { %v1520_v29 = vpop.eup %1519  ;;  %1059 = vst.msk [vmem:[%s1844_s30 + $0x58] sm:$0xff] %vm772_vm1, %v1518_v28  ;;  %v943_v30 = vld [vmem:[#allocation2 + $0x70] sm:$0xff]  ;;  %v682_v32 = vpop.f32.mrb[32].mxu0 }
 0x13b   : > { %v963_v31 = vld [vmem:[#allocation2 + $0x110] sm:$0xff]  ;;  %v762_v33 = vpop.f32.mrb[32].mxu1  ;;  %1079 = vst.msk [vmem:[%s1844_s30 + $0xf8] sm:$0xff] %vm772_vm1, %v1520_v29  ;;  %v987_v34 = vadd.f32 %v1826_v1, %v943_v30  ;;  %789 = vst.msk [vmem:[#allocation2 + $0x80] sm:$0xff] %vm772_vm1, %v682_v32  ;;  %v1381_v36 = vpop.f32.mrb[33].mxu0 }
 0x13c   : > { %v1007_v35 = vadd.f32 %v1826_v1, %v963_v31  ;;  %809 = vst.msk [vmem:[#allocation2 + $0x120] sm:$0xff] %vm772_vm1, %v762_v33  ;;  %v1421_v37 = vpop.f32.mrb[33].mxu1  ;;  %v944_v38 = vld [vmem:[#allocation2 + $0x78] sm:$0xff]  ;;  %v685_v40 = vpop.f32.mrb[34].mxu0 }
 0x13d   : > { %v964_v39 = vld [vmem:[#allocation2 + $0x118] sm:$0xff]  ;;  %v765_v41 = vpop.f32.mrb[34].mxu1  ;;  %1529 = vtanh.f32 %v987_v34  ;;  %v988_v42 = vadd.f32 %v1826_v1, %v944_v38  ;;  %790 = vst.msk [vmem:[#allocation2 + $0x88] sm:$0xff] %vm772_vm1, %v685_v40  ;;  %v1382_v44 = vpop.f32.mrb[35].mxu0 }
 0x13e   : > { %v1008_v43 = vadd.f32 %v1826_v1, %v964_v39  ;;  %v1422_v45 = vpop.f32.mrb[35].mxu1  ;;  %1531 = vtanh.f32 %v1007_v35 }
 0x13f   : > { %v1522_v46 = vpop.eup %1521  ;;  %1533 = vtanh.f32 %v988_v42 }
 0x140   : > { %v1524_v47 = vpop.eup %1523  ;;  %1060 = vst.msk [vmem:[%s1844_s30 + $0x60] sm:$0xff] %vm772_vm1, %v1522_v46  ;;  %1535 = vtanh.f32 %v1008_v43 }
 0x141   : > { %v1526_v48 = vpop.eup %1525  ;;  %1080 = vst.msk [vmem:[%s1844_s30 + $0x100] sm:$0xff] %vm772_vm1, %v1524_v47 }
 0x142   : > { %v1528_v49 = vpop.eup %1527  ;;  %1061 = vst.msk [vmem:[%s1844_s30 + $0x68] sm:$0xff] %vm772_vm1, %v1526_v48  ;;  %v945_v50 = vld [vmem:[#allocation2 + $0x80] sm:$0xff]  ;;  %v690_v52 = vpop.f32.mrb[36].mxu0 }
 0x143   : > { %v965_v51 = vld [vmem:[#allocation2 + $0x120] sm:$0xff]  ;;  %1081 = vst.msk [vmem:[%s1844_s30 + $0x108] sm:$0xff] %vm772_vm1, %v1528_v49  ;;  %v989_v53 = vadd.f32 %v1826_v1, %v945_v50  ;;  %791 = vst.msk [vmem:[#allocation2 + $0x90] sm:$0xff] %vm772_vm1, %v690_v52  ;;  %v1385_v55 = vpop.f32.mrb[37].mxu0 }
 0x144   : > { %v1009_v54 = vadd.f32 %v1826_v1, %v965_v51  ;;  %v946_v56 = vld [vmem:[#allocation2 + $0x88] sm:$0xff]  ;;  %v693_v57 = vpop.f32.mrb[38].mxu0 }
 0x145   : > { %1537 = vtanh.f32 %v989_v53  ;;  %v990_v59 = vadd.f32 %v1826_v1, %v946_v56  ;;  %792 = vst.msk [vmem:[#allocation2 + $0x98] sm:$0xff] %vm772_vm1, %v693_v57  ;;  %v1386_v60 = vpop.f32.mrb[39].mxu0 }
 0x146   : > { %1539 = vtanh.f32 %v1009_v54 }
 0x147   : > { %v1530_v61 = vpop.eup %1529  ;;  %1541 = vtanh.f32 %v990_v59 }
 0x148   : > { %v1532_v62 = vpop.eup %1531  ;;  %1062 = vst.msk [vmem:[%s1844_s30 + $0x70] sm:$0xff] %vm772_vm1, %v1530_v61 }
 0x149   : > { %v1534_v63 = vpop.eup %1533  ;;  %1082 = vst.msk [vmem:[%s1844_s30 + $0x110] sm:$0xff] %vm772_vm1, %v1532_v62 }
 0x14a   : > { %v1536_v0 = vpop.eup %1535  ;;  %1063 = vst.msk [vmem:[%s1844_s30 + $0x78] sm:$0xff] %vm772_vm1, %v1534_v63  ;;  %v947_v2 = vld [vmem:[#allocation2 + $0x90] sm:$0xff] }
 0x14b   : > { %1083 = vst.msk [vmem:[%s1844_s30 + $0x118] sm:$0xff] %vm772_vm1, %v1536_v0  ;;  %v991_v3 = vadd.f32 %v1826_v1, %v947_v2 }
 0x14c   : > { %v948_v4 = vld [vmem:[#allocation2 + $0x98] sm:$0xff] }
 0x14d   : > { %1543 = vtanh.f32 %v991_v3  ;;  %v992_v5 = vadd.f32 %v1826_v1, %v948_v4 }
 0x14f   : > { %v1538_v12 = vpop.eup %1537  ;;  %1545 = vtanh.f32 %v992_v5 }
 0x150   : > { %v1540_v6 = vpop.eup %1539  ;;  %1064 = vst.msk [vmem:[%s1844_s30 + $0x80] sm:$0xff] %vm772_vm1, %v1538_v12 }
 0x151   : > { %v1542_v8 = vpop.eup %1541  ;;  %1084 = vst.msk [vmem:[%s1844_s30 + $0x120] sm:$0xff] %vm772_vm1, %v1540_v6 }
 0x152   : > { %1065 = vst.msk [vmem:[%s1844_s30 + $0x88] sm:$0xff] %vm772_vm1, %v1542_v8 }
 0x157   : > { %v1544_v9 = vpop.eup %1543 }
 0x158   : > { %1066 = vst.msk [vmem:[%s1844_s30 + $0x90] sm:$0xff] %vm772_vm1, %v1544_v9 }
 0x159   : > { %v1546_v10 = vpop.eup %1545 }
 0x15a   : > { %1067 = vst.msk [vmem:[%s1844_s30 + $0x98] sm:$0xff] %vm772_vm1, %v1546_v10 }
 0x15b PF: > { %s15_s20 = sadd.s32 1, %s1569_s20   ;;  %s1993_s18 = smov %s1565_s19 }
 0x15c   : > { %p12_p5 = scmp.ge.s32.totalorder %s15_s20, 4   ;;  %s1994_s19 = smov %s1996_s21 }
 0x15e   :  { %14 = sbr.rel (!%p12_p5) target bundleno = 2 (0x2), region = 91 }

</bundles_post_ra>
